<compile_context>
chip_gen: v7x
topology: tpu7x:2x2x1
jax: 0.10.0
libtpu: 0.0.40
codegen_flags: <defaults>
</compile_context>

<pallas_src>
import functools

import jax
import jax.numpy as jnp
from jax.experimental import pallas as pl
from jax.experimental.pallas import tpu as pltpu


# ----------------------------------------------------------------------------
# The single fused kernel: all GRU layers (input projection + bidirectional
# recurrence) + lin1/lin2 + both bmm + sigmoid.
# PyTorch GRU cell (gate order r, z, n):
#   r = sigmoid(gi_r + gh_r); z = sigmoid(gi_z + gh_z)
#   n = tanh(gi_n + r * gh_n); h' = (1 - z) * n + z * h
# ----------------------------------------------------------------------------
def fused_forward_kernel(sent_ref, desc_ref, *refs, num_layers, hidden):
    out_ref = refs[-1]
    w_refs = refs[:-1]
    H = hidden
    B, T, _ = sent_ref.shape

    def gru_cell(gi, gh, h):
        r = jax.nn.sigmoid(gi[:, :H] + gh[:, :H])
        z = jax.nn.sigmoid(gi[:, H:2 * H] + gh[:, H:2 * H])
        n = jnp.tanh(gi[:, 2 * H:] + r * gh[:, 2 * H:])
        return (1.0 - z) * n + z * h

    x = sent_ref[...]                                      # (B, T, D_in)
    sent_feat = None
    for l in range(num_layers):
        w_ih, b_ih, w_hh, b_hh = (r[...] for r in w_refs[4 * l:4 * l + 4])
        d_in = x.shape[-1]

        # Hoisted, time-invariant input projection for BOTH directions: one MXU pass.
        gi = jnp.dot(x.reshape(B * T, d_in), w_ih,
                     preferred_element_type=jnp.float32) + b_ih       # (B*T, 6H)
        gi = gi.reshape(B, T, 6 * H)

        hf = jnp.zeros((B, H), jnp.float32)
        hb = jnp.zeros((B, H), jnp.float32)
        outs_f = [None] * T
        outs_b = [None] * T
        for s in range(T):                                  # fully unrolled time loop
            tb = T - 1 - s
            gi_f = gi[:, s, :3 * H]                         # forward gates @ time s
            gi_b = gi[:, tb, 3 * H:]                        # backward gates @ time T-1-s
            h_cat = jnp.concatenate([hf, hb], axis=1)       # (B, 2H)
            # Both directions' recurrent matmuls merged via block-diagonal W_hh.
            gh = jnp.dot(h_cat, w_hh,
                         preferred_element_type=jnp.float32) + b_hh   # (B, 6H)
            hf = gru_cell(gi_f, gh[:, :3 * H], hf)
            hb = gru_cell(gi_b, gh[:, 3 * H:], hb)
            outs_f[s] = hf
            outs_b[tb] = hb

        if l < num_layers - 1:
            # next layer input = [fwd | bwd] per time step (torch bidirectional layout)
            x = jnp.stack([jnp.concatenate([outs_f[t], outs_b[t]], axis=-1)
                           for t in range(T)], axis=1)      # (B, T, 2H)
        else:
            # .view(T, B, 2, H).sum(-2) == fwd + bwd ; batch-major == permute(1,0,2)
            sent_feat = jnp.stack([outs_f[t] + outs_b[t]
                                   for t in range(T)], axis=1)        # (B, T, H)

    # Tail: lin1/lin2 as one (D, 2H) matmul (dropout identity in eval mode),
    # then both bmm + sigmoid heads, emitted as one output slab.
    w12 = w_refs[4 * num_layers][...]
    b12 = w_refs[4 * num_layers + 1][...]
    d = jnp.dot(desc_ref[...], w12, preferred_element_type=jnp.float32) + b12  # (B, 2H)
    d1 = d[:, :H]
    d2 = d[:, H:]
    s1 = jnp.sum(sent_feat * d1[:, None, :], axis=-1)       # (B, T) == bmm(...).squeeze
    s2 = jnp.sum(sent_feat * d2[:, None, :], axis=-1)
    out_ref[0] = jax.nn.sigmoid(s1).astype(out_ref.dtype)
    out_ref[1] = jax.nn.sigmoid(s2).astype(out_ref.dtype)


def fused_forward(sentences_encode, descriptor_encode, params):
    layers = params["layers"]
    num_layers = len(layers)
    B, T, _ = sentences_encode.shape
    H = layers[0]["w_hh"].shape[1] // 6

    flat_weights = []
    for lp in layers:
        flat_weights += [lp["w_ih"], lp["b_ih"], lp["w_hh"], lp["b_hh"]]
    flat_weights += [params["w12"], params["b12"]]

    vmem = pl.BlockSpec(memory_space=pltpu.MemorySpace.VMEM)
    kernel = functools.partial(fused_forward_kernel, num_layers=num_layers, hidden=H)
    return pl.pallas_call(
        kernel,
        out_shape=jax.ShapeDtypeStruct((2, B, T), jnp.float32),
        in_specs=[vmem] * (2 + len(flat_weights)),
        out_specs=vmem,
    )(sentences_encode, descriptor_encode, *flat_weights)


# ----------------------------------------------------------------------------
# One-time parameter preparation (transposes / gate concats / block-diag W_hh).
# ----------------------------------------------------------------------------
def prepare_params(gru_params, lin1, lin2):
    layers = []
    for p in gru_params:
        H = p["w_hh_f"].shape[1]
        w_hh = jnp.zeros((2 * H, 6 * H), jnp.float32)
        w_hh = w_hh.at[:H, :3 * H].set(p["w_hh_f"].T)       # forward block
        w_hh = w_hh.at[H:, 3 * H:].set(p["w_hh_b"].T)       # backward block
        layers.append(dict(
            # (D_in, 6H): columns = [r_f, z_f, n_f, r_b, z_b, n_b]
            w_ih=jnp.concatenate([p["w_ih_f"].T, p["w_ih_b"].T], axis=1),
            b_ih=jnp.concatenate([p["b_ih_f"], p["b_ih_b"]])[None],      # (1, 6H)
            w_hh=w_hh,                                                    # (2H, 6H)
            b_hh=jnp.concatenate([p["b_hh_f"], p["b_hh_b"]])[None],      # (1, 6H)
        ))
    return dict(
        layers=layers,
        w12=jnp.concatenate([lin1[0].T, lin2[0].T], axis=1),             # (D, 2H)
        b12=jnp.concatenate([lin1[1], lin2[1]])[None],                   # (1, 2H)
    )


# ----------------------------------------------------------------------------
# Full forward (post-BERT part of Model.forward), jitted. One pallas_call total.
# ----------------------------------------------------------------------------
@jax.jit
def model_forward(sentences_encode, descriptor_encode, params):
    out = fused_forward(sentences_encode, descriptor_encode, params)    # (2, B, NS)
    start = out[0][..., None]                                           # (B, NS, 1)
    end = out[1][..., None]
    return start, end


# ----------------------------------------------------------------------------
# Pure-JAX reference (mirrors torch.nn.GRU / Linear / bmm / sigmoid) for checking.
# ----------------------------------------------------------------------------
def reference_forward(sentences_encode, descriptor_encode, gru_params, lin1, lin2):
    H = gru_params[0]["w_hh_f"].shape[1]
    x = jnp.transpose(sentences_encode, (1, 0, 2))          # (T, B, D) time-major
    T, B, _ = x.shape

    def run_dir(x_seq, w_ih, w_hh, b_ih, b_hh):
        h = jnp.zeros((B, H), jnp.float32)
        outs = []
        for t in range(T):
            gi = x_seq[t] @ w_ih.T + b_ih
            gh = h @ w_hh.T + b_hh
            r = jax.nn.sigmoid(gi[:, :H] + gh[:, :H])
            z = jax.nn.sigmoid(gi[:, H:2 * H] + gh[:, H:2 * H])
            n = jnp.tanh(gi[:, 2 * H:] + r * gh[:, 2 * H:])
            h = (1.0 - z) * n + z * h
            outs.append(h)
        return jnp.stack(outs, axis=0)

    out_f = out_b = None
    for p in gru_params:
        out_f = run_dir(x, p["w_ih_f"], p["w_hh_f"], p["b_ih_f"], p["b_hh_f"])
        out_b = run_dir(x[::-1], p["w_ih_b"], p["w_hh_b"], p["b_ih_b"], p["b_hh_b"])[::-1]
        x = jnp.concatenate([out_f, out_b], axis=-1)
    sent = jnp.transpose(out_f + out_b, (1, 0, 2))          # (B, T, H)
    d1 = descriptor_encode @ lin1[0].T + lin1[1]
    d2 = descriptor_encode @ lin2[0].T + lin2[1]
    start = jax.nn.sigmoid(jnp.einsum("bth,bh->bt", sent, d1))[..., None]
    end = jax.nn.sigmoid(jnp.einsum("bth,bh->bt", sent, d2))[..., None]
    return start, end


if __name__ == "__main__":
    B = 2            # batch_size
    NS = 8           # len(sentences) -> GRU sequence length
    D_BERT = 768     # bert-base-chinese hidden_size
    H = 32           # hidden_states
    NUM_LAYERS = 2   # num_layers

    keys = iter(jax.random.split(jax.random.PRNGKey(0), 64))

    # TODO(synk): AutoModel('bert-base-chinese') + tokenizer have no Pallas equivalent;
    # their pooler_output is replaced by deterministic synthetic features of same shape.
    sentences_encode = jax.random.normal(next(keys), (B, NS, D_BERT), jnp.float32)
    descriptor_encode = jax.random.normal(next(keys), (B, D_BERT), jnp.float32)

    def init(shape, k, fan):
        bound = 1.0 / jnp.sqrt(fan)
        return jax.random.uniform(k, shape, jnp.float32, -bound, bound)

    # GRU parameters in PyTorch layout: weight_ih (3H, D_in), weight_hh (3H, H), biases (3H,)
    gru_params = []
    in_dim = D_BERT
    for _ in range(NUM_LAYERS):
        p = {}
        for suf in ("f", "b"):
            p[f"w_ih_{suf}"] = init((3 * H, in_dim), next(keys), H)
            p[f"w_hh_{suf}"] = init((3 * H, H), next(keys), H)
            p[f"b_ih_{suf}"] = init((3 * H,), next(keys), H)
            p[f"b_hh_{suf}"] = init((3 * H,), next(keys), H)
        gru_params.append(p)
        in_dim = 2 * H

    lin1 = (init((H, D_BERT), next(keys), D_BERT), init((H,), next(keys), D_BERT))
    lin2 = (init((H, D_BERT), next(keys), D_BERT), init((H,), next(keys), D_BERT))

    params = prepare_params(gru_params, lin1, lin2)

    start, end = model_forward(sentences_encode, descriptor_encode, params)
    jax.block_until_ready((start, end))
    assert start.shape == (B, NS, 1) and end.shape == (B, NS, 1)

    # Numerical self-check against the pure-JAX reference of the torch module.
    ref_start, ref_end = reference_forward(sentences_encode, descriptor_encode,
                                           gru_params, lin1, lin2)
    err = max(float(jnp.max(jnp.abs(start - ref_start))),
              float(jnp.max(jnp.abs(end - ref_end))))
    assert err < 2e-3, f"numerical mismatch vs reference: {err}"

    print("KERNEL_OK")
</pallas_src>

<mosaic_0001>
module attributes {stable_mosaic.version = 11 : i64} {
  func.func @fused_forward_kernel(%arg0: memref<2x8x768xf32, #tpu.memory_space<vmem>>, %arg1: memref<2x768xf32, #tpu.memory_space<vmem>>, %arg2: memref<768x192xf32, #tpu.memory_space<vmem>>, %arg3: memref<1x192xf32, #tpu.memory_space<vmem>>, %arg4: memref<64x192xf32, #tpu.memory_space<vmem>>, %arg5: memref<1x192xf32, #tpu.memory_space<vmem>>, %arg6: memref<64x192xf32, #tpu.memory_space<vmem>>, %arg7: memref<1x192xf32, #tpu.memory_space<vmem>>, %arg8: memref<64x192xf32, #tpu.memory_space<vmem>>, %arg9: memref<1x192xf32, #tpu.memory_space<vmem>>, %arg10: memref<768x64xf32, #tpu.memory_space<vmem>>, %arg11: memref<1x64xf32, #tpu.memory_space<vmem>>, %arg12: memref<2x2x8xf32, #tpu.memory_space<vmem>>) attributes {dimension_semantics = [], scalar_prefetch = 0 : i64, scratch_operands = 0 : i64, tpu.core_type = #tpu.core_type<tc>} {
    %c0 = arith.constant 0 : index
    %c0_0 = arith.constant 0 : index
    %c0_1 = arith.constant 0 : index
    %0 = vector.load %arg0[%c0, %c0_0, %c0_1] : memref<2x8x768xf32, #tpu.memory_space<vmem>>, vector<2x8x768xf32>
    %c0_2 = arith.constant 0 : index
    %c0_3 = arith.constant 0 : index
    %1 = vector.load %arg2[%c0_2, %c0_3] : memref<768x192xf32, #tpu.memory_space<vmem>>, vector<768x192xf32>
    %c0_4 = arith.constant 0 : index
    %c0_5 = arith.constant 0 : index
    %2 = vector.load %arg3[%c0_4, %c0_5] : memref<1x192xf32, #tpu.memory_space<vmem>>, vector<1x192xf32>
    %c0_6 = arith.constant 0 : index
    %c0_7 = arith.constant 0 : index
    %3 = vector.load %arg4[%c0_6, %c0_7] : memref<64x192xf32, #tpu.memory_space<vmem>>, vector<64x192xf32>
    %c0_8 = arith.constant 0 : index
    %c0_9 = arith.constant 0 : index
    %4 = vector.load %arg5[%c0_8, %c0_9] : memref<1x192xf32, #tpu.memory_space<vmem>>, vector<1x192xf32>
    %5 = vector.shape_cast %0 : vector<2x8x768xf32> to vector<16x768xf32>
    %cst = arith.constant dense<0.000000e+00> : vector<16x192xf32>
    %6 = tpu.matmul %5, %1, %cst {dimension_numbers = #tpu.dot_dimension_numbers<[1], [0], [0], [1], [0, 0, 1, 1], [], []>} : vector<16x768xf32>, vector<768x192xf32>, vector<16x192xf32> -> vector<16x192xf32>
    %7 = vector.broadcast %2 : vector<1x192xf32> to vector<16x192xf32>
    %8 = arith.addf %6, %7 : vector<16x192xf32>
    %9 = vector.shape_cast %8 : vector<16x192xf32> to vector<2x8x192xf32>
    %cst_10 = arith.constant 0.000000e+00 : f32
    %10 = vector.broadcast %cst_10 : f32 to vector<2x32xf32>
    %cst_11 = arith.constant 0.000000e+00 : f32
    %11 = vector.broadcast %cst_11 : f32 to vector<2x32xf32>
    %12 = vector.extract_strided_slice %9 {offsets = [0, 0, 0], sizes = [2, 1, 96], strides = [1, 1, 1]} : vector<2x8x192xf32> to vector<2x1x96xf32>
    %13 = vector.shape_cast %12 : vector<2x1x96xf32> to vector<2x96xf32>
    %14 = vector.extract_strided_slice %9 {offsets = [0, 7, 96], sizes = [2, 1, 96], strides = [1, 1, 1]} : vector<2x8x192xf32> to vector<2x1x96xf32>
    %15 = vector.shape_cast %14 : vector<2x1x96xf32> to vector<2x96xf32>
    %16 = tpu.concatenate %10, %11 in 1 : vector<2x32xf32>, vector<2x32xf32> -> vector<2x64xf32>
    %cst_12 = arith.constant dense<0.000000e+00> : vector<2x192xf32>
    %17 = tpu.matmul %16, %3, %cst_12 {dimension_numbers = #tpu.dot_dimension_numbers<[1], [0], [0], [1], [0, 0, 1, 1], [], []>} : vector<2x64xf32>, vector<64x192xf32>, vector<2x192xf32> -> vector<2x192xf32>
    %18 = vector.broadcast %4 : vector<1x192xf32> to vector<2x192xf32>
    %19 = arith.addf %17, %18 : vector<2x192xf32>
    %20 = vector.extract_strided_slice %19 {offsets = [0, 0], sizes = [2, 96], strides = [1, 1]} : vector<2x192xf32> to vector<2x96xf32>
    %21 = vector.extract_strided_slice %13 {offsets = [0, 0], sizes = [2, 32], strides = [1, 1]} : vector<2x96xf32> to vector<2x32xf32>
    %22 = vector.extract_strided_slice %20 {offsets = [0, 0], sizes = [2, 32], strides = [1, 1]} : vector<2x96xf32> to vector<2x32xf32>
    %23 = arith.addf %21, %22 : vector<2x32xf32>
    %24 = arith.negf %23 : vector<2x32xf32>
    %25 = math.exp %24 : vector<2x32xf32>
    %cst_13 = arith.constant 1.000000e+00 : f32
    %26 = vector.broadcast %cst_13 : f32 to vector<2x32xf32>
    %27 = arith.addf %26, %25 : vector<2x32xf32>
    %28 = arith.divf %26, %27 : vector<2x32xf32>
    %29 = vector.extract_strided_slice %13 {offsets = [0, 32], sizes = [2, 32], strides = [1, 1]} : vector<2x96xf32> to vector<2x32xf32>
    %30 = vector.extract_strided_slice %20 {offsets = [0, 32], sizes = [2, 32], strides = [1, 1]} : vector<2x96xf32> to vector<2x32xf32>
    %31 = arith.addf %29, %30 : vector<2x32xf32>
    %32 = arith.negf %31 : vector<2x32xf32>
    %33 = math.exp %32 : vector<2x32xf32>
    %cst_14 = arith.constant 1.000000e+00 : f32
    %34 = vector.broadcast %cst_14 : f32 to vector<2x32xf32>
    %35 = arith.addf %34, %33 : vector<2x32xf32>
    %36 = arith.divf %34, %35 : vector<2x32xf32>
    %37 = vector.extract_strided_slice %13 {offsets = [0, 64], sizes = [2, 32], strides = [1, 1]} : vector<2x96xf32> to vector<2x32xf32>
    %38 = vector.extract_strided_slice %20 {offsets = [0, 64], sizes = [2, 32], strides = [1, 1]} : vector<2x96xf32> to vector<2x32xf32>
    %39 = arith.mulf %28, %38 : vector<2x32xf32>
    %40 = arith.addf %37, %39 : vector<2x32xf32>
    %41 = math.tanh %40 : vector<2x32xf32>
    %cst_15 = arith.constant 1.000000e+00 : f32
    %42 = vector.broadcast %cst_15 : f32 to vector<2x32xf32>
    %43 = arith.subf %42, %36 : vector<2x32xf32>
    %44 = arith.mulf %43, %41 : vector<2x32xf32>
    %45 = arith.mulf %36, %10 : vector<2x32xf32>
    %46 = arith.addf %44, %45 : vector<2x32xf32>
    %47 = vector.extract_strided_slice %19 {offsets = [0, 96], sizes = [2, 96], strides = [1, 1]} : vector<2x192xf32> to vector<2x96xf32>
    %48 = vector.extract_strided_slice %15 {offsets = [0, 0], sizes = [2, 32], strides = [1, 1]} : vector<2x96xf32> to vector<2x32xf32>
    %49 = vector.extract_strided_slice %47 {offsets = [0, 0], sizes = [2, 32], strides = [1, 1]} : vector<2x96xf32> to vector<2x32xf32>
    %50 = arith.addf %48, %49 : vector<2x32xf32>
    %51 = arith.negf %50 : vector<2x32xf32>
    %52 = math.exp %51 : vector<2x32xf32>
    %cst_16 = arith.constant 1.000000e+00 : f32
    %53 = vector.broadcast %cst_16 : f32 to vector<2x32xf32>
    %54 = arith.addf %53, %52 : vector<2x32xf32>
    %55 = arith.divf %53, %54 : vector<2x32xf32>
    %56 = vector.extract_strided_slice %15 {offsets = [0, 32], sizes = [2, 32], strides = [1, 1]} : vector<2x96xf32> to vector<2x32xf32>
    %57 = vector.extract_strided_slice %47 {offsets = [0, 32], sizes = [2, 32], strides = [1, 1]} : vector<2x96xf32> to vector<2x32xf32>
    %58 = arith.addf %56, %57 : vector<2x32xf32>
    %59 = arith.negf %58 : vector<2x32xf32>
    %60 = math.exp %59 : vector<2x32xf32>
    %cst_17 = arith.constant 1.000000e+00 : f32
    %61 = vector.broadcast %cst_17 : f32 to vector<2x32xf32>
    %62 = arith.addf %61, %60 : vector<2x32xf32>
    %63 = arith.divf %61, %62 : vector<2x32xf32>
    %64 = vector.extract_strided_slice %15 {offsets = [0, 64], sizes = [2, 32], strides = [1, 1]} : vector<2x96xf32> to vector<2x32xf32>
    %65 = vector.extract_strided_slice %47 {offsets = [0, 64], sizes = [2, 32], strides = [1, 1]} : vector<2x96xf32> to vector<2x32xf32>
    %66 = arith.mulf %55, %65 : vector<2x32xf32>
    %67 = arith.addf %64, %66 : vector<2x32xf32>
    %68 = math.tanh %67 : vector<2x32xf32>
    %cst_18 = arith.constant 1.000000e+00 : f32
    %69 = vector.broadcast %cst_18 : f32 to vector<2x32xf32>
    %70 = arith.subf %69, %63 : vector<2x32xf32>
    %71 = arith.mulf %70, %68 : vector<2x32xf32>
    %72 = arith.mulf %63, %11 : vector<2x32xf32>
    %73 = arith.addf %71, %72 : vector<2x32xf32>
    %74 = vector.extract_strided_slice %9 {offsets = [0, 1, 0], sizes = [2, 1, 96], strides = [1, 1, 1]} : vector<2x8x192xf32> to vector<2x1x96xf32>
    %75 = vector.shape_cast %74 : vector<2x1x96xf32> to vector<2x96xf32>
    %76 = vector.extract_strided_slice %9 {offsets = [0, 6, 96], sizes = [2, 1, 96], strides = [1, 1, 1]} : vector<2x8x192xf32> to vector<2x1x96xf32>
    %77 = vector.shape_cast %76 : vector<2x1x96xf32> to vector<2x96xf32>
    %78 = tpu.concatenate %46, %73 in 1 : vector<2x32xf32>, vector<2x32xf32> -> vector<2x64xf32>
    %cst_19 = arith.constant dense<0.000000e+00> : vector<2x192xf32>
    %79 = tpu.matmul %78, %3, %cst_19 {dimension_numbers = #tpu.dot_dimension_numbers<[1], [0], [0], [1], [0, 0, 1, 1], [], []>} : vector<2x64xf32>, vector<64x192xf32>, vector<2x192xf32> -> vector<2x192xf32>
    %80 = vector.broadcast %4 : vector<1x192xf32> to vector<2x192xf32>
    %81 = arith.addf %79, %80 : vector<2x192xf32>
    %82 = vector.extract_strided_slice %81 {offsets = [0, 0], sizes = [2, 96], strides = [1, 1]} : vector<2x192xf32> to vector<2x96xf32>
    %83 = vector.extract_strided_slice %75 {offsets = [0, 0], sizes = [2, 32], strides = [1, 1]} : vector<2x96xf32> to vector<2x32xf32>
    %84 = vector.extract_strided_slice %82 {offsets = [0, 0], sizes = [2, 32], strides = [1, 1]} : vector<2x96xf32> to vector<2x32xf32>
    %85 = arith.addf %83, %84 : vector<2x32xf32>
    %86 = arith.negf %85 : vector<2x32xf32>
    %87 = math.exp %86 : vector<2x32xf32>
    %cst_20 = arith.constant 1.000000e+00 : f32
    %88 = vector.broadcast %cst_20 : f32 to vector<2x32xf32>
    %89 = arith.addf %88, %87 : vector<2x32xf32>
    %90 = arith.divf %88, %89 : vector<2x32xf32>
    %91 = vector.extract_strided_slice %75 {offsets = [0, 32], sizes = [2, 32], strides = [1, 1]} : vector<2x96xf32> to vector<2x32xf32>
    %92 = vector.extract_strided_slice %82 {offsets = [0, 32], sizes = [2, 32], strides = [1, 1]} : vector<2x96xf32> to vector<2x32xf32>
    %93 = arith.addf %91, %92 : vector<2x32xf32>
    %94 = arith.negf %93 : vector<2x32xf32>
    %95 = math.exp %94 : vector<2x32xf32>
    %cst_21 = arith.constant 1.000000e+00 : f32
    %96 = vector.broadcast %cst_21 : f32 to vector<2x32xf32>
    %97 = arith.addf %96, %95 : vector<2x32xf32>
    %98 = arith.divf %96, %97 : vector<2x32xf32>
    %99 = vector.extract_strided_slice %75 {offsets = [0, 64], sizes = [2, 32], strides = [1, 1]} : vector<2x96xf32> to vector<2x32xf32>
    %100 = vector.extract_strided_slice %82 {offsets = [0, 64], sizes = [2, 32], strides = [1, 1]} : vector<2x96xf32> to vector<2x32xf32>
    %101 = arith.mulf %90, %100 : vector<2x32xf32>
    %102 = arith.addf %99, %101 : vector<2x32xf32>
    %103 = math.tanh %102 : vector<2x32xf32>
    %cst_22 = arith.constant 1.000000e+00 : f32
    %104 = vector.broadcast %cst_22 : f32 to vector<2x32xf32>
    %105 = arith.subf %104, %98 : vector<2x32xf32>
    %106 = arith.mulf %105, %103 : vector<2x32xf32>
    %107 = arith.mulf %98, %46 : vector<2x32xf32>
    %108 = arith.addf %106, %107 : vector<2x32xf32>
    %109 = vector.extract_strided_slice %81 {offsets = [0, 96], sizes = [2, 96], strides = [1, 1]} : vector<2x192xf32> to vector<2x96xf32>
    %110 = vector.extract_strided_slice %77 {offsets = [0, 0], sizes = [2, 32], strides = [1, 1]} : vector<2x96xf32> to vector<2x32xf32>
    %111 = vector.extract_strided_slice %109 {offsets = [0, 0], sizes = [2, 32], strides = [1, 1]} : vector<2x96xf32> to vector<2x32xf32>
    %112 = arith.addf %110, %111 : vector<2x32xf32>
    %113 = arith.negf %112 : vector<2x32xf32>
    %114 = math.exp %113 : vector<2x32xf32>
    %cst_23 = arith.constant 1.000000e+00 : f32
    %115 = vector.broadcast %cst_23 : f32 to vector<2x32xf32>
    %116 = arith.addf %115, %114 : vector<2x32xf32>
    %117 = arith.divf %115, %116 : vector<2x32xf32>
    %118 = vector.extract_strided_slice %77 {offsets = [0, 32], sizes = [2, 32], strides = [1, 1]} : vector<2x96xf32> to vector<2x32xf32>
    %119 = vector.extract_strided_slice %109 {offsets = [0, 32], sizes = [2, 32], strides = [1, 1]} : vector<2x96xf32> to vector<2x32xf32>
    %120 = arith.addf %118, %119 : vector<2x32xf32>
    %121 = arith.negf %120 : vector<2x32xf32>
    %122 = math.exp %121 : vector<2x32xf32>
    %cst_24 = arith.constant 1.000000e+00 : f32
    %123 = vector.broadcast %cst_24 : f32 to vector<2x32xf32>
    %124 = arith.addf %123, %122 : vector<2x32xf32>
    %125 = arith.divf %123, %124 : vector<2x32xf32>
    %126 = vector.extract_strided_slice %77 {offsets = [0, 64], sizes = [2, 32], strides = [1, 1]} : vector<2x96xf32> to vector<2x32xf32>
    %127 = vector.extract_strided_slice %109 {offsets = [0, 64], sizes = [2, 32], strides = [1, 1]} : vector<2x96xf32> to vector<2x32xf32>
    %128 = arith.mulf %117, %127 : vector<2x32xf32>
    %129 = arith.addf %126, %128 : vector<2x32xf32>
    %130 = math.tanh %129 : vector<2x32xf32>
    %cst_25 = arith.constant 1.000000e+00 : f32
    %131 = vector.broadcast %cst_25 : f32 to vector<2x32xf32>
    %132 = arith.subf %131, %125 : vector<2x32xf32>
    %133 = arith.mulf %132, %130 : vector<2x32xf32>
    %134 = arith.mulf %125, %73 : vector<2x32xf32>
    %135 = arith.addf %133, %134 : vector<2x32xf32>
    %136 = vector.extract_strided_slice %9 {offsets = [0, 2, 0], sizes = [2, 1, 96], strides = [1, 1, 1]} : vector<2x8x192xf32> to vector<2x1x96xf32>
    %137 = vector.shape_cast %136 : vector<2x1x96xf32> to vector<2x96xf32>
    %138 = vector.extract_strided_slice %9 {offsets = [0, 5, 96], sizes = [2, 1, 96], strides = [1, 1, 1]} : vector<2x8x192xf32> to vector<2x1x96xf32>
    %139 = vector.shape_cast %138 : vector<2x1x96xf32> to vector<2x96xf32>
    %140 = tpu.concatenate %108, %135 in 1 : vector<2x32xf32>, vector<2x32xf32> -> vector<2x64xf32>
    %cst_26 = arith.constant dense<0.000000e+00> : vector<2x192xf32>
    %141 = tpu.matmul %140, %3, %cst_26 {dimension_numbers = #tpu.dot_dimension_numbers<[1], [0], [0], [1], [0, 0, 1, 1], [], []>} : vector<2x64xf32>, vector<64x192xf32>, vector<2x192xf32> -> vector<2x192xf32>
    %142 = vector.broadcast %4 : vector<1x192xf32> to vector<2x192xf32>
    %143 = arith.addf %141, %142 : vector<2x192xf32>
    %144 = vector.extract_strided_slice %143 {offsets = [0, 0], sizes = [2, 96], strides = [1, 1]} : vector<2x192xf32> to vector<2x96xf32>
    %145 = vector.extract_strided_slice %137 {offsets = [0, 0], sizes = [2, 32], strides = [1, 1]} : vector<2x96xf32> to vector<2x32xf32>
    %146 = vector.extract_strided_slice %144 {offsets = [0, 0], sizes = [2, 32], strides = [1, 1]} : vector<2x96xf32> to vector<2x32xf32>
    %147 = arith.addf %145, %146 : vector<2x32xf32>
    %148 = arith.negf %147 : vector<2x32xf32>
    %149 = math.exp %148 : vector<2x32xf32>
    %cst_27 = arith.constant 1.000000e+00 : f32
    %150 = vector.broadcast %cst_27 : f32 to vector<2x32xf32>
    %151 = arith.addf %150, %149 : vector<2x32xf32>
    %152 = arith.divf %150, %151 : vector<2x32xf32>
    %153 = vector.extract_strided_slice %137 {offsets = [0, 32], sizes = [2, 32], strides = [1, 1]} : vector<2x96xf32> to vector<2x32xf32>
    %154 = vector.extract_strided_slice %144 {offsets = [0, 32], sizes = [2, 32], strides = [1, 1]} : vector<2x96xf32> to vector<2x32xf32>
    %155 = arith.addf %153, %154 : vector<2x32xf32>
    %156 = arith.negf %155 : vector<2x32xf32>
    %157 = math.exp %156 : vector<2x32xf32>
    %cst_28 = arith.constant 1.000000e+00 : f32
    %158 = vector.broadcast %cst_28 : f32 to vector<2x32xf32>
    %159 = arith.addf %158, %157 : vector<2x32xf32>
    %160 = arith.divf %158, %159 : vector<2x32xf32>
    %161 = vector.extract_strided_slice %137 {offsets = [0, 64], sizes = [2, 32], strides = [1, 1]} : vector<2x96xf32> to vector<2x32xf32>
    %162 = vector.extract_strided_slice %144 {offsets = [0, 64], sizes = [2, 32], strides = [1, 1]} : vector<2x96xf32> to vector<2x32xf32>
    %163 = arith.mulf %152, %162 : vector<2x32xf32>
    %164 = arith.addf %161, %163 : vector<2x32xf32>
    %165 = math.tanh %164 : vector<2x32xf32>
    %cst_29 = arith.constant 1.000000e+00 : f32
    %166 = vector.broadcast %cst_29 : f32 to vector<2x32xf32>
    %167 = arith.subf %166, %160 : vector<2x32xf32>
    %168 = arith.mulf %167, %165 : vector<2x32xf32>
    %169 = arith.mulf %160, %108 : vector<2x32xf32>
    %170 = arith.addf %168, %169 : vector<2x32xf32>
    %171 = vector.extract_strided_slice %143 {offsets = [0, 96], sizes = [2, 96], strides = [1, 1]} : vector<2x192xf32> to vector<2x96xf32>
    %172 = vector.extract_strided_slice %139 {offsets = [0, 0], sizes = [2, 32], strides = [1, 1]} : vector<2x96xf32> to vector<2x32xf32>
    %173 = vector.extract_strided_slice %171 {offsets = [0, 0], sizes = [2, 32], strides = [1, 1]} : vector<2x96xf32> to vector<2x32xf32>
    %174 = arith.addf %172, %173 : vector<2x32xf32>
    %175 = arith.negf %174 : vector<2x32xf32>
    %176 = math.exp %175 : vector<2x32xf32>
    %cst_30 = arith.constant 1.000000e+00 : f32
    %177 = vector.broadcast %cst_30 : f32 to vector<2x32xf32>
    %178 = arith.addf %177, %176 : vector<2x32xf32>
    %179 = arith.divf %177, %178 : vector<2x32xf32>
    %180 = vector.extract_strided_slice %139 {offsets = [0, 32], sizes = [2, 32], strides = [1, 1]} : vector<2x96xf32> to vector<2x32xf32>
    %181 = vector.extract_strided_slice %171 {offsets = [0, 32], sizes = [2, 32], strides = [1, 1]} : vector<2x96xf32> to vector<2x32xf32>
    %182 = arith.addf %180, %181 : vector<2x32xf32>
    %183 = arith.negf %182 : vector<2x32xf32>
    %184 = math.exp %183 : vector<2x32xf32>
    %cst_31 = arith.constant 1.000000e+00 : f32
    %185 = vector.broadcast %cst_31 : f32 to vector<2x32xf32>
    %186 = arith.addf %185, %184 : vector<2x32xf32>
    %187 = arith.divf %185, %186 : vector<2x32xf32>
    %188 = vector.extract_strided_slice %139 {offsets = [0, 64], sizes = [2, 32], strides = [1, 1]} : vector<2x96xf32> to vector<2x32xf32>
    %189 = vector.extract_strided_slice %171 {offsets = [0, 64], sizes = [2, 32], strides = [1, 1]} : vector<2x96xf32> to vector<2x32xf32>
    %190 = arith.mulf %179, %189 : vector<2x32xf32>
    %191 = arith.addf %188, %190 : vector<2x32xf32>
    %192 = math.tanh %191 : vector<2x32xf32>
    %cst_32 = arith.constant 1.000000e+00 : f32
    %193 = vector.broadcast %cst_32 : f32 to vector<2x32xf32>
    %194 = arith.subf %193, %187 : vector<2x32xf32>
    %195 = arith.mulf %194, %192 : vector<2x32xf32>
    %196 = arith.mulf %187, %135 : vector<2x32xf32>
    %197 = arith.addf %195, %196 : vector<2x32xf32>
    %198 = vector.extract_strided_slice %9 {offsets = [0, 3, 0], sizes = [2, 1, 96], strides = [1, 1, 1]} : vector<2x8x192xf32> to vector<2x1x96xf32>
    %199 = vector.shape_cast %198 : vector<2x1x96xf32> to vector<2x96xf32>
    %200 = vector.extract_strided_slice %9 {offsets = [0, 4, 96], sizes = [2, 1, 96], strides = [1, 1, 1]} : vector<2x8x192xf32> to vector<2x1x96xf32>
    %201 = vector.shape_cast %200 : vector<2x1x96xf32> to vector<2x96xf32>
    %202 = tpu.concatenate %170, %197 in 1 : vector<2x32xf32>, vector<2x32xf32> -> vector<2x64xf32>
    %cst_33 = arith.constant dense<0.000000e+00> : vector<2x192xf32>
    %203 = tpu.matmul %202, %3, %cst_33 {dimension_numbers = #tpu.dot_dimension_numbers<[1], [0], [0], [1], [0, 0, 1, 1], [], []>} : vector<2x64xf32>, vector<64x192xf32>, vector<2x192xf32> -> vector<2x192xf32>
    %204 = vector.broadcast %4 : vector<1x192xf32> to vector<2x192xf32>
    %205 = arith.addf %203, %204 : vector<2x192xf32>
    %206 = vector.extract_strided_slice %205 {offsets = [0, 0], sizes = [2, 96], strides = [1, 1]} : vector<2x192xf32> to vector<2x96xf32>
    %207 = vector.extract_strided_slice %199 {offsets = [0, 0], sizes = [2, 32], strides = [1, 1]} : vector<2x96xf32> to vector<2x32xf32>
    %208 = vector.extract_strided_slice %206 {offsets = [0, 0], sizes = [2, 32], strides = [1, 1]} : vector<2x96xf32> to vector<2x32xf32>
    %209 = arith.addf %207, %208 : vector<2x32xf32>
    %210 = arith.negf %209 : vector<2x32xf32>
    %211 = math.exp %210 : vector<2x32xf32>
    %cst_34 = arith.constant 1.000000e+00 : f32
    %212 = vector.broadcast %cst_34 : f32 to vector<2x32xf32>
    %213 = arith.addf %212, %211 : vector<2x32xf32>
    %214 = arith.divf %212, %213 : vector<2x32xf32>
    %215 = vector.extract_strided_slice %199 {offsets = [0, 32], sizes = [2, 32], strides = [1, 1]} : vector<2x96xf32> to vector<2x32xf32>
    %216 = vector.extract_strided_slice %206 {offsets = [0, 32], sizes = [2, 32], strides = [1, 1]} : vector<2x96xf32> to vector<2x32xf32>
    %217 = arith.addf %215, %216 : vector<2x32xf32>
    %218 = arith.negf %217 : vector<2x32xf32>
    %219 = math.exp %218 : vector<2x32xf32>
    %cst_35 = arith.constant 1.000000e+00 : f32
    %220 = vector.broadcast %cst_35 : f32 to vector<2x32xf32>
    %221 = arith.addf %220, %219 : vector<2x32xf32>
    %222 = arith.divf %220, %221 : vector<2x32xf32>
    %223 = vector.extract_strided_slice %199 {offsets = [0, 64], sizes = [2, 32], strides = [1, 1]} : vector<2x96xf32> to vector<2x32xf32>
    %224 = vector.extract_strided_slice %206 {offsets = [0, 64], sizes = [2, 32], strides = [1, 1]} : vector<2x96xf32> to vector<2x32xf32>
    %225 = arith.mulf %214, %224 : vector<2x32xf32>
    %226 = arith.addf %223, %225 : vector<2x32xf32>
    %227 = math.tanh %226 : vector<2x32xf32>
    %cst_36 = arith.constant 1.000000e+00 : f32
    %228 = vector.broadcast %cst_36 : f32 to vector<2x32xf32>
    %229 = arith.subf %228, %222 : vector<2x32xf32>
    %230 = arith.mulf %229, %227 : vector<2x32xf32>
    %231 = arith.mulf %222, %170 : vector<2x32xf32>
    %232 = arith.addf %230, %231 : vector<2x32xf32>
    %233 = vector.extract_strided_slice %205 {offsets = [0, 96], sizes = [2, 96], strides = [1, 1]} : vector<2x192xf32> to vector<2x96xf32>
    %234 = vector.extract_strided_slice %201 {offsets = [0, 0], sizes = [2, 32], strides = [1, 1]} : vector<2x96xf32> to vector<2x32xf32>
    %235 = vector.extract_strided_slice %233 {offsets = [0, 0], sizes = [2, 32], strides = [1, 1]} : vector<2x96xf32> to vector<2x32xf32>
    %236 = arith.addf %234, %235 : vector<2x32xf32>
    %237 = arith.negf %236 : vector<2x32xf32>
    %238 = math.exp %237 : vector<2x32xf32>
    %cst_37 = arith.constant 1.000000e+00 : f32
    %239 = vector.broadcast %cst_37 : f32 to vector<2x32xf32>
    %240 = arith.addf %239, %238 : vector<2x32xf32>
    %241 = arith.divf %239, %240 : vector<2x32xf32>
    %242 = vector.extract_strided_slice %201 {offsets = [0, 32], sizes = [2, 32], strides = [1, 1]} : vector<2x96xf32> to vector<2x32xf32>
    %243 = vector.extract_strided_slice %233 {offsets = [0, 32], sizes = [2, 32], strides = [1, 1]} : vector<2x96xf32> to vector<2x32xf32>
    %244 = arith.addf %242, %243 : vector<2x32xf32>
    %245 = arith.negf %244 : vector<2x32xf32>
    %246 = math.exp %245 : vector<2x32xf32>
    %cst_38 = arith.constant 1.000000e+00 : f32
    %247 = vector.broadcast %cst_38 : f32 to vector<2x32xf32>
    %248 = arith.addf %247, %246 : vector<2x32xf32>
    %249 = arith.divf %247, %248 : vector<2x32xf32>
    %250 = vector.extract_strided_slice %201 {offsets = [0, 64], sizes = [2, 32], strides = [1, 1]} : vector<2x96xf32> to vector<2x32xf32>
    %251 = vector.extract_strided_slice %233 {offsets = [0, 64], sizes = [2, 32], strides = [1, 1]} : vector<2x96xf32> to vector<2x32xf32>
    %252 = arith.mulf %241, %251 : vector<2x32xf32>
    %253 = arith.addf %250, %252 : vector<2x32xf32>
    %254 = math.tanh %253 : vector<2x32xf32>
    %cst_39 = arith.constant 1.000000e+00 : f32
    %255 = vector.broadcast %cst_39 : f32 to vector<2x32xf32>
    %256 = arith.subf %255, %249 : vector<2x32xf32>
    %257 = arith.mulf %256, %254 : vector<2x32xf32>
    %258 = arith.mulf %249, %197 : vector<2x32xf32>
    %259 = arith.addf %257, %258 : vector<2x32xf32>
    %260 = vector.extract_strided_slice %9 {offsets = [0, 4, 0], sizes = [2, 1, 96], strides = [1, 1, 1]} : vector<2x8x192xf32> to vector<2x1x96xf32>
    %261 = vector.shape_cast %260 : vector<2x1x96xf32> to vector<2x96xf32>
    %262 = vector.extract_strided_slice %9 {offsets = [0, 3, 96], sizes = [2, 1, 96], strides = [1, 1, 1]} : vector<2x8x192xf32> to vector<2x1x96xf32>
    %263 = vector.shape_cast %262 : vector<2x1x96xf32> to vector<2x96xf32>
    %264 = tpu.concatenate %232, %259 in 1 : vector<2x32xf32>, vector<2x32xf32> -> vector<2x64xf32>
    %cst_40 = arith.constant dense<0.000000e+00> : vector<2x192xf32>
    %265 = tpu.matmul %264, %3, %cst_40 {dimension_numbers = #tpu.dot_dimension_numbers<[1], [0], [0], [1], [0, 0, 1, 1], [], []>} : vector<2x64xf32>, vector<64x192xf32>, vector<2x192xf32> -> vector<2x192xf32>
    %266 = vector.broadcast %4 : vector<1x192xf32> to vector<2x192xf32>
    %267 = arith.addf %265, %266 : vector<2x192xf32>
    %268 = vector.extract_strided_slice %267 {offsets = [0, 0], sizes = [2, 96], strides = [1, 1]} : vector<2x192xf32> to vector<2x96xf32>
    %269 = vector.extract_strided_slice %261 {offsets = [0, 0], sizes = [2, 32], strides = [1, 1]} : vector<2x96xf32> to vector<2x32xf32>
    %270 = vector.extract_strided_slice %268 {offsets = [0, 0], sizes = [2, 32], strides = [1, 1]} : vector<2x96xf32> to vector<2x32xf32>
    %271 = arith.addf %269, %270 : vector<2x32xf32>
    %272 = arith.negf %271 : vector<2x32xf32>
    %273 = math.exp %272 : vector<2x32xf32>
    %cst_41 = arith.constant 1.000000e+00 : f32
    %274 = vector.broadcast %cst_41 : f32 to vector<2x32xf32>
    %275 = arith.addf %274, %273 : vector<2x32xf32>
    %276 = arith.divf %274, %275 : vector<2x32xf32>
    %277 = vector.extract_strided_slice %261 {offsets = [0, 32], sizes = [2, 32], strides = [1, 1]} : vector<2x96xf32> to vector<2x32xf32>
    %278 = vector.extract_strided_slice %268 {offsets = [0, 32], sizes = [2, 32], strides = [1, 1]} : vector<2x96xf32> to vector<2x32xf32>
    %279 = arith.addf %277, %278 : vector<2x32xf32>
    %280 = arith.negf %279 : vector<2x32xf32>
    %281 = math.exp %280 : vector<2x32xf32>
    %cst_42 = arith.constant 1.000000e+00 : f32
    %282 = vector.broadcast %cst_42 : f32 to vector<2x32xf32>
    %283 = arith.addf %282, %281 : vector<2x32xf32>
    %284 = arith.divf %282, %283 : vector<2x32xf32>
    %285 = vector.extract_strided_slice %261 {offsets = [0, 64], sizes = [2, 32], strides = [1, 1]} : vector<2x96xf32> to vector<2x32xf32>
    %286 = vector.extract_strided_slice %268 {offsets = [0, 64], sizes = [2, 32], strides = [1, 1]} : vector<2x96xf32> to vector<2x32xf32>
    %287 = arith.mulf %276, %286 : vector<2x32xf32>
    %288 = arith.addf %285, %287 : vector<2x32xf32>
    %289 = math.tanh %288 : vector<2x32xf32>
    %cst_43 = arith.constant 1.000000e+00 : f32
    %290 = vector.broadcast %cst_43 : f32 to vector<2x32xf32>
    %291 = arith.subf %290, %284 : vector<2x32xf32>
    %292 = arith.mulf %291, %289 : vector<2x32xf32>
    %293 = arith.mulf %284, %232 : vector<2x32xf32>
    %294 = arith.addf %292, %293 : vector<2x32xf32>
    %295 = vector.extract_strided_slice %267 {offsets = [0, 96], sizes = [2, 96], strides = [1, 1]} : vector<2x192xf32> to vector<2x96xf32>
    %296 = vector.extract_strided_slice %263 {offsets = [0, 0], sizes = [2, 32], strides = [1, 1]} : vector<2x96xf32> to vector<2x32xf32>
    %297 = vector.extract_strided_slice %295 {offsets = [0, 0], sizes = [2, 32], strides = [1, 1]} : vector<2x96xf32> to vector<2x32xf32>
    %298 = arith.addf %296, %297 : vector<2x32xf32>
    %299 = arith.negf %298 : vector<2x32xf32>
    %300 = math.exp %299 : vector<2x32xf32>
    %cst_44 = arith.constant 1.000000e+00 : f32
    %301 = vector.broadcast %cst_44 : f32 to vector<2x32xf32>
    %302 = arith.addf %301, %300 : vector<2x32xf32>
    %303 = arith.divf %301, %302 : vector<2x32xf32>
    %304 = vector.extract_strided_slice %263 {offsets = [0, 32], sizes = [2, 32], strides = [1, 1]} : vector<2x96xf32> to vector<2x32xf32>
    %305 = vector.extract_strided_slice %295 {offsets = [0, 32], sizes = [2, 32], strides = [1, 1]} : vector<2x96xf32> to vector<2x32xf32>
    %306 = arith.addf %304, %305 : vector<2x32xf32>
    %307 = arith.negf %306 : vector<2x32xf32>
    %308 = math.exp %307 : vector<2x32xf32>
    %cst_45 = arith.constant 1.000000e+00 : f32
    %309 = vector.broadcast %cst_45 : f32 to vector<2x32xf32>
    %310 = arith.addf %309, %308 : vector<2x32xf32>
    %311 = arith.divf %309, %310 : vector<2x32xf32>
    %312 = vector.extract_strided_slice %263 {offsets = [0, 64], sizes = [2, 32], strides = [1, 1]} : vector<2x96xf32> to vector<2x32xf32>
    %313 = vector.extract_strided_slice %295 {offsets = [0, 64], sizes = [2, 32], strides = [1, 1]} : vector<2x96xf32> to vector<2x32xf32>
    %314 = arith.mulf %303, %313 : vector<2x32xf32>
    %315 = arith.addf %312, %314 : vector<2x32xf32>
    %316 = math.tanh %315 : vector<2x32xf32>
    %cst_46 = arith.constant 1.000000e+00 : f32
    %317 = vector.broadcast %cst_46 : f32 to vector<2x32xf32>
    %318 = arith.subf %317, %311 : vector<2x32xf32>
    %319 = arith.mulf %318, %316 : vector<2x32xf32>
    %320 = arith.mulf %311, %259 : vector<2x32xf32>
    %321 = arith.addf %319, %320 : vector<2x32xf32>
    %322 = vector.extract_strided_slice %9 {offsets = [0, 5, 0], sizes = [2, 1, 96], strides = [1, 1, 1]} : vector<2x8x192xf32> to vector<2x1x96xf32>
    %323 = vector.shape_cast %322 : vector<2x1x96xf32> to vector<2x96xf32>
    %324 = vector.extract_strided_slice %9 {offsets = [0, 2, 96], sizes = [2, 1, 96], strides = [1, 1, 1]} : vector<2x8x192xf32> to vector<2x1x96xf32>
    %325 = vector.shape_cast %324 : vector<2x1x96xf32> to vector<2x96xf32>
    %326 = tpu.concatenate %294, %321 in 1 : vector<2x32xf32>, vector<2x32xf32> -> vector<2x64xf32>
    %cst_47 = arith.constant dense<0.000000e+00> : vector<2x192xf32>
    %327 = tpu.matmul %326, %3, %cst_47 {dimension_numbers = #tpu.dot_dimension_numbers<[1], [0], [0], [1], [0, 0, 1, 1], [], []>} : vector<2x64xf32>, vector<64x192xf32>, vector<2x192xf32> -> vector<2x192xf32>
    %328 = vector.broadcast %4 : vector<1x192xf32> to vector<2x192xf32>
    %329 = arith.addf %327, %328 : vector<2x192xf32>
    %330 = vector.extract_strided_slice %329 {offsets = [0, 0], sizes = [2, 96], strides = [1, 1]} : vector<2x192xf32> to vector<2x96xf32>
    %331 = vector.extract_strided_slice %323 {offsets = [0, 0], sizes = [2, 32], strides = [1, 1]} : vector<2x96xf32> to vector<2x32xf32>
    %332 = vector.extract_strided_slice %330 {offsets = [0, 0], sizes = [2, 32], strides = [1, 1]} : vector<2x96xf32> to vector<2x32xf32>
    %333 = arith.addf %331, %332 : vector<2x32xf32>
    %334 = arith.negf %333 : vector<2x32xf32>
    %335 = math.exp %334 : vector<2x32xf32>
    %cst_48 = arith.constant 1.000000e+00 : f32
    %336 = vector.broadcast %cst_48 : f32 to vector<2x32xf32>
    %337 = arith.addf %336, %335 : vector<2x32xf32>
    %338 = arith.divf %336, %337 : vector<2x32xf32>
    %339 = vector.extract_strided_slice %323 {offsets = [0, 32], sizes = [2, 32], strides = [1, 1]} : vector<2x96xf32> to vector<2x32xf32>
    %340 = vector.extract_strided_slice %330 {offsets = [0, 32], sizes = [2, 32], strides = [1, 1]} : vector<2x96xf32> to vector<2x32xf32>
    %341 = arith.addf %339, %340 : vector<2x32xf32>
    %342 = arith.negf %341 : vector<2x32xf32>
    %343 = math.exp %342 : vector<2x32xf32>
    %cst_49 = arith.constant 1.000000e+00 : f32
    %344 = vector.broadcast %cst_49 : f32 to vector<2x32xf32>
    %345 = arith.addf %344, %343 : vector<2x32xf32>
    %346 = arith.divf %344, %345 : vector<2x32xf32>
    %347 = vector.extract_strided_slice %323 {offsets = [0, 64], sizes = [2, 32], strides = [1, 1]} : vector<2x96xf32> to vector<2x32xf32>
    %348 = vector.extract_strided_slice %330 {offsets = [0, 64], sizes = [2, 32], strides = [1, 1]} : vector<2x96xf32> to vector<2x32xf32>
    %349 = arith.mulf %338, %348 : vector<2x32xf32>
    %350 = arith.addf %347, %349 : vector<2x32xf32>
    %351 = math.tanh %350 : vector<2x32xf32>
    %cst_50 = arith.constant 1.000000e+00 : f32
    %352 = vector.broadcast %cst_50 : f32 to vector<2x32xf32>
    %353 = arith.subf %352, %346 : vector<2x32xf32>
    %354 = arith.mulf %353, %351 : vector<2x32xf32>
    %355 = arith.mulf %346, %294 : vector<2x32xf32>
    %356 = arith.addf %354, %355 : vector<2x32xf32>
    %357 = vector.extract_strided_slice %329 {offsets = [0, 96], sizes = [2, 96], strides = [1, 1]} : vector<2x192xf32> to vector<2x96xf32>
    %358 = vector.extract_strided_slice %325 {offsets = [0, 0], sizes = [2, 32], strides = [1, 1]} : vector<2x96xf32> to vector<2x32xf32>
    %359 = vector.extract_strided_slice %357 {offsets = [0, 0], sizes = [2, 32], strides = [1, 1]} : vector<2x96xf32> to vector<2x32xf32>
    %360 = arith.addf %358, %359 : vector<2x32xf32>
    %361 = arith.negf %360 : vector<2x32xf32>
    %362 = math.exp %361 : vector<2x32xf32>
    %cst_51 = arith.constant 1.000000e+00 : f32
    %363 = vector.broadcast %cst_51 : f32 to vector<2x32xf32>
    %364 = arith.addf %363, %362 : vector<2x32xf32>
    %365 = arith.divf %363, %364 : vector<2x32xf32>
    %366 = vector.extract_strided_slice %325 {offsets = [0, 32], sizes = [2, 32], strides = [1, 1]} : vector<2x96xf32> to vector<2x32xf32>
    %367 = vector.extract_strided_slice %357 {offsets = [0, 32], sizes = [2, 32], strides = [1, 1]} : vector<2x96xf32> to vector<2x32xf32>
    %368 = arith.addf %366, %367 : vector<2x32xf32>
    %369 = arith.negf %368 : vector<2x32xf32>
    %370 = math.exp %369 : vector<2x32xf32>
    %cst_52 = arith.constant 1.000000e+00 : f32
    %371 = vector.broadcast %cst_52 : f32 to vector<2x32xf32>
    %372 = arith.addf %371, %370 : vector<2x32xf32>
    %373 = arith.divf %371, %372 : vector<2x32xf32>
    %374 = vector.extract_strided_slice %325 {offsets = [0, 64], sizes = [2, 32], strides = [1, 1]} : vector<2x96xf32> to vector<2x32xf32>
    %375 = vector.extract_strided_slice %357 {offsets = [0, 64], sizes = [2, 32], strides = [1, 1]} : vector<2x96xf32> to vector<2x32xf32>
    %376 = arith.mulf %365, %375 : vector<2x32xf32>
    %377 = arith.addf %374, %376 : vector<2x32xf32>
    %378 = math.tanh %377 : vector<2x32xf32>
    %cst_53 = arith.constant 1.000000e+00 : f32
    %379 = vector.broadcast %cst_53 : f32 to vector<2x32xf32>
    %380 = arith.subf %379, %373 : vector<2x32xf32>
    %381 = arith.mulf %380, %378 : vector<2x32xf32>
    %382 = arith.mulf %373, %321 : vector<2x32xf32>
    %383 = arith.addf %381, %382 : vector<2x32xf32>
    %384 = vector.extract_strided_slice %9 {offsets = [0, 6, 0], sizes = [2, 1, 96], strides = [1, 1, 1]} : vector<2x8x192xf32> to vector<2x1x96xf32>
    %385 = vector.shape_cast %384 : vector<2x1x96xf32> to vector<2x96xf32>
    %386 = vector.extract_strided_slice %9 {offsets = [0, 1, 96], sizes = [2, 1, 96], strides = [1, 1, 1]} : vector<2x8x192xf32> to vector<2x1x96xf32>
    %387 = vector.shape_cast %386 : vector<2x1x96xf32> to vector<2x96xf32>
    %388 = tpu.concatenate %356, %383 in 1 : vector<2x32xf32>, vector<2x32xf32> -> vector<2x64xf32>
    %cst_54 = arith.constant dense<0.000000e+00> : vector<2x192xf32>
    %389 = tpu.matmul %388, %3, %cst_54 {dimension_numbers = #tpu.dot_dimension_numbers<[1], [0], [0], [1], [0, 0, 1, 1], [], []>} : vector<2x64xf32>, vector<64x192xf32>, vector<2x192xf32> -> vector<2x192xf32>
    %390 = vector.broadcast %4 : vector<1x192xf32> to vector<2x192xf32>
    %391 = arith.addf %389, %390 : vector<2x192xf32>
    %392 = vector.extract_strided_slice %391 {offsets = [0, 0], sizes = [2, 96], strides = [1, 1]} : vector<2x192xf32> to vector<2x96xf32>
    %393 = vector.extract_strided_slice %385 {offsets = [0, 0], sizes = [2, 32], strides = [1, 1]} : vector<2x96xf32> to vector<2x32xf32>
    %394 = vector.extract_strided_slice %392 {offsets = [0, 0], sizes = [2, 32], strides = [1, 1]} : vector<2x96xf32> to vector<2x32xf32>
    %395 = arith.addf %393, %394 : vector<2x32xf32>
    %396 = arith.negf %395 : vector<2x32xf32>
    %397 = math.exp %396 : vector<2x32xf32>
    %cst_55 = arith.constant 1.000000e+00 : f32
    %398 = vector.broadcast %cst_55 : f32 to vector<2x32xf32>
    %399 = arith.addf %398, %397 : vector<2x32xf32>
    %400 = arith.divf %398, %399 : vector<2x32xf32>
    %401 = vector.extract_strided_slice %385 {offsets = [0, 32], sizes = [2, 32], strides = [1, 1]} : vector<2x96xf32> to vector<2x32xf32>
    %402 = vector.extract_strided_slice %392 {offsets = [0, 32], sizes = [2, 32], strides = [1, 1]} : vector<2x96xf32> to vector<2x32xf32>
    %403 = arith.addf %401, %402 : vector<2x32xf32>
    %404 = arith.negf %403 : vector<2x32xf32>
    %405 = math.exp %404 : vector<2x32xf32>
    %cst_56 = arith.constant 1.000000e+00 : f32
    %406 = vector.broadcast %cst_56 : f32 to vector<2x32xf32>
    %407 = arith.addf %406, %405 : vector<2x32xf32>
    %408 = arith.divf %406, %407 : vector<2x32xf32>
    %409 = vector.extract_strided_slice %385 {offsets = [0, 64], sizes = [2, 32], strides = [1, 1]} : vector<2x96xf32> to vector<2x32xf32>
    %410 = vector.extract_strided_slice %392 {offsets = [0, 64], sizes = [2, 32], strides = [1, 1]} : vector<2x96xf32> to vector<2x32xf32>
    %411 = arith.mulf %400, %410 : vector<2x32xf32>
    %412 = arith.addf %409, %411 : vector<2x32xf32>
    %413 = math.tanh %412 : vector<2x32xf32>
    %cst_57 = arith.constant 1.000000e+00 : f32
    %414 = vector.broadcast %cst_57 : f32 to vector<2x32xf32>
    %415 = arith.subf %414, %408 : vector<2x32xf32>
    %416 = arith.mulf %415, %413 : vector<2x32xf32>
    %417 = arith.mulf %408, %356 : vector<2x32xf32>
    %418 = arith.addf %416, %417 : vector<2x32xf32>
    %419 = vector.extract_strided_slice %391 {offsets = [0, 96], sizes = [2, 96], strides = [1, 1]} : vector<2x192xf32> to vector<2x96xf32>
    %420 = vector.extract_strided_slice %387 {offsets = [0, 0], sizes = [2, 32], strides = [1, 1]} : vector<2x96xf32> to vector<2x32xf32>
    %421 = vector.extract_strided_slice %419 {offsets = [0, 0], sizes = [2, 32], strides = [1, 1]} : vector<2x96xf32> to vector<2x32xf32>
    %422 = arith.addf %420, %421 : vector<2x32xf32>
    %423 = arith.negf %422 : vector<2x32xf32>
    %424 = math.exp %423 : vector<2x32xf32>
    %cst_58 = arith.constant 1.000000e+00 : f32
    %425 = vector.broadcast %cst_58 : f32 to vector<2x32xf32>
    %426 = arith.addf %425, %424 : vector<2x32xf32>
    %427 = arith.divf %425, %426 : vector<2x32xf32>
    %428 = vector.extract_strided_slice %387 {offsets = [0, 32], sizes = [2, 32], strides = [1, 1]} : vector<2x96xf32> to vector<2x32xf32>
    %429 = vector.extract_strided_slice %419 {offsets = [0, 32], sizes = [2, 32], strides = [1, 1]} : vector<2x96xf32> to vector<2x32xf32>
    %430 = arith.addf %428, %429 : vector<2x32xf32>
    %431 = arith.negf %430 : vector<2x32xf32>
    %432 = math.exp %431 : vector<2x32xf32>
    %cst_59 = arith.constant 1.000000e+00 : f32
    %433 = vector.broadcast %cst_59 : f32 to vector<2x32xf32>
    %434 = arith.addf %433, %432 : vector<2x32xf32>
    %435 = arith.divf %433, %434 : vector<2x32xf32>
    %436 = vector.extract_strided_slice %387 {offsets = [0, 64], sizes = [2, 32], strides = [1, 1]} : vector<2x96xf32> to vector<2x32xf32>
    %437 = vector.extract_strided_slice %419 {offsets = [0, 64], sizes = [2, 32], strides = [1, 1]} : vector<2x96xf32> to vector<2x32xf32>
    %438 = arith.mulf %427, %437 : vector<2x32xf32>
    %439 = arith.addf %436, %438 : vector<2x32xf32>
    %440 = math.tanh %439 : vector<2x32xf32>
    %cst_60 = arith.constant 1.000000e+00 : f32
    %441 = vector.broadcast %cst_60 : f32 to vector<2x32xf32>
    %442 = arith.subf %441, %435 : vector<2x32xf32>
    %443 = arith.mulf %442, %440 : vector<2x32xf32>
    %444 = arith.mulf %435, %383 : vector<2x32xf32>
    %445 = arith.addf %443, %444 : vector<2x32xf32>
    %446 = vector.extract_strided_slice %9 {offsets = [0, 7, 0], sizes = [2, 1, 96], strides = [1, 1, 1]} : vector<2x8x192xf32> to vector<2x1x96xf32>
    %447 = vector.shape_cast %446 : vector<2x1x96xf32> to vector<2x96xf32>
    %448 = vector.extract_strided_slice %9 {offsets = [0, 0, 96], sizes = [2, 1, 96], strides = [1, 1, 1]} : vector<2x8x192xf32> to vector<2x1x96xf32>
    %449 = vector.shape_cast %448 : vector<2x1x96xf32> to vector<2x96xf32>
    %450 = tpu.concatenate %418, %445 in 1 : vector<2x32xf32>, vector<2x32xf32> -> vector<2x64xf32>
    %cst_61 = arith.constant dense<0.000000e+00> : vector<2x192xf32>
    %451 = tpu.matmul %450, %3, %cst_61 {dimension_numbers = #tpu.dot_dimension_numbers<[1], [0], [0], [1], [0, 0, 1, 1], [], []>} : vector<2x64xf32>, vector<64x192xf32>, vector<2x192xf32> -> vector<2x192xf32>
    %452 = vector.broadcast %4 : vector<1x192xf32> to vector<2x192xf32>
    %453 = arith.addf %451, %452 : vector<2x192xf32>
    %454 = vector.extract_strided_slice %453 {offsets = [0, 0], sizes = [2, 96], strides = [1, 1]} : vector<2x192xf32> to vector<2x96xf32>
    %455 = vector.extract_strided_slice %447 {offsets = [0, 0], sizes = [2, 32], strides = [1, 1]} : vector<2x96xf32> to vector<2x32xf32>
    %456 = vector.extract_strided_slice %454 {offsets = [0, 0], sizes = [2, 32], strides = [1, 1]} : vector<2x96xf32> to vector<2x32xf32>
    %457 = arith.addf %455, %456 : vector<2x32xf32>
    %458 = arith.negf %457 : vector<2x32xf32>
    %459 = math.exp %458 : vector<2x32xf32>
    %cst_62 = arith.constant 1.000000e+00 : f32
    %460 = vector.broadcast %cst_62 : f32 to vector<2x32xf32>
    %461 = arith.addf %460, %459 : vector<2x32xf32>
    %462 = arith.divf %460, %461 : vector<2x32xf32>
    %463 = vector.extract_strided_slice %447 {offsets = [0, 32], sizes = [2, 32], strides = [1, 1]} : vector<2x96xf32> to vector<2x32xf32>
    %464 = vector.extract_strided_slice %454 {offsets = [0, 32], sizes = [2, 32], strides = [1, 1]} : vector<2x96xf32> to vector<2x32xf32>
    %465 = arith.addf %463, %464 : vector<2x32xf32>
    %466 = arith.negf %465 : vector<2x32xf32>
    %467 = math.exp %466 : vector<2x32xf32>
    %cst_63 = arith.constant 1.000000e+00 : f32
    %468 = vector.broadcast %cst_63 : f32 to vector<2x32xf32>
    %469 = arith.addf %468, %467 : vector<2x32xf32>
    %470 = arith.divf %468, %469 : vector<2x32xf32>
    %471 = vector.extract_strided_slice %447 {offsets = [0, 64], sizes = [2, 32], strides = [1, 1]} : vector<2x96xf32> to vector<2x32xf32>
    %472 = vector.extract_strided_slice %454 {offsets = [0, 64], sizes = [2, 32], strides = [1, 1]} : vector<2x96xf32> to vector<2x32xf32>
    %473 = arith.mulf %462, %472 : vector<2x32xf32>
    %474 = arith.addf %471, %473 : vector<2x32xf32>
    %475 = math.tanh %474 : vector<2x32xf32>
    %cst_64 = arith.constant 1.000000e+00 : f32
    %476 = vector.broadcast %cst_64 : f32 to vector<2x32xf32>
    %477 = arith.subf %476, %470 : vector<2x32xf32>
    %478 = arith.mulf %477, %475 : vector<2x32xf32>
    %479 = arith.mulf %470, %418 : vector<2x32xf32>
    %480 = arith.addf %478, %479 : vector<2x32xf32>
    %481 = vector.extract_strided_slice %453 {offsets = [0, 96], sizes = [2, 96], strides = [1, 1]} : vector<2x192xf32> to vector<2x96xf32>
    %482 = vector.extract_strided_slice %449 {offsets = [0, 0], sizes = [2, 32], strides = [1, 1]} : vector<2x96xf32> to vector<2x32xf32>
    %483 = vector.extract_strided_slice %481 {offsets = [0, 0], sizes = [2, 32], strides = [1, 1]} : vector<2x96xf32> to vector<2x32xf32>
    %484 = arith.addf %482, %483 : vector<2x32xf32>
    %485 = arith.negf %484 : vector<2x32xf32>
    %486 = math.exp %485 : vector<2x32xf32>
    %cst_65 = arith.constant 1.000000e+00 : f32
    %487 = vector.broadcast %cst_65 : f32 to vector<2x32xf32>
    %488 = arith.addf %487, %486 : vector<2x32xf32>
    %489 = arith.divf %487, %488 : vector<2x32xf32>
    %490 = vector.extract_strided_slice %449 {offsets = [0, 32], sizes = [2, 32], strides = [1, 1]} : vector<2x96xf32> to vector<2x32xf32>
    %491 = vector.extract_strided_slice %481 {offsets = [0, 32], sizes = [2, 32], strides = [1, 1]} : vector<2x96xf32> to vector<2x32xf32>
    %492 = arith.addf %490, %491 : vector<2x32xf32>
    %493 = arith.negf %492 : vector<2x32xf32>
    %494 = math.exp %493 : vector<2x32xf32>
    %cst_66 = arith.constant 1.000000e+00 : f32
    %495 = vector.broadcast %cst_66 : f32 to vector<2x32xf32>
    %496 = arith.addf %495, %494 : vector<2x32xf32>
    %497 = arith.divf %495, %496 : vector<2x32xf32>
    %498 = vector.extract_strided_slice %449 {offsets = [0, 64], sizes = [2, 32], strides = [1, 1]} : vector<2x96xf32> to vector<2x32xf32>
    %499 = vector.extract_strided_slice %481 {offsets = [0, 64], sizes = [2, 32], strides = [1, 1]} : vector<2x96xf32> to vector<2x32xf32>
    %500 = arith.mulf %489, %499 : vector<2x32xf32>
    %501 = arith.addf %498, %500 : vector<2x32xf32>
    %502 = math.tanh %501 : vector<2x32xf32>
    %cst_67 = arith.constant 1.000000e+00 : f32
    %503 = vector.broadcast %cst_67 : f32 to vector<2x32xf32>
    %504 = arith.subf %503, %497 : vector<2x32xf32>
    %505 = arith.mulf %504, %502 : vector<2x32xf32>
    %506 = arith.mulf %497, %445 : vector<2x32xf32>
    %507 = arith.addf %505, %506 : vector<2x32xf32>
    %508 = tpu.concatenate %46, %507 in 1 : vector<2x32xf32>, vector<2x32xf32> -> vector<2x64xf32>
    %509 = tpu.concatenate %108, %445 in 1 : vector<2x32xf32>, vector<2x32xf32> -> vector<2x64xf32>
    %510 = tpu.concatenate %170, %383 in 1 : vector<2x32xf32>, vector<2x32xf32> -> vector<2x64xf32>
    %511 = tpu.concatenate %232, %321 in 1 : vector<2x32xf32>, vector<2x32xf32> -> vector<2x64xf32>
    %512 = tpu.concatenate %294, %259 in 1 : vector<2x32xf32>, vector<2x32xf32> -> vector<2x64xf32>
    %513 = tpu.concatenate %356, %197 in 1 : vector<2x32xf32>, vector<2x32xf32> -> vector<2x64xf32>
    %514 = tpu.concatenate %418, %135 in 1 : vector<2x32xf32>, vector<2x32xf32> -> vector<2x64xf32>
    %515 = tpu.concatenate %480, %73 in 1 : vector<2x32xf32>, vector<2x32xf32> -> vector<2x64xf32>
    %516 = vector.shape_cast %508 : vector<2x64xf32> to vector<2x1x64xf32>
    %517 = vector.shape_cast %509 : vector<2x64xf32> to vector<2x1x64xf32>
    %518 = vector.shape_cast %510 : vector<2x64xf32> to vector<2x1x64xf32>
    %519 = vector.shape_cast %511 : vector<2x64xf32> to vector<2x1x64xf32>
    %520 = vector.shape_cast %512 : vector<2x64xf32> to vector<2x1x64xf32>
    %521 = vector.shape_cast %513 : vector<2x64xf32> to vector<2x1x64xf32>
    %522 = vector.shape_cast %514 : vector<2x64xf32> to vector<2x1x64xf32>
    %523 = vector.shape_cast %515 : vector<2x64xf32> to vector<2x1x64xf32>
    %524 = tpu.concatenate %516, %517, %518, %519, %520, %521, %522, %523 in 1 : vector<2x1x64xf32>, vector<2x1x64xf32>, vector<2x1x64xf32>, vector<2x1x64xf32>, vector<2x1x64xf32>, vector<2x1x64xf32>, vector<2x1x64xf32>, vector<2x1x64xf32> -> vector<2x8x64xf32>
    %c0_68 = arith.constant 0 : index
    %c0_69 = arith.constant 0 : index
    %525 = vector.load %arg6[%c0_68, %c0_69] : memref<64x192xf32, #tpu.memory_space<vmem>>, vector<64x192xf32>
    %c0_70 = arith.constant 0 : index
    %c0_71 = arith.constant 0 : index
    %526 = vector.load %arg7[%c0_70, %c0_71] : memref<1x192xf32, #tpu.memory_space<vmem>>, vector<1x192xf32>
    %c0_72 = arith.constant 0 : index
    %c0_73 = arith.constant 0 : index
    %527 = vector.load %arg8[%c0_72, %c0_73] : memref<64x192xf32, #tpu.memory_space<vmem>>, vector<64x192xf32>
    %c0_74 = arith.constant 0 : index
    %c0_75 = arith.constant 0 : index
    %528 = vector.load %arg9[%c0_74, %c0_75] : memref<1x192xf32, #tpu.memory_space<vmem>>, vector<1x192xf32>
    %529 = vector.shape_cast %524 : vector<2x8x64xf32> to vector<16x64xf32>
    %cst_76 = arith.constant dense<0.000000e+00> : vector<16x192xf32>
    %530 = tpu.matmul %529, %525, %cst_76 {dimension_numbers = #tpu.dot_dimension_numbers<[1], [0], [0], [1], [0, 0, 1, 1], [], []>} : vector<16x64xf32>, vector<64x192xf32>, vector<16x192xf32> -> vector<16x192xf32>
    %531 = vector.broadcast %526 : vector<1x192xf32> to vector<16x192xf32>
    %532 = arith.addf %530, %531 : vector<16x192xf32>
    %533 = vector.shape_cast %532 : vector<16x192xf32> to vector<2x8x192xf32>
    %cst_77 = arith.constant 0.000000e+00 : f32
    %534 = vector.broadcast %cst_77 : f32 to vector<2x32xf32>
    %cst_78 = arith.constant 0.000000e+00 : f32
    %535 = vector.broadcast %cst_78 : f32 to vector<2x32xf32>
    %536 = vector.extract_strided_slice %533 {offsets = [0, 0, 0], sizes = [2, 1, 96], strides = [1, 1, 1]} : vector<2x8x192xf32> to vector<2x1x96xf32>
    %537 = vector.shape_cast %536 : vector<2x1x96xf32> to vector<2x96xf32>
    %538 = vector.extract_strided_slice %533 {offsets = [0, 7, 96], sizes = [2, 1, 96], strides = [1, 1, 1]} : vector<2x8x192xf32> to vector<2x1x96xf32>
    %539 = vector.shape_cast %538 : vector<2x1x96xf32> to vector<2x96xf32>
    %540 = tpu.concatenate %534, %535 in 1 : vector<2x32xf32>, vector<2x32xf32> -> vector<2x64xf32>
    %cst_79 = arith.constant dense<0.000000e+00> : vector<2x192xf32>
    %541 = tpu.matmul %540, %527, %cst_79 {dimension_numbers = #tpu.dot_dimension_numbers<[1], [0], [0], [1], [0, 0, 1, 1], [], []>} : vector<2x64xf32>, vector<64x192xf32>, vector<2x192xf32> -> vector<2x192xf32>
    %542 = vector.broadcast %528 : vector<1x192xf32> to vector<2x192xf32>
    %543 = arith.addf %541, %542 : vector<2x192xf32>
    %544 = vector.extract_strided_slice %543 {offsets = [0, 0], sizes = [2, 96], strides = [1, 1]} : vector<2x192xf32> to vector<2x96xf32>
    %545 = vector.extract_strided_slice %537 {offsets = [0, 0], sizes = [2, 32], strides = [1, 1]} : vector<2x96xf32> to vector<2x32xf32>
    %546 = vector.extract_strided_slice %544 {offsets = [0, 0], sizes = [2, 32], strides = [1, 1]} : vector<2x96xf32> to vector<2x32xf32>
    %547 = arith.addf %545, %546 : vector<2x32xf32>
    %548 = arith.negf %547 : vector<2x32xf32>
    %549 = math.exp %548 : vector<2x32xf32>
    %cst_80 = arith.constant 1.000000e+00 : f32
    %550 = vector.broadcast %cst_80 : f32 to vector<2x32xf32>
    %551 = arith.addf %550, %549 : vector<2x32xf32>
    %552 = arith.divf %550, %551 : vector<2x32xf32>
    %553 = vector.extract_strided_slice %537 {offsets = [0, 32], sizes = [2, 32], strides = [1, 1]} : vector<2x96xf32> to vector<2x32xf32>
    %554 = vector.extract_strided_slice %544 {offsets = [0, 32], sizes = [2, 32], strides = [1, 1]} : vector<2x96xf32> to vector<2x32xf32>
    %555 = arith.addf %553, %554 : vector<2x32xf32>
    %556 = arith.negf %555 : vector<2x32xf32>
    %557 = math.exp %556 : vector<2x32xf32>
    %cst_81 = arith.constant 1.000000e+00 : f32
    %558 = vector.broadcast %cst_81 : f32 to vector<2x32xf32>
    %559 = arith.addf %558, %557 : vector<2x32xf32>
    %560 = arith.divf %558, %559 : vector<2x32xf32>
    %561 = vector.extract_strided_slice %537 {offsets = [0, 64], sizes = [2, 32], strides = [1, 1]} : vector<2x96xf32> to vector<2x32xf32>
    %562 = vector.extract_strided_slice %544 {offsets = [0, 64], sizes = [2, 32], strides = [1, 1]} : vector<2x96xf32> to vector<2x32xf32>
    %563 = arith.mulf %552, %562 : vector<2x32xf32>
    %564 = arith.addf %561, %563 : vector<2x32xf32>
    %565 = math.tanh %564 : vector<2x32xf32>
    %cst_82 = arith.constant 1.000000e+00 : f32
    %566 = vector.broadcast %cst_82 : f32 to vector<2x32xf32>
    %567 = arith.subf %566, %560 : vector<2x32xf32>
    %568 = arith.mulf %567, %565 : vector<2x32xf32>
    %569 = arith.mulf %560, %534 : vector<2x32xf32>
    %570 = arith.addf %568, %569 : vector<2x32xf32>
    %571 = vector.extract_strided_slice %543 {offsets = [0, 96], sizes = [2, 96], strides = [1, 1]} : vector<2x192xf32> to vector<2x96xf32>
    %572 = vector.extract_strided_slice %539 {offsets = [0, 0], sizes = [2, 32], strides = [1, 1]} : vector<2x96xf32> to vector<2x32xf32>
    %573 = vector.extract_strided_slice %571 {offsets = [0, 0], sizes = [2, 32], strides = [1, 1]} : vector<2x96xf32> to vector<2x32xf32>
    %574 = arith.addf %572, %573 : vector<2x32xf32>
    %575 = arith.negf %574 : vector<2x32xf32>
    %576 = math.exp %575 : vector<2x32xf32>
    %cst_83 = arith.constant 1.000000e+00 : f32
    %577 = vector.broadcast %cst_83 : f32 to vector<2x32xf32>
    %578 = arith.addf %577, %576 : vector<2x32xf32>
    %579 = arith.divf %577, %578 : vector<2x32xf32>
    %580 = vector.extract_strided_slice %539 {offsets = [0, 32], sizes = [2, 32], strides = [1, 1]} : vector<2x96xf32> to vector<2x32xf32>
    %581 = vector.extract_strided_slice %571 {offsets = [0, 32], sizes = [2, 32], strides = [1, 1]} : vector<2x96xf32> to vector<2x32xf32>
    %582 = arith.addf %580, %581 : vector<2x32xf32>
    %583 = arith.negf %582 : vector<2x32xf32>
    %584 = math.exp %583 : vector<2x32xf32>
    %cst_84 = arith.constant 1.000000e+00 : f32
    %585 = vector.broadcast %cst_84 : f32 to vector<2x32xf32>
    %586 = arith.addf %585, %584 : vector<2x32xf32>
    %587 = arith.divf %585, %586 : vector<2x32xf32>
    %588 = vector.extract_strided_slice %539 {offsets = [0, 64], sizes = [2, 32], strides = [1, 1]} : vector<2x96xf32> to vector<2x32xf32>
    %589 = vector.extract_strided_slice %571 {offsets = [0, 64], sizes = [2, 32], strides = [1, 1]} : vector<2x96xf32> to vector<2x32xf32>
    %590 = arith.mulf %579, %589 : vector<2x32xf32>
    %591 = arith.addf %588, %590 : vector<2x32xf32>
    %592 = math.tanh %591 : vector<2x32xf32>
    %cst_85 = arith.constant 1.000000e+00 : f32
    %593 = vector.broadcast %cst_85 : f32 to vector<2x32xf32>
    %594 = arith.subf %593, %587 : vector<2x32xf32>
    %595 = arith.mulf %594, %592 : vector<2x32xf32>
    %596 = arith.mulf %587, %535 : vector<2x32xf32>
    %597 = arith.addf %595, %596 : vector<2x32xf32>
    %598 = vector.extract_strided_slice %533 {offsets = [0, 1, 0], sizes = [2, 1, 96], strides = [1, 1, 1]} : vector<2x8x192xf32> to vector<2x1x96xf32>
    %599 = vector.shape_cast %598 : vector<2x1x96xf32> to vector<2x96xf32>
    %600 = vector.extract_strided_slice %533 {offsets = [0, 6, 96], sizes = [2, 1, 96], strides = [1, 1, 1]} : vector<2x8x192xf32> to vector<2x1x96xf32>
    %601 = vector.shape_cast %600 : vector<2x1x96xf32> to vector<2x96xf32>
    %602 = tpu.concatenate %570, %597 in 1 : vector<2x32xf32>, vector<2x32xf32> -> vector<2x64xf32>
    %cst_86 = arith.constant dense<0.000000e+00> : vector<2x192xf32>
    %603 = tpu.matmul %602, %527, %cst_86 {dimension_numbers = #tpu.dot_dimension_numbers<[1], [0], [0], [1], [0, 0, 1, 1], [], []>} : vector<2x64xf32>, vector<64x192xf32>, vector<2x192xf32> -> vector<2x192xf32>
    %604 = vector.broadcast %528 : vector<1x192xf32> to vector<2x192xf32>
    %605 = arith.addf %603, %604 : vector<2x192xf32>
    %606 = vector.extract_strided_slice %605 {offsets = [0, 0], sizes = [2, 96], strides = [1, 1]} : vector<2x192xf32> to vector<2x96xf32>
    %607 = vector.extract_strided_slice %599 {offsets = [0, 0], sizes = [2, 32], strides = [1, 1]} : vector<2x96xf32> to vector<2x32xf32>
    %608 = vector.extract_strided_slice %606 {offsets = [0, 0], sizes = [2, 32], strides = [1, 1]} : vector<2x96xf32> to vector<2x32xf32>
    %609 = arith.addf %607, %608 : vector<2x32xf32>
    %610 = arith.negf %609 : vector<2x32xf32>
    %611 = math.exp %610 : vector<2x32xf32>
    %cst_87 = arith.constant 1.000000e+00 : f32
    %612 = vector.broadcast %cst_87 : f32 to vector<2x32xf32>
    %613 = arith.addf %612, %611 : vector<2x32xf32>
    %614 = arith.divf %612, %613 : vector<2x32xf32>
    %615 = vector.extract_strided_slice %599 {offsets = [0, 32], sizes = [2, 32], strides = [1, 1]} : vector<2x96xf32> to vector<2x32xf32>
    %616 = vector.extract_strided_slice %606 {offsets = [0, 32], sizes = [2, 32], strides = [1, 1]} : vector<2x96xf32> to vector<2x32xf32>
    %617 = arith.addf %615, %616 : vector<2x32xf32>
    %618 = arith.negf %617 : vector<2x32xf32>
    %619 = math.exp %618 : vector<2x32xf32>
    %cst_88 = arith.constant 1.000000e+00 : f32
    %620 = vector.broadcast %cst_88 : f32 to vector<2x32xf32>
    %621 = arith.addf %620, %619 : vector<2x32xf32>
    %622 = arith.divf %620, %621 : vector<2x32xf32>
    %623 = vector.extract_strided_slice %599 {offsets = [0, 64], sizes = [2, 32], strides = [1, 1]} : vector<2x96xf32> to vector<2x32xf32>
    %624 = vector.extract_strided_slice %606 {offsets = [0, 64], sizes = [2, 32], strides = [1, 1]} : vector<2x96xf32> to vector<2x32xf32>
    %625 = arith.mulf %614, %624 : vector<2x32xf32>
    %626 = arith.addf %623, %625 : vector<2x32xf32>
    %627 = math.tanh %626 : vector<2x32xf32>
    %cst_89 = arith.constant 1.000000e+00 : f32
    %628 = vector.broadcast %cst_89 : f32 to vector<2x32xf32>
    %629 = arith.subf %628, %622 : vector<2x32xf32>
    %630 = arith.mulf %629, %627 : vector<2x32xf32>
    %631 = arith.mulf %622, %570 : vector<2x32xf32>
    %632 = arith.addf %630, %631 : vector<2x32xf32>
    %633 = vector.extract_strided_slice %605 {offsets = [0, 96], sizes = [2, 96], strides = [1, 1]} : vector<2x192xf32> to vector<2x96xf32>
    %634 = vector.extract_strided_slice %601 {offsets = [0, 0], sizes = [2, 32], strides = [1, 1]} : vector<2x96xf32> to vector<2x32xf32>
    %635 = vector.extract_strided_slice %633 {offsets = [0, 0], sizes = [2, 32], strides = [1, 1]} : vector<2x96xf32> to vector<2x32xf32>
    %636 = arith.addf %634, %635 : vector<2x32xf32>
    %637 = arith.negf %636 : vector<2x32xf32>
    %638 = math.exp %637 : vector<2x32xf32>
    %cst_90 = arith.constant 1.000000e+00 : f32
    %639 = vector.broadcast %cst_90 : f32 to vector<2x32xf32>
    %640 = arith.addf %639, %638 : vector<2x32xf32>
    %641 = arith.divf %639, %640 : vector<2x32xf32>
    %642 = vector.extract_strided_slice %601 {offsets = [0, 32], sizes = [2, 32], strides = [1, 1]} : vector<2x96xf32> to vector<2x32xf32>
    %643 = vector.extract_strided_slice %633 {offsets = [0, 32], sizes = [2, 32], strides = [1, 1]} : vector<2x96xf32> to vector<2x32xf32>
    %644 = arith.addf %642, %643 : vector<2x32xf32>
    %645 = arith.negf %644 : vector<2x32xf32>
    %646 = math.exp %645 : vector<2x32xf32>
    %cst_91 = arith.constant 1.000000e+00 : f32
    %647 = vector.broadcast %cst_91 : f32 to vector<2x32xf32>
    %648 = arith.addf %647, %646 : vector<2x32xf32>
    %649 = arith.divf %647, %648 : vector<2x32xf32>
    %650 = vector.extract_strided_slice %601 {offsets = [0, 64], sizes = [2, 32], strides = [1, 1]} : vector<2x96xf32> to vector<2x32xf32>
    %651 = vector.extract_strided_slice %633 {offsets = [0, 64], sizes = [2, 32], strides = [1, 1]} : vector<2x96xf32> to vector<2x32xf32>
    %652 = arith.mulf %641, %651 : vector<2x32xf32>
    %653 = arith.addf %650, %652 : vector<2x32xf32>
    %654 = math.tanh %653 : vector<2x32xf32>
    %cst_92 = arith.constant 1.000000e+00 : f32
    %655 = vector.broadcast %cst_92 : f32 to vector<2x32xf32>
    %656 = arith.subf %655, %649 : vector<2x32xf32>
    %657 = arith.mulf %656, %654 : vector<2x32xf32>
    %658 = arith.mulf %649, %597 : vector<2x32xf32>
    %659 = arith.addf %657, %658 : vector<2x32xf32>
    %660 = vector.extract_strided_slice %533 {offsets = [0, 2, 0], sizes = [2, 1, 96], strides = [1, 1, 1]} : vector<2x8x192xf32> to vector<2x1x96xf32>
    %661 = vector.shape_cast %660 : vector<2x1x96xf32> to vector<2x96xf32>
    %662 = vector.extract_strided_slice %533 {offsets = [0, 5, 96], sizes = [2, 1, 96], strides = [1, 1, 1]} : vector<2x8x192xf32> to vector<2x1x96xf32>
    %663 = vector.shape_cast %662 : vector<2x1x96xf32> to vector<2x96xf32>
    %664 = tpu.concatenate %632, %659 in 1 : vector<2x32xf32>, vector<2x32xf32> -> vector<2x64xf32>
    %cst_93 = arith.constant dense<0.000000e+00> : vector<2x192xf32>
    %665 = tpu.matmul %664, %527, %cst_93 {dimension_numbers = #tpu.dot_dimension_numbers<[1], [0], [0], [1], [0, 0, 1, 1], [], []>} : vector<2x64xf32>, vector<64x192xf32>, vector<2x192xf32> -> vector<2x192xf32>
    %666 = vector.broadcast %528 : vector<1x192xf32> to vector<2x192xf32>
    %667 = arith.addf %665, %666 : vector<2x192xf32>
    %668 = vector.extract_strided_slice %667 {offsets = [0, 0], sizes = [2, 96], strides = [1, 1]} : vector<2x192xf32> to vector<2x96xf32>
    %669 = vector.extract_strided_slice %661 {offsets = [0, 0], sizes = [2, 32], strides = [1, 1]} : vector<2x96xf32> to vector<2x32xf32>
    %670 = vector.extract_strided_slice %668 {offsets = [0, 0], sizes = [2, 32], strides = [1, 1]} : vector<2x96xf32> to vector<2x32xf32>
    %671 = arith.addf %669, %670 : vector<2x32xf32>
    %672 = arith.negf %671 : vector<2x32xf32>
    %673 = math.exp %672 : vector<2x32xf32>
    %cst_94 = arith.constant 1.000000e+00 : f32
    %674 = vector.broadcast %cst_94 : f32 to vector<2x32xf32>
    %675 = arith.addf %674, %673 : vector<2x32xf32>
    %676 = arith.divf %674, %675 : vector<2x32xf32>
    %677 = vector.extract_strided_slice %661 {offsets = [0, 32], sizes = [2, 32], strides = [1, 1]} : vector<2x96xf32> to vector<2x32xf32>
    %678 = vector.extract_strided_slice %668 {offsets = [0, 32], sizes = [2, 32], strides = [1, 1]} : vector<2x96xf32> to vector<2x32xf32>
    %679 = arith.addf %677, %678 : vector<2x32xf32>
    %680 = arith.negf %679 : vector<2x32xf32>
    %681 = math.exp %680 : vector<2x32xf32>
    %cst_95 = arith.constant 1.000000e+00 : f32
    %682 = vector.broadcast %cst_95 : f32 to vector<2x32xf32>
    %683 = arith.addf %682, %681 : vector<2x32xf32>
    %684 = arith.divf %682, %683 : vector<2x32xf32>
    %685 = vector.extract_strided_slice %661 {offsets = [0, 64], sizes = [2, 32], strides = [1, 1]} : vector<2x96xf32> to vector<2x32xf32>
    %686 = vector.extract_strided_slice %668 {offsets = [0, 64], sizes = [2, 32], strides = [1, 1]} : vector<2x96xf32> to vector<2x32xf32>
    %687 = arith.mulf %676, %686 : vector<2x32xf32>
    %688 = arith.addf %685, %687 : vector<2x32xf32>
    %689 = math.tanh %688 : vector<2x32xf32>
    %cst_96 = arith.constant 1.000000e+00 : f32
    %690 = vector.broadcast %cst_96 : f32 to vector<2x32xf32>
    %691 = arith.subf %690, %684 : vector<2x32xf32>
    %692 = arith.mulf %691, %689 : vector<2x32xf32>
    %693 = arith.mulf %684, %632 : vector<2x32xf32>
    %694 = arith.addf %692, %693 : vector<2x32xf32>
    %695 = vector.extract_strided_slice %667 {offsets = [0, 96], sizes = [2, 96], strides = [1, 1]} : vector<2x192xf32> to vector<2x96xf32>
    %696 = vector.extract_strided_slice %663 {offsets = [0, 0], sizes = [2, 32], strides = [1, 1]} : vector<2x96xf32> to vector<2x32xf32>
    %697 = vector.extract_strided_slice %695 {offsets = [0, 0], sizes = [2, 32], strides = [1, 1]} : vector<2x96xf32> to vector<2x32xf32>
    %698 = arith.addf %696, %697 : vector<2x32xf32>
    %699 = arith.negf %698 : vector<2x32xf32>
    %700 = math.exp %699 : vector<2x32xf32>
    %cst_97 = arith.constant 1.000000e+00 : f32
    %701 = vector.broadcast %cst_97 : f32 to vector<2x32xf32>
    %702 = arith.addf %701, %700 : vector<2x32xf32>
    %703 = arith.divf %701, %702 : vector<2x32xf32>
    %704 = vector.extract_strided_slice %663 {offsets = [0, 32], sizes = [2, 32], strides = [1, 1]} : vector<2x96xf32> to vector<2x32xf32>
    %705 = vector.extract_strided_slice %695 {offsets = [0, 32], sizes = [2, 32], strides = [1, 1]} : vector<2x96xf32> to vector<2x32xf32>
    %706 = arith.addf %704, %705 : vector<2x32xf32>
    %707 = arith.negf %706 : vector<2x32xf32>
    %708 = math.exp %707 : vector<2x32xf32>
    %cst_98 = arith.constant 1.000000e+00 : f32
    %709 = vector.broadcast %cst_98 : f32 to vector<2x32xf32>
    %710 = arith.addf %709, %708 : vector<2x32xf32>
    %711 = arith.divf %709, %710 : vector<2x32xf32>
    %712 = vector.extract_strided_slice %663 {offsets = [0, 64], sizes = [2, 32], strides = [1, 1]} : vector<2x96xf32> to vector<2x32xf32>
    %713 = vector.extract_strided_slice %695 {offsets = [0, 64], sizes = [2, 32], strides = [1, 1]} : vector<2x96xf32> to vector<2x32xf32>
    %714 = arith.mulf %703, %713 : vector<2x32xf32>
    %715 = arith.addf %712, %714 : vector<2x32xf32>
    %716 = math.tanh %715 : vector<2x32xf32>
    %cst_99 = arith.constant 1.000000e+00 : f32
    %717 = vector.broadcast %cst_99 : f32 to vector<2x32xf32>
    %718 = arith.subf %717, %711 : vector<2x32xf32>
    %719 = arith.mulf %718, %716 : vector<2x32xf32>
    %720 = arith.mulf %711, %659 : vector<2x32xf32>
    %721 = arith.addf %719, %720 : vector<2x32xf32>
    %722 = vector.extract_strided_slice %533 {offsets = [0, 3, 0], sizes = [2, 1, 96], strides = [1, 1, 1]} : vector<2x8x192xf32> to vector<2x1x96xf32>
    %723 = vector.shape_cast %722 : vector<2x1x96xf32> to vector<2x96xf32>
    %724 = vector.extract_strided_slice %533 {offsets = [0, 4, 96], sizes = [2, 1, 96], strides = [1, 1, 1]} : vector<2x8x192xf32> to vector<2x1x96xf32>
    %725 = vector.shape_cast %724 : vector<2x1x96xf32> to vector<2x96xf32>
    %726 = tpu.concatenate %694, %721 in 1 : vector<2x32xf32>, vector<2x32xf32> -> vector<2x64xf32>
    %cst_100 = arith.constant dense<0.000000e+00> : vector<2x192xf32>
    %727 = tpu.matmul %726, %527, %cst_100 {dimension_numbers = #tpu.dot_dimension_numbers<[1], [0], [0], [1], [0, 0, 1, 1], [], []>} : vector<2x64xf32>, vector<64x192xf32>, vector<2x192xf32> -> vector<2x192xf32>
    %728 = vector.broadcast %528 : vector<1x192xf32> to vector<2x192xf32>
    %729 = arith.addf %727, %728 : vector<2x192xf32>
    %730 = vector.extract_strided_slice %729 {offsets = [0, 0], sizes = [2, 96], strides = [1, 1]} : vector<2x192xf32> to vector<2x96xf32>
    %731 = vector.extract_strided_slice %723 {offsets = [0, 0], sizes = [2, 32], strides = [1, 1]} : vector<2x96xf32> to vector<2x32xf32>
    %732 = vector.extract_strided_slice %730 {offsets = [0, 0], sizes = [2, 32], strides = [1, 1]} : vector<2x96xf32> to vector<2x32xf32>
    %733 = arith.addf %731, %732 : vector<2x32xf32>
    %734 = arith.negf %733 : vector<2x32xf32>
    %735 = math.exp %734 : vector<2x32xf32>
    %cst_101 = arith.constant 1.000000e+00 : f32
    %736 = vector.broadcast %cst_101 : f32 to vector<2x32xf32>
    %737 = arith.addf %736, %735 : vector<2x32xf32>
    %738 = arith.divf %736, %737 : vector<2x32xf32>
    %739 = vector.extract_strided_slice %723 {offsets = [0, 32], sizes = [2, 32], strides = [1, 1]} : vector<2x96xf32> to vector<2x32xf32>
    %740 = vector.extract_strided_slice %730 {offsets = [0, 32], sizes = [2, 32], strides = [1, 1]} : vector<2x96xf32> to vector<2x32xf32>
    %741 = arith.addf %739, %740 : vector<2x32xf32>
    %742 = arith.negf %741 : vector<2x32xf32>
    %743 = math.exp %742 : vector<2x32xf32>
    %cst_102 = arith.constant 1.000000e+00 : f32
    %744 = vector.broadcast %cst_102 : f32 to vector<2x32xf32>
    %745 = arith.addf %744, %743 : vector<2x32xf32>
    %746 = arith.divf %744, %745 : vector<2x32xf32>
    %747 = vector.extract_strided_slice %723 {offsets = [0, 64], sizes = [2, 32], strides = [1, 1]} : vector<2x96xf32> to vector<2x32xf32>
    %748 = vector.extract_strided_slice %730 {offsets = [0, 64], sizes = [2, 32], strides = [1, 1]} : vector<2x96xf32> to vector<2x32xf32>
    %749 = arith.mulf %738, %748 : vector<2x32xf32>
    %750 = arith.addf %747, %749 : vector<2x32xf32>
    %751 = math.tanh %750 : vector<2x32xf32>
    %cst_103 = arith.constant 1.000000e+00 : f32
    %752 = vector.broadcast %cst_103 : f32 to vector<2x32xf32>
    %753 = arith.subf %752, %746 : vector<2x32xf32>
    %754 = arith.mulf %753, %751 : vector<2x32xf32>
    %755 = arith.mulf %746, %694 : vector<2x32xf32>
    %756 = arith.addf %754, %755 : vector<2x32xf32>
    %757 = vector.extract_strided_slice %729 {offsets = [0, 96], sizes = [2, 96], strides = [1, 1]} : vector<2x192xf32> to vector<2x96xf32>
    %758 = vector.extract_strided_slice %725 {offsets = [0, 0], sizes = [2, 32], strides = [1, 1]} : vector<2x96xf32> to vector<2x32xf32>
    %759 = vector.extract_strided_slice %757 {offsets = [0, 0], sizes = [2, 32], strides = [1, 1]} : vector<2x96xf32> to vector<2x32xf32>
    %760 = arith.addf %758, %759 : vector<2x32xf32>
    %761 = arith.negf %760 : vector<2x32xf32>
    %762 = math.exp %761 : vector<2x32xf32>
    %cst_104 = arith.constant 1.000000e+00 : f32
    %763 = vector.broadcast %cst_104 : f32 to vector<2x32xf32>
    %764 = arith.addf %763, %762 : vector<2x32xf32>
    %765 = arith.divf %763, %764 : vector<2x32xf32>
    %766 = vector.extract_strided_slice %725 {offsets = [0, 32], sizes = [2, 32], strides = [1, 1]} : vector<2x96xf32> to vector<2x32xf32>
    %767 = vector.extract_strided_slice %757 {offsets = [0, 32], sizes = [2, 32], strides = [1, 1]} : vector<2x96xf32> to vector<2x32xf32>
    %768 = arith.addf %766, %767 : vector<2x32xf32>
    %769 = arith.negf %768 : vector<2x32xf32>
    %770 = math.exp %769 : vector<2x32xf32>
    %cst_105 = arith.constant 1.000000e+00 : f32
    %771 = vector.broadcast %cst_105 : f32 to vector<2x32xf32>
    %772 = arith.addf %771, %770 : vector<2x32xf32>
    %773 = arith.divf %771, %772 : vector<2x32xf32>
    %774 = vector.extract_strided_slice %725 {offsets = [0, 64], sizes = [2, 32], strides = [1, 1]} : vector<2x96xf32> to vector<2x32xf32>
    %775 = vector.extract_strided_slice %757 {offsets = [0, 64], sizes = [2, 32], strides = [1, 1]} : vector<2x96xf32> to vector<2x32xf32>
    %776 = arith.mulf %765, %775 : vector<2x32xf32>
    %777 = arith.addf %774, %776 : vector<2x32xf32>
    %778 = math.tanh %777 : vector<2x32xf32>
    %cst_106 = arith.constant 1.000000e+00 : f32
    %779 = vector.broadcast %cst_106 : f32 to vector<2x32xf32>
    %780 = arith.subf %779, %773 : vector<2x32xf32>
    %781 = arith.mulf %780, %778 : vector<2x32xf32>
    %782 = arith.mulf %773, %721 : vector<2x32xf32>
    %783 = arith.addf %781, %782 : vector<2x32xf32>
    %784 = vector.extract_strided_slice %533 {offsets = [0, 4, 0], sizes = [2, 1, 96], strides = [1, 1, 1]} : vector<2x8x192xf32> to vector<2x1x96xf32>
    %785 = vector.shape_cast %784 : vector<2x1x96xf32> to vector<2x96xf32>
    %786 = vector.extract_strided_slice %533 {offsets = [0, 3, 96], sizes = [2, 1, 96], strides = [1, 1, 1]} : vector<2x8x192xf32> to vector<2x1x96xf32>
    %787 = vector.shape_cast %786 : vector<2x1x96xf32> to vector<2x96xf32>
    %788 = tpu.concatenate %756, %783 in 1 : vector<2x32xf32>, vector<2x32xf32> -> vector<2x64xf32>
    %cst_107 = arith.constant dense<0.000000e+00> : vector<2x192xf32>
    %789 = tpu.matmul %788, %527, %cst_107 {dimension_numbers = #tpu.dot_dimension_numbers<[1], [0], [0], [1], [0, 0, 1, 1], [], []>} : vector<2x64xf32>, vector<64x192xf32>, vector<2x192xf32> -> vector<2x192xf32>
    %790 = vector.broadcast %528 : vector<1x192xf32> to vector<2x192xf32>
    %791 = arith.addf %789, %790 : vector<2x192xf32>
    %792 = vector.extract_strided_slice %791 {offsets = [0, 0], sizes = [2, 96], strides = [1, 1]} : vector<2x192xf32> to vector<2x96xf32>
    %793 = vector.extract_strided_slice %785 {offsets = [0, 0], sizes = [2, 32], strides = [1, 1]} : vector<2x96xf32> to vector<2x32xf32>
    %794 = vector.extract_strided_slice %792 {offsets = [0, 0], sizes = [2, 32], strides = [1, 1]} : vector<2x96xf32> to vector<2x32xf32>
    %795 = arith.addf %793, %794 : vector<2x32xf32>
    %796 = arith.negf %795 : vector<2x32xf32>
    %797 = math.exp %796 : vector<2x32xf32>
    %cst_108 = arith.constant 1.000000e+00 : f32
    %798 = vector.broadcast %cst_108 : f32 to vector<2x32xf32>
    %799 = arith.addf %798, %797 : vector<2x32xf32>
    %800 = arith.divf %798, %799 : vector<2x32xf32>
    %801 = vector.extract_strided_slice %785 {offsets = [0, 32], sizes = [2, 32], strides = [1, 1]} : vector<2x96xf32> to vector<2x32xf32>
    %802 = vector.extract_strided_slice %792 {offsets = [0, 32], sizes = [2, 32], strides = [1, 1]} : vector<2x96xf32> to vector<2x32xf32>
    %803 = arith.addf %801, %802 : vector<2x32xf32>
    %804 = arith.negf %803 : vector<2x32xf32>
    %805 = math.exp %804 : vector<2x32xf32>
    %cst_109 = arith.constant 1.000000e+00 : f32
    %806 = vector.broadcast %cst_109 : f32 to vector<2x32xf32>
    %807 = arith.addf %806, %805 : vector<2x32xf32>
    %808 = arith.divf %806, %807 : vector<2x32xf32>
    %809 = vector.extract_strided_slice %785 {offsets = [0, 64], sizes = [2, 32], strides = [1, 1]} : vector<2x96xf32> to vector<2x32xf32>
    %810 = vector.extract_strided_slice %792 {offsets = [0, 64], sizes = [2, 32], strides = [1, 1]} : vector<2x96xf32> to vector<2x32xf32>
    %811 = arith.mulf %800, %810 : vector<2x32xf32>
    %812 = arith.addf %809, %811 : vector<2x32xf32>
    %813 = math.tanh %812 : vector<2x32xf32>
    %cst_110 = arith.constant 1.000000e+00 : f32
    %814 = vector.broadcast %cst_110 : f32 to vector<2x32xf32>
    %815 = arith.subf %814, %808 : vector<2x32xf32>
    %816 = arith.mulf %815, %813 : vector<2x32xf32>
    %817 = arith.mulf %808, %756 : vector<2x32xf32>
    %818 = arith.addf %816, %817 : vector<2x32xf32>
    %819 = vector.extract_strided_slice %791 {offsets = [0, 96], sizes = [2, 96], strides = [1, 1]} : vector<2x192xf32> to vector<2x96xf32>
    %820 = vector.extract_strided_slice %787 {offsets = [0, 0], sizes = [2, 32], strides = [1, 1]} : vector<2x96xf32> to vector<2x32xf32>
    %821 = vector.extract_strided_slice %819 {offsets = [0, 0], sizes = [2, 32], strides = [1, 1]} : vector<2x96xf32> to vector<2x32xf32>
    %822 = arith.addf %820, %821 : vector<2x32xf32>
    %823 = arith.negf %822 : vector<2x32xf32>
    %824 = math.exp %823 : vector<2x32xf32>
    %cst_111 = arith.constant 1.000000e+00 : f32
    %825 = vector.broadcast %cst_111 : f32 to vector<2x32xf32>
    %826 = arith.addf %825, %824 : vector<2x32xf32>
    %827 = arith.divf %825, %826 : vector<2x32xf32>
    %828 = vector.extract_strided_slice %787 {offsets = [0, 32], sizes = [2, 32], strides = [1, 1]} : vector<2x96xf32> to vector<2x32xf32>
    %829 = vector.extract_strided_slice %819 {offsets = [0, 32], sizes = [2, 32], strides = [1, 1]} : vector<2x96xf32> to vector<2x32xf32>
    %830 = arith.addf %828, %829 : vector<2x32xf32>
    %831 = arith.negf %830 : vector<2x32xf32>
    %832 = math.exp %831 : vector<2x32xf32>
    %cst_112 = arith.constant 1.000000e+00 : f32
    %833 = vector.broadcast %cst_112 : f32 to vector<2x32xf32>
    %834 = arith.addf %833, %832 : vector<2x32xf32>
    %835 = arith.divf %833, %834 : vector<2x32xf32>
    %836 = vector.extract_strided_slice %787 {offsets = [0, 64], sizes = [2, 32], strides = [1, 1]} : vector<2x96xf32> to vector<2x32xf32>
    %837 = vector.extract_strided_slice %819 {offsets = [0, 64], sizes = [2, 32], strides = [1, 1]} : vector<2x96xf32> to vector<2x32xf32>
    %838 = arith.mulf %827, %837 : vector<2x32xf32>
    %839 = arith.addf %836, %838 : vector<2x32xf32>
    %840 = math.tanh %839 : vector<2x32xf32>
    %cst_113 = arith.constant 1.000000e+00 : f32
    %841 = vector.broadcast %cst_113 : f32 to vector<2x32xf32>
    %842 = arith.subf %841, %835 : vector<2x32xf32>
    %843 = arith.mulf %842, %840 : vector<2x32xf32>
    %844 = arith.mulf %835, %783 : vector<2x32xf32>
    %845 = arith.addf %843, %844 : vector<2x32xf32>
    %846 = vector.extract_strided_slice %533 {offsets = [0, 5, 0], sizes = [2, 1, 96], strides = [1, 1, 1]} : vector<2x8x192xf32> to vector<2x1x96xf32>
    %847 = vector.shape_cast %846 : vector<2x1x96xf32> to vector<2x96xf32>
    %848 = vector.extract_strided_slice %533 {offsets = [0, 2, 96], sizes = [2, 1, 96], strides = [1, 1, 1]} : vector<2x8x192xf32> to vector<2x1x96xf32>
    %849 = vector.shape_cast %848 : vector<2x1x96xf32> to vector<2x96xf32>
    %850 = tpu.concatenate %818, %845 in 1 : vector<2x32xf32>, vector<2x32xf32> -> vector<2x64xf32>
    %cst_114 = arith.constant dense<0.000000e+00> : vector<2x192xf32>
    %851 = tpu.matmul %850, %527, %cst_114 {dimension_numbers = #tpu.dot_dimension_numbers<[1], [0], [0], [1], [0, 0, 1, 1], [], []>} : vector<2x64xf32>, vector<64x192xf32>, vector<2x192xf32> -> vector<2x192xf32>
    %852 = vector.broadcast %528 : vector<1x192xf32> to vector<2x192xf32>
    %853 = arith.addf %851, %852 : vector<2x192xf32>
    %854 = vector.extract_strided_slice %853 {offsets = [0, 0], sizes = [2, 96], strides = [1, 1]} : vector<2x192xf32> to vector<2x96xf32>
    %855 = vector.extract_strided_slice %847 {offsets = [0, 0], sizes = [2, 32], strides = [1, 1]} : vector<2x96xf32> to vector<2x32xf32>
    %856 = vector.extract_strided_slice %854 {offsets = [0, 0], sizes = [2, 32], strides = [1, 1]} : vector<2x96xf32> to vector<2x32xf32>
    %857 = arith.addf %855, %856 : vector<2x32xf32>
    %858 = arith.negf %857 : vector<2x32xf32>
    %859 = math.exp %858 : vector<2x32xf32>
    %cst_115 = arith.constant 1.000000e+00 : f32
    %860 = vector.broadcast %cst_115 : f32 to vector<2x32xf32>
    %861 = arith.addf %860, %859 : vector<2x32xf32>
    %862 = arith.divf %860, %861 : vector<2x32xf32>
    %863 = vector.extract_strided_slice %847 {offsets = [0, 32], sizes = [2, 32], strides = [1, 1]} : vector<2x96xf32> to vector<2x32xf32>
    %864 = vector.extract_strided_slice %854 {offsets = [0, 32], sizes = [2, 32], strides = [1, 1]} : vector<2x96xf32> to vector<2x32xf32>
    %865 = arith.addf %863, %864 : vector<2x32xf32>
    %866 = arith.negf %865 : vector<2x32xf32>
    %867 = math.exp %866 : vector<2x32xf32>
    %cst_116 = arith.constant 1.000000e+00 : f32
    %868 = vector.broadcast %cst_116 : f32 to vector<2x32xf32>
    %869 = arith.addf %868, %867 : vector<2x32xf32>
    %870 = arith.divf %868, %869 : vector<2x32xf32>
    %871 = vector.extract_strided_slice %847 {offsets = [0, 64], sizes = [2, 32], strides = [1, 1]} : vector<2x96xf32> to vector<2x32xf32>
    %872 = vector.extract_strided_slice %854 {offsets = [0, 64], sizes = [2, 32], strides = [1, 1]} : vector<2x96xf32> to vector<2x32xf32>
    %873 = arith.mulf %862, %872 : vector<2x32xf32>
    %874 = arith.addf %871, %873 : vector<2x32xf32>
    %875 = math.tanh %874 : vector<2x32xf32>
    %cst_117 = arith.constant 1.000000e+00 : f32
    %876 = vector.broadcast %cst_117 : f32 to vector<2x32xf32>
    %877 = arith.subf %876, %870 : vector<2x32xf32>
    %878 = arith.mulf %877, %875 : vector<2x32xf32>
    %879 = arith.mulf %870, %818 : vector<2x32xf32>
    %880 = arith.addf %878, %879 : vector<2x32xf32>
    %881 = vector.extract_strided_slice %853 {offsets = [0, 96], sizes = [2, 96], strides = [1, 1]} : vector<2x192xf32> to vector<2x96xf32>
    %882 = vector.extract_strided_slice %849 {offsets = [0, 0], sizes = [2, 32], strides = [1, 1]} : vector<2x96xf32> to vector<2x32xf32>
    %883 = vector.extract_strided_slice %881 {offsets = [0, 0], sizes = [2, 32], strides = [1, 1]} : vector<2x96xf32> to vector<2x32xf32>
    %884 = arith.addf %882, %883 : vector<2x32xf32>
    %885 = arith.negf %884 : vector<2x32xf32>
    %886 = math.exp %885 : vector<2x32xf32>
    %cst_118 = arith.constant 1.000000e+00 : f32
    %887 = vector.broadcast %cst_118 : f32 to vector<2x32xf32>
    %888 = arith.addf %887, %886 : vector<2x32xf32>
    %889 = arith.divf %887, %888 : vector<2x32xf32>
    %890 = vector.extract_strided_slice %849 {offsets = [0, 32], sizes = [2, 32], strides = [1, 1]} : vector<2x96xf32> to vector<2x32xf32>
    %891 = vector.extract_strided_slice %881 {offsets = [0, 32], sizes = [2, 32], strides = [1, 1]} : vector<2x96xf32> to vector<2x32xf32>
    %892 = arith.addf %890, %891 : vector<2x32xf32>
    %893 = arith.negf %892 : vector<2x32xf32>
    %894 = math.exp %893 : vector<2x32xf32>
    %cst_119 = arith.constant 1.000000e+00 : f32
    %895 = vector.broadcast %cst_119 : f32 to vector<2x32xf32>
    %896 = arith.addf %895, %894 : vector<2x32xf32>
    %897 = arith.divf %895, %896 : vector<2x32xf32>
    %898 = vector.extract_strided_slice %849 {offsets = [0, 64], sizes = [2, 32], strides = [1, 1]} : vector<2x96xf32> to vector<2x32xf32>
    %899 = vector.extract_strided_slice %881 {offsets = [0, 64], sizes = [2, 32], strides = [1, 1]} : vector<2x96xf32> to vector<2x32xf32>
    %900 = arith.mulf %889, %899 : vector<2x32xf32>
    %901 = arith.addf %898, %900 : vector<2x32xf32>
    %902 = math.tanh %901 : vector<2x32xf32>
    %cst_120 = arith.constant 1.000000e+00 : f32
    %903 = vector.broadcast %cst_120 : f32 to vector<2x32xf32>
    %904 = arith.subf %903, %897 : vector<2x32xf32>
    %905 = arith.mulf %904, %902 : vector<2x32xf32>
    %906 = arith.mulf %897, %845 : vector<2x32xf32>
    %907 = arith.addf %905, %906 : vector<2x32xf32>
    %908 = vector.extract_strided_slice %533 {offsets = [0, 6, 0], sizes = [2, 1, 96], strides = [1, 1, 1]} : vector<2x8x192xf32> to vector<2x1x96xf32>
    %909 = vector.shape_cast %908 : vector<2x1x96xf32> to vector<2x96xf32>
    %910 = vector.extract_strided_slice %533 {offsets = [0, 1, 96], sizes = [2, 1, 96], strides = [1, 1, 1]} : vector<2x8x192xf32> to vector<2x1x96xf32>
    %911 = vector.shape_cast %910 : vector<2x1x96xf32> to vector<2x96xf32>
    %912 = tpu.concatenate %880, %907 in 1 : vector<2x32xf32>, vector<2x32xf32> -> vector<2x64xf32>
    %cst_121 = arith.constant dense<0.000000e+00> : vector<2x192xf32>
    %913 = tpu.matmul %912, %527, %cst_121 {dimension_numbers = #tpu.dot_dimension_numbers<[1], [0], [0], [1], [0, 0, 1, 1], [], []>} : vector<2x64xf32>, vector<64x192xf32>, vector<2x192xf32> -> vector<2x192xf32>
    %914 = vector.broadcast %528 : vector<1x192xf32> to vector<2x192xf32>
    %915 = arith.addf %913, %914 : vector<2x192xf32>
    %916 = vector.extract_strided_slice %915 {offsets = [0, 0], sizes = [2, 96], strides = [1, 1]} : vector<2x192xf32> to vector<2x96xf32>
    %917 = vector.extract_strided_slice %909 {offsets = [0, 0], sizes = [2, 32], strides = [1, 1]} : vector<2x96xf32> to vector<2x32xf32>
    %918 = vector.extract_strided_slice %916 {offsets = [0, 0], sizes = [2, 32], strides = [1, 1]} : vector<2x96xf32> to vector<2x32xf32>
    %919 = arith.addf %917, %918 : vector<2x32xf32>
    %920 = arith.negf %919 : vector<2x32xf32>
    %921 = math.exp %920 : vector<2x32xf32>
    %cst_122 = arith.constant 1.000000e+00 : f32
    %922 = vector.broadcast %cst_122 : f32 to vector<2x32xf32>
    %923 = arith.addf %922, %921 : vector<2x32xf32>
    %924 = arith.divf %922, %923 : vector<2x32xf32>
    %925 = vector.extract_strided_slice %909 {offsets = [0, 32], sizes = [2, 32], strides = [1, 1]} : vector<2x96xf32> to vector<2x32xf32>
    %926 = vector.extract_strided_slice %916 {offsets = [0, 32], sizes = [2, 32], strides = [1, 1]} : vector<2x96xf32> to vector<2x32xf32>
    %927 = arith.addf %925, %926 : vector<2x32xf32>
    %928 = arith.negf %927 : vector<2x32xf32>
    %929 = math.exp %928 : vector<2x32xf32>
    %cst_123 = arith.constant 1.000000e+00 : f32
    %930 = vector.broadcast %cst_123 : f32 to vector<2x32xf32>
    %931 = arith.addf %930, %929 : vector<2x32xf32>
    %932 = arith.divf %930, %931 : vector<2x32xf32>
    %933 = vector.extract_strided_slice %909 {offsets = [0, 64], sizes = [2, 32], strides = [1, 1]} : vector<2x96xf32> to vector<2x32xf32>
    %934 = vector.extract_strided_slice %916 {offsets = [0, 64], sizes = [2, 32], strides = [1, 1]} : vector<2x96xf32> to vector<2x32xf32>
    %935 = arith.mulf %924, %934 : vector<2x32xf32>
    %936 = arith.addf %933, %935 : vector<2x32xf32>
    %937 = math.tanh %936 : vector<2x32xf32>
    %cst_124 = arith.constant 1.000000e+00 : f32
    %938 = vector.broadcast %cst_124 : f32 to vector<2x32xf32>
    %939 = arith.subf %938, %932 : vector<2x32xf32>
    %940 = arith.mulf %939, %937 : vector<2x32xf32>
    %941 = arith.mulf %932, %880 : vector<2x32xf32>
    %942 = arith.addf %940, %941 : vector<2x32xf32>
    %943 = vector.extract_strided_slice %915 {offsets = [0, 96], sizes = [2, 96], strides = [1, 1]} : vector<2x192xf32> to vector<2x96xf32>
    %944 = vector.extract_strided_slice %911 {offsets = [0, 0], sizes = [2, 32], strides = [1, 1]} : vector<2x96xf32> to vector<2x32xf32>
    %945 = vector.extract_strided_slice %943 {offsets = [0, 0], sizes = [2, 32], strides = [1, 1]} : vector<2x96xf32> to vector<2x32xf32>
    %946 = arith.addf %944, %945 : vector<2x32xf32>
    %947 = arith.negf %946 : vector<2x32xf32>
    %948 = math.exp %947 : vector<2x32xf32>
    %cst_125 = arith.constant 1.000000e+00 : f32
    %949 = vector.broadcast %cst_125 : f32 to vector<2x32xf32>
    %950 = arith.addf %949, %948 : vector<2x32xf32>
    %951 = arith.divf %949, %950 : vector<2x32xf32>
    %952 = vector.extract_strided_slice %911 {offsets = [0, 32], sizes = [2, 32], strides = [1, 1]} : vector<2x96xf32> to vector<2x32xf32>
    %953 = vector.extract_strided_slice %943 {offsets = [0, 32], sizes = [2, 32], strides = [1, 1]} : vector<2x96xf32> to vector<2x32xf32>
    %954 = arith.addf %952, %953 : vector<2x32xf32>
    %955 = arith.negf %954 : vector<2x32xf32>
    %956 = math.exp %955 : vector<2x32xf32>
    %cst_126 = arith.constant 1.000000e+00 : f32
    %957 = vector.broadcast %cst_126 : f32 to vector<2x32xf32>
    %958 = arith.addf %957, %956 : vector<2x32xf32>
    %959 = arith.divf %957, %958 : vector<2x32xf32>
    %960 = vector.extract_strided_slice %911 {offsets = [0, 64], sizes = [2, 32], strides = [1, 1]} : vector<2x96xf32> to vector<2x32xf32>
    %961 = vector.extract_strided_slice %943 {offsets = [0, 64], sizes = [2, 32], strides = [1, 1]} : vector<2x96xf32> to vector<2x32xf32>
    %962 = arith.mulf %951, %961 : vector<2x32xf32>
    %963 = arith.addf %960, %962 : vector<2x32xf32>
    %964 = math.tanh %963 : vector<2x32xf32>
    %cst_127 = arith.constant 1.000000e+00 : f32
    %965 = vector.broadcast %cst_127 : f32 to vector<2x32xf32>
    %966 = arith.subf %965, %959 : vector<2x32xf32>
    %967 = arith.mulf %966, %964 : vector<2x32xf32>
    %968 = arith.mulf %959, %907 : vector<2x32xf32>
    %969 = arith.addf %967, %968 : vector<2x32xf32>
    %970 = vector.extract_strided_slice %533 {offsets = [0, 7, 0], sizes = [2, 1, 96], strides = [1, 1, 1]} : vector<2x8x192xf32> to vector<2x1x96xf32>
    %971 = vector.shape_cast %970 : vector<2x1x96xf32> to vector<2x96xf32>
    %972 = vector.extract_strided_slice %533 {offsets = [0, 0, 96], sizes = [2, 1, 96], strides = [1, 1, 1]} : vector<2x8x192xf32> to vector<2x1x96xf32>
    %973 = vector.shape_cast %972 : vector<2x1x96xf32> to vector<2x96xf32>
    %974 = tpu.concatenate %942, %969 in 1 : vector<2x32xf32>, vector<2x32xf32> -> vector<2x64xf32>
    %cst_128 = arith.constant dense<0.000000e+00> : vector<2x192xf32>
    %975 = tpu.matmul %974, %527, %cst_128 {dimension_numbers = #tpu.dot_dimension_numbers<[1], [0], [0], [1], [0, 0, 1, 1], [], []>} : vector<2x64xf32>, vector<64x192xf32>, vector<2x192xf32> -> vector<2x192xf32>
    %976 = vector.broadcast %528 : vector<1x192xf32> to vector<2x192xf32>
    %977 = arith.addf %975, %976 : vector<2x192xf32>
    %978 = vector.extract_strided_slice %977 {offsets = [0, 0], sizes = [2, 96], strides = [1, 1]} : vector<2x192xf32> to vector<2x96xf32>
    %979 = vector.extract_strided_slice %971 {offsets = [0, 0], sizes = [2, 32], strides = [1, 1]} : vector<2x96xf32> to vector<2x32xf32>
    %980 = vector.extract_strided_slice %978 {offsets = [0, 0], sizes = [2, 32], strides = [1, 1]} : vector<2x96xf32> to vector<2x32xf32>
    %981 = arith.addf %979, %980 : vector<2x32xf32>
    %982 = arith.negf %981 : vector<2x32xf32>
    %983 = math.exp %982 : vector<2x32xf32>
    %cst_129 = arith.constant 1.000000e+00 : f32
    %984 = vector.broadcast %cst_129 : f32 to vector<2x32xf32>
    %985 = arith.addf %984, %983 : vector<2x32xf32>
    %986 = arith.divf %984, %985 : vector<2x32xf32>
    %987 = vector.extract_strided_slice %971 {offsets = [0, 32], sizes = [2, 32], strides = [1, 1]} : vector<2x96xf32> to vector<2x32xf32>
    %988 = vector.extract_strided_slice %978 {offsets = [0, 32], sizes = [2, 32], strides = [1, 1]} : vector<2x96xf32> to vector<2x32xf32>
    %989 = arith.addf %987, %988 : vector<2x32xf32>
    %990 = arith.negf %989 : vector<2x32xf32>
    %991 = math.exp %990 : vector<2x32xf32>
    %cst_130 = arith.constant 1.000000e+00 : f32
    %992 = vector.broadcast %cst_130 : f32 to vector<2x32xf32>
    %993 = arith.addf %992, %991 : vector<2x32xf32>
    %994 = arith.divf %992, %993 : vector<2x32xf32>
    %995 = vector.extract_strided_slice %971 {offsets = [0, 64], sizes = [2, 32], strides = [1, 1]} : vector<2x96xf32> to vector<2x32xf32>
    %996 = vector.extract_strided_slice %978 {offsets = [0, 64], sizes = [2, 32], strides = [1, 1]} : vector<2x96xf32> to vector<2x32xf32>
    %997 = arith.mulf %986, %996 : vector<2x32xf32>
    %998 = arith.addf %995, %997 : vector<2x32xf32>
    %999 = math.tanh %998 : vector<2x32xf32>
    %cst_131 = arith.constant 1.000000e+00 : f32
    %1000 = vector.broadcast %cst_131 : f32 to vector<2x32xf32>
    %1001 = arith.subf %1000, %994 : vector<2x32xf32>
    %1002 = arith.mulf %1001, %999 : vector<2x32xf32>
    %1003 = arith.mulf %994, %942 : vector<2x32xf32>
    %1004 = arith.addf %1002, %1003 : vector<2x32xf32>
    %1005 = vector.extract_strided_slice %977 {offsets = [0, 96], sizes = [2, 96], strides = [1, 1]} : vector<2x192xf32> to vector<2x96xf32>
    %1006 = vector.extract_strided_slice %973 {offsets = [0, 0], sizes = [2, 32], strides = [1, 1]} : vector<2x96xf32> to vector<2x32xf32>
    %1007 = vector.extract_strided_slice %1005 {offsets = [0, 0], sizes = [2, 32], strides = [1, 1]} : vector<2x96xf32> to vector<2x32xf32>
    %1008 = arith.addf %1006, %1007 : vector<2x32xf32>
    %1009 = arith.negf %1008 : vector<2x32xf32>
    %1010 = math.exp %1009 : vector<2x32xf32>
    %cst_132 = arith.constant 1.000000e+00 : f32
    %1011 = vector.broadcast %cst_132 : f32 to vector<2x32xf32>
    %1012 = arith.addf %1011, %1010 : vector<2x32xf32>
    %1013 = arith.divf %1011, %1012 : vector<2x32xf32>
    %1014 = vector.extract_strided_slice %973 {offsets = [0, 32], sizes = [2, 32], strides = [1, 1]} : vector<2x96xf32> to vector<2x32xf32>
    %1015 = vector.extract_strided_slice %1005 {offsets = [0, 32], sizes = [2, 32], strides = [1, 1]} : vector<2x96xf32> to vector<2x32xf32>
    %1016 = arith.addf %1014, %1015 : vector<2x32xf32>
    %1017 = arith.negf %1016 : vector<2x32xf32>
    %1018 = math.exp %1017 : vector<2x32xf32>
    %cst_133 = arith.constant 1.000000e+00 : f32
    %1019 = vector.broadcast %cst_133 : f32 to vector<2x32xf32>
    %1020 = arith.addf %1019, %1018 : vector<2x32xf32>
    %1021 = arith.divf %1019, %1020 : vector<2x32xf32>
    %1022 = vector.extract_strided_slice %973 {offsets = [0, 64], sizes = [2, 32], strides = [1, 1]} : vector<2x96xf32> to vector<2x32xf32>
    %1023 = vector.extract_strided_slice %1005 {offsets = [0, 64], sizes = [2, 32], strides = [1, 1]} : vector<2x96xf32> to vector<2x32xf32>
    %1024 = arith.mulf %1013, %1023 : vector<2x32xf32>
    %1025 = arith.addf %1022, %1024 : vector<2x32xf32>
    %1026 = math.tanh %1025 : vector<2x32xf32>
    %cst_134 = arith.constant 1.000000e+00 : f32
    %1027 = vector.broadcast %cst_134 : f32 to vector<2x32xf32>
    %1028 = arith.subf %1027, %1021 : vector<2x32xf32>
    %1029 = arith.mulf %1028, %1026 : vector<2x32xf32>
    %1030 = arith.mulf %1021, %969 : vector<2x32xf32>
    %1031 = arith.addf %1029, %1030 : vector<2x32xf32>
    %1032 = arith.addf %570, %1031 : vector<2x32xf32>
    %1033 = arith.addf %632, %969 : vector<2x32xf32>
    %1034 = arith.addf %694, %907 : vector<2x32xf32>
    %1035 = arith.addf %756, %845 : vector<2x32xf32>
    %1036 = arith.addf %818, %783 : vector<2x32xf32>
    %1037 = arith.addf %880, %721 : vector<2x32xf32>
    %1038 = arith.addf %942, %659 : vector<2x32xf32>
    %1039 = arith.addf %1004, %597 : vector<2x32xf32>
    %1040 = vector.shape_cast %1032 : vector<2x32xf32> to vector<2x1x32xf32>
    %1041 = vector.shape_cast %1033 : vector<2x32xf32> to vector<2x1x32xf32>
    %1042 = vector.shape_cast %1034 : vector<2x32xf32> to vector<2x1x32xf32>
    %1043 = vector.shape_cast %1035 : vector<2x32xf32> to vector<2x1x32xf32>
    %1044 = vector.shape_cast %1036 : vector<2x32xf32> to vector<2x1x32xf32>
    %1045 = vector.shape_cast %1037 : vector<2x32xf32> to vector<2x1x32xf32>
    %1046 = vector.shape_cast %1038 : vector<2x32xf32> to vector<2x1x32xf32>
    %1047 = vector.shape_cast %1039 : vector<2x32xf32> to vector<2x1x32xf32>
    %1048 = tpu.concatenate %1040, %1041, %1042, %1043, %1044, %1045, %1046, %1047 in 1 : vector<2x1x32xf32>, vector<2x1x32xf32>, vector<2x1x32xf32>, vector<2x1x32xf32>, vector<2x1x32xf32>, vector<2x1x32xf32>, vector<2x1x32xf32>, vector<2x1x32xf32> -> vector<2x8x32xf32>
    %c0_135 = arith.constant 0 : index
    %c0_136 = arith.constant 0 : index
    %1049 = vector.load %arg10[%c0_135, %c0_136] : memref<768x64xf32, #tpu.memory_space<vmem>>, vector<768x64xf32>
    %c0_137 = arith.constant 0 : index
    %c0_138 = arith.constant 0 : index
    %1050 = vector.load %arg11[%c0_137, %c0_138] : memref<1x64xf32, #tpu.memory_space<vmem>>, vector<1x64xf32>
    %c0_139 = arith.constant 0 : index
    %c0_140 = arith.constant 0 : index
    %1051 = vector.load %arg1[%c0_139, %c0_140] : memref<2x768xf32, #tpu.memory_space<vmem>>, vector<2x768xf32>
    %cst_141 = arith.constant dense<0.000000e+00> : vector<2x64xf32>
    %1052 = tpu.matmul %1051, %1049, %cst_141 {dimension_numbers = #tpu.dot_dimension_numbers<[1], [0], [0], [1], [0, 0, 1, 1], [], []>} : vector<2x768xf32>, vector<768x64xf32>, vector<2x64xf32> -> vector<2x64xf32>
    %1053 = vector.broadcast %1050 : vector<1x64xf32> to vector<2x64xf32>
    %1054 = arith.addf %1052, %1053 : vector<2x64xf32>
    %1055 = vector.extract_strided_slice %1054 {offsets = [0, 0], sizes = [2, 32], strides = [1, 1]} : vector<2x64xf32> to vector<2x32xf32>
    %1056 = vector.extract_strided_slice %1054 {offsets = [0, 32], sizes = [2, 32], strides = [1, 1]} : vector<2x64xf32> to vector<2x32xf32>
    %1057 = vector.shape_cast %1055 : vector<2x32xf32> to vector<2x1x32xf32>
    %1058 = vector.broadcast %1057 : vector<2x1x32xf32> to vector<2x8x32xf32>
    %1059 = arith.mulf %1048, %1058 : vector<2x8x32xf32>
    %cst_142 = arith.constant dense<0.000000e+00> : vector<2x8xf32>
    %1060 = vector.multi_reduction <add>, %1059, %cst_142 [2] : vector<2x8x32xf32> to vector<2x8xf32>
    %1061 = vector.shape_cast %1056 : vector<2x32xf32> to vector<2x1x32xf32>
    %1062 = vector.broadcast %1061 : vector<2x1x32xf32> to vector<2x8x32xf32>
    %1063 = arith.mulf %1048, %1062 : vector<2x8x32xf32>
    %cst_143 = arith.constant dense<0.000000e+00> : vector<2x8xf32>
    %1064 = vector.multi_reduction <add>, %1063, %cst_143 [2] : vector<2x8x32xf32> to vector<2x8xf32>
    %1065 = arith.negf %1060 : vector<2x8xf32>
    %1066 = math.exp %1065 : vector<2x8xf32>
    %cst_144 = arith.constant 1.000000e+00 : f32
    %1067 = vector.broadcast %cst_144 : f32 to vector<2x8xf32>
    %1068 = arith.addf %1067, %1066 : vector<2x8xf32>
    %1069 = arith.divf %1067, %1068 : vector<2x8xf32>
    %c0_145 = arith.constant 0 : index
    %c0_146 = arith.constant 0 : index
    %c0_147 = arith.constant 0 : index
    %1070 = vector.load %arg12[%c0_145, %c0_146, %c0_147] : memref<2x2x8xf32, #tpu.memory_space<vmem>>, vector<1x2x8xf32>
    %1071 = vector.shape_cast %1070 : vector<1x2x8xf32> to vector<2x8xf32>
    %1072 = vector.shape_cast %1069 : vector<2x8xf32> to vector<1x2x8xf32>
    tpu.vector_store %arg12[%c0_145, %c0_146, %c0_147], %1072 {strides = array<i32>} : memref<2x2x8xf32, #tpu.memory_space<vmem>>, vector<1x2x8xf32>,
    %1073 = arith.negf %1064 : vector<2x8xf32>
    %1074 = math.exp %1073 : vector<2x8xf32>
    %cst_148 = arith.constant 1.000000e+00 : f32
    %1075 = vector.broadcast %cst_148 : f32 to vector<2x8xf32>
    %1076 = arith.addf %1075, %1074 : vector<2x8xf32>
    %1077 = arith.divf %1075, %1076 : vector<2x8xf32>
    %c1 = arith.constant 1 : index
    %c0_149 = arith.constant 0 : index
    %c0_150 = arith.constant 0 : index
    %1078 = vector.load %arg12[%c1, %c0_149, %c0_150] : memref<2x2x8xf32, #tpu.memory_space<vmem>>, vector<1x2x8xf32>
    %1079 = vector.shape_cast %1078 : vector<1x2x8xf32> to vector<2x8xf32>
    %1080 = vector.shape_cast %1077 : vector<2x8xf32> to vector<1x2x8xf32>
    tpu.vector_store %arg12[%c1, %c0_149, %c0_150], %1080 {strides = array<i32>} : memref<2x2x8xf32, #tpu.memory_space<vmem>>, vector<1x2x8xf32>,
    return
  }
}

</mosaic_0001>

<bundles_post_ra>
// kernel: model_forward.1
= control target key start
LH: loop header
LB: loop body
LE: loop exit
PB: predicated region body
PF: predicated region fallthrough
CT: control target
= control target key end

     0   :  { %v6450_v3 = vmov 0.0   ;;  %vm719_vm0 = vcmask 1041409   ;;  %s6453_s14 = smov 32   ;;  %vm732_vm1 = vcmask 261120   ;;  %vm516_vm2 = vcmask 523264   ;;  %s8975_s2 = inlined_call_operand.vmem [shape: f32[768,192], index: 2, kind: input, shape index: {}]   ;;  %s8976_s0 = inlined_call_operand.vmem [shape: f32[2,8,768], index: 0, kind: input, shape index: {}]   ;;  %s8977_s4 = inlined_call_operand.vmem [shape: f32[64,192], index: 4, kind: input, shape index: {}]   ;;  %s8978_s5 = inlined_call_operand.vmem [shape: f32[1,192], index: 5, kind: input, shape index: {}]   ;;  %s8979_s3 = inlined_call_operand.vmem [shape: f32[1,192], index: 3, kind: input, shape index: {}]   ;;  %s8980_s6 = inlined_call_operand.vmem [shape: f32[64,192], index: 6, kind: input, shape index: {}]   ;;  %s8981_s8 = inlined_call_operand.vmem [shape: f32[64,192], index: 8, kind: input, shape index: {}]   ;;  %s8982_s9 = inlined_call_operand.vmem [shape: f32[1,192], index: 9, kind: input, shape index: {}]   ;;  %s8983_s7 = inlined_call_operand.vmem [shape: f32[1,192], index: 7, kind: input, shape index: {}]   ;;  %s8984_s10 = inlined_call_operand.vmem [shape: f32[768,64], index: 10, kind: input, shape index: {}]   ;;  %s8985_s1 = inlined_call_operand.vmem [shape: f32[2,768], index: 1, kind: input, shape index: {}]   ;;  %s8986_s11 = inlined_call_operand.vmem [shape: f32[1,64], index: 11, kind: input, shape index: {}]   ;;  %s8987_s12 = inlined_call_operand.vmem [shape: f32[2,2,8], index: 12, kind: output, shape index: {}]  }
   0x1   :  { %v54_v0 = vld [vmem:[%s8975_s2 + $0x8] sm:$0xff]  ;;  %v56_v1 = vld [vmem:[%s8975_s2 + $0x18] sm:$0xff]  ;;  %v53_v2 = vld [vmem:[%s8975_s2] sm:$0xff]  ;;  %584 = vmatprep.mubr.f32.mxu1 %v6450_v3  ;;  %vm945_vm3 = vcmask 1042434   ;;  %vm2072_vm4 = vcmask 1047559   ;;  %vm1172_vm5 = vcmask 1043459  }
   0x2   :  { %v5343_v4 = vpack.c.bf16 %v56_v1, %v54_v0  ;;  %v55_v5 = vld [vmem:[%s8975_s2 + $0x10] sm:$0xff]  ;;  %v58_v6 = vld [vmem:[%s8975_s2 + $0x28] sm:$0xff]  ;;  %v60_v7 = vld [vmem:[%s8975_s2 + $0x38] sm:$0xff]  ;;  %vm1847_vm6 = vcmask 1046534   ;;  %vm1397_vm7 = vcmask 1044484   ;;  %vm1620_vm8 = vcmask 1045509  }
   0x3   :  { %v5345_v8 = vpack.c.bf16 %v55_v5, %v53_v2  ;;  %v5347_v9 = vpack.c.bf16 %v60_v7, %v58_v6  ;;  %v57_v10 = vld [vmem:[%s8975_s2 + $0x20] sm:$0xff]  ;;  %v59_v11 = vld [vmem:[%s8975_s2 + $0x30] sm:$0xff]  ;;  %v62_v12 = vld [vmem:[%s8975_s2 + $0x48] sm:$0xff]  ;;  %vm2638_vm9 = vcmask 1040384   ;;  %vm2641_vm10 = vcmask 1041408  }
   0x4   :  { %5344 = vmatprep.subr.bf16.mxu0 %v5343_v4  ;;  %v64_v13 = vld [vmem:[%s8975_s2 + $0x58] sm:$0xff]  ;;  %v5349_v14 = vpack.c.bf16 %v59_v11, %v57_v10  ;;  %v61_v16 = vld [vmem:[%s8975_s2 + $0x40] sm:$0xff]  ;;  %v63_v17 = vld [vmem:[%s8975_s2 + $0x50] sm:$0xff]  ;;  %vm2644_vm11 = vcmask 1042432   ;;  %vm2647_vm12 = vcmask 1043456   ;;  %vm2650_vm13 = vcmask 1044480  }
   0x5   :  { %5346 = vmatpush1.bf16.msra.mxu0 %v5345_v8  ;;  %v5351_v15 = vpack.c.bf16 %v64_v13, %v62_v12  ;;  %v66_v18 = vld [vmem:[%s8975_s2 + $0x68] sm:$0xff]  ;;  %v68_v19 = vld [vmem:[%s8975_s2 + $0x78] sm:$0xff]  ;;  %v5353_v20 = vpack.c.bf16 %v63_v17, %v61_v16  ;;  %v65_v22 = vld [vmem:[%s8975_s2 + $0x60] sm:$0xff]  ;;  %vm2653_vm14 = vcmask 1045504   ;;  %vm2656_vm15 = vcmask 1046528  }
   0x6   :  { %5348 = vmatprep.subr.bf16.mxu0 %v5347_v9  ;;  %v5355_v21 = vpack.c.bf16 %v68_v19, %v66_v18  ;;  %v67_v23 = vld [vmem:[%s8975_s2 + $0x70] sm:$0xff]  ;;  %v70_v24 = vld [vmem:[%s8975_s2 + $0x88] sm:$0xff]  ;;  %v72_v25 = vld [vmem:[%s8975_s2 + $0x98] sm:$0xff] }
   0x7   :  { %v5357_v26 = vpack.c.bf16 %v67_v23, %v65_v22  ;;  %v5359_v27 = vpack.c.bf16 %v72_v25, %v70_v24  ;;  %v69_v28 = vld [vmem:[%s8975_s2 + $0x80] sm:$0xff]  ;;  %v71_v29 = vld [vmem:[%s8975_s2 + $0x90] sm:$0xff]  ;;  %v74_v30 = vld [vmem:[%s8975_s2 + $0xa8] sm:$0xff] }
   0x8   :  { %v76_v31 = vld [vmem:[%s8975_s2 + $0xb8] sm:$0xff]  ;;  %v5361_v32 = vpack.c.bf16 %v71_v29, %v69_v28  ;;  %v73_v34 = vld [vmem:[%s8975_s2 + $0xa0] sm:$0xff]  ;;  %v75_v35 = vld [vmem:[%s8975_s2 + $0xb0] sm:$0xff] }
   0x9   :  { %5350 = vmatpush1.bf16.msra.mxu0 %v5349_v14  ;;  %v5363_v33 = vpack.c.bf16 %v76_v31, %v74_v30  ;;  %v78_v36 = vld [vmem:[%s8975_s2 + $0xc8] sm:$0xff]  ;;  %v80_v37 = vld [vmem:[%s8975_s2 + $0xd8] sm:$0xff]  ;;  %v5365_v38 = vpack.c.bf16 %v75_v35, %v73_v34  ;;  %v77_v40 = vld [vmem:[%s8975_s2 + $0xc0] sm:$0xff] }
   0xa   :  { %5352 = vmatprep.subr.bf16.mxu0 %v5351_v15  ;;  %v5367_v39 = vpack.c.bf16 %v80_v37, %v78_v36  ;;  %v79_v41 = vld [vmem:[%s8975_s2 + $0xd0] sm:$0xff]  ;;  %v42_v42 = vld [vmem:[%s8976_s0 + $0x8] sm:$0xff]  ;;  %v84_v44 = vld [vmem:[%s8975_s2 + $0xf8] sm:$0xff] }
   0xb   :  { %v82_v43 = vld [vmem:[%s8975_s2 + $0xe8] sm:$0xff]  ;;  %338 = vmatprep.mubr.f32.mxu0 %v42_v42  ;;  %v5369_v45 = vpack.c.bf16 %v79_v41, %v77_v40  ;;  %v81_v47 = vld [vmem:[%s8975_s2 + $0xe0] sm:$0xff]  ;;  %v83_v48 = vld [vmem:[%s8975_s2 + $0xf0] sm:$0xff] }
   0xc   :  { %v5371_v46 = vpack.c.bf16 %v84_v44, %v82_v43  ;;  %v86_v49 = vld [vmem:[%s8975_s2 + $0x108] sm:$0xff]  ;;  %v88_v50 = vld [vmem:[%s8975_s2 + $0x118] sm:$0xff]  ;;  %v5373_v51 = vpack.c.bf16 %v83_v48, %v81_v47  ;;  %v85_v52 = vld [vmem:[%s8975_s2 + $0x100] sm:$0xff] }
   0xd   :  { %5354 = vmatpush1.bf16.msra.mxu0 %v5353_v20  ;;  %v87_v53 = vld [vmem:[%s8975_s2 + $0x110] sm:$0xff]  ;;  %v247_v54 = vld [vmem:[%s8977_s4 + $0x8] sm:$0xff]  ;;  %v5375_v55 = vpack.c.bf16 %v88_v50, %v86_v49  ;;  %v249_v56 = vld [vmem:[%s8977_s4 + $0x18] sm:$0xff] }
   0xe   :  { %5356 = vmatprep.subr.bf16.mxu0 %v5355_v21  ;;  %v246_v57 = vld [vmem:[%s8977_s4] sm:$0xff]  ;;  %v248_v58 = vld [vmem:[%s8977_s4 + $0x10] sm:$0xff]  ;;  %v90_v59 = vld [vmem:[%s8975_s2 + $0x128] sm:$0xff]  ;;  %v6651_v61 = vpack.c.bf16 %v249_v56, %v247_v54  ;;  %v5377_v1 = vpack.c.bf16 %v87_v53, %v85_v52 }
   0xf   :  { %v92_v60 = vld [vmem:[%s8975_s2 + $0x138] sm:$0xff]  ;;  %v6653_v62 = vpack.c.bf16 %v248_v58, %v246_v57  ;;  %v251_v63 = vld [vmem:[%s8977_s4 + $0x28] sm:$0xff]  ;;  %v89_v2 = vld [vmem:[%s8975_s2 + $0x120] sm:$0xff] }
  0x10   :  { %v253_v0 = vld [vmem:[%s8977_s4 + $0x38] sm:$0xff]  ;;  %5536 = vmatprep.subr.bf16.mxu1 %v6651_v61  ;;  %v250_v5 = vld [vmem:[%s8977_s4 + $0x20] sm:$0xff]  ;;  %v252_v6 = vld [vmem:[%s8977_s4 + $0x30] sm:$0xff]  ;;  %v5379_v7 = vpack.c.bf16 %v92_v60, %v90_v59 }
  0x11   :  { %5358 = vmatpush1.bf16.msra.mxu0 %v5357_v26  ;;  %v6665_v4 = vpack.c.bf16 %v253_v0, %v251_v63  ;;  %v91_v8 = vld [vmem:[%s8975_s2 + $0x130] sm:$0xff]  ;;  %v94_v9 = vld [vmem:[%s8975_s2 + $0x148] sm:$0xff]  ;;  %v96_v10 = vld [vmem:[%s8975_s2 + $0x158] sm:$0xff]  ;;  %5538 = vmatpush1.bf16.msra.mxu1 %v6653_v62  ;;  %v6683_v11 = vpack.c.bf16 %v252_v6, %v250_v5 }
  0x12   :  { %5360 = vmatprep.subr.bf16.mxu0 %v5359_v27  ;;  %v255_v12 = vld [vmem:[%s8977_s4 + $0x48] sm:$0xff]  ;;  %v257_v13 = vld [vmem:[%s8977_s4 + $0x58] sm:$0xff]  ;;  %v254_v14 = vld [vmem:[%s8977_s4 + $0x40] sm:$0xff]  ;;  %v5381_v17 = vpack.c.bf16 %v91_v8, %v89_v2  ;;  %v5383_v20 = vpack.c.bf16 %v96_v10, %v94_v9 }
  0x13   :  { %5540 = vmatprep.subr.bf16.mxu1 %v6665_v4  ;;  %v6695_v15 = vpack.c.bf16 %v257_v13, %v255_v12  ;;  %v256_v16 = vld [vmem:[%s8977_s4 + $0x50] sm:$0xff]  ;;  %v93_v18 = vld [vmem:[%s8975_s2 + $0x140] sm:$0xff]  ;;  %v259_v19 = vld [vmem:[%s8977_s4 + $0x68] sm:$0xff] }
  0x14   :  { %v95_v21 = vld [vmem:[%s8975_s2 + $0x150] sm:$0xff]  ;;  %v98_v22 = vld [vmem:[%s8975_s2 + $0x168] sm:$0xff]  ;;  %v6713_v23 = vpack.c.bf16 %v256_v16, %v254_v14  ;;  %v261_v24 = vld [vmem:[%s8977_s4 + $0x78] sm:$0xff] }
  0x15   :  { %5362 = vmatpush1.bf16.msra.mxu0 %v5361_v32  ;;  %5542 = vmatpush1.bf16.msra.mxu1 %v6683_v11  ;;  %v100_v25 = vld [vmem:[%s8975_s2 + $0x178] sm:$0xff]  ;;  %v6722_v26 = vpack.c.bf16 %v261_v24, %v259_v19  ;;  %v258_v27 = vld [vmem:[%s8977_s4 + $0x60] sm:$0xff]  ;;  %v260_v28 = vld [vmem:[%s8977_s4 + $0x70] sm:$0xff]  ;;  %v5385_v29 = vpack.c.bf16 %v95_v21, %v93_v18 }
  0x16   :  { %5364 = vmatprep.subr.bf16.mxu0 %v5363_v33  ;;  %5544 = vmatprep.subr.bf16.mxu1 %v6695_v15  ;;  %v5387_v30 = vpack.c.bf16 %v100_v25, %v98_v22  ;;  %v97_v31 = vld [vmem:[%s8975_s2 + $0x160] sm:$0xff]  ;;  %v99_v32 = vld [vmem:[%s8975_s2 + $0x170] sm:$0xff]  ;;  %v6737_v33 = vpack.c.bf16 %v260_v28, %v258_v27  ;;  %v102_v34 = vld [vmem:[%s8975_s2 + $0x188] sm:$0xff] }
  0x17   :  { %v104_v35 = vld [vmem:[%s8975_s2 + $0x198] sm:$0xff]  ;;  %v5389_v36 = vpack.c.bf16 %v99_v32, %v97_v31  ;;  %v106_v40 = vld [vmem:[%s8975_s2 + $0x1a8] sm:$0xff]  ;;  %v105_v44 = vld [vmem:[%s8975_s2 + $0x1a0] sm:$0xff] }
  0x18   :  { %v5391_v37 = vpack.c.bf16 %v104_v35, %v102_v34  ;;  %v108_v41 = vld [vmem:[%s8975_s2 + $0x1b8] sm:$0xff]  ;;  %v109_v50 = vld [vmem:[%s8975_s2 + $0x1c0] sm:$0xff]  ;;  %v114_v52 = vld [vmem:[%s8975_s2 + $0x1e8] sm:$0xff] }
  0x19   :  { %5366 = vmatpush1.bf16.msra.mxu0 %v5365_v38  ;;  %5546 = vmatpush1.bf16.msra.mxu1 %v6713_v23  ;;  %v101_v38 = vld [vmem:[%s8975_s2 + $0x180] sm:$0xff]  ;;  %v5395_v43 = vpack.c.bf16 %v108_v41, %v106_v40  ;;  %v112_v47 = vld [vmem:[%s8975_s2 + $0x1d8] sm:$0xff]  ;;  %v115_v57 = vld [vmem:[%s8975_s2 + $0x1f0] sm:$0xff] }
  0x1a   :  { %5368 = vmatprep.subr.bf16.mxu0 %v5367_v39  ;;  %5548 = vmatprep.subr.bf16.mxu1 %v6722_v26  ;;  %v103_v39 = vld [vmem:[%s8975_s2 + $0x190] sm:$0xff]  ;;  %v116_v53 = vld [vmem:[%s8975_s2 + $0x1f8] sm:$0xff]  ;;  %v113_v56 = vld [vmem:[%s8975_s2 + $0x1e0] sm:$0xff] }
  0x1b   :  { %v5393_v42 = vpack.c.bf16 %v103_v39, %v101_v38  ;;  %v118_v58 = vld [vmem:[%s8975_s2 + $0x208] sm:$0xff]  ;;  %v120_v59 = vld [vmem:[%s8975_s2 + $0x218] sm:$0xff]  ;;  %v5405_v60 = vpack.c.bf16 %v115_v57, %v113_v56  ;;  %v117_v0 = vld [vmem:[%s8975_s2 + $0x200] sm:$0xff] }
  0x1c   :  { %v5407_v63 = vpack.c.bf16 %v120_v59, %v118_v58  ;;  %v122_v2 = vld [vmem:[%s8975_s2 + $0x228] sm:$0xff]  ;;  %v124_v5 = vld [vmem:[%s8975_s2 + $0x238] sm:$0xff]  ;;  %v41_v6 = vld [vmem:[%s8976_s0] sm:$0xff] }
  0x1d   :  { %5370 = vmatpush1.bf16.msra.mxu0 %v5369_v45  ;;  %5550 = vmatpush1.bf16.msra.mxu1 %v6737_v33  ;;  %v107_v45 = vld [vmem:[%s8975_s2 + $0x1b0] sm:$0xff]  ;;  %v5411_v8 = vpack.c.bf16 %v124_v5, %v122_v2  ;;  %v121_v9 = vld [vmem:[%s8975_s2 + $0x220] sm:$0xff]  ;;  %v48_v12 = vld [vmem:[%s8976_s0 + $0x38] sm:$0xff] }
  0x1e   :  { %5372 = vmatprep.subr.bf16.mxu0 %v5371_v46  ;;  %5552 = vmatprep.subr.bf16.mxu1 %v6651_v61  ;;  %v110_v46 = vld [vmem:[%s8975_s2 + $0x1c8] sm:$0xff]  ;;  %v5397_v48 = vpack.c.bf16 %v107_v45, %v105_v44  ;;  %v123_v10 = vld [vmem:[%s8975_s2 + $0x230] sm:$0xff]  ;;  %v128_v14 = vld [vmem:[%s8975_s2 + $0x258] sm:$0xff] }
  0x1f   :  { %v5399_v49 = vpack.c.bf16 %v112_v47, %v110_v46  ;;  %v126_v13 = vld [vmem:[%s8975_s2 + $0x248] sm:$0xff]  ;;  %v5413_v16 = vpack.c.bf16 %v123_v10, %v121_v9  ;;  %v125_v19 = vld [vmem:[%s8975_s2 + $0x240] sm:$0xff]  ;;  %v44_v21 = vld [vmem:[%s8976_s0 + $0x18] sm:$0xff] }
  0x20   :  { %585 = vmatmul.mubr.f32.vlgmr.msra.gmra.mrb[0].mxu1 %v6450_v3  ;;  %v5415_v18 = vpack.c.bf16 %v128_v14, %v126_v13  ;;  %v130_v22 = vld [vmem:[%s8975_s2 + $0x268] sm:$0xff]  ;;  %v132_v24 = vld [vmem:[%s8975_s2 + $0x278] sm:$0xff]  ;;  %v129_v28 = vld [vmem:[%s8975_s2 + $0x260] sm:$0xff] }
  0x21   :  { %5374 = vmatpush1.bf16.msra.mxu0 %v5373_v51  ;;  %5554 = vmatpush1.bf16.msra.mxu1 %v6653_v62  ;;  %v111_v51 = vld [vmem:[%s8975_s2 + $0x1d0] sm:$0xff]  ;;  %v5419_v27 = vpack.c.bf16 %v132_v24, %v130_v22  ;;  %v136_v31 = vld [vmem:[%s8975_s2 + $0x298] sm:$0xff]  ;;  %v133_v35 = vld [vmem:[%s8975_s2 + $0x280] sm:$0xff] }
  0x22   :  { %5376 = vmatprep.subr.bf16.mxu0 %v5375_v55  ;;  %5556 = vmatprep.subr.bf16.mxu1 %v6665_v4  ;;  %v5401_v54 = vpack.c.bf16 %v111_v51, %v109_v50  ;;  %v5403_v55 = vpack.c.bf16 %v116_v53, %v114_v52  ;;  %v140_v38 = vld [vmem:[%s8975_s2 + $0x2b8] sm:$0xff]  ;;  %v137_v41 = vld [vmem:[%s8975_s2 + $0x2a0] sm:$0xff]  ;;  %v159_v13 = vld [vmem:[%s8975_s2 + $0x350] sm:$0xff] }
  0x23   :  { %801 = vmatprep.mubr.f32.mxu1 %v6450_v3  ;;  %v144_v44 = vld [vmem:[%s8975_s2 + $0x2d8] sm:$0xff]  ;;  %v141_v47 = vld [vmem:[%s8975_s2 + $0x2c0] sm:$0xff]  ;;  %v162_v14 = vld [vmem:[%s8975_s2 + $0x368] sm:$0xff] }
  0x24   :  { %v148_v50 = vld [vmem:[%s8975_s2 + $0x2f8] sm:$0xff]  ;;  %v145_v53 = vld [vmem:[%s8975_s2 + $0x2e0] sm:$0xff] }
  0x25   :  { %5378 = vmatpush1.bf16.msra.mxu0 %v5377_v1  ;;  %5558 = vmatpush1.bf16.msra.mxu1 %v6683_v11  ;;  %v119_v1 = vld [vmem:[%s8975_s2 + $0x210] sm:$0xff]  ;;  %v152_v56 = vld [vmem:[%s8975_s2 + $0x318] sm:$0xff]  ;;  %v149_v59 = vld [vmem:[%s8975_s2 + $0x300] sm:$0xff] }
  0x26   :  { %5380 = vmatprep.subr.bf16.mxu0 %v5379_v7  ;;  %5560 = vmatprep.subr.bf16.mxu1 %v6695_v15  ;;  %v5409_v7 = vpack.c.bf16 %v119_v1, %v117_v0  ;;  %v156_v0 = vld [vmem:[%s8975_s2 + $0x338] sm:$0xff]  ;;  %v153_v5 = vld [vmem:[%s8975_s2 + $0x320] sm:$0xff] }
  0x27   :  { %v168_v22 = vld [vmem:[%s8975_s2 + $0x398] sm:$0xff] }
  0x29   :  { %5382 = vmatpush1.bf16.msra.mxu0 %v5381_v17  ;;  %5562 = vmatpush1.bf16.msra.mxu1 %v6713_v23  ;;  %v47_v17 = vld [vmem:[%s8976_s0 + $0x30] sm:$0xff] }
  0x2a   :  { %5384 = vmatprep.subr.bf16.mxu0 %v5383_v20  ;;  %5564 = vmatprep.subr.bf16.mxu1 %v6722_v26  ;;  %v127_v20 = vld [vmem:[%s8975_s2 + $0x250] sm:$0xff] }
  0x2b   :  { %v5417_v25 = vpack.c.bf16 %v127_v20, %v125_v19  ;;  %v161_v19 = vld [vmem:[%s8975_s2 + $0x360] sm:$0xff]  ;;  %v163_v20 = vld [vmem:[%s8975_s2 + $0x370] sm:$0xff] }
  0x2c   :  { %v5453_v24 = vpack.c.bf16 %v163_v20, %v161_v19  ;;  %v200_v19 = vld [vmem:[%s8975_s2 + $0x498] sm:$0xff] }
  0x2d   :  { %5386 = vmatpush1.bf16.msra.mxu0 %v5385_v29  ;;  %5566 = vmatpush1.bf16.msra.mxu1 %v6737_v33  ;;  %v131_v29 = vld [vmem:[%s8975_s2 + $0x270] sm:$0xff] }
  0x2e   :  { %5388 = vmatprep.subr.bf16.mxu0 %v5387_v30  ;;  %5568 = vmatprep.subr.bf16.mxu1 %v6651_v61  ;;  %v134_v30 = vld [vmem:[%s8975_s2 + $0x288] sm:$0xff]  ;;  %v5421_v32 = vpack.c.bf16 %v131_v29, %v129_v28  ;;  %v167_v28 = vld [vmem:[%s8975_s2 + $0x390] sm:$0xff] }
  0x2f   :  { %v5423_v34 = vpack.c.bf16 %v136_v31, %v134_v30  ;;  %v170_v29 = vld [vmem:[%s8975_s2 + $0x3a8] sm:$0xff]  ;;  %v172_v30 = vld [vmem:[%s8975_s2 + $0x3b8] sm:$0xff] }
  0x31   :  { %5390 = vmatpush1.bf16.msra.mxu0 %v5389_v36  ;;  %v135_v36 = vld [vmem:[%s8975_s2 + $0x290] sm:$0xff] }
  0x32   :  { %5392 = vmatprep.subr.bf16.mxu0 %v5391_v37  ;;  %v138_v37 = vld [vmem:[%s8975_s2 + $0x2a8] sm:$0xff]  ;;  %v5425_v39 = vpack.c.bf16 %v135_v36, %v133_v35  ;;  %v171_v35 = vld [vmem:[%s8975_s2 + $0x3b0] sm:$0xff] }
  0x33   :  { %v5427_v40 = vpack.c.bf16 %v140_v38, %v138_v37  ;;  %v174_v36 = vld [vmem:[%s8975_s2 + $0x3c8] sm:$0xff]  ;;  %v176_v37 = vld [vmem:[%s8975_s2 + $0x3d8] sm:$0xff] }
  0x35   :  { %5394 = vmatpush1.bf16.msra.mxu0 %v5393_v42  ;;  %v139_v42 = vld [vmem:[%s8975_s2 + $0x2b0] sm:$0xff] }
  0x36   :  { %5396 = vmatprep.subr.bf16.mxu0 %v5395_v43  ;;  %v142_v43 = vld [vmem:[%s8975_s2 + $0x2c8] sm:$0xff]  ;;  %v5429_v45 = vpack.c.bf16 %v139_v42, %v137_v41  ;;  %v175_v41 = vld [vmem:[%s8975_s2 + $0x3d0] sm:$0xff] }
  0x37   :  { %v5431_v46 = vpack.c.bf16 %v144_v44, %v142_v43  ;;  %v178_v42 = vld [vmem:[%s8975_s2 + $0x3e8] sm:$0xff]  ;;  %v180_v43 = vld [vmem:[%s8975_s2 + $0x3f8] sm:$0xff] }
  0x39   :  { %5398 = vmatpush1.bf16.msra.mxu0 %v5397_v48  ;;  %v143_v48 = vld [vmem:[%s8975_s2 + $0x2d0] sm:$0xff] }
  0x3a   :  { %5400 = vmatprep.subr.bf16.mxu0 %v5399_v49  ;;  %v146_v49 = vld [vmem:[%s8975_s2 + $0x2e8] sm:$0xff]  ;;  %v5433_v51 = vpack.c.bf16 %v143_v48, %v141_v47  ;;  %v179_v47 = vld [vmem:[%s8975_s2 + $0x3f0] sm:$0xff] }
  0x3b   :  { %v5435_v52 = vpack.c.bf16 %v148_v50, %v146_v49  ;;  %v182_v48 = vld [vmem:[%s8975_s2 + $0x408] sm:$0xff]  ;;  %v184_v49 = vld [vmem:[%s8975_s2 + $0x418] sm:$0xff] }
  0x3d   :  { %5402 = vmatpush1.bf16.msra.mxu0 %v5401_v54  ;;  %v147_v54 = vld [vmem:[%s8975_s2 + $0x2f0] sm:$0xff] }
  0x3e   :  { %5404 = vmatprep.subr.bf16.mxu0 %v5403_v55  ;;  %v150_v55 = vld [vmem:[%s8975_s2 + $0x308] sm:$0xff]  ;;  %v5437_v57 = vpack.c.bf16 %v147_v54, %v145_v53  ;;  %v183_v53 = vld [vmem:[%s8975_s2 + $0x410] sm:$0xff] }
  0x3f   :  { %v5439_v58 = vpack.c.bf16 %v152_v56, %v150_v55  ;;  %v186_v54 = vld [vmem:[%s8975_s2 + $0x428] sm:$0xff]  ;;  %v188_v55 = vld [vmem:[%s8975_s2 + $0x438] sm:$0xff]  ;;  %v43_v56 = vld [vmem:[%s8976_s0 + $0x10] sm:$0xff] }
  0x41   :  { %5406 = vmatpush1.bf16.msra.mxu0 %v5405_v60  ;;  %v151_v60 = vld [vmem:[%s8975_s2 + $0x310] sm:$0xff] }
  0x42   :  { %5408 = vmatprep.subr.bf16.mxu0 %v5407_v63  ;;  %v154_v63 = vld [vmem:[%s8975_s2 + $0x328] sm:$0xff]  ;;  %v5441_v1 = vpack.c.bf16 %v151_v60, %v149_v59  ;;  %v185_v59 = vld [vmem:[%s8975_s2 + $0x420] sm:$0xff]  ;;  %v187_v60 = vld [vmem:[%s8975_s2 + $0x430] sm:$0xff] }
  0x43   :  { %v5443_v2 = vpack.c.bf16 %v156_v0, %v154_v63  ;;  %v50_v63 = vld [vmem:[%s8976_s0 + $0x48] sm:$0xff] }
  0x44   :  { %339 = vmatmul.mubr.f32.vlgmr.msra.gmra.mrb[0].mxu0 %v41_v6  ;;  %v155_v6 = vld [vmem:[%s8975_s2 + $0x330] sm:$0xff]  ;;  %v190_v0 = vld [vmem:[%s8975_s2 + $0x448] sm:$0xff] }
  0x45   :  { %5410 = vmatpush1.bf16.msra.mxu0 %v5409_v7  ;;  %344 = vmatprep.mubr.f32.mxu0 %v48_v12  ;;  %v158_v7 = vld [vmem:[%s8975_s2 + $0x348] sm:$0xff]  ;;  %v5445_v9 = vpack.c.bf16 %v155_v6, %v153_v5  ;;  %v157_v12 = vld [vmem:[%s8975_s2 + $0x340] sm:$0xff] }
  0x46   :  { %5412 = vmatprep.subr.bf16.mxu0 %v5411_v8  ;;  %v160_v8 = vld [vmem:[%s8975_s2 + $0x358] sm:$0xff]  ;;  %v49_v5 = vld [vmem:[%s8976_s0 + $0x40] sm:$0xff] }
  0x47   :  { %v5447_v10 = vpack.c.bf16 %v160_v8, %v158_v7  ;;  %v189_v7 = vld [vmem:[%s8975_s2 + $0x440] sm:$0xff]  ;;  %v191_v8 = vld [vmem:[%s8975_s2 + $0x450] sm:$0xff] }
  0x48   :  { %345 = vmatmul.mubr.f32.gmra.mrb[2].mxu0 %v47_v17  ;;  %v5449_v17 = vpack.c.bf16 %v159_v13, %v157_v12  ;;  %v196_v12 = vld [vmem:[%s8975_s2 + $0x478] sm:$0xff]  ;;  %v5481_v13 = vpack.c.bf16 %v191_v8, %v189_v7  ;;  %v225_v7 = vld [vmem:[%s8975_s2 + $0x560] sm:$0xff]  ;;  %v227_v8 = vld [vmem:[%s8975_s2 + $0x570] sm:$0xff] }
  0x49   :  { %5414 = vmatpush1.bf16.msra.mxu0 %v5413_v16  ;;  %415 = vmatprep.mubr.f32.mxu0 %v44_v21  ;;  %v164_v16 = vld [vmem:[%s8975_s2 + $0x378] sm:$0xff]  ;;  %v166_v21 = vld [vmem:[%s8975_s2 + $0x388] sm:$0xff] }
  0x4a   :  { %5416 = vmatprep.subr.bf16.mxu0 %v5415_v18  ;;  %v5451_v18 = vpack.c.bf16 %v164_v16, %v162_v14  ;;  %v193_v16 = vld [vmem:[%s8975_s2 + $0x460] sm:$0xff] }
  0x4d   :  { %5418 = vmatpush1.bf16.msra.mxu0 %v5417_v25  ;;  %v5455_v25 = vpack.c.bf16 %v168_v22, %v166_v21  ;;  %v197_v22 = vld [vmem:[%s8975_s2 + $0x480] sm:$0xff] }
  0x4e   :  { %5420 = vmatprep.subr.bf16.mxu0 %v5419_v27  ;;  %v165_v27 = vld [vmem:[%s8975_s2 + $0x380] sm:$0xff] }
  0x4f   :  { %v5457_v31 = vpack.c.bf16 %v167_v28, %v165_v27  ;;  %v204_v27 = vld [vmem:[%s8975_s2 + $0x4b8] sm:$0xff] }
  0x51   :  { %5422 = vmatpush1.bf16.msra.mxu0 %v5421_v32  ;;  %v5459_v32 = vpack.c.bf16 %v172_v30, %v170_v29  ;;  %v201_v30 = vld [vmem:[%s8975_s2 + $0x4a0] sm:$0xff] }
  0x52   :  { %5424 = vmatprep.subr.bf16.mxu0 %v5423_v34  ;;  %v169_v34 = vld [vmem:[%s8975_s2 + $0x3a0] sm:$0xff] }
  0x53   :  { %v5461_v38 = vpack.c.bf16 %v171_v35, %v169_v34  ;;  %v208_v34 = vld [vmem:[%s8975_s2 + $0x4d8] sm:$0xff] }
  0x55   :  { %5426 = vmatpush1.bf16.msra.mxu0 %v5425_v39  ;;  %v5463_v39 = vpack.c.bf16 %v176_v37, %v174_v36  ;;  %v205_v37 = vld [vmem:[%s8975_s2 + $0x4c0] sm:$0xff] }
  0x56   :  { %5428 = vmatprep.subr.bf16.mxu0 %v5427_v40  ;;  %v173_v40 = vld [vmem:[%s8975_s2 + $0x3c0] sm:$0xff] }
  0x57   :  { %v5465_v44 = vpack.c.bf16 %v175_v41, %v173_v40  ;;  %v212_v40 = vld [vmem:[%s8975_s2 + $0x4f8] sm:$0xff] }
  0x59   :  { %5430 = vmatpush1.bf16.msra.mxu0 %v5429_v45  ;;  %v5467_v45 = vpack.c.bf16 %v180_v43, %v178_v42  ;;  %v209_v43 = vld [vmem:[%s8975_s2 + $0x4e0] sm:$0xff] }
  0x5a   :  { %5432 = vmatprep.subr.bf16.mxu0 %v5431_v46  ;;  %v177_v46 = vld [vmem:[%s8975_s2 + $0x3e0] sm:$0xff] }
  0x5b   :  { %v5469_v50 = vpack.c.bf16 %v179_v47, %v177_v46  ;;  %v216_v46 = vld [vmem:[%s8975_s2 + $0x518] sm:$0xff] }
  0x5d   :  { %5434 = vmatpush1.bf16.msra.mxu0 %v5433_v51  ;;  %v5471_v51 = vpack.c.bf16 %v184_v49, %v182_v48  ;;  %v213_v49 = vld [vmem:[%s8975_s2 + $0x500] sm:$0xff] }
  0x5e   :  { %5436 = vmatprep.subr.bf16.mxu0 %v5435_v52  ;;  %v181_v52 = vld [vmem:[%s8975_s2 + $0x400] sm:$0xff] }
  0x61   :  { %5438 = vmatpush1.bf16.msra.mxu0 %v5437_v57  ;;  %v5473_v57 = vpack.c.bf16 %v183_v53, %v181_v52  ;;  %v220_v52 = vld [vmem:[%s8975_s2 + $0x538] sm:$0xff] }
  0x62   :  { %5440 = vmatprep.subr.bf16.mxu0 %v5439_v58  ;;  %v5475_v58 = vpack.c.bf16 %v188_v55, %v186_v54  ;;  %v217_v55 = vld [vmem:[%s8975_s2 + $0x520] sm:$0xff] }
  0x65   :  { %5442 = vmatpush1.bf16.msra.mxu0 %v5441_v1  ;;  %v192_v1 = vld [vmem:[%s8975_s2 + $0x458] sm:$0xff] }
  0x66   :  { %5444 = vmatprep.subr.bf16.mxu0 %v5443_v2  ;;  %v5477_v2 = vpack.c.bf16 %v187_v60, %v185_v59  ;;  %v5479_v6 = vpack.c.bf16 %v192_v1, %v190_v0  ;;  %v223_v0 = vld [vmem:[%s8975_s2 + $0x550] sm:$0xff]  ;;  %v226_v1 = vld [vmem:[%s8975_s2 + $0x568] sm:$0xff] }
  0x69   :  { %5446 = vmatpush1.bf16.msra.mxu0 %v5445_v9  ;;  %v46_v9 = vld [vmem:[%s8976_s0 + $0x28] sm:$0xff] }
  0x6a   :  { %5448 = vmatprep.subr.bf16.mxu0 %v5447_v10  ;;  %v194_v10 = vld [vmem:[%s8975_s2 + $0x468] sm:$0xff] }
  0x6b   :  { %v5483_v14 = vpack.c.bf16 %v196_v12, %v194_v10  ;;  %v232_v10 = vld [vmem:[%s8975_s2 + $0x598] sm:$0xff]  ;;  %v5517_v12 = vpack.c.bf16 %v227_v8, %v225_v7 }
  0x6d   :  { %5450 = vmatpush1.bf16.msra.mxu0 %v5449_v17  ;;  %v195_v17 = vld [vmem:[%s8975_s2 + $0x470] sm:$0xff] }
  0x6e   :  { %5452 = vmatprep.subr.bf16.mxu0 %v5451_v18  ;;  %v198_v18 = vld [vmem:[%s8975_s2 + $0x488] sm:$0xff]  ;;  %v5485_v20 = vpack.c.bf16 %v195_v17, %v193_v16  ;;  %v231_v16 = vld [vmem:[%s8975_s2 + $0x590] sm:$0xff] }
  0x6f   :  { %v5487_v21 = vpack.c.bf16 %v200_v19, %v198_v18  ;;  %v234_v17 = vld [vmem:[%s8975_s2 + $0x5a8] sm:$0xff]  ;;  %v236_v18 = vld [vmem:[%s8975_s2 + $0x5b8] sm:$0xff] }
  0x71   :  { %5454 = vmatpush1.bf16.msra.mxu0 %v5453_v24  ;;  %v199_v24 = vld [vmem:[%s8975_s2 + $0x490] sm:$0xff] }
  0x72   :  { %5456 = vmatprep.subr.bf16.mxu0 %v5455_v25  ;;  %v202_v25 = vld [vmem:[%s8975_s2 + $0x4a8] sm:$0xff]  ;;  %v5489_v28 = vpack.c.bf16 %v199_v24, %v197_v22  ;;  %v235_v22 = vld [vmem:[%s8975_s2 + $0x5b0] sm:$0xff] }
  0x73   :  { %v5491_v29 = vpack.c.bf16 %v204_v27, %v202_v25  ;;  %v238_v24 = vld [vmem:[%s8975_s2 + $0x5c8] sm:$0xff]  ;;  %v240_v25 = vld [vmem:[%s8975_s2 + $0x5d8] sm:$0xff] }
  0x75   :  { %5458 = vmatpush1.bf16.msra.mxu0 %v5457_v31  ;;  %v203_v31 = vld [vmem:[%s8975_s2 + $0x4b0] sm:$0xff] }
  0x76   :  { %5460 = vmatprep.subr.bf16.mxu0 %v5459_v32  ;;  %v206_v32 = vld [vmem:[%s8975_s2 + $0x4c8] sm:$0xff]  ;;  %v5493_v35 = vpack.c.bf16 %v203_v31, %v201_v30  ;;  %v239_v30 = vld [vmem:[%s8975_s2 + $0x5d0] sm:$0xff] }
  0x77   :  { %v5495_v36 = vpack.c.bf16 %v208_v34, %v206_v32  ;;  %v242_v31 = vld [vmem:[%s8975_s2 + $0x5e8] sm:$0xff]  ;;  %v244_v32 = vld [vmem:[%s8975_s2 + $0x5f8] sm:$0xff] }
  0x79   :  { %5462 = vmatpush1.bf16.msra.mxu0 %v5461_v38  ;;  %v207_v38 = vld [vmem:[%s8975_s2 + $0x4d0] sm:$0xff] }
  0x7a   :  { %5464 = vmatprep.subr.bf16.mxu0 %v5463_v39  ;;  %v210_v39 = vld [vmem:[%s8975_s2 + $0x4e8] sm:$0xff]  ;;  %v5497_v41 = vpack.c.bf16 %v207_v38, %v205_v37  ;;  %v243_v37 = vld [vmem:[%s8975_s2 + $0x5f0] sm:$0xff] }
  0x7b   :  { %v5499_v42 = vpack.c.bf16 %v212_v40, %v210_v39  ;;  %v45_v39 = vld [vmem:[%s8976_s0 + $0x20] sm:$0xff]  ;;  %v52_v40 = vld [vmem:[%s8976_s0 + $0x58] sm:$0xff] }
  0x7d   :  { %5466 = vmatpush1.bf16.msra.mxu0 %v5465_v44  ;;  %v211_v44 = vld [vmem:[%s8975_s2 + $0x4f0] sm:$0xff] }
  0x7e   :  { %5468 = vmatprep.subr.bf16.mxu0 %v5467_v45  ;;  %v214_v45 = vld [vmem:[%s8975_s2 + $0x508] sm:$0xff]  ;;  %v5501_v47 = vpack.c.bf16 %v211_v44, %v209_v43 }
  0x7f   :  { %v5503_v48 = vpack.c.bf16 %v216_v46, %v214_v45  ;;  %v262_v45 = vld [vmem:[%s8978_s5] sm:$0x3] }
  0x81   :  { %5470 = vmatpush1.bf16.msra.mxu0 %v5469_v50  ;;  %v215_v50 = vld [vmem:[%s8975_s2 + $0x510] sm:$0xff] }
  0x82   :  { %5472 = vmatprep.subr.bf16.mxu0 %v5471_v51  ;;  %v218_v51 = vld [vmem:[%s8975_s2 + $0x528] sm:$0xff]  ;;  %v5505_v53 = vpack.c.bf16 %v215_v50, %v213_v49 }
  0x83   :  { %v5507_v54 = vpack.c.bf16 %v220_v52, %v218_v51 }
  0x84   :  { %416 = vmatmul.mubr.f32.vlgmr.msra.gmra.mrb[0].mxu0 %v43_v56  ;;  %v219_v56 = vld [vmem:[%s8975_s2 + $0x530] sm:$0xff] }
  0x85   :  { %5474 = vmatpush1.bf16.msra.mxu0 %v5473_v57  ;;  %421 = vmatprep.mubr.f32.mxu0 %v50_v63  ;;  %v222_v57 = vld [vmem:[%s8975_s2 + $0x548] sm:$0xff]  ;;  %v5509_v59 = vpack.c.bf16 %v219_v56, %v217_v55  ;;  %v221_v63 = vld [vmem:[%s8975_s2 + $0x540] sm:$0xff] }
  0x86   :  { %5476 = vmatprep.subr.bf16.mxu0 %v5475_v58  ;;  %v224_v58 = vld [vmem:[%s8975_s2 + $0x558] sm:$0xff]  ;;  %v245_v56 = vld [vmem:[%s8979_s3] sm:$0x3]  ;;  %s6452_s3 = smov 96  }
  0x87   :  { %v5511_v60 = vpack.c.bf16 %v224_v58, %v222_v57 }
  0x88   :  { %422 = vmatmul.mubr.f32.gmra.mrb[2].mxu0 %v49_v5  ;;  %v5513_v5 = vpack.c.bf16 %v223_v0, %v221_v63 }
  0x89   :  { %5478 = vmatpush1.bf16.msra.mxu0 %v5477_v2  ;;  %492 = vmatprep.mubr.f32.mxu0 %v46_v9  ;;  %v228_v2 = vld [vmem:[%s8975_s2 + $0x578] sm:$0xff]  ;;  %v230_v9 = vld [vmem:[%s8975_s2 + $0x588] sm:$0xff] }
  0x8a   :  { %5480 = vmatprep.subr.bf16.mxu0 %v5479_v6  ;;  %v5515_v6 = vpack.c.bf16 %v228_v2, %v226_v1 }
  0x8d   :  { %5482 = vmatpush1.bf16.msra.mxu0 %v5481_v13  ;;  %v5519_v13 = vpack.c.bf16 %v232_v10, %v230_v9 }
  0x8e   :  { %5484 = vmatprep.subr.bf16.mxu0 %v5483_v14  ;;  %v229_v14 = vld [vmem:[%s8975_s2 + $0x580] sm:$0xff] }
  0x8f   :  { %v5521_v19 = vpack.c.bf16 %v231_v16, %v229_v14 }
  0x91   :  { %5486 = vmatpush1.bf16.msra.mxu0 %v5485_v20  ;;  %v5523_v20 = vpack.c.bf16 %v236_v18, %v234_v17 }
  0x92   :  { %5488 = vmatprep.subr.bf16.mxu0 %v5487_v21  ;;  %v233_v21 = vld [vmem:[%s8975_s2 + $0x5a0] sm:$0xff] }
  0x93   :  { %v5525_v27 = vpack.c.bf16 %v235_v22, %v233_v21 }
  0x95   :  { %5490 = vmatpush1.bf16.msra.mxu0 %v5489_v28  ;;  %v5527_v28 = vpack.c.bf16 %v240_v25, %v238_v24 }
  0x96   :  { %5492 = vmatprep.subr.bf16.mxu0 %v5491_v29  ;;  %v237_v29 = vld [vmem:[%s8975_s2 + $0x5c0] sm:$0xff] }
  0x97   :  { %v5529_v34 = vpack.c.bf16 %v239_v30, %v237_v29 }
  0x99   :  { %5494 = vmatpush1.bf16.msra.mxu0 %v5493_v35  ;;  %v5531_v35 = vpack.c.bf16 %v244_v32, %v242_v31 }
  0x9a   :  { %5496 = vmatprep.subr.bf16.mxu0 %v5495_v36  ;;  %v241_v36 = vld [vmem:[%s8975_s2 + $0x5e0] sm:$0xff] }
  0x9b   :  { %v5533_v38 = vpack.c.bf16 %v243_v37, %v241_v36 }
  0x9d   :  { %5498 = vmatpush1.bf16.msra.mxu0 %v5497_v41  ;;  %v51_v41 = vld [vmem:[%s8976_s0 + $0x50] sm:$0xff]  ;;  %s6451_s0 = smov 64  }
  0x9e   :  { %5500 = vmatprep.subr.bf16.mxu0 %v5499_v42  ;;  %v264_v42 = vlaneseq }
  0xa0   :  { %v7219_v43 = vshrl.u32 %v264_v42, 7 }
  0xa1   :  { %5502 = vmatpush1.bf16.msra.mxu0 %v5501_v47 }
  0xa2   :  { %5504 = vmatprep.subr.bf16.mxu0 %v5503_v48  ;;  %v7222_v44 = vsub.s32 0, %v7219_v43  ;;  %v7228_v46 = vsub.s32 1, %v7219_v43 }
  0xa4   :  { %v7231_v47 = vrot.slane %v262_v45, %v7222_v44  ;;  %v7234_v48 = vrot.slane %v262_v45, %v7228_v46  ;;  %v267_v57 = vrot.slane %v245_v56, %v7222_v44 }
  0xa5   :  { %5506 = vmatpush1.bf16.msra.mxu0 %v5505_v53 }
  0xa6   :  { %5508 = vmatprep.subr.bf16.mxu0 %v5507_v54 }
  0xa9   :  { %5510 = vmatpush1.bf16.msra.mxu0 %v5509_v59 }
  0xaa   :  { %5512 = vmatprep.subr.bf16.mxu0 %v5511_v60 }
  0xad   :  { %5514 = vmatpush1.bf16.msra.mxu0 %v5513_v5 }
  0xae   :  { %5516 = vmatprep.subr.bf16.mxu0 %v5515_v6 }
  0xb1   :  { %5518 = vmatpush1.bf16.msra.mxu0 %v5517_v12 }
  0xb2   :  { %5520 = vmatprep.subr.bf16.mxu0 %v5519_v13 }
  0xb5   :  { %5522 = vmatpush1.bf16.msra.mxu0 %v5521_v19 }
  0xb6   :  { %5524 = vmatprep.subr.bf16.mxu0 %v5523_v20 }
  0xb9   :  { %5526 = vmatpush1.bf16.msra.mxu0 %v5525_v27 }
  0xba   :  { %5528 = vmatprep.subr.bf16.mxu0 %v5527_v28 }
  0xbd   :  { %5530 = vmatpush1.bf16.msra.mxu0 %v5529_v34 }
  0xbe   :  { %5532 = vmatprep.subr.bf16.mxu0 %v5531_v35 }
  0xc1   :  { %5534 = vmatpush1.bf16.msra.mxu0 %v5533_v38  ;;  %v271_v38 = vrot.slane %v245_v56, %v7228_v46 }
  0xc4   :  { %493 = vmatmul.mubr.f32.vlgmr.msra.gmra.mrb[0].mxu0 %v45_v39 }
  0xc5   :  { %498 = vmatprep.mubr.f32.mxu0 %v52_v40 }
  0xc8   :  { %499 = vmatmul.mubr.f32.gmra.mrb[2].mxu0 %v51_v41 }
  0xc9   :  { %3528 = vmatprep.mubr.f32.mxu0 %v6450_v3 }
  0xf3   :  { %v586_v49 = vpop.f32.mrb[0].mxu1 }
  0xf4   :  { %v587_v50 = vadd.f32 %v586_v49, %v7231_v47  ;;  %v588_v51 = vpop.f32.mrb[1].mxu1 }
  0xf5   :  { %v7238_v52 = vadd.f32 %v588_v51, %v7234_v48 }
  0xf6   :  { %v592_v53 = vrot.slane %v587_v50, 1  ;;  %v645_v2 = vrot.slane %v587_v50, 2 }
  0xf7   :  { %v663_v54 = vrot.slane %v7238_v52, 2  ;;  %v662_v55 = vrot.slane %v7238_v52, 1 }
  0xf8   :  { %611 = vrot.lane.b32.xlu0 %v592_v53, %s6451_s0 }
  0xf9   :  { %682 = vrot.lane.b32.xlu1 %v663_v54, %s6451_s0 }
  0xfc   :  { %680 = vrot.lane.b32.xlu0 %v662_v55, %s6451_s0 }
  0xfd   :  { %609 = vrot.lane.b32.xlu1 %v587_v50, %s6451_s0 }
 0x16a   :  { %v612_v22 = vpop.permute.xlu0 %611 }
 0x16b   :  { %v683_v25 = vpop.permute.xlu1 %682 }
 0x16e   :  { %v681_v27 = vpop.permute.xlu0 %680 }
 0x16f   :  { %v610_v31 = vpop.permute.xlu1 %609 }
 0x197   :  { %v494_v58 = vpop.f32.mrb[0].mxu0 }
 0x198   :  { %v7254_v59 = vadd.f32 %v494_v58, %v267_v57  ;;  %v496_v60 = vpop.f32.mrb[1].mxu0 }
 0x199   :  { %v7267_v39 = vadd.f32 %v496_v60, %v271_v38 }
 0x19a   :  { %v595_v63 = vadd.f32 %v7254_v59, %v587_v50  ;;  %v647_v0 = vadd.f32 %v7254_v59, %v592_v53 }
 0x19b   :  { %v500_v1 = vpop.f32.mrb[2].mxu0 }
 0x19c   :  { %v7258_v5 = vadd.f32 %v500_v1, %v267_v57  ;;  %v502_v6 = vpop.f32.mrb[3].mxu0  ;;  %v5119_v7 = vmul.f32 -1.442695, %v595_v63  ;;  %v5121_v8 = vmul.f32 -1.442695, %v647_v0  ;;  %v666_v1 = vadd.f32 %v7267_v39, %v662_v55 }
 0x19e   :  { %v648_v9 = vadd.f32 %v7258_v5, %v645_v2  ;;  %v596_v10 = vadd.f32 %v7258_v5, %v592_v53  ;;  %5922 = vpow2.f32 %v5119_v7  ;;  %v7272_v53 = vadd.f32 %v502_v6, %v271_v38 }
 0x19f   :  { %5924 = vpow2.f32 %v5121_v8  ;;  %v5123_v2 = vmul.f32 -1.442695, %v666_v1 }
 0x1a0   :  { %v5122_v12 = vmul.f32 -1.442695, %v648_v9  ;;  %v5120_v13 = vmul.f32 -1.442695, %v596_v10  ;;  %v667_v6 = vadd.f32 %v7272_v53, %v663_v54 }
 0x1a2   :  { %5926 = vpow2.f32 %v5122_v12  ;;  %v5124_v7 = vmul.f32 -1.442695, %v667_v6 }
 0x1a3   :  { %5928 = vpow2.f32 %v5120_v13 }
 0x1a8   :  { %v5923_v14 = vpop.eup %5922 }
 0x1a9   :  { %v5925_v16 = vpop.eup %5924  ;;  %v603_v17 = vadd.f32 1.0, %v5923_v14 }
 0x1aa   :  { %v655_v18 = vadd.f32 1.0, %v5925_v16 }
 0x1ac   :  { %v5927_v19 = vpop.eup %5926  ;;  %5930 = vrcp.f32 %v655_v18 }
 0x1ad   :  { %v5929_v20 = vpop.eup %5928  ;;  %v656_v21 = vadd.f32 1.0, %v5927_v19  ;;  %5932 = vrcp.f32 %v603_v17 }
 0x1ae   :  { %v604_v24 = vadd.f32 1.0, %v5929_v20 }
 0x1b0   :  { %5934 = vrcp.f32 %v604_v24 }
 0x1b1   :  { %5936 = vrcp.f32 %v656_v21 }
 0x1b6   :  { %v5931_v28 = vpop.eup %5930 }
 0x1b7   :  { %v686_v29 = vmul.f32 %v5931_v28, %v681_v27  ;;  %v5933_v30 = vpop.eup %5932 }
 0x1b8   :  { %v615_v35 = vmul.f32 %v5933_v30, %v610_v31  ;;  %v629_v19 = vsub.f32 1.0, %v5933_v30  ;;  %v641_v27 = vmul.f32 0.0, %v5933_v30 }
 0x1b9   :  { %690 = vrot.lane.b32.xlu1 %v686_v29, %s6451_s0 }
 0x1ba   :  { %v5935_v32 = vpop.eup %5934 }
 0x1bb   :  { %v616_v34 = vmul.f32 %v5935_v32, %v612_v22  ;;  %v5937_v36 = vpop.eup %5936  ;;  %v630_v17 = vsub.f32 1.0, %v5935_v32  ;;  %v642_v52 = vmul.f32 0.0, %v5935_v32 }
 0x1bc   :  { %v687_v37 = vmul.f32 %v5937_v36, %v683_v25 }
 0x1bd   :  { %621 = vrot.lane.b32.xlu0 %v616_v34, %s6451_s0  ;;  %619 = vrot.lane.b32.xlu1 %v615_v35, %s6451_s0 }
 0x1c1   :  { %692 = vrot.lane.b32.xlu0 %v687_v37, %s6451_s0 }
 0x22b   :  { %v691_v40 = vpop.permute.xlu1 %690 }
 0x22c   :  { %v696_v41 = vadd.f32 %v7267_v39, %v691_v40 }
 0x22e   :  { %5938 = vtanh.f32 %v696_v41 }
 0x22f   :  { %v622_v45 = vpop.permute.xlu0 %621  ;;  %v620_v49 = vpop.permute.xlu1 %619 }
 0x230   :  { %v626_v50 = vadd.f32 %v7258_v5, %v622_v45  ;;  %v625_v51 = vadd.f32 %v7254_v59, %v620_v49 }
 0x232   :  { %5940 = vtanh.f32 %v626_v50 }
 0x233   :  { %5942 = vtanh.f32 %v625_v51  ;;  %v693_v57 = vpop.permute.xlu0 %692 }
 0x234   :  { %v697_v58 = vadd.f32 %v7272_v53, %v693_v57 }
 0x236   :  { %5944 = vtanh.f32 %v697_v58 }
 0x237   :  { %5946 = vpow2.f32 %v5123_v2 }
 0x238   :  { %v5939_v56 = vpop.eup %5938  ;;  %5948 = vpow2.f32 %v5124_v7 }
 0x239   :  { %704 = vrot.lane.b32.xlu1 %v5939_v56, %s6452_s3 }
 0x23c   :  { %v5941_v60 = vpop.eup %5940 }
 0x23d   :  { %v5943_v63 = vpop.eup %5942  ;;  %635 = vrot.lane.b32.xlu0 %v5941_v60, %s6452_s3 }
 0x23e   :  { %633 = vrot.lane.b32.xlu1 %v5943_v63, %s6452_s3 }
 0x240   :  { %v5945_v0 = vpop.eup %5944 }
 0x241   :  { %706 = vrot.lane.b32.xlu0 %v5945_v0, %s6452_s3  ;;  %v5947_v8 = vpop.eup %5946 }
 0x242   :  { %v674_v9 = vadd.f32 1.0, %v5947_v8  ;;  %v5949_v10 = vpop.eup %5948 }
 0x243   :  { %v675_v12 = vadd.f32 1.0, %v5949_v10 }
 0x244   :  { %5950 = vrcp.f32 %v674_v9 }
 0x245   :  { %5952 = vrcp.f32 %v675_v12 }
 0x24e   :  { %v5951_v13 = vpop.eup %5950 }
 0x24f   :  { %v700_v16 = vsub.f32 1.0, %v5951_v13  ;;  %v5953_v18 = vpop.eup %5952  ;;  %v712_v24 = vmul.f32 0.0, %v5951_v13 }
 0x250   :  { %v701_v28 = vsub.f32 1.0, %v5953_v18  ;;  %v713_v29 = vmul.f32 0.0, %v5953_v18 }
 0x2ab   :  { %v705_v14 = vpop.permute.xlu1 %704 }
 0x2ac   :  { %v710_v20 = vmul.f32 %v705_v14, %v700_v16 }
 0x2ae   :  { %v7287_v34 = vadd.f32 %v712_v24, %v710_v20 }
 0x2af   :  { %v636_v55 = vpop.permute.xlu0 %635 }
 0x2b0   :  { %v640_v21 = vmul.f32 %v636_v55, %v630_v17  ;;  %v634_v54 = vpop.permute.xlu1 %633  ;;  %v726_v30 = vrot.slane %v7287_v34, 7 }
 0x2b1   :  { %v639_v22 = vmul.f32 %v634_v54, %v629_v19 }
 0x2b2   :  { %v7285_v25 = vadd.f32 %v642_v52, %v640_v21 }
 0x2b3   :  { %v707_v31 = vpop.permute.xlu0 %706  ;;  %v7290_v36 = vadd.f32 %v641_v27, %v639_v22 }
 0x2b4   :  { %v718_v35 = vrot.slane %v7285_v25, 7  ;;  %v711_v37 = vmul.f32 %v707_v31, %v701_v28 }
 0x2b6   :  { %v7292_v38 = vadd.f32 %v713_v29, %v711_v37  ;;  %v720_v32 = vsel %vm719_vm0, %v718_v35, %v7290_v36 }
 0x2b7   :  { %721 = vrot.lane.b32.xlu0 %v720_v32, %s6452_s3 }
 0x2b8   :  { %v727_v40 = vrot.slane %v7292_v38, 6  ;;  %v935_v8 = vrot.slane %v7292_v38, 1 }
 0x2ba   :  { %v728_v41 = vsel %vm719_vm0, %v727_v40, %v726_v30 }
 0x2bb   :  { %729 = vrot.lane.b32.xlu1 %v728_v41, %s6453_s14 }
 0x329   :  { %v7303_v45 = vpop.permute.xlu0 %721 }
 0x32d   :  { %v730_v49 = vpop.permute.xlu1 %729 }
 0x32e   :  { %v733_v50 = vsel %vm732_vm1, %v7303_v45, %v730_v49 }
 0x32f   :  { %5125 = vmatmul.mubr.msk.f32.vlgmr.msra.gmra.mrb[2].mxu1 %vm516_vm2, %v733_v50 }
 0x330   :  { %5570 = vmatpush1.bf16.msra.mxu1 %v6653_v62  ;;  %1027 = vmatprep.mubr.f32.mxu1 %v6450_v3 }
 0x331   :  { %5572 = vmatprep.subr.bf16.mxu1 %v6665_v4 }
 0x334   :  { %5574 = vmatpush1.bf16.msra.mxu1 %v6683_v11 }
 0x335   :  { %5576 = vmatprep.subr.bf16.mxu1 %v6695_v15 }
 0x338   :  { %5578 = vmatpush1.bf16.msra.mxu1 %v6713_v23 }
 0x339   :  { %5580 = vmatprep.subr.bf16.mxu1 %v6722_v26 }
 0x33c   :  { %5582 = vmatpush1.bf16.msra.mxu1 %v6737_v33 }
 0x33d   :  { %5584 = vmatprep.subr.bf16.mxu1 %v6651_v61 }
 0x402   :  { %v803_v51 = vpop.f32.mrb[2].mxu1 }
 0x403   :  { %v804_v57 = vadd.f32 %v803_v51, %v7231_v47  ;;  %v805_v58 = vpop.f32.mrb[3].mxu1 }
 0x404   :  { %v7319_v56 = vadd.f32 %v805_v58, %v7234_v48 }
 0x405   :  { %828 = vrot.lane.b32.xlu0 %v804_v57, %s6451_s0  ;;  %v809_v2 = vrot.slane %v804_v57, 7  ;;  %v865_v12 = vrot.slane %v804_v57, 2  ;;  %v813_v13 = vadd.f32 %v7258_v5, %v804_v57  ;;  %v866_v14 = vrot.slane %v804_v57, 3 }
 0x406   :  { %v884_v60 = vrot.slane %v7319_v56, 2  ;;  %v885_v63 = vrot.slane %v7319_v56, 3 }
 0x407   :  { %v869_v16 = vadd.f32 %v7254_v59, %v865_v12  ;;  %v5127_v17 = vmul.f32 -1.442695, %v813_v13  ;;  %v870_v18 = vadd.f32 %v7258_v5, %v866_v14  ;;  %v812_v19 = vadd.f32 %v7254_v59, %v809_v2 }
 0x408   :  { %v889_v0 = vadd.f32 %v7272_v53, %v885_v63  ;;  %902 = vrot.lane.b32.xlu1 %v884_v60, %s6451_s0 }
 0x409   :  { %904 = vrot.lane.b32.xlu0 %v885_v63, %s6451_s0  ;;  %v5128_v55 = vmul.f32 -1.442695, %v869_v16  ;;  %v5129_v20 = vmul.f32 -1.442695, %v870_v18  ;;  %v5126_v52 = vmul.f32 -1.442695, %v812_v19  ;;  %v888_v19 = vadd.f32 %v7267_v39, %v884_v60 }
 0x40a   :  { %v5131_v1 = vmul.f32 -1.442695, %v889_v0 }
 0x40c   :  { %826 = vrot.lane.b32.xlu1 %v809_v2, %s6451_s0  ;;  %5954 = vpow2.f32 %v5131_v1 }
 0x416   :  { %v5955_v6 = vpop.eup %5954 }
 0x417   :  { %v897_v7 = vadd.f32 1.0, %v5955_v6 }
 0x419   :  { %5956 = vrcp.f32 %v897_v7 }
 0x41a   :  { %5958 = vpow2.f32 %v5127_v17 }
 0x41b   :  { %5960 = vpow2.f32 %v5128_v55 }
 0x41c   :  { %5962 = vpow2.f32 %v5129_v20  ;;  %v5130_v20 = vmul.f32 -1.442695, %v888_v19 }
 0x41d   :  { %5964 = vpow2.f32 %v5126_v52 }
 0x423   :  { %v7331_v9 = vpop.eup %5956 }
 0x424   :  { %v7334_v10 = vmul.f32 %v7331_v9, %v935_v8  ;;  %v5959_v21 = vpop.eup %5958 }
 0x425   :  { %v5961_v54 = vpop.eup %5960  ;;  %v821_v22 = vadd.f32 1.0, %v5959_v21 }
 0x426   :  { %v5963_v24 = vpop.eup %5962  ;;  %v877_v27 = vadd.f32 1.0, %v5961_v54 }
 0x427   :  { %v5965_v28 = vpop.eup %5964  ;;  %5966 = vrcp.f32 %v821_v22  ;;  %v878_v29 = vadd.f32 1.0, %v5963_v24 }
 0x428   :  { %v820_v31 = vadd.f32 1.0, %v5965_v28  ;;  %5968 = vrcp.f32 %v877_v27 }
 0x429   :  { %5970 = vrcp.f32 %v878_v29  ;;  %v934_v29 = vrot.slane %v7287_v34, 1 }
 0x42a   :  { %5972 = vrcp.f32 %v820_v31 }
 0x431   :  { %v5967_v37 = vpop.eup %5966 }
 0x432   :  { %v5969_v40 = vpop.eup %5968  ;;  %v847_v22 = vsub.f32 1.0, %v5967_v37  ;;  %v862_v56 = vmul.f32 %v5967_v37, %v718_v35 }
 0x433   :  { %v5971_v49 = vpop.eup %5970 }
 0x434   :  { %v5973_v58 = vpop.eup %5972 }
 0x477   :  { %v829_v32 = vpop.permute.xlu0 %828 }
 0x478   :  { %v833_v30 = vmul.f32 %v5967_v37, %v829_v32  ;;  %v923_v32 = vsub.f32 1.0, %v7331_v9 }
 0x47a   :  { %v903_v41 = vpop.permute.xlu1 %902  ;;  %838 = vrot.lane.b32.xlu0 %v833_v30, %s6451_s0 }
 0x47b   :  { %v908_v50 = vmul.f32 %v5969_v40, %v903_v41  ;;  %v905_v51 = vpop.permute.xlu0 %904  ;;  %v858_v41 = vrot.slane %v7290_v36, 7 }
 0x47c   :  { %v909_v57 = vmul.f32 %v5971_v49, %v905_v51 }
 0x47d   :  { %912 = vrot.lane.b32.xlu1 %v908_v50, %s6451_s0 }
 0x47e   :  { %914 = vrot.lane.b32.xlu0 %v909_v57, %s6451_s0  ;;  %v827_v63 = vpop.permute.xlu1 %826  ;;  %v846_v57 = vsub.f32 1.0, %v5973_v58 }
 0x47f   :  { %v832_v0 = vmul.f32 %v5973_v58, %v827_v63 }
 0x481   :  { %836 = vrot.lane.b32.xlu1 %v832_v0, %s6451_s0  ;;  %v861_v0 = vmul.f32 %v5973_v58, %v858_v41 }
 0x4ec   :  { %v839_v1 = vpop.permute.xlu0 %838 }
 0x4ed   :  { %v843_v2 = vadd.f32 %v7258_v5, %v839_v1 }
 0x4ef   :  { %5974 = vtanh.f32 %v843_v2  ;;  %v913_v6 = vpop.permute.xlu1 %912 }
 0x4f0   :  { %v918_v7 = vadd.f32 %v7267_v39, %v913_v6  ;;  %v915_v8 = vpop.permute.xlu0 %914 }
 0x4f1   :  { %v919_v12 = vadd.f32 %v7272_v53, %v915_v8 }
 0x4f2   :  { %5976 = vtanh.f32 %v918_v7 }
 0x4f3   :  { %5978 = vtanh.f32 %v919_v12  ;;  %v837_v13 = vpop.permute.xlu1 %836 }
 0x4f4   :  { %v842_v14 = vadd.f32 %v7254_v59, %v837_v13 }
 0x4f6   :  { %5980 = vtanh.f32 %v842_v14 }
 0x4f7   :  { %5982 = vpow2.f32 %v5130_v20 }
 0x4f9   :  { %v5975_v16 = vpop.eup %5974 }
 0x4fa   :  { %852 = vrot.lane.b32.xlu0 %v5975_v16, %s6452_s3 }
 0x4fc   :  { %v5977_v17 = vpop.eup %5976 }
 0x4fd   :  { %v5979_v18 = vpop.eup %5978  ;;  %926 = vrot.lane.b32.xlu1 %v5977_v17, %s6452_s3 }
 0x4fe   :  { %928 = vrot.lane.b32.xlu0 %v5979_v18, %s6452_s3 }
 0x500   :  { %v5981_v55 = vpop.eup %5980 }
 0x501   :  { %850 = vrot.lane.b32.xlu1 %v5981_v55, %s6452_s3  ;;  %v5983_v52 = vpop.eup %5982 }
 0x502   :  { %v896_v21 = vadd.f32 1.0, %v5983_v52 }
 0x504   :  { %5984 = vrcp.f32 %v896_v21 }
 0x50e   :  { %v5985_v54 = vpop.eup %5984 }
 0x50f   :  { %v922_v28 = vsub.f32 1.0, %v5985_v54  ;;  %v938_v30 = vmul.f32 %v5985_v54, %v934_v29 }
 0x56c   :  { %v853_v24 = vpop.permute.xlu0 %852 }
 0x56d   :  { %v857_v27 = vmul.f32 %v853_v24, %v847_v22 }
 0x56f   :  { %v927_v31 = vpop.permute.xlu1 %926  ;;  %v7360_v50 = vadd.f32 %v862_v56, %v857_v27 }
 0x570   :  { %v932_v60 = vmul.f32 %v927_v31, %v922_v28  ;;  %v929_v40 = vpop.permute.xlu0 %928 }
 0x571   :  { %v933_v49 = vmul.f32 %v929_v40, %v923_v32  ;;  %v944_v37 = vrot.slane %v7360_v50, 7 }
 0x572   :  { %v940_v51 = vadd.f32 %v938_v30, %v932_v60 }
 0x573   :  { %v941_v63 = vadd.f32 %v7334_v10, %v933_v49  ;;  %v851_v1 = vpop.permute.xlu1 %850 }
 0x574   :  { %v856_v2 = vmul.f32 %v851_v1, %v846_v57  ;;  %v952_v9 = vrot.slane %v940_v51, 5  ;;  %v1161_v32 = vrot.slane %v940_v51, 1 }
 0x575   :  { %v953_v25 = vrot.slane %v941_v63, 4  ;;  %v2330_v35 = vrot.slane %v941_v63, 7  ;;  %v1162_v30 = vrot.slane %v941_v63, 1 }
 0x576   :  { %v7364_v6 = vadd.f32 %v861_v0, %v856_v2 }
 0x577   :  { %v954_v36 = vsel %vm945_vm3, %v953_v25, %v952_v9  ;;  %v7368_v7 = vsel %vm2072_vm4, %v2330_v35, %v940_v51 }
 0x578   :  { %955 = vrot.lane.b32.xlu1 %v954_v36, %s6453_s14  ;;  %v946_v10 = vsel %vm945_vm3, %v944_v37, %v7364_v6 }
 0x579   :  { %947 = vrot.lane.b32.xlu0 %v946_v10, %s6452_s3 }
 0x5ea   :  { %v956_v58 = vpop.permute.xlu1 %955 }
 0x5eb   :  { %v7376_v8 = vpop.permute.xlu0 %947 }
 0x5ec   :  { %v958_v12 = vsel %vm732_vm1, %v7376_v8, %v956_v58 }
 0x5ed   :  { %v960_v13 = vrot.slane %v958_v12, 1 }
 0x5ef   :  { %5132 = vmatmul.mubr.msk.f32.vlgmr.msra.gmra.mrb[4].mxu1 %vm516_vm2, %v960_v13 }
 0x5f0   :  { %5586 = vmatpush1.bf16.msra.mxu1 %v6653_v62  ;;  %1254 = vmatprep.mubr.f32.mxu1 %v6450_v3 }
 0x5f1   :  { %5588 = vmatprep.subr.bf16.mxu1 %v6665_v4 }
 0x5f4   :  { %5590 = vmatpush1.bf16.msra.mxu1 %v6683_v11 }
 0x5f5   :  { %5592 = vmatprep.subr.bf16.mxu1 %v6695_v15 }
 0x5f8   :  { %5594 = vmatpush1.bf16.msra.mxu1 %v6713_v23 }
 0x5f9   :  { %5596 = vmatprep.subr.bf16.mxu1 %v6722_v26 }
 0x5fc   :  { %5598 = vmatpush1.bf16.msra.mxu1 %v6737_v33 }
 0x5fd   :  { %5600 = vmatprep.subr.bf16.mxu1 %v6651_v61 }
 0x6c2   :  { %v1029_v14 = vpop.f32.mrb[4].mxu1 }
 0x6c3   :  { %v1030_v16 = vadd.f32 %v1029_v14, %v7231_v47  ;;  %v1031_v17 = vpop.f32.mrb[5].mxu1 }
 0x6c4   :  { %v1032_v18 = vadd.f32 %v1031_v17, %v7234_v48 }
 0x6c5   :  { %v1036_v55 = vrot.slane %v1030_v16, 7  ;;  %v1035_v24 = vrot.slane %v1030_v16, 6  ;;  %v1092_v49 = vrot.slane %v1030_v16, 3  ;;  %v1093_v57 = vrot.slane %v1030_v16, 4 }
 0x6c6   :  { %v1111_v19 = vrot.slane %v1032_v18, 3  ;;  %v1112_v20 = vrot.slane %v1032_v18, 4 }
 0x6c7   :  { %1055 = vrot.lane.b32.xlu0 %v1036_v55, %s6451_s0  ;;  %v1040_v0 = vadd.f32 %v7258_v5, %v1036_v55  ;;  %v1096_v1 = vadd.f32 %v7254_v59, %v1092_v49  ;;  %v1097_v2 = vadd.f32 %v7258_v5, %v1093_v57  ;;  %v1039_v63 = vadd.f32 %v7254_v59, %v1035_v24 }
 0x6c8   :  { %v1115_v52 = vadd.f32 %v7267_v39, %v1111_v19  ;;  %v1116_v21 = vadd.f32 %v7272_v53, %v1112_v20  ;;  %1129 = vrot.lane.b32.xlu1 %v1111_v19, %s6451_s0 }
 0x6c9   :  { %v5134_v51 = vmul.f32 -1.442695, %v1040_v0  ;;  %v5135_v9 = vmul.f32 -1.442695, %v1096_v1  ;;  %v5136_v25 = vmul.f32 -1.442695, %v1097_v2 }
 0x6ca   :  { %v5137_v54 = vmul.f32 -1.442695, %v1115_v52  ;;  %v5138_v22 = vmul.f32 -1.442695, %v1116_v21  ;;  %v5133_v35 = vmul.f32 -1.442695, %v1039_v63 }
 0x6cb   :  { %1131 = vrot.lane.b32.xlu0 %v1112_v20, %s6451_s0 }
 0x6cc   :  { %1053 = vrot.lane.b32.xlu1 %v1035_v24, %s6451_s0  ;;  %5986 = vpow2.f32 %v5137_v54 }
 0x6cd   :  { %5988 = vpow2.f32 %v5138_v22 }
 0x6d6   :  { %v5987_v27 = vpop.eup %5986 }
 0x6d7   :  { %v5989_v28 = vpop.eup %5988  ;;  %v1123_v29 = vadd.f32 1.0, %v5987_v27 }
 0x6d8   :  { %v1124_v31 = vadd.f32 1.0, %v5989_v28 }
 0x6d9   :  { %5990 = vrcp.f32 %v1123_v29 }
 0x6da   :  { %5992 = vrcp.f32 %v1124_v31 }
 0x6db   :  { %5994 = vpow2.f32 %v5134_v51 }
 0x6dc   :  { %5996 = vpow2.f32 %v5135_v9 }
 0x6dd   :  { %5998 = vpow2.f32 %v5136_v25 }
 0x6de   :  { %6000 = vpow2.f32 %v5133_v35 }
 0x6e3   :  { %v7398_v56 = vpop.eup %5990 }
 0x6e4   :  { %v7400_v60 = vpop.eup %5992  ;;  %v7403_v40 = vmul.f32 %v7398_v56, %v1161_v32 }
 0x6e5   :  { %v7406_v41 = vmul.f32 %v7400_v60, %v1162_v30  ;;  %v5995_v36 = vpop.eup %5994 }
 0x6e6   :  { %v5997_v10 = vpop.eup %5996  ;;  %v1048_v58 = vadd.f32 1.0, %v5995_v36 }
 0x6e7   :  { %v5999_v12 = vpop.eup %5998  ;;  %v1104_v13 = vadd.f32 1.0, %v5997_v10  ;;  %v1149_v10 = vsub.f32 1.0, %v7398_v56 }
 0x6e8   :  { %v6001_v14 = vpop.eup %6000  ;;  %6002 = vrcp.f32 %v1048_v58  ;;  %v1105_v16 = vadd.f32 1.0, %v5999_v12 }
 0x6e9   :  { %v1047_v17 = vadd.f32 1.0, %v6001_v14  ;;  %6004 = vrcp.f32 %v1104_v13 }
 0x6ea   :  { %6006 = vrcp.f32 %v1105_v16  ;;  %v1150_v16 = vsub.f32 1.0, %v7400_v60 }
 0x6eb   :  { %6008 = vrcp.f32 %v1047_v17  ;;  %v1085_v17 = vrot.slane %v7364_v6, 7 }
 0x6f2   :  { %v6003_v18 = vpop.eup %6002 }
 0x6f3   :  { %v6005_v19 = vpop.eup %6004  ;;  %v1074_v35 = vsub.f32 1.0, %v6003_v18  ;;  %v1089_v13 = vmul.f32 %v6003_v18, %v944_v37 }
 0x6f4   :  { %v6007_v54 = vpop.eup %6006 }
 0x6f5   :  { %v6009_v24 = vpop.eup %6008 }
 0x6f6   :  { %v1088_v56 = vmul.f32 %v6009_v24, %v1085_v17 }
 0x739   :  { %v1056_v55 = vpop.permute.xlu0 %1055 }
 0x73a   :  { %v1060_v20 = vmul.f32 %v6003_v18, %v1056_v55  ;;  %v1130_v52 = vpop.permute.xlu1 %1129 }
 0x73b   :  { %v1135_v21 = vmul.f32 %v6005_v19, %v1130_v52  ;;  %v1073_v52 = vsub.f32 1.0, %v6009_v24 }
 0x73c   :  { %1065 = vrot.lane.b32.xlu0 %v1060_v20, %s6451_s0 }
 0x73d   :  { %v1132_v22 = vpop.permute.xlu0 %1131  ;;  %1139 = vrot.lane.b32.xlu1 %v1135_v21, %s6451_s0 }
 0x73e   :  { %v1136_v27 = vmul.f32 %v6007_v54, %v1132_v22  ;;  %v1054_v28 = vpop.permute.xlu1 %1053 }
 0x73f   :  { %v1059_v29 = vmul.f32 %v6009_v24, %v1054_v28 }
 0x740   :  { %1141 = vrot.lane.b32.xlu0 %v1136_v27, %s6451_s0 }
 0x741   :  { %1063 = vrot.lane.b32.xlu1 %v1059_v29, %s6451_s0 }
 0x7ae   :  { %v1066_v31 = vpop.permute.xlu0 %1065 }
 0x7af   :  { %v1070_v32 = vadd.f32 %v7258_v5, %v1066_v31  ;;  %v1140_v30 = vpop.permute.xlu1 %1139 }
 0x7b0   :  { %v1145_v49 = vadd.f32 %v7267_v39, %v1140_v30 }
 0x7b1   :  { %6010 = vtanh.f32 %v1070_v32 }
 0x7b2   :  { %6012 = vtanh.f32 %v1145_v49  ;;  %v1142_v57 = vpop.permute.xlu0 %1141 }
 0x7b3   :  { %v1146_v0 = vadd.f32 %v7272_v53, %v1142_v57  ;;  %v1064_v1 = vpop.permute.xlu1 %1063 }
 0x7b4   :  { %v1069_v2 = vadd.f32 %v7254_v59, %v1064_v1 }
 0x7b5   :  { %6014 = vtanh.f32 %v1146_v0 }
 0x7b6   :  { %6016 = vtanh.f32 %v1069_v2 }
 0x7bb   :  { %v6011_v51 = vpop.eup %6010 }
 0x7bc   :  { %v6013_v9 = vpop.eup %6012  ;;  %1079 = vrot.lane.b32.xlu0 %v6011_v51, %s6452_s3 }
 0x7bd   :  { %1153 = vrot.lane.b32.xlu1 %v6013_v9, %s6452_s3 }
 0x7bf   :  { %v6015_v63 = vpop.eup %6014 }
 0x7c0   :  { %v6017_v25 = vpop.eup %6016  ;;  %1155 = vrot.lane.b32.xlu0 %v6015_v63, %s6452_s3 }
 0x7c1   :  { %1077 = vrot.lane.b32.xlu1 %v6017_v25, %s6452_s3 }
 0x82e   :  { %v1080_v36 = vpop.permute.xlu0 %1079 }
 0x82f   :  { %v1084_v58 = vmul.f32 %v1080_v36, %v1074_v35  ;;  %v1154_v12 = vpop.permute.xlu1 %1153 }
 0x830   :  { %v1159_v14 = vmul.f32 %v1154_v12, %v1149_v10 }
 0x831   :  { %v7429_v55 = vadd.f32 %v1089_v13, %v1084_v58 }
 0x832   :  { %v7432_v19 = vadd.f32 %v7403_v40, %v1159_v14  ;;  %v1156_v20 = vpop.permute.xlu0 %1155 }
 0x833   :  { %v1160_v21 = vmul.f32 %v1156_v20, %v1150_v16  ;;  %v1078_v54 = vpop.permute.xlu1 %1077  ;;  %v1171_v50 = vrot.slane %v7429_v55, 7 }
 0x834   :  { %v1083_v22 = vmul.f32 %v1078_v54, %v1073_v52  ;;  %v1179_v6 = vrot.slane %v7432_v19, 3  ;;  %v1386_v14 = vrot.slane %v7432_v19, 1 }
 0x835   :  { %v1168_v27 = vadd.f32 %v7406_v41, %v1160_v21 }
 0x836   :  { %v7436_v37 = vadd.f32 %v1088_v56, %v1083_v22 }
 0x837   :  { %v1180_v60 = vrot.slane %v1168_v27, 2  ;;  %v2324_v18 = vrot.slane %v1168_v27, 7  ;;  %v1387_v17 = vrot.slane %v1168_v27, 1 }
 0x838   :  { %v1173_v40 = vsel %vm1172_vm5, %v1171_v50, %v7436_v37 }
 0x839   :  { %1174 = vrot.lane.b32.xlu0 %v1173_v40, %s6452_s3  ;;  %v1181_v24 = vsel %vm1172_vm5, %v1180_v60, %v1179_v6  ;;  %v7447_v41 = vsel %vm1847_vm6, %v2324_v18, %v7432_v19 }
 0x83a   :  { %1182 = vrot.lane.b32.xlu1 %v1181_v24, %s6453_s14 }
 0x8ab   :  { %v7450_v28 = vpop.permute.xlu0 %1174 }
 0x8ac   :  { %v1183_v29 = vpop.permute.xlu1 %1182 }
 0x8ad   :  { %v1185_v31 = vsel %vm732_vm1, %v7450_v28, %v1183_v29 }
 0x8ae   :  { %v1187_v32 = vrot.slane %v1185_v31, 2 }
 0x8b0   :  { %5139 = vmatmul.mubr.msk.f32.vlgmr.msra.gmra.mrb[6].mxu1 %vm516_vm2, %v1187_v32 }
 0x8b1   :  { %5602 = vmatpush1.bf16.msra.mxu1 %v6653_v62  ;;  %1478 = vmatprep.mubr.f32.mxu1 %v6450_v3 }
 0x8b2   :  { %5604 = vmatprep.subr.bf16.mxu1 %v6665_v4 }
 0x8b5   :  { %5606 = vmatpush1.bf16.msra.mxu1 %v6683_v11 }
 0x8b6   :  { %5608 = vmatprep.subr.bf16.mxu1 %v6695_v15 }
 0x8b9   :  { %5610 = vmatpush1.bf16.msra.mxu1 %v6713_v23 }
 0x8ba   :  { %5612 = vmatprep.subr.bf16.mxu1 %v6722_v26 }
 0x8bd   :  { %5614 = vmatpush1.bf16.msra.mxu1 %v6737_v33 }
 0x8be   :  { %5616 = vmatprep.subr.bf16.mxu1 %v6651_v61 }
 0x983   :  { %v1256_v30 = vpop.f32.mrb[6].mxu1 }
 0x984   :  { %v1257_v49 = vadd.f32 %v1256_v30, %v7231_v47  ;;  %v1258_v57 = vpop.f32.mrb[7].mxu1 }
 0x985   :  { %v1259_v0 = vadd.f32 %v1258_v57, %v7234_v48 }
 0x986   :  { %v1263_v1 = vrot.slane %v1257_v49, 6  ;;  %v1262_v25 = vrot.slane %v1257_v49, 5  ;;  %v1319_v54 = vrot.slane %v1257_v49, 4 }
 0x987   :  { %v1336_v2 = vrot.slane %v1259_v0, 4  ;;  %v1337_v51 = vrot.slane %v1259_v0, 5 }
 0x988   :  { %1282 = vrot.lane.b32.xlu0 %v1263_v1, %s6451_s0  ;;  %v1267_v56 = vadd.f32 %v7258_v5, %v1263_v1  ;;  %v1321_v22 = vadd.f32 %v7254_v59, %v1319_v54  ;;  %v1266_v60 = vadd.f32 %v7254_v59, %v1262_v25  ;;  %v1322_v18 = vadd.f32 %v7258_v5, %v1262_v25 }
 0x989   :  { %v1340_v9 = vadd.f32 %v7267_v39, %v1336_v2  ;;  %v1341_v63 = vadd.f32 %v7272_v53, %v1337_v51  ;;  %1354 = vrot.lane.b32.xlu1 %v1336_v2, %s6451_s0 }
 0x98a   :  { %v5141_v6 = vmul.f32 -1.442695, %v1267_v56  ;;  %v5142_v19 = vmul.f32 -1.442695, %v1321_v22  ;;  %v5140_v27 = vmul.f32 -1.442695, %v1266_v60 }
 0x98b   :  { %v5144_v35 = vmul.f32 -1.442695, %v1340_v9  ;;  %v5145_v36 = vmul.f32 -1.442695, %v1341_v63  ;;  %v5143_v40 = vmul.f32 -1.442695, %v1322_v18 }
 0x98c   :  { %1280 = vrot.lane.b32.xlu0 %v1262_v25, %s6451_s0 }
 0x98d   :  { %6018 = vpow2.f32 %v5144_v35  ;;  %1356 = vrot.lane.b32.xlu1 %v1337_v51, %s6451_s0 }
 0x98e   :  { %6020 = vpow2.f32 %v5145_v36 }
 0x997   :  { %v6019_v10 = vpop.eup %6018 }
 0x998   :  { %v6021_v58 = vpop.eup %6020  ;;  %v1348_v12 = vadd.f32 1.0, %v6019_v10 }
 0x999   :  { %v1349_v13 = vadd.f32 1.0, %v6021_v58 }
 0x99a   :  { %6022 = vrcp.f32 %v1348_v12 }
 0x99b   :  { %6024 = vrcp.f32 %v1349_v13 }
 0x99c   :  { %6026 = vpow2.f32 %v5141_v6 }
 0x99d   :  { %6028 = vpow2.f32 %v5142_v19 }
 0x99e   :  { %6030 = vpow2.f32 %v5140_v27 }
 0x99f   :  { %6032 = vpow2.f32 %v5143_v40 }
 0x9a4   :  { %v7473_v16 = vpop.eup %6022 }
 0x9a5   :  { %v7475_v20 = vpop.eup %6024  ;;  %v7478_v52 = vmul.f32 %v7473_v16, %v1386_v14 }
 0x9a6   :  { %v7481_v21 = vmul.f32 %v7475_v20, %v1387_v17  ;;  %v6027_v24 = vpop.eup %6026 }
 0x9a7   :  { %v6029_v29 = vpop.eup %6028  ;;  %v1275_v31 = vadd.f32 1.0, %v6027_v24 }
 0x9a8   :  { %v6031_v32 = vpop.eup %6030  ;;  %v1329_v30 = vadd.f32 1.0, %v6029_v29 }
 0x9a9   :  { %v6033_v49 = vpop.eup %6032  ;;  %6034 = vrcp.f32 %v1275_v31  ;;  %v1274_v57 = vadd.f32 1.0, %v6031_v32  ;;  %v1374_v32 = vsub.f32 1.0, %v7473_v16 }
 0x9aa   :  { %6036 = vrcp.f32 %v1329_v30  ;;  %v1330_v0 = vadd.f32 1.0, %v6033_v49 }
 0x9ab   :  { %6038 = vrcp.f32 %v1274_v57 }
 0x9ac   :  { %6040 = vrcp.f32 %v1330_v0 }
 0x9b3   :  { %v6035_v1 = vpop.eup %6034 }
 0x9b4   :  { %v6037_v51 = vpop.eup %6036  ;;  %v1301_v29 = vsub.f32 1.0, %v6035_v1  ;;  %v1316_v30 = vmul.f32 %v6035_v1, %v1171_v50 }
 0x9b5   :  { %v6039_v35 = vpop.eup %6038 }
 0x9b6   :  { %v6041_v10 = vpop.eup %6040 }
 0x9fa   :  { %v1283_v2 = vpop.permute.xlu0 %1282 }
 0x9fb   :  { %v1287_v9 = vmul.f32 %v6035_v1, %v1283_v2  ;;  %v1355_v63 = vpop.permute.xlu1 %1354  ;;  %v1312_v2 = vrot.slane %v7436_v37, 7 }
 0x9fc   :  { %v1360_v25 = vmul.f32 %v6037_v51, %v1355_v63 }
 0x9fd   :  { %1292 = vrot.lane.b32.xlu0 %v1287_v9, %s6451_s0  ;;  %v1300_v9 = vsub.f32 1.0, %v6039_v35 }
 0x9fe   :  { %1364 = vrot.lane.b32.xlu1 %v1360_v25, %s6451_s0  ;;  %v1281_v36 = vpop.permute.xlu0 %1280 }
 0x9ff   :  { %v1286_v58 = vmul.f32 %v6039_v35, %v1281_v36  ;;  %v1357_v12 = vpop.permute.xlu1 %1356  ;;  %v1375_v36 = vsub.f32 1.0, %v7475_v20 }
 0xa00   :  { %v1361_v13 = vmul.f32 %v6041_v10, %v1357_v12  ;;  %v1315_v10 = vmul.f32 %v6039_v35, %v1312_v2 }
 0xa01   :  { %1290 = vrot.lane.b32.xlu0 %v1286_v58, %s6451_s0 }
 0xa02   :  { %1366 = vrot.lane.b32.xlu1 %v1361_v13, %s6451_s0 }
 0xa6f   :  { %v1293_v14 = vpop.permute.xlu0 %1292 }
 0xa70   :  { %v1297_v17 = vadd.f32 %v7258_v5, %v1293_v14  ;;  %v1365_v54 = vpop.permute.xlu1 %1364 }
 0xa71   :  { %v1370_v56 = vadd.f32 %v7267_v39, %v1365_v54 }
 0xa72   :  { %6042 = vtanh.f32 %v1297_v17 }
 0xa73   :  { %6044 = vtanh.f32 %v1370_v56  ;;  %v1291_v22 = vpop.permute.xlu0 %1290 }
 0xa74   :  { %v1296_v6 = vadd.f32 %v7254_v59, %v1291_v22  ;;  %v1367_v60 = vpop.permute.xlu1 %1366 }
 0xa75   :  { %v1371_v19 = vadd.f32 %v7272_v53, %v1367_v60 }
 0xa76   :  { %6046 = vtanh.f32 %v1296_v6 }
 0xa77   :  { %6048 = vtanh.f32 %v1371_v19 }
 0xa7c   :  { %v6043_v18 = vpop.eup %6042 }
 0xa7d   :  { %v6045_v27 = vpop.eup %6044  ;;  %1306 = vrot.lane.b32.xlu0 %v6043_v18, %s6452_s3 }
 0xa7e   :  { %1378 = vrot.lane.b32.xlu1 %v6045_v27, %s6452_s3 }
 0xa80   :  { %v6047_v40 = vpop.eup %6046 }
 0xa81   :  { %v6049_v24 = vpop.eup %6048  ;;  %1304 = vrot.lane.b32.xlu0 %v6047_v40, %s6452_s3 }
 0xa82   :  { %1380 = vrot.lane.b32.xlu1 %v6049_v24, %s6452_s3 }
 0xaef   :  { %v1307_v31 = vpop.permute.xlu0 %1306 }
 0xaf0   :  { %v1311_v49 = vmul.f32 %v1307_v31, %v1301_v29  ;;  %v1379_v57 = vpop.permute.xlu1 %1378 }
 0xaf1   :  { %v1384_v0 = vmul.f32 %v1379_v57, %v1374_v32 }
 0xaf2   :  { %v7503_v51 = vadd.f32 %v1316_v30, %v1311_v49 }
 0xaf3   :  { %v7506_v63 = vadd.f32 %v7478_v52, %v1384_v0  ;;  %v1305_v25 = vpop.permute.xlu0 %1304 }
 0xaf4   :  { %v1310_v58 = vmul.f32 %v1305_v25, %v1300_v9  ;;  %v1381_v16 = vpop.permute.xlu1 %1380  ;;  %v1396_v55 = vrot.slane %v7503_v51, 7 }
 0xaf5   :  { %v1385_v12 = vmul.f32 %v1381_v16, %v1375_v36  ;;  %v1404_v37 = vrot.slane %v7506_v63, 1 }
 0xaf6   :  { %v7510_v50 = vadd.f32 %v1315_v10, %v1310_v58 }
 0xaf7   :  { %v1393_v1 = vadd.f32 %v7481_v21, %v1385_v12 }
 0xaf8   :  { %v1398_v52 = vsel %vm1397_vm7, %v1396_v55, %v7510_v50 }
 0xaf9   :  { %1399 = vrot.lane.b32.xlu0 %v1398_v52, %s6452_s3  ;;  %v1405_v20 = vsel %vm1397_vm7, %v1393_v1, %v1404_v37  ;;  %v2318_v35 = vrot.slane %v1393_v1, 7  ;;  %v1610_v30 = vrot.slane %v1393_v1, 1 }
 0xafa   :  { %1406 = vrot.lane.b32.xlu1 %v1405_v20, %s6453_s14 }
 0xafb   :  { %v7525_v13 = vsel %vm1620_vm8, %v2318_v35, %v7506_v63 }
 0xb6b   :  { %v7527_v21 = vpop.permute.xlu0 %1399 }
 0xb6c   :  { %v1407_v14 = vpop.permute.xlu1 %1406 }
 0xb6d   :  { %v1409_v17 = vsel %vm732_vm1, %v7527_v21, %v1407_v14 }
 0xb6e   :  { %v1411_v54 = vrot.slane %v1409_v17, 3 }
 0xb70   :  { %5146 = vmatmul.mubr.msk.f32.vlgmr.msra.gmra.mrb[8].mxu1 %vm516_vm2, %v1411_v54 }
 0xb71   :  { %5618 = vmatpush1.bf16.msra.mxu1 %v6653_v62  ;;  %1702 = vmatprep.mubr.f32.mxu1 %v6450_v3 }
 0xb72   :  { %5620 = vmatprep.subr.bf16.mxu1 %v6665_v4 }
 0xb75   :  { %5622 = vmatpush1.bf16.msra.mxu1 %v6683_v11 }
 0xb76   :  { %5624 = vmatprep.subr.bf16.mxu1 %v6695_v15 }
 0xb79   :  { %5626 = vmatpush1.bf16.msra.mxu1 %v6713_v23 }
 0xb7a   :  { %5628 = vmatprep.subr.bf16.mxu1 %v6722_v26 }
 0xb7d   :  { %5630 = vmatpush1.bf16.msra.mxu1 %v6737_v33 }
 0xb7e   :  { %5632 = vmatprep.subr.bf16.mxu1 %v6651_v61 }
 0xc43   :  { %v1480_v56 = vpop.f32.mrb[8].mxu1 }
 0xc44   :  { %v1481_v22 = vadd.f32 %v1480_v56, %v7231_v47  ;;  %v1482_v6 = vpop.f32.mrb[9].mxu1 }
 0xc45   :  { %v7543_v60 = vadd.f32 %v1482_v6, %v7234_v48 }
 0xc46   :  { %v1487_v19 = vrot.slane %v1481_v22, 5  ;;  %v1486_v29 = vrot.slane %v1481_v22, 4  ;;  %v1543_v0 = vrot.slane %v1481_v22, 6 }
 0xc47   :  { %v1560_v18 = vrot.slane %v7543_v60, 5  ;;  %v1561_v27 = vrot.slane %v7543_v60, 6 }
 0xc48   :  { %1506 = vrot.lane.b32.xlu0 %v1487_v19, %s6451_s0  ;;  %v1491_v2 = vadd.f32 %v7258_v5, %v1487_v19  ;;  %v1545_v9 = vadd.f32 %v7254_v59, %v1487_v19  ;;  %v1546_v25 = vadd.f32 %v7258_v5, %v1543_v0  ;;  %v1490_v58 = vadd.f32 %v7254_v59, %v1486_v29 }
 0xc49   :  { %v1565_v40 = vadd.f32 %v7272_v53, %v1561_v27  ;;  %1578 = vrot.lane.b32.xlu1 %v1560_v18, %s6451_s0 }
 0xc4a   :  { %v5148_v36 = vmul.f32 -1.442695, %v1491_v2  ;;  %v5149_v10 = vmul.f32 -1.442695, %v1545_v9  ;;  %v5150_v16 = vmul.f32 -1.442695, %v1546_v25 }
 0xc4b   :  { %v5152_v24 = vmul.f32 -1.442695, %v1565_v40  ;;  %v5147_v12 = vmul.f32 -1.442695, %v1490_v58 }
 0xc4c   :  { %1580 = vrot.lane.b32.xlu0 %v1561_v27, %s6451_s0 }
 0xc4d   :  { %1504 = vrot.lane.b32.xlu1 %v1486_v29, %s6451_s0  ;;  %6050 = vpow2.f32 %v5152_v24 }
 0xc57   :  { %v6051_v31 = vpop.eup %6050 }
 0xc58   :  { %v1573_v32 = vadd.f32 1.0, %v6051_v31 }
 0xc5a   :  { %6052 = vrcp.f32 %v1573_v32 }
 0xc5b   :  { %6054 = vpow2.f32 %v5148_v36 }
 0xc5c   :  { %6056 = vpow2.f32 %v5149_v10 }
 0xc5d   :  { %6058 = vpow2.f32 %v5150_v16 }
 0xc5e   :  { %6060 = vpow2.f32 %v5147_v12 }
 0xc64   :  { %v7554_v49 = vpop.eup %6052 }
 0xc65   :  { %v7557_v57 = vmul.f32 %v7554_v49, %v1610_v30  ;;  %v6055_v1 = vpop.eup %6054 }
 0xc66   :  { %v6057_v52 = vpop.eup %6056  ;;  %v1499_v20 = vadd.f32 1.0, %v6055_v1 }
 0xc67   :  { %v6059_v35 = vpop.eup %6058  ;;  %v1553_v14 = vadd.f32 1.0, %v6057_v52 }
 0xc68   :  { %v6061_v17 = vpop.eup %6060  ;;  %v1554_v54 = vadd.f32 1.0, %v6059_v35  ;;  %6062 = vrcp.f32 %v1499_v20 }
 0xc69   :  { %v1498_v56 = vadd.f32 1.0, %v6061_v17  ;;  %6064 = vrcp.f32 %v1553_v14  ;;  %v1564_v17 = vadd.f32 %v7267_v39, %v1560_v18  ;;  %v1599_v18 = vsub.f32 1.0, %v7554_v49 }
 0xc6a   :  { %6066 = vrcp.f32 %v1554_v54 }
 0xc6b   :  { %6068 = vrcp.f32 %v1498_v56  ;;  %v5151_v54 = vmul.f32 -1.442695, %v1564_v17 }
 0xc72   :  { %v6063_v22 = vpop.eup %6062 }
 0xc73   :  { %v6065_v19 = vpop.eup %6064 }
 0xc74   :  { %v6067_v29 = vpop.eup %6066 }
 0xc75   :  { %v6069_v32 = vpop.eup %6068 }
 0xcba   :  { %v1507_v6 = vpop.permute.xlu0 %1506 }
 0xcbb   :  { %v1511_v27 = vmul.f32 %v6063_v22, %v1507_v6  ;;  %v1579_v40 = vpop.permute.xlu1 %1578 }
 0xcbc   :  { %v1584_v24 = vmul.f32 %v6065_v19, %v1579_v40 }
 0xcbd   :  { %1516 = vrot.lane.b32.xlu0 %v1511_v27, %s6451_s0  ;;  %v1525_v27 = vsub.f32 1.0, %v6063_v22 }
 0xcbe   :  { %v1581_v31 = vpop.permute.xlu0 %1580  ;;  %1588 = vrot.lane.b32.xlu1 %v1584_v24, %s6451_s0 }
 0xcbf   :  { %v1585_v30 = vmul.f32 %v6067_v29, %v1581_v31  ;;  %v1505_v0 = vpop.permute.xlu1 %1504 }
 0xcc0   :  { %v1510_v2 = vmul.f32 %v6069_v32, %v1505_v0 }
 0xcc1   :  { %1590 = vrot.lane.b32.xlu0 %v1585_v30, %s6451_s0  ;;  %v1540_v30 = vmul.f32 %v6063_v22, %v1396_v55 }
 0xcc2   :  { %1514 = vrot.lane.b32.xlu1 %v1510_v2, %s6451_s0  ;;  %v1536_v2 = vrot.slane %v7510_v50, 7 }
 0xd2f   :  { %v1517_v9 = vpop.permute.xlu0 %1516 }
 0xd30   :  { %v1521_v25 = vadd.f32 %v7258_v5, %v1517_v9  ;;  %v1589_v36 = vpop.permute.xlu1 %1588 }
 0xd31   :  { %v1594_v10 = vadd.f32 %v7267_v39, %v1589_v36  ;;  %v1524_v36 = vsub.f32 1.0, %v6069_v32 }
 0xd32   :  { %6070 = vtanh.f32 %v1521_v25 }
 0xd33   :  { %6072 = vtanh.f32 %v1594_v10  ;;  %v1591_v58 = vpop.permute.xlu0 %1590 }
 0xd34   :  { %v1595_v16 = vadd.f32 %v7272_v53, %v1591_v58  ;;  %v1515_v12 = vpop.permute.xlu1 %1514 }
 0xd35   :  { %v1520_v1 = vadd.f32 %v7254_v59, %v1515_v12  ;;  %v1539_v12 = vmul.f32 %v6069_v32, %v1536_v2 }
 0xd36   :  { %6074 = vtanh.f32 %v1595_v16 }
 0xd37   :  { %6076 = vtanh.f32 %v1520_v1 }
 0xd38   :  { %6078 = vpow2.f32 %v5151_v54 }
 0xd3c   :  { %v6071_v52 = vpop.eup %6070 }
 0xd3d   :  { %v6073_v20 = vpop.eup %6072  ;;  %1530 = vrot.lane.b32.xlu0 %v6071_v52, %s6452_s3 }
 0xd3e   :  { %1602 = vrot.lane.b32.xlu1 %v6073_v20, %s6452_s3 }
 0xd40   :  { %v6075_v35 = vpop.eup %6074 }
 0xd41   :  { %v6077_v14 = vpop.eup %6076  ;;  %1604 = vrot.lane.b32.xlu0 %v6075_v35, %s6452_s3 }
 0xd42   :  { %1528 = vrot.lane.b32.xlu1 %v6077_v14, %s6452_s3  ;;  %v6079_v56 = vpop.eup %6078 }
 0xd43   :  { %v1572_v6 = vadd.f32 1.0, %v6079_v56 }
 0xd45   :  { %6080 = vrcp.f32 %v1572_v6 }
 0xd4f   :  { %v6081_v19 = vpop.eup %6080 }
 0xd50   :  { %v1598_v24 = vsub.f32 1.0, %v6081_v19  ;;  %v1613_v60 = vmul.f32 %v6081_v19, %v1404_v37 }
 0xdaf   :  { %v1531_v40 = vpop.permute.xlu0 %1530 }
 0xdb0   :  { %v1535_v29 = vmul.f32 %v1531_v40, %v1525_v27  ;;  %v1603_v31 = vpop.permute.xlu1 %1602 }
 0xdb1   :  { %v1608_v0 = vmul.f32 %v1603_v31, %v1598_v24 }
 0xdb2   :  { %v7584_v9 = vadd.f32 %v1540_v30, %v1535_v29 }
 0xdb3   :  { %v1605_v25 = vpop.permute.xlu0 %1604  ;;  %v1615_v10 = vadd.f32 %v1613_v60, %v1608_v0 }
 0xdb4   :  { %v1609_v58 = vmul.f32 %v1605_v25, %v1599_v18  ;;  %v1529_v16 = vpop.permute.xlu1 %1528  ;;  %v1619_v55 = vrot.slane %v7584_v9, 7 }
 0xdb5   :  { %v1534_v1 = vmul.f32 %v1529_v16, %v1524_v36  ;;  %v1627_v63 = vrot.slane %v1615_v10, 7  ;;  %v1836_v25 = vrot.slane %v1615_v10, 1 }
 0xdb6   :  { %v1616_v51 = vadd.f32 %v7557_v57, %v1609_v58 }
 0xdb7   :  { %v7588_v22 = vadd.f32 %v1539_v12, %v1534_v1 }
 0xdb8   :  { %v1628_v37 = vrot.slane %v1616_v51, 6  ;;  %v2312_v49 = vrot.slane %v1616_v51, 7  ;;  %v1837_v58 = vrot.slane %v1616_v51, 1 }
 0xdb9   :  { %v1621_v50 = vsel %vm1620_vm8, %v1619_v55, %v7588_v22 }
 0xdba   :  { %1622 = vrot.lane.b32.xlu0 %v1621_v50, %s6452_s3  ;;  %v1629_v52 = vsel %vm1620_vm8, %v1628_v37, %v1627_v63  ;;  %v7597_v32 = vsel %vm1397_vm7, %v2312_v49, %v1615_v10 }
 0xdbb   :  { %1630 = vrot.lane.b32.xlu1 %v1629_v52, %s6453_s14 }
 0xe2c   :  { %v7600_v57 = vpop.permute.xlu0 %1622 }
 0xe2d   :  { %v1631_v20 = vpop.permute.xlu1 %1630 }
 0xe2e   :  { %v1633_v35 = vsel %vm732_vm1, %v7600_v57, %v1631_v20 }
 0xe2f   :  { %v1635_v14 = vrot.slane %v1633_v35, 4 }
 0xe31   :  { %5153 = vmatmul.mubr.msk.f32.vlgmr.msra.gmra.mrb[10].mxu1 %vm516_vm2, %v1635_v14 }
 0xe32   :  { %5634 = vmatpush1.bf16.msra.mxu1 %v6653_v62  ;;  %1929 = vmatprep.mubr.f32.mxu1 %v6450_v3 }
 0xe33   :  { %5636 = vmatprep.subr.bf16.mxu1 %v6665_v4 }
 0xe36   :  { %5638 = vmatpush1.bf16.msra.mxu1 %v6683_v11 }
 0xe37   :  { %5640 = vmatprep.subr.bf16.mxu1 %v6695_v15 }
 0xe3a   :  { %5642 = vmatpush1.bf16.msra.mxu1 %v6713_v23 }
 0xe3b   :  { %5644 = vmatprep.subr.bf16.mxu1 %v6722_v26 }
 0xe3e   :  { %5646 = vmatpush1.bf16.msra.mxu1 %v6737_v33 }
 0xe3f   :  { %5648 = vmatprep.subr.bf16.mxu1 %v6651_v61 }
 0xf04   :  { %v1704_v17 = vpop.f32.mrb[10].mxu1 }
 0xf05   :  { %v1705_v54 = vadd.f32 %v1704_v17, %v7231_v47  ;;  %v1706_v56 = vpop.f32.mrb[11].mxu1 }
 0xf06   :  { %v1707_v6 = vadd.f32 %v1706_v56, %v7234_v48 }
 0xf07   :  { %v1711_v19 = vrot.slane %v1705_v54, 4  ;;  %v1710_v61 = vrot.slane %v1705_v54, 3  ;;  %v1767_v63 = vrot.slane %v1705_v54, 6  ;;  %v1768_v37 = vrot.slane %v1705_v54, 7 }
 0xf08   :  { %v1786_v27 = vrot.slane %v1707_v6, 6  ;;  %v1787_v40 = vrot.slane %v1707_v6, 7 }
 0xf09   :  { %1730 = vrot.lane.b32.xlu0 %v1711_v19, %s6451_s0  ;;  %v1715_v49 = vadd.f32 %v7258_v5, %v1711_v19  ;;  %v1771_v50 = vadd.f32 %v7254_v59, %v1767_v63  ;;  %v1772_v52 = vadd.f32 %v7258_v5, %v1768_v37  ;;  %v1714_v51 = vadd.f32 %v7254_v59, %v1710_v61 }
 0xf0a   :  { %v1790_v24 = vadd.f32 %v7267_v39, %v1786_v27  ;;  %v1791_v29 = vadd.f32 %v7272_v53, %v1787_v40  ;;  %1804 = vrot.lane.b32.xlu1 %v1786_v27, %s6451_s0 }
 0xf0b   :  { %v5155_v10 = vmul.f32 -1.442695, %v1715_v49  ;;  %v5156_v20 = vmul.f32 -1.442695, %v1771_v50  ;;  %v5157_v35 = vmul.f32 -1.442695, %v1772_v52 }
 0xf0c   :  { %v5158_v31 = vmul.f32 -1.442695, %v1790_v24  ;;  %v5159_v30 = vmul.f32 -1.442695, %v1791_v29  ;;  %v5154_v14 = vmul.f32 -1.442695, %v1714_v51 }
 0xf0d   :  { %1806 = vrot.lane.b32.xlu0 %v1787_v40, %s6451_s0 }
 0xf0e   :  { %1728 = vrot.lane.b32.xlu1 %v1710_v61, %s6451_s0  ;;  %6082 = vpow2.f32 %v5158_v31 }
 0xf0f   :  { %6084 = vpow2.f32 %v5159_v30 }
 0xf18   :  { %v6083_v0 = vpop.eup %6082 }
 0xf19   :  { %v6085_v60 = vpop.eup %6084  ;;  %v1798_v18 = vadd.f32 1.0, %v6083_v0 }
 0xf1a   :  { %v1799_v2 = vadd.f32 1.0, %v6085_v60 }
 0xf1b   :  { %6086 = vrcp.f32 %v1798_v18 }
 0xf1c   :  { %6088 = vrcp.f32 %v1799_v2 }
 0xf1d   :  { %6090 = vpow2.f32 %v5155_v10 }
 0xf1e   :  { %6092 = vpow2.f32 %v5156_v20 }
 0xf1f   :  { %6094 = vpow2.f32 %v5157_v35 }
 0xf20   :  { %6096 = vpow2.f32 %v5154_v14 }
 0xf25   :  { %v7622_v36 = vpop.eup %6086 }
 0xf26   :  { %v7624_v16 = vpop.eup %6088  ;;  %v7627_v12 = vmul.f32 %v7622_v36, %v1836_v25 }
 0xf27   :  { %v7630_v1 = vmul.f32 %v7624_v16, %v1837_v58  ;;  %v6091_v17 = vpop.eup %6090 }
 0xf28   :  { %v6093_v56 = vpop.eup %6092  ;;  %v1723_v6 = vadd.f32 1.0, %v6091_v17 }
 0xf29   :  { %v6095_v54 = vpop.eup %6094  ;;  %v1779_v27 = vadd.f32 1.0, %v6093_v56 }
 0xf2a   :  { %v6097_v19 = vpop.eup %6096  ;;  %6098 = vrcp.f32 %v1723_v6  ;;  %v1780_v40 = vadd.f32 1.0, %v6095_v54 }
 0xf2b   :  { %v1722_v24 = vadd.f32 1.0, %v6097_v19  ;;  %6100 = vrcp.f32 %v1779_v27 }
 0xf2c   :  { %6102 = vrcp.f32 %v1780_v40  ;;  %v1824_v40 = vsub.f32 1.0, %v7622_v36 }
 0xf2d   :  { %6104 = vrcp.f32 %v1722_v24 }
 0xf34   :  { %v6099_v29 = vpop.eup %6098 }
 0xf35   :  { %v6101_v30 = vpop.eup %6100  ;;  %v1749_v27 = vsub.f32 1.0, %v6099_v29 }
 0xf36   :  { %v6103_v18 = vpop.eup %6102 }
 0xf37   :  { %v6105_v25 = vpop.eup %6104 }
 0xf7b   :  { %v1731_v31 = vpop.permute.xlu0 %1730 }
 0xf7c   :  { %v1735_v61 = vmul.f32 %v6099_v29, %v1731_v31  ;;  %v1805_v0 = vpop.permute.xlu1 %1804 }
 0xf7d   :  { %v1810_v60 = vmul.f32 %v6101_v30, %v1805_v0  ;;  %v1764_v30 = vmul.f32 %v6099_v29, %v1619_v55  ;;  %v1825_v0 = vsub.f32 1.0, %v7624_v16 }
 0xf7e   :  { %1740 = vrot.lane.b32.xlu0 %v1735_v61, %s6451_s0 }
 0xf7f   :  { %v1807_v2 = vpop.permute.xlu0 %1806  ;;  %1814 = vrot.lane.b32.xlu1 %v1810_v60, %s6451_s0  ;;  %v1760_v60 = vrot.slane %v7588_v22, 7 }
 0xf80   :  { %v1811_v58 = vmul.f32 %v6103_v18, %v1807_v2  ;;  %v1729_v63 = vpop.permute.xlu1 %1728 }
 0xf81   :  { %v1734_v37 = vmul.f32 %v6105_v25, %v1729_v63  ;;  %v1748_v63 = vsub.f32 1.0, %v6105_v25 }
 0xf82   :  { %1816 = vrot.lane.b32.xlu0 %v1811_v58, %s6451_s0 }
 0xf83   :  { %1738 = vrot.lane.b32.xlu1 %v1734_v37, %s6451_s0 }
 0xff0   :  { %v1741_v49 = vpop.permute.xlu0 %1740 }
 0xff1   :  { %v1745_v50 = vadd.f32 %v7258_v5, %v1741_v49  ;;  %v1815_v52 = vpop.permute.xlu1 %1814 }
 0xff2   :  { %v1820_v10 = vadd.f32 %v7267_v39, %v1815_v52 }
 0xff3   :  { %6106 = vtanh.f32 %v1745_v50  ;;  %v1763_v50 = vmul.f32 %v6105_v25, %v1760_v60 }
 0xff4   :  { %6108 = vtanh.f32 %v1820_v10  ;;  %v1817_v20 = vpop.permute.xlu0 %1816 }
 0xff5   :  { %v1821_v51 = vadd.f32 %v7272_v53, %v1817_v20  ;;  %v1739_v35 = vpop.permute.xlu1 %1738 }
 0xff6   :  { %v1744_v14 = vadd.f32 %v7254_v59, %v1739_v35 }
 0xff7   :  { %6110 = vtanh.f32 %v1821_v51 }
 0xff8   :  { %6112 = vtanh.f32 %v1744_v14 }
 0xffd   :  { %v6107_v17 = vpop.eup %6106 }
 0xffe   :  { %v6109_v56 = vpop.eup %6108  ;;  %1754 = vrot.lane.b32.xlu0 %v6107_v17, %s6452_s3 }
 0xfff   :  { %1828 = vrot.lane.b32.xlu1 %v6109_v56, %s6452_s3 }
0x1001   :  { %v6111_v6 = vpop.eup %6110 }
0x1002   :  { %v6113_v54 = vpop.eup %6112  ;;  %1830 = vrot.lane.b32.xlu0 %v6111_v6, %s6452_s3 }
0x1003   :  { %1752 = vrot.lane.b32.xlu1 %v6113_v54, %s6452_s3 }
0x1070   :  { %v1755_v19 = vpop.permute.xlu0 %1754 }
0x1071   :  { %v1759_v24 = vmul.f32 %v1755_v19, %v1749_v27  ;;  %v1829_v31 = vpop.permute.xlu1 %1828 }
0x1072   :  { %v1834_v61 = vmul.f32 %v1829_v31, %v1824_v40 }
0x1073   :  { %v7653_v18 = vadd.f32 %v1764_v30, %v1759_v24 }
0x1074   :  { %v1842_v2 = vadd.f32 %v7627_v12, %v1834_v61  ;;  %v1831_v58 = vpop.permute.xlu0 %1830 }
0x1075   :  { %v1835_v37 = vmul.f32 %v1831_v58, %v1825_v0  ;;  %v1753_v49 = vpop.permute.xlu1 %1752  ;;  %v1846_v9 = vrot.slane %v7653_v18, 7 }
0x1076   :  { %v1758_v36 = vmul.f32 %v1753_v49, %v1748_v63  ;;  %v1854_v29 = vrot.slane %v1842_v2, 5  ;;  %v2061_v61 = vrot.slane %v1842_v2, 1 }
0x1077   :  { %v1843_v52 = vadd.f32 %v7630_v1, %v1835_v37 }
0x1078   :  { %v7658_v55 = vadd.f32 %v1763_v50, %v1758_v36 }
0x1079   :  { %v1855_v16 = vrot.slane %v1843_v52, 4  ;;  %v2306_v10 = vrot.slane %v1843_v52, 7  ;;  %v2062_v24 = vrot.slane %v1843_v52, 1 }
0x107a   :  { %v1848_v22 = vsel %vm1847_vm6, %v1846_v9, %v7658_v55 }
0x107b   :  { %1849 = vrot.lane.b32.xlu0 %v1848_v22, %s6452_s3  ;;  %v1856_v12 = vsel %vm1847_vm6, %v1855_v16, %v1854_v29  ;;  %v7667_v25 = vsel %vm1172_vm5, %v2306_v10, %v1842_v2 }
0x107c   :  { %1857 = vrot.lane.b32.xlu1 %v1856_v12, %s6453_s14 }
0x10ed   :  { %v7670_v1 = vpop.permute.xlu0 %1849 }
0x10ee   :  { %v1858_v20 = vpop.permute.xlu1 %1857 }
0x10ef   :  { %v1860_v51 = vsel %vm732_vm1, %v7670_v1, %v1858_v20 }
0x10f0   :  { %v1862_v35 = vrot.slane %v1860_v51, 5 }
0x10f2   :  { %5160 = vmatmul.mubr.msk.f32.vlgmr.msra.gmra.mrb[12].mxu1 %vm516_vm2, %v1862_v35 }
0x10f3   :  { %5650 = vmatpush1.bf16.msra.mxu1 %v6653_v62  ;;  %2154 = vmatprep.mubr.f32.mxu1 %v6450_v3 }
0x10f4   :  { %5652 = vmatprep.subr.bf16.mxu1 %v6665_v4 }
0x10f7   :  { %5654 = vmatpush1.bf16.msra.mxu1 %v6683_v11 }
0x10f8   :  { %5656 = vmatprep.subr.bf16.mxu1 %v6695_v15 }
0x10fb   :  { %5658 = vmatpush1.bf16.msra.mxu1 %v6713_v23 }
0x10fc   :  { %5660 = vmatprep.subr.bf16.mxu1 %v6722_v26 }
0x10ff   :  { %5662 = vmatpush1.bf16.msra.mxu1 %v6737_v33 }
0x11c5   :  { %v1931_v14 = vpop.f32.mrb[12].mxu1 }
0x11c6   :  { %v1932_v17 = vadd.f32 %v1931_v14, %v7231_v47  ;;  %v1933_v56 = vpop.f32.mrb[13].mxu1 }
0x11c7   :  { %v1934_v62 = vadd.f32 %v1933_v56, %v7234_v48 }
0x11c8   :  { %v1938_v6 = vrot.slane %v1932_v17, 3  ;;  %v1937_v26 = vrot.slane %v1932_v17, 2  ;;  %v1994_v58 = vrot.slane %v1932_v17, 7  ;;  %v1998_v49 = vadd.f32 %v7258_v5, %v1932_v17 }
0x11c9   :  { %v2016_v54 = vadd.f32 %v7272_v53, %v1934_v62  ;;  %v2012_v4 = vrot.slane %v1934_v62, 7 }
0x11ca   :  { %1957 = vrot.lane.b32.xlu0 %v1938_v6, %s6451_s0  ;;  %v1942_v63 = vadd.f32 %v7258_v5, %v1938_v6  ;;  %v1997_v37 = vadd.f32 %v7254_v59, %v1994_v58  ;;  %v1941_v52 = vadd.f32 %v7254_v59, %v1937_v26  ;;  %v5164_v29 = vmul.f32 -1.442695, %v1998_v49 }
0x11cb   :  { %v5166_v11 = vmul.f32 -1.442695, %v2016_v54  ;;  %2029 = vrot.lane.b32.xlu1 %v2012_v4, %s6451_s0  ;;  %v2015_v15 = vadd.f32 %v7267_v39, %v2012_v4 }
0x11cc   :  { %v5162_v50 = vmul.f32 -1.442695, %v1942_v63  ;;  %v5163_v36 = vmul.f32 -1.442695, %v1997_v37  ;;  %v5161_v2 = vmul.f32 -1.442695, %v1941_v52 }
0x11cd   :  { %6114 = vpow2.f32 %v5166_v11  ;;  %v5165_v23 = vmul.f32 -1.442695, %v2015_v15 }
0x11ce   :  { %2031 = vrot.lane.b32.xlu0 %v1934_v62, %s6451_s0 }
0x11cf   :  { %1955 = vrot.lane.b32.xlu1 %v1937_v26, %s6451_s0  ;;  %6116 = vpow2.f32 %v5165_v23 }
0x11d7   :  { %v6115_v33 = vpop.eup %6114 }
0x11d8   :  { %v2024_v27 = vadd.f32 1.0, %v6115_v33 }
0x11d9   :  { %v6117_v19 = vpop.eup %6116 }
0x11da   :  { %6118 = vrcp.f32 %v2024_v27  ;;  %v2023_v40 = vadd.f32 1.0, %v6117_v19 }
0x11dc   :  { %6120 = vrcp.f32 %v2023_v40 }
0x11dd   :  { %6122 = vpow2.f32 %v5162_v50 }
0x11de   :  { %6124 = vpow2.f32 %v5163_v36 }
0x11df   :  { %6126 = vpow2.f32 %v5164_v29 }
0x11e0   :  { %6128 = vpow2.f32 %v5161_v2 }
0x11e4   :  { %v7691_v31 = vpop.eup %6118 }
0x11e5   :  { %v7694_v30 = vmul.f32 %v7691_v31, %v2062_v24 }
0x11e6   :  { %v7696_v0 = vpop.eup %6120 }
0x11e7   :  { %v7699_v60 = vmul.f32 %v7696_v0, %v2061_v61  ;;  %v6123_v16 = vpop.eup %6122 }
0x11e8   :  { %v6125_v10 = vpop.eup %6124  ;;  %v1950_v22 = vadd.f32 1.0, %v6123_v16 }
0x11e9   :  { %v6127_v12 = vpop.eup %6126  ;;  %v2005_v20 = vadd.f32 1.0, %v6125_v10  ;;  %v2049_v10 = vsub.f32 1.0, %v7696_v0 }
0x11ea   :  { %v6129_v51 = vpop.eup %6128  ;;  %v2006_v35 = vadd.f32 1.0, %v6127_v12  ;;  %6130 = vrcp.f32 %v1950_v22 }
0x11eb   :  { %v1949_v14 = vadd.f32 1.0, %v6129_v51  ;;  %6132 = vrcp.f32 %v2005_v20 }
0x11ec   :  { %6134 = vrcp.f32 %v2006_v35  ;;  %v2050_v35 = vsub.f32 1.0, %v7691_v31 }
0x11ed   :  { %6136 = vrcp.f32 %v1949_v14  ;;  %v1987_v14 = vrot.slane %v7658_v55, 7 }
0x11f4   :  { %v6131_v17 = vpop.eup %6130 }
0x11f5   :  { %v6133_v62 = vpop.eup %6132  ;;  %v1976_v2 = vsub.f32 1.0, %v6131_v17  ;;  %v1991_v20 = vmul.f32 %v6131_v17, %v1846_v9 }
0x11f6   :  { %v6135_v11 = vpop.eup %6134 }
0x11f7   :  { %v6137_v23 = vpop.eup %6136 }
0x123c   :  { %v1958_v56 = vpop.permute.xlu0 %1957 }
0x123d   :  { %v1962_v6 = vmul.f32 %v6131_v17, %v1958_v56  ;;  %v2030_v54 = vpop.permute.xlu1 %2029 }
0x123e   :  { %v2035_v4 = vmul.f32 %v6133_v62, %v2030_v54  ;;  %v1975_v54 = vsub.f32 1.0, %v6137_v23 }
0x123f   :  { %1967 = vrot.lane.b32.xlu0 %v1962_v6, %s6451_s0 }
0x1240   :  { %v2032_v15 = vpop.permute.xlu0 %2031  ;;  %2039 = vrot.lane.b32.xlu1 %v2035_v4, %s6451_s0 }
0x1241   :  { %v2036_v26 = vmul.f32 %v6135_v11, %v2032_v15  ;;  %v1956_v33 = vpop.permute.xlu1 %1955  ;;  %v1990_v15 = vmul.f32 %v6137_v23, %v1987_v14 }
0x1242   :  { %v1961_v27 = vmul.f32 %v6137_v23, %v1956_v33 }
0x1243   :  { %2041 = vrot.lane.b32.xlu0 %v2036_v26, %s6451_s0 }
0x1244   :  { %1965 = vrot.lane.b32.xlu1 %v1961_v27, %s6451_s0 }
0x12b1   :  { %v1968_v19 = vpop.permute.xlu0 %1967 }
0x12b2   :  { %v1972_v40 = vadd.f32 %v7258_v5, %v1968_v19  ;;  %v2040_v24 = vpop.permute.xlu1 %2039 }
0x12b3   :  { %v2045_v61 = vadd.f32 %v7267_v39, %v2040_v24 }
0x12b4   :  { %6138 = vtanh.f32 %v1972_v40 }
0x12b5   :  { %6140 = vtanh.f32 %v2045_v61  ;;  %v2042_v58 = vpop.permute.xlu0 %2041 }
0x12b6   :  { %v2046_v63 = vadd.f32 %v7272_v53, %v2042_v58  ;;  %v1966_v37 = vpop.permute.xlu1 %1965 }
0x12b7   :  { %v1971_v49 = vadd.f32 %v7254_v59, %v1966_v37 }
0x12b8   :  { %6142 = vtanh.f32 %v2046_v63 }
0x12b9   :  { %6144 = vtanh.f32 %v1971_v49 }
0x12be   :  { %v6139_v50 = vpop.eup %6138 }
0x12bf   :  { %v6141_v36 = vpop.eup %6140  ;;  %1981 = vrot.lane.b32.xlu0 %v6139_v50, %s6452_s3 }
0x12c0   :  { %2053 = vrot.lane.b32.xlu1 %v6141_v36, %s6452_s3 }
0x12c2   :  { %v6143_v52 = vpop.eup %6142 }
0x12c3   :  { %v6145_v29 = vpop.eup %6144  ;;  %2055 = vrot.lane.b32.xlu0 %v6143_v52, %s6452_s3 }
0x12c4   :  { %1979 = vrot.lane.b32.xlu1 %v6145_v29, %s6452_s3 }
0x1331   :  { %v1982_v16 = vpop.permute.xlu0 %1981 }
0x1332   :  { %v1986_v22 = vmul.f32 %v1982_v16, %v1976_v2  ;;  %v2054_v12 = vpop.permute.xlu1 %2053 }
0x1333   :  { %v2059_v51 = vmul.f32 %v2054_v12, %v2049_v10 }
0x1334   :  { %v7722_v56 = vadd.f32 %v1991_v20, %v1986_v22 }
0x1335   :  { %v2067_v62 = vadd.f32 %v7699_v60, %v2059_v51  ;;  %v2056_v6 = vpop.permute.xlu0 %2055 }
0x1336   :  { %v2060_v4 = vmul.f32 %v2056_v6, %v2050_v35  ;;  %v1980_v11 = vpop.permute.xlu1 %1979  ;;  %v2071_v18 = vrot.slane %v7722_v56, 7  ;;  %v2671_v56 = vld [vmem:[%s8980_s6 + $0x60] sm:$0xff] }
0x1337   :  { %v1985_v0 = vmul.f32 %v1980_v11, %v1975_v54  ;;  %v2079_v17 = vrot.slane %v2067_v62, 3  ;;  %v2284_v22 = vrot.slane %v2067_v62, 1 }
0x1338   :  { %v2068_v26 = vadd.f32 %v7694_v30, %v2060_v4 }
0x1339   :  { %v7727_v9 = vadd.f32 %v1990_v15, %v1985_v0 }
0x133a   :  { %v2080_v31 = vrot.slane %v2068_v26, 2  ;;  %v2300_v33 = vrot.slane %v2068_v26, 7  ;;  %v2285_v51 = vrot.slane %v2068_v26, 1 }
0x133b   :  { %v2073_v55 = vsel %vm2072_vm4, %v2071_v18, %v7727_v9 }
0x133c   :  { %2074 = vrot.lane.b32.xlu0 %v2073_v55, %s6452_s3  ;;  %v2081_v60 = vsel %vm2072_vm4, %v2080_v31, %v2079_v17  ;;  %v7736_v23 = vsel %vm945_vm3, %v2300_v33, %v2067_v62 }
0x133d   :  { %2082 = vrot.lane.b32.xlu1 %v2081_v60, %s6453_s14 }
0x13ae   :  { %v7739_v30 = vpop.permute.xlu0 %2074 }
0x13af   :  { %v2083_v27 = vpop.permute.xlu1 %2082 }
0x13b0   :  { %v2085_v19 = vsel %vm732_vm1, %v7739_v30, %v2083_v27 }
0x13b1   :  { %v2087_v40 = vrot.slane %v2085_v19, 6 }
0x13b3   :  { %5167 = vmatmul.mubr.msk.f32.vlgmr.msra.gmra.mrb[14].mxu1 %vm516_vm2, %v2087_v40 }
0x13b4   :  { %2774 = vmatprep.mubr.f32.mxu1 %v6450_v3 }
0x1486   :  { %v2156_v24 = vpop.f32.mrb[14].mxu1 }
0x1487   :  { %v2157_v61 = vadd.f32 %v2156_v24, %v7231_v47  ;;  %v2158_v58 = vpop.f32.mrb[15].mxu1 }
0x1488   :  { %v2159_v63 = vadd.f32 %v2158_v58, %v7234_v48 }
0x1489   :  { %v2162_v37 = vrot.slane %v2157_v61, 1  ;;  %v2163_v29 = vrot.slane %v2157_v61, 2  ;;  %v2220_v62 = vadd.f32 %v7254_v59, %v2157_v61 }
0x148a   :  { %v2235_v49 = vrot.slane %v2159_v63, 1  ;;  %v2238_v50 = vadd.f32 %v7267_v39, %v2159_v63 }
0x148b   :  { %2180 = vrot.lane.b32.xlu1 %v2162_v37, %s6451_s0  ;;  %v2166_v6 = vadd.f32 %v7254_v59, %v2162_v37  ;;  %v2221_v54 = vadd.f32 %v7258_v5, %v2162_v37  ;;  %v2167_v4 = vadd.f32 %v7258_v5, %v2163_v29  ;;  %v5170_v17 = vmul.f32 -1.442695, %v2220_v62 }
0x148c   :  { %v2239_v36 = vadd.f32 %v7272_v53, %v2235_v49  ;;  %v5172_v52 = vmul.f32 -1.442695, %v2238_v50  ;;  %2254 = vrot.lane.b32.xlu0 %v2235_v49, %s6451_s0 }
0x148d   :  { %v5168_v11 = vmul.f32 -1.442695, %v2166_v6  ;;  %v5171_v15 = vmul.f32 -1.442695, %v2221_v54  ;;  %v5169_v0 = vmul.f32 -1.442695, %v2167_v4 }
0x148e   :  { %6146 = vpow2.f32 %v5172_v52  ;;  %v5173_v2 = vmul.f32 -1.442695, %v2239_v36 }
0x148f   :  { %2182 = vrot.lane.b32.xlu1 %v2163_v29, %s6451_s0 }
0x1490   :  { %2252 = vrot.lane.b32.xlu0 %v2159_v63, %s6451_s0  ;;  %6148 = vpow2.f32 %v5173_v2 }
0x1498   :  { %v6147_v47 = vpop.eup %6146 }
0x1499   :  { %v2246_v48 = vadd.f32 1.0, %v6147_v47 }
0x149a   :  { %v6149_v16 = vpop.eup %6148 }
0x149b   :  { %6150 = vrcp.f32 %v2246_v48  ;;  %v2247_v10 = vadd.f32 1.0, %v6149_v16 }
0x149d   :  { %6152 = vrcp.f32 %v2247_v10 }
0x149e   :  { %6154 = vpow2.f32 %v5168_v11 }
0x149f   :  { %6156 = vpow2.f32 %v5171_v15 }
0x14a0   :  { %6158 = vpow2.f32 %v5169_v0 }
0x14a1   :  { %6160 = vpow2.f32 %v5170_v17 }
0x14a5   :  { %v7753_v12 = vpop.eup %6150 }
0x14a6   :  { %v7756_v20 = vmul.f32 %v7753_v12, %v2284_v22 }
0x14a7   :  { %v7758_v35 = vpop.eup %6152 }
0x14a8   :  { %v7761_v14 = vmul.f32 %v7758_v35, %v2285_v51  ;;  %v6155_v26 = vpop.eup %6154  ;;  %v2273_v17 = vsub.f32 1.0, %v7758_v35  ;;  %v2668_v35 = vld [vmem:[%s8980_s6 + $0x48] sm:$0xff] }
0x14a9   :  { %v6157_v31 = vpop.eup %6156  ;;  %v2174_v33 = vadd.f32 1.0, %v6155_v26 }
0x14aa   :  { %v6159_v55 = vpop.eup %6158  ;;  %v2229_v60 = vadd.f32 1.0, %v6157_v31  ;;  %v2663_v31 = vld [vmem:[%s8980_s6 + $0x20] sm:$0xff] }
0x14ab   :  { %v6161_v27 = vpop.eup %6160  ;;  %v2175_v19 = vadd.f32 1.0, %v6159_v55  ;;  %6162 = vrcp.f32 %v2174_v33 }
0x14ac   :  { %v2228_v40 = vadd.f32 1.0, %v6161_v27  ;;  %6164 = vrcp.f32 %v2229_v60 }
0x14ad   :  { %6166 = vrcp.f32 %v2175_v19 }
0x14ae   :  { %6168 = vrcp.f32 %v2228_v40 }
0x14b5   :  { %v7767_v24 = vpop.eup %6162 }
0x14b6   :  { %v6165_v58 = vpop.eup %6164 }
0x14b7   :  { %v7771_v50 = vpop.eup %6166 }
0x14b8   :  { %v6169_v52 = vpop.eup %6168 }
0x14fd   :  { %v2181_v61 = vpop.permute.xlu1 %2180 }
0x14fe   :  { %v2186_v63 = vmul.f32 %v7767_v24, %v2181_v61  ;;  %v2255_v37 = vpop.permute.xlu0 %2254  ;;  %v2201_v61 = vsub.f32 1.0, %v7771_v50 }
0x14ff   :  { %v2259_v49 = vmul.f32 %v6165_v58, %v2255_v37  ;;  %v2670_v58 = vld [vmem:[%s8980_s6 + $0x58] sm:$0xff]  ;;  %v2272_v37 = vsub.f32 1.0, %v7753_v12 }
0x1500   :  { %2190 = vrot.lane.b32.xlu1 %v2186_v63, %s6451_s0 }
0x1501   :  { %v2183_v36 = vpop.permute.xlu1 %2182  ;;  %2264 = vrot.lane.b32.xlu0 %v2259_v49, %s6451_s0  ;;  %v5671_v49 = vpack.c.bf16 %v2670_v58, %v2668_v35 }
0x1502   :  { %v2187_v29 = vmul.f32 %v7771_v50, %v2183_v36  ;;  %v2253_v2 = vpop.permute.xlu0 %2252  ;;  %v2667_v36 = vld [vmem:[%s8980_s6 + $0x40] sm:$0xff] }
0x1503   :  { %v2258_v47 = vmul.f32 %v6169_v52, %v2253_v2  ;;  %v2669_v52 = vld [vmem:[%s8980_s6 + $0x50] sm:$0xff] }
0x1504   :  { %2192 = vrot.lane.b32.xlu1 %v2187_v29, %s6451_s0  ;;  %v2216_v29 = vmul.f32 %v7771_v50, %v2071_v18 }
0x1505   :  { %2262 = vrot.lane.b32.xlu0 %v2258_v47, %s6451_s0 }
0x1572   :  { %v2191_v48 = vpop.permute.xlu1 %2190 }
0x1573   :  { %v2196_v16 = vadd.f32 %v7254_v59, %v2191_v48  ;;  %v2265_v10 = vpop.permute.xlu0 %2264 }
0x1574   :  { %v2269_v22 = vadd.f32 %v7272_v53, %v2265_v10  ;;  %v2674_v10 = vld [vmem:[%s8980_s6 + $0x78] sm:$0xff] }
0x1575   :  { %6170 = vtanh.f32 %v2196_v16  ;;  %v2672_v16 = vld [vmem:[%s8980_s6 + $0x68] sm:$0xff] }
0x1576   :  { %6172 = vtanh.f32 %v2269_v22  ;;  %v2193_v51 = vpop.permute.xlu1 %2192  ;;  %v5675_v22 = vpack.c.bf16 %v2674_v10, %v2672_v16 }
0x1577   :  { %v2197_v6 = vadd.f32 %v7258_v5, %v2193_v51  ;;  %v2263_v54 = vpop.permute.xlu0 %2262  ;;  %v2660_v5 = vld [vmem:[%s8980_s6 + $0x8] sm:$0xff]  ;;  %v2673_v51 = vld [vmem:[%s8980_s6 + $0x70] sm:$0xff] }
0x1578   :  { %v2268_v4 = vadd.f32 %v7267_v39, %v2263_v54  ;;  %v2662_v39 = vld [vmem:[%s8980_s6 + $0x18] sm:$0xff] }
0x1579   :  { %6174 = vtanh.f32 %v2197_v6  ;;  %v5663_v53 = vpack.c.bf16 %v2662_v39, %v2660_v5  ;;  %v2677_v6 = vld [vmem:[%s8981_s8 + $0x8] sm:$0xff]  ;;  %v2679_v54 = vld [vmem:[%s8981_s8 + $0x18] sm:$0xff] }
0x157a   :  { %6176 = vtanh.f32 %v2268_v4  ;;  %v2681_v39 = vld [vmem:[%s8981_s8 + $0x28] sm:$0xff] }
0x157b   :  { %5664 = vmatprep.subr.bf16.mxu1 %v5663_v53  ;;  %v2683_v53 = vld [vmem:[%s8981_s8 + $0x38] sm:$0xff] }
0x157f   :  { %v6171_v11 = vpop.eup %6170 }
0x1580   :  { %v6173_v62 = vpop.eup %6172  ;;  %2204 = vrot.lane.b32.xlu1 %v6171_v11, %s6452_s3  ;;  %v5677_v11 = vpack.c.bf16 %v2673_v51, %v2671_v56 }
0x1581   :  { %2278 = vrot.lane.b32.xlu0 %v6173_v62, %s6452_s3  ;;  %v7865_v62 = vpack.c.bf16 %v2679_v54, %v2677_v6 }
0x1583   :  { %v6175_v59 = vpop.eup %6174  ;;  %5728 = vmatprep.subr.bf16.mxu0 %v7865_v62 }
0x1584   :  { %v6177_v15 = vpop.eup %6176  ;;  %2206 = vrot.lane.b32.xlu1 %v6175_v59, %s6452_s3 }
0x1585   :  { %2276 = vrot.lane.b32.xlu0 %v6177_v15, %s6452_s3  ;;  %v2678_v15 = vld [vmem:[%s8981_s8 + $0x10] sm:$0xff] }
0x1588   :  { %2314 = vrot.lane.b32.xlu1 %v7597_v32, %s6453_s14  ;;  %v2200_v32 = vsub.f32 1.0, %v7767_v24 }
0x1589   :  { %2302 = vrot.lane.b32.xlu0 %v7736_v23, %s6453_s14  ;;  %v2666_v23 = vld [vmem:[%s8980_s6 + $0x38] sm:$0xff] }
0x158c   :  { %2326 = vrot.lane.b32.xlu1 %v7447_v41, %s6453_s14  ;;  %v2659_v41 = vld [vmem:[%s8980_s6] sm:$0xff] }
0x158d   :  { %2308 = vrot.lane.b32.xlu0 %v7667_v25, %s6453_s14  ;;  %v2664_v25 = vld [vmem:[%s8980_s6 + $0x28] sm:$0xff] }
0x158e   :  { %v5667_v26 = vpack.c.bf16 %v2666_v23, %v2664_v25  ;;  %v2687_v25 = vld [vmem:[%s8981_s8 + $0x58] sm:$0xff] }
0x1590   :  { %2346 = vrot.lane.b32.xlu1 %v7287_v34, %s6453_s14  ;;  %v2661_v34 = vld [vmem:[%s8980_s6 + $0x10] sm:$0xff] }
0x1591   :  { %2320 = vrot.lane.b32.xlu0 %v7525_v13, %s6453_s14  ;;  %v5665_v13 = vpack.c.bf16 %v2661_v34, %v2659_v41  ;;  %v7884_v41 = vpack.c.bf16 %v2683_v53, %v2681_v39  ;;  %v2345_v34 = vrot.slane %v7292_v38, 7  ;;  %v2685_v38 = vld [vmem:[%s8981_s8 + $0x48] sm:$0xff] }
0x1592   :  { %v7906_v23 = vpack.c.bf16 %v2687_v25, %v2685_v38 }
0x1593   :  { %5666 = vmatpush1.bf16.msra.mxu1 %v5665_v13  ;;  %v2680_v13 = vld [vmem:[%s8981_s8 + $0x20] sm:$0xff] }
0x1594   :  { %2332 = vrot.lane.b32.xlu1 %v7368_v7, %s6453_s14  ;;  %v2212_v7 = vrot.slane %v7727_v9, 7  ;;  %v2665_v9 = vld [vmem:[%s8980_s6 + $0x30] sm:$0xff]  ;;  %5668 = vmatprep.subr.bf16.mxu1 %v5667_v26 }
0x1595   :  { %v5669_v27 = vpack.c.bf16 %v2665_v9, %v2663_v31  ;;  %v2689_v31 = vld [vmem:[%s8981_s8 + $0x68] sm:$0xff]  ;;  %v2691_v9 = vld [vmem:[%s8981_s8 + $0x78] sm:$0xff] }
0x1596   :  { %v2215_v33 = vmul.f32 %v7767_v24, %v2212_v7  ;;  %v2682_v7 = vld [vmem:[%s8981_s8 + $0x30] sm:$0xff] }
0x1597   :  { %5670 = vmatpush1.bf16.msra.mxu1 %v5669_v27 }
0x1598   :  { %5672 = vmatprep.subr.bf16.mxu1 %v5671_v49 }
0x15f2   :  { %v2205_v0 = vpop.permute.xlu1 %2204 }
0x15f3   :  { %v2210_v55 = vmul.f32 %v2205_v0, %v2200_v32  ;;  %v2279_v60 = vpop.permute.xlu0 %2278  ;;  %v7898_v32 = vpack.c.bf16 %v2682_v7, %v2680_v13  ;;  %v2684_v0 = vld [vmem:[%s8981_s8 + $0x40] sm:$0xff] }
0x15f4   :  { %v2283_v19 = vmul.f32 %v2279_v60, %v2273_v17  ;;  %v2686_v17 = vld [vmem:[%s8981_s8 + $0x50] sm:$0xff] }
0x15f5   :  { %v2217_v40 = vadd.f32 %v2215_v33, %v2210_v55  ;;  %v7916_v26 = vpack.c.bf16 %v2686_v17, %v2684_v0  ;;  %v7924_v33 = vpack.c.bf16 %v2691_v9, %v2689_v31  ;;  %v2688_v55 = vld [vmem:[%s8981_s8 + $0x60] sm:$0xff]  ;;  %v2690_v60 = vld [vmem:[%s8981_s8 + $0x70] sm:$0xff] }
0x15f6   :  { %v2291_v63 = vadd.f32 %v7761_v14, %v2283_v19  ;;  %v2207_v24 = vpop.permute.xlu1 %2206  ;;  %v5673_v14 = vpack.c.bf16 %v2669_v52, %v2667_v36  ;;  %v7934_v27 = vpack.c.bf16 %v2690_v60, %v2688_v55 }
0x15f7   :  { %v2211_v2 = vmul.f32 %v2207_v24, %v2201_v61  ;;  %v2277_v47 = vpop.permute.xlu0 %2276  ;;  %2339 = vrot.lane.b32.xlu0 %v2217_v40, %s6452_s3  ;;  %v6454_v61 = vmov 1966171168  }
0x15f8   :  { %v2282_v48 = vmul.f32 %v2277_v47, %v2272_v37  ;;  %5674 = vmatpush1.bf16.msra.mxu1 %v5673_v14  ;;  %v2294_v18 = vrot.slane %v2291_v63, 7  ;;  %v2356_v35 = vunpack.c.l.s4 %v6454_v61 }
0x15f9   :  { %v2218_v12 = vadd.f32 %v2216_v29, %v2211_v2  ;;  %5676 = vmatprep.subr.bf16.mxu1 %v5675_v22 }
0x15fa   :  { %v2290_v50 = vadd.f32 %v7756_v20, %v2282_v48  ;;  %v2676_v20 = vld [vmem:[%s8981_s8] sm:$0xff]  ;;  %v2315_v19 = vpop.permute.xlu1 %2314  ;;  %v2357_v63 = vunpack.c.0.s8 %v2356_v35 }
0x15fb   :  { %v2338_v4 = vrot.slane %v2218_v12, 7  ;;  %v7876_v5 = vpack.c.bf16 %v2678_v15, %v2676_v20  ;;  %v2303_v58 = vpop.permute.xlu0 %2302  ;;  %v2317_v36 = vsel %vm732_vm1, %v7527_v21, %v2315_v19 }
0x15fc   :  { %v2295_v59 = vsel %vm719_vm0, %v2294_v18, %v2290_v50  ;;  %5678 = vmatpush1.bf16.msra.mxu1 %v5677_v11  ;;  %v7939_v49 = vsub.s32 %v2357_v63, %v7219_v43  ;;  %v2305_v2 = vsel %vm732_vm1, %v7376_v8, %v2303_v58  ;;  %v2429_v14 = vcombine.high %v2317_v36, %v2317_v36 }
0x15fd   :  { %2296 = vrot.lane.b32.xlu0 %v2295_v59, %s6453_s14  ;;  %2341 = vrot.lane.b32.xlu1 %v2338_v4, %s6452_s3 }
0x15fe   :  { %5680 = vmatprep.subr.bf16.mxu1 %v7865_v62  ;;  %5730 = vmatpush1.bf16.msra.mxu0 %v7876_v5  ;;  %v2327_v40 = vpop.permute.xlu1 %2326  ;;  %v2436_v29 = vrot.slane %v2317_v36, %v7939_v49  ;;  %v2386_v10 = vrot.slane %v2305_v2, %v7939_v49  ;;  %v2443_v50 = vrot.slane %v2429_v14, %v7939_v49 }
0x15ff   :  { %5732 = vmatprep.subr.bf16.mxu0 %v7884_v41  ;;  %v2309_v37 = vpop.permute.xlu0 %2308  ;;  %v2329_v16 = vsel %vm732_vm1, %v7670_v1, %v2327_v40 }
0x1600   :  { %v2311_v48 = vsel %vm732_vm1, %v7450_v28, %v2309_v37  ;;  %v2444_v56 = vcombine.high %v2436_v29, %v2436_v29  ;;  %v2485_v22 = vcombine.high %v2329_v16, %v2329_v16  ;;  %v2387_v28 = vcombine.high %v2386_v10, %v2386_v10 }
0x1601   :  { %2348 = vrot.lane.b32.xlu0 %v2345_v34, %s6453_s14  ;;  %v2410_v18 = vrot.slane %v2311_v48, %v7939_v49  ;;  %v2394_v6 = vrot.slane %v2386_v10, %v7939_v49 }
0x1602   :  { %5734 = vmatpush1.bf16.msra.mxu0 %v7898_v32  ;;  %v2347_v24 = vpop.permute.xlu1 %2346  ;;  %v2458_v54 = vrot.slane %v2444_v56, %v7939_v49  ;;  %v2492_v59 = vrot.slane %v2485_v22, %v7939_v49  ;;  %v2401_v53 = vrot.slane %v2387_v28, %v7939_v49 }
0x1603   :  { %5736 = vmatprep.subr.bf16.mxu0 %v7906_v23  ;;  %v2321_v47 = vpop.permute.xlu0 %2320  ;;  %v2411_v1 = vcombine.high %v2410_v18, %v2410_v18  ;;  %v2418_v15 = vrot.slane %v2410_v18, %v7939_v49  ;;  %v2402_v34 = vcombine.high %v2394_v6, %v2394_v6 }
0x1604   :  { %v2323_v21 = vsel %vm732_vm1, %v7600_v57, %v2321_v47  ;;  %v2451_v57 = vrot.slane %v2443_v50, %v7939_v49  ;;  %v2459_v7 = vcombine.high %v2458_v54, %v2458_v54  ;;  %v2493_v17 = vcombine.high %v2492_v59, %v2492_v59 }
0x1605   :  { %v2461_v51 = vcombine.high %v2323_v21, %v2323_v21  ;;  %v2425_v38 = vrot.slane %v2411_v1, %v7939_v49  ;;  %v2500_v31 = vrot.slane %v2492_v59, %v7939_v49  ;;  %v2426_v60 = vcombine.high %v2418_v15, %v2418_v15 }
0x1606   :  { %5738 = vmatpush1.bf16.msra.mxu0 %v7916_v26  ;;  %v2333_v52 = vpop.permute.xlu1 %2332  ;;  %v2595_v0 = vrot.slane %v2451_v57, %v7222_v44  ;;  %v2571_v35 = vrot.slane %v2401_v53, %v7222_v44  ;;  %v2575_v58 = vrot.slane %v2402_v34, %v7222_v44  ;;  %v2591_v37 = vrot.slane %v2459_v7, %v7222_v44 }
0x1607   :  { %5740 = vmatprep.subr.bf16.mxu0 %v7924_v33  ;;  %v2335_v12 = vsel %vm732_vm1, %v7739_v30, %v2333_v52  ;;  %v2468_v39 = vrot.slane %v2461_v51, %v7939_v49  ;;  %v2427_v36 = vcombine.high %v2425_v38, %v2425_v38  ;;  %v2507_v2 = vrot.slane %v2493_v17, %v7939_v49 }
0x1608   :  { %v2510_v8 = vcombine.high %v2335_v12, %v2335_v12  ;;  %v2508_v47 = vcombine.high %v2500_v31, %v2500_v31  ;;  %v2581_v16 = vrot.slane %v2426_v60, %v7222_v44 }
0x1609   :  { %v2469_v19 = vcombine.high %v2468_v39, %v2468_v39  ;;  %v2476_v52 = vrot.slane %v2468_v39, %v7939_v49  ;;  %v2585_v51 = vrot.slane %v2427_v36, %v7222_v44  ;;  %v2611_v54 = vrot.slane %v2507_v2, %v7222_v44 }
0x160a   :  { %5742 = vmatpush1.bf16.msra.mxu0 %v7934_v27  ;;  %v2517_v4 = vrot.slane %v2510_v8, %v7939_v49  ;;  %v2615_v1 = vrot.slane %v2508_v47, %v7222_v44 }
0x160b   :  { %5760 = vmatprep.subr.bf16.mxu0 %v7865_v62  ;;  %v2483_v10 = vrot.slane %v2469_v19, %v7939_v49  ;;  %v2601_v28 = vrot.slane %v2476_v52, %v7222_v44 }
0x160c   :  { %v2518_v25 = vcombine.high %v2517_v4, %v2517_v4  ;;  %v2525_v40 = vrot.slane %v2517_v4, %v7939_v49 }
0x160d   :  { %v2605_v57 = vrot.slane %v2483_v10, %v7222_v44 }
0x160e   :  { %v2532_v29 = vrot.slane %v2518_v25, %v7939_v49  ;;  %v2533_v21 = vcombine.high %v2525_v40, %v2525_v40 }
0x1610   :  { %v2534_v6 = vcombine.high %v2532_v29, %v2532_v29  ;;  %v2621_v59 = vrot.slane %v2533_v21, %v7222_v44 }
0x1612   :  { %v2625_v38 = vrot.slane %v2534_v6, %v7222_v44 }
0x1669   :  { %v2340_v30 = vpop.permute.xlu0 %2339 }
0x166a   :  { %v2352_v11 = vsel %vm732_vm1, %v2340_v30, %v2347_v24 }
0x166b   :  { %v2537_v20 = vcombine.high %v2352_v11, %v2352_v11 }
0x166d   :  { %v2544_v13 = vrot.slane %v2537_v20, %v7939_v49 }
0x166f   :  { %v2545_v9 = vcombine.high %v2544_v13, %v2544_v13  ;;  %v2297_v55 = vpop.permute.xlu0 %2296  ;;  %v2342_v48 = vpop.permute.xlu1 %2341 }
0x1670   :  { %v2299_v61 = vsel %vm732_vm1, %v7303_v45, %v2297_v55 }
0x1671   :  { %v2552_v63 = vrot.slane %v2545_v9, %v7939_v49  ;;  %v2361_v24 = vrot.slane %v2299_v61, %v7939_v49 }
0x1673   :  { %v2362_v45 = vcombine.high %v2361_v24, %v2361_v24  ;;  %v2369_v14 = vrot.slane %v2361_v24, %v7939_v49  ;;  %v2349_v12 = vpop.permute.xlu0 %2348  ;;  %v2553_v18 = vcombine.high %v2552_v63, %v2552_v63 }
0x1674   :  { %v2353_v56 = vsel %vm732_vm1, %v2342_v48, %v2349_v12 }
0x1675   :  { %v2376_v8 = vrot.slane %v2362_v45, %v7939_v49  ;;  %v2639_v50 = vsel %vm2638_vm9, %v2369_v14, %v2571_v35  ;;  %v2560_v22 = vrot.slane %v2353_v56, %v7939_v49  ;;  %v2631_v39 = vrot.slane %v2553_v18, %v7222_v44  ;;  %v2692_v35 = vld [vmem:[%s8982_s9] sm:$0x3] }
0x1676   :  { %v2642_v30 = vsel %vm2641_vm10, %v2639_v50, %v2581_v16  ;;  %v8044_v63 = vrot.slane %v2692_v35, %v7228_v46  ;;  %v2675_v45 = vld [vmem:[%s8983_s7] sm:$0x3] }
0x1677   :  { %v2640_v4 = vsel %vm2638_vm9, %v2376_v8, %v2575_v58  ;;  %v2645_v11 = vsel %vm2644_vm11, %v2642_v30, %v2591_v37  ;;  %v2567_v53 = vrot.slane %v2560_v22, %v7939_v49  ;;  %v8041_v58 = vrot.slane %v2692_v35, %v7222_v44 }
0x1678   :  { %v2643_v20 = vsel %vm2641_vm10, %v2640_v4, %v2585_v51  ;;  %v2648_v15 = vsel %vm2647_vm12, %v2645_v11, %v2601_v28  ;;  %v2697_v14 = vrot.slane %v2675_v45, %v7222_v44 }
0x1679   :  { %v2651_v34 = vsel %vm2650_vm13, %v2648_v15, %v2611_v54  ;;  %v2646_v13 = vsel %vm2644_vm11, %v2643_v20, %v2595_v0  ;;  %v2635_v55 = vrot.slane %v2567_v53, %v7222_v44 }
0x167a   :  { %v2654_v7 = vsel %vm2653_vm14, %v2651_v34, %v2621_v59  ;;  %v2649_v25 = vsel %vm2647_vm12, %v2646_v13, %v2605_v57 }
0x167b   :  { %v2657_v17 = vsel %vm2656_vm15, %v2654_v7, %v2631_v39  ;;  %v2652_v31 = vsel %vm2650_vm13, %v2649_v25, %v2615_v1 }
0x167c   :  { %5174 = vmatmul.mubr.msk.f32.vlgmr.msra.gmra.mrb[16].mxu1 %vm516_vm2, %v2657_v17  ;;  %v2655_v9 = vsel %vm2653_vm14, %v2652_v31, %v2625_v38 }
0x167d   :  { %5682 = vmatpush1.bf16.msra.mxu1 %v7876_v5  ;;  %2780 = vmatprep.mubr.f32.mxu1 %v6450_v3  ;;  %v2658_v0 = vsel %vm2656_vm15, %v2655_v9, %v2635_v55  ;;  %v2701_v9 = vrot.slane %v2675_v45, %v7228_v46 }
0x167e   :  { %5684 = vmatprep.subr.bf16.mxu1 %v7884_v41 }
0x1680   :  { %5175 = vmatmul.mubr.msk.f32.gmra.mrb[18].mxu1 %vm516_vm2, %v2658_v0 }
0x1681   :  { %5686 = vmatpush1.bf16.msra.mxu1 %v7898_v32  ;;  %2862 = vmatprep.mubr.f32.mxu1 %v6450_v3 }
0x1682   :  { %5688 = vmatprep.subr.bf16.mxu1 %v7906_v23 }
0x1685   :  { %5690 = vmatpush1.bf16.msra.mxu1 %v7916_v26 }
0x1686   :  { %5692 = vmatprep.subr.bf16.mxu1 %v7924_v33 }
0x1689   :  { %5694 = vmatpush1.bf16.msra.mxu1 %v7934_v27 }
0x168a   :  { %5696 = vmatprep.subr.bf16.mxu1 %v7865_v62 }
0x168c   :  { %2863 = vmatmul.mubr.f32.vlgmr.msra.gmra.mrb[20].mxu1 %v6450_v3 }
0x168d   :  { %5698 = vmatpush1.bf16.msra.mxu1 %v7876_v5  ;;  %3077 = vmatprep.mubr.f32.mxu1 %v6450_v3 }
0x168e   :  { %5700 = vmatprep.subr.bf16.mxu1 %v7884_v41 }
0x1691   :  { %5702 = vmatpush1.bf16.msra.mxu1 %v7898_v32 }
0x1692   :  { %5704 = vmatprep.subr.bf16.mxu1 %v7906_v23 }
0x1695   :  { %5706 = vmatpush1.bf16.msra.mxu1 %v7916_v26 }
0x1696   :  { %5708 = vmatprep.subr.bf16.mxu1 %v7924_v33 }
0x1699   :  { %5710 = vmatpush1.bf16.msra.mxu1 %v7934_v27 }
0x169a   :  { %5712 = vmatprep.subr.bf16.mxu1 %v7865_v62 }
0x174f   :  { %v2776_v60 = vpop.f32.mrb[16].mxu1 }
0x1750   :  { %v8033_v19 = vpop.f32.mrb[17].mxu1  ;;  %v8066_v12 = vadd.f32 %v2776_v60, %v2697_v14 }
0x1751   :  { %v8078_v55 = vadd.f32 %v8033_v19, %v2701_v9 }
0x1753   :  { %v2782_v40 = vpop.f32.mrb[18].mxu1 }
0x1754   :  { %v8035_v61 = vpop.f32.mrb[19].mxu1  ;;  %v8064_v48 = vadd.f32 %v2782_v40, %v2697_v14 }
0x175f   :  { %v2864_v24 = vpop.f32.mrb[20].mxu1 }
0x1760   :  { %v2865_v37 = vadd.f32 %v2864_v24, %v8041_v58  ;;  %v2866_v36 = vpop.f32.mrb[21].mxu1  ;;  %v8083_v24 = vadd.f32 %v8035_v61, %v2701_v9 }
0x1761   :  { %v8048_v52 = vadd.f32 %v2866_v36, %v8044_v63 }
0x1762   :  { %v2870_v29 = vrot.slane %v2865_v37, 1  ;;  %v2923_v16 = vrot.slane %v2865_v37, 2  ;;  %v2873_v8 = vadd.f32 %v2865_v37, %v8066_v12 }
0x1763   :  { %v2940_v2 = vrot.slane %v8048_v52, 1  ;;  %v2941_v47 = vrot.slane %v8048_v52, 2 }
0x1764   :  { %2889 = vrot.lane.b32.xlu1 %v2870_v29, %s6451_s0  ;;  %v2874_v10 = vadd.f32 %v2870_v29, %v8064_v48  ;;  %v2925_v21 = vadd.f32 %v2870_v29, %v8066_v12  ;;  %v2926_v56 = vadd.f32 %v2923_v16, %v8064_v48  ;;  %v5176_v51 = vmul.f32 -1.442695, %v2873_v8 }
0x1765   :  { %2958 = vrot.lane.b32.xlu0 %v2940_v2, %s6451_s0  ;;  %v2944_v61 = vadd.f32 %v2940_v2, %v8078_v55 }
0x1766   :  { %v5177_v18 = vmul.f32 -1.442695, %v2874_v10  ;;  %v5178_v50 = vmul.f32 -1.442695, %v2925_v21  ;;  %v5179_v22 = vmul.f32 -1.442695, %v2926_v56  ;;  %v2945_v10 = vadd.f32 %v2941_v47, %v8083_v24 }
0x1767   :  { %v5180_v21 = vmul.f32 -1.442695, %v2944_v61 }
0x1768   :  { %2960 = vrot.lane.b32.xlu1 %v2941_v47, %s6451_s0  ;;  %6178 = vpow2.f32 %v5177_v18  ;;  %v5181_v56 = vmul.f32 -1.442695, %v2945_v10 }
0x1769   :  { %2887 = vrot.lane.b32.xlu0 %v2865_v37, %s6451_s0  ;;  %6180 = vpow2.f32 %v5178_v50 }
0x176a   :  { %6182 = vpow2.f32 %v5179_v22 }
0x176b   :  { %6184 = vpow2.f32 %v5176_v51 }
0x1772   :  { %v6179_v28 = vpop.eup %6178 }
0x1773   :  { %v6181_v6 = vpop.eup %6180  ;;  %v2882_v30 = vadd.f32 1.0, %v6179_v28 }
0x1774   :  { %v6183_v54 = vpop.eup %6182  ;;  %v2933_v1 = vadd.f32 1.0, %v6181_v6 }
0x1775   :  { %v6185_v4 = vpop.eup %6184  ;;  %6186 = vrcp.f32 %v2882_v30  ;;  %v2934_v11 = vadd.f32 1.0, %v6183_v54 }
0x1776   :  { %v2881_v57 = vadd.f32 1.0, %v6185_v4  ;;  %6188 = vrcp.f32 %v2933_v1 }
0x1777   :  { %6190 = vrcp.f32 %v2934_v11 }
0x1778   :  { %6192 = vrcp.f32 %v2881_v57 }
0x177f   :  { %v6187_v59 = vpop.eup %6186 }
0x1780   :  { %v6189_v15 = vpop.eup %6188  ;;  %v2908_v28 = vsub.f32 1.0, %v6187_v59  ;;  %v2920_v4 = vmul.f32 0.0, %v6187_v59 }
0x1781   :  { %v6191_v13 = vpop.eup %6190 }
0x1782   :  { %v6193_v38 = vpop.eup %6192 }
0x17d6   :  { %v2890_v20 = vpop.permute.xlu1 %2889 }
0x17d7   :  { %v2894_v39 = vmul.f32 %v6187_v59, %v2890_v20  ;;  %v2959_v53 = vpop.permute.xlu0 %2958 }
0x17d8   :  { %v2964_v34 = vmul.f32 %v6189_v15, %v2959_v53  ;;  %v2907_v15 = vsub.f32 1.0, %v6193_v38 }
0x17d9   :  { %2899 = vrot.lane.b32.xlu1 %v2894_v39, %s6451_s0 }
0x17da   :  { %v2961_v7 = vpop.permute.xlu1 %2960  ;;  %2968 = vrot.lane.b32.xlu0 %v2964_v34, %s6451_s0 }
0x17db   :  { %v2965_v25 = vmul.f32 %v6191_v13, %v2961_v7  ;;  %v2888_v17 = vpop.permute.xlu0 %2887  ;;  %v2919_v7 = vmul.f32 0.0, %v6193_v38 }
0x17dc   :  { %v2893_v31 = vmul.f32 %v6193_v38, %v2888_v17 }
0x17dd   :  { %2970 = vrot.lane.b32.xlu1 %v2965_v25, %s6451_s0 }
0x17de   :  { %2897 = vrot.lane.b32.xlu0 %v2893_v31, %s6451_s0 }
0x184b   :  { %v2900_v0 = vpop.permute.xlu1 %2899 }
0x184c   :  { %v2904_v60 = vadd.f32 %v2900_v0, %v8064_v48  ;;  %v2969_v40 = vpop.permute.xlu0 %2968 }
0x184d   :  { %v2974_v35 = vadd.f32 %v2969_v40, %v8078_v55 }
0x184e   :  { %6194 = vtanh.f32 %v2904_v60 }
0x184f   :  { %6196 = vtanh.f32 %v2974_v35  ;;  %v2971_v37 = vpop.permute.xlu1 %2970 }
0x1850   :  { %v2975_v36 = vadd.f32 %v2971_v37, %v8083_v24  ;;  %v2898_v29 = vpop.permute.xlu0 %2897 }
0x1851   :  { %v2903_v46 = vadd.f32 %v2898_v29, %v8066_v12 }
0x1852   :  { %6198 = vtanh.f32 %v2975_v36 }
0x1853   :  { %6200 = vtanh.f32 %v2903_v46 }
0x1854   :  { %6202 = vpow2.f32 %v5180_v21 }
0x1855   :  { %6204 = vpow2.f32 %v5181_v56 }
0x1858   :  { %v6195_v19 = vpop.eup %6194 }
0x1859   :  { %v6197_v45 = vpop.eup %6196  ;;  %2913 = vrot.lane.b32.xlu1 %v6195_v19, %s6452_s3 }
0x185a   :  { %2982 = vrot.lane.b32.xlu0 %v6197_v45, %s6452_s3 }
0x185c   :  { %v6199_v14 = vpop.eup %6198 }
0x185d   :  { %v6201_v16 = vpop.eup %6200  ;;  %2984 = vrot.lane.b32.xlu1 %v6199_v14, %s6452_s3 }
0x185e   :  { %2911 = vrot.lane.b32.xlu0 %v6201_v16, %s6452_s3  ;;  %v6203_v18 = vpop.eup %6202 }
0x185f   :  { %v6205_v8 = vpop.eup %6204  ;;  %v2952_v50 = vadd.f32 1.0, %v6203_v18 }
0x1860   :  { %v2953_v22 = vadd.f32 1.0, %v6205_v8 }
0x1861   :  { %6206 = vrcp.f32 %v2952_v50 }
0x1862   :  { %6208 = vrcp.f32 %v2953_v22 }
0x186b   :  { %v6207_v51 = vpop.eup %6206 }
0x186c   :  { %v6209_v6 = vpop.eup %6208  ;;  %v2978_v54 = vsub.f32 1.0, %v6207_v51  ;;  %v2990_v47 = vmul.f32 0.0, %v6207_v51 }
0x186d   :  { %v2979_v11 = vsub.f32 1.0, %v6209_v6  ;;  %v2991_v53 = vmul.f32 0.0, %v6209_v6 }
0x18cb   :  { %v2914_v30 = vpop.permute.xlu1 %2913 }
0x18cc   :  { %v2918_v2 = vmul.f32 %v2914_v30, %v2908_v28  ;;  %v2983_v1 = vpop.permute.xlu0 %2982 }
0x18cd   :  { %v2988_v52 = vmul.f32 %v2983_v1, %v2978_v54 }
0x18ce   :  { %v8097_v57 = vadd.f32 %v2920_v4, %v2918_v2 }
0x18cf   :  { %v2985_v20 = vpop.permute.xlu1 %2984  ;;  %v8099_v39 = vadd.f32 %v2990_v47, %v2988_v52 }
0x18d0   :  { %v2989_v34 = vmul.f32 %v2985_v20, %v2979_v11  ;;  %v2912_v13 = vpop.permute.xlu0 %2911  ;;  %v2996_v31 = vrot.slane %v8097_v57, 7 }
0x18d1   :  { %v2917_v25 = vmul.f32 %v2912_v13, %v2907_v15  ;;  %v3003_v59 = vrot.slane %v8099_v39, 7 }
0x18d2   :  { %v8101_v17 = vadd.f32 %v2991_v53, %v2989_v34 }
0x18d3   :  { %v8104_v9 = vadd.f32 %v2919_v7, %v2917_v25 }
0x18d4   :  { %v3004_v0 = vrot.slane %v8101_v17, 6 }
0x18d5   :  { %v2997_v60 = vsel %vm719_vm0, %v2996_v31, %v8104_v9 }
0x18d6   :  { %2998 = vrot.lane.b32.xlu1 %v2997_v60, %s6452_s3  ;;  %v3005_v38 = vsel %vm719_vm0, %v3004_v0, %v3003_v59 }
0x18d7   :  { %3006 = vrot.lane.b32.xlu0 %v3005_v38, %s6453_s14 }
0x1948   :  { %v2999_v40 = vpop.permute.xlu1 %2998 }
0x1949   :  { %v3007_v35 = vpop.permute.xlu0 %3006 }
0x194a   :  { %v3009_v37 = vsel %vm732_vm1, %v2999_v40, %v3007_v35 }
0x194b   :  { %5182 = vmatmul.mubr.msk.f32.vlgmr.msra.gmra.mrb[22].mxu1 %vm516_vm2, %v3009_v37 }
0x194c   :  { %5714 = vmatpush1.bf16.msra.mxu1 %v7876_v5  ;;  %3302 = vmatprep.mubr.f32.mxu1 %v6450_v3 }
0x194d   :  { %5716 = vmatprep.subr.bf16.mxu1 %v7884_v41 }
0x1950   :  { %5718 = vmatpush1.bf16.msra.mxu1 %v7898_v32 }
0x1951   :  { %5720 = vmatprep.subr.bf16.mxu1 %v7906_v23 }
0x1954   :  { %5722 = vmatpush1.bf16.msra.mxu1 %v7916_v26 }
0x1955   :  { %5724 = vmatprep.subr.bf16.mxu1 %v7924_v33 }
0x1958   :  { %5726 = vmatpush1.bf16.msra.mxu1 %v7934_v27 }
0x1959   :  { %5744 = vmatprep.subr.bf16.mxu1 %v7865_v62 }
0x1a1e   :  { %v3079_v36 = vpop.f32.mrb[22].mxu1 }
0x1a1f   :  { %v3080_v29 = vadd.f32 %v3079_v36, %v8041_v58  ;;  %v3081_v46 = vpop.f32.mrb[23].mxu1 }
0x1a20   :  { %v8128_v19 = vadd.f32 %v3081_v46, %v8044_v63 }
0x1a21   :  { %3104 = vrot.lane.b32.xlu1 %v3080_v29, %s6451_s0  ;;  %v3085_v16 = vrot.slane %v3080_v29, 7  ;;  %v3141_v61 = vrot.slane %v3080_v29, 2  ;;  %v3089_v10 = vadd.f32 %v3080_v29, %v8064_v48  ;;  %v3142_v21 = vrot.slane %v3080_v29, 3 }
0x1a22   :  { %v3160_v45 = vrot.slane %v8128_v19, 2  ;;  %v3161_v14 = vrot.slane %v8128_v19, 3 }
0x1a23   :  { %v3145_v56 = vadd.f32 %v3141_v61, %v8066_v12  ;;  %v5184_v18 = vmul.f32 -1.442695, %v3089_v10  ;;  %v3146_v8 = vadd.f32 %v3142_v21, %v8064_v48  ;;  %v3088_v22 = vadd.f32 %v3085_v16, %v8066_v12 }
0x1a24   :  { %3178 = vrot.lane.b32.xlu0 %v3160_v45, %s6451_s0 }
0x1a25   :  { %3180 = vrot.lane.b32.xlu1 %v3161_v14, %s6451_s0  ;;  %v5185_v50 = vmul.f32 -1.442695, %v3145_v56  ;;  %6210 = vpow2.f32 %v5184_v18  ;;  %v5186_v51 = vmul.f32 -1.442695, %v3146_v8  ;;  %v5183_v28 = vmul.f32 -1.442695, %v3088_v22 }
0x1a26   :  { %v3164_v8 = vadd.f32 %v3160_v45, %v8078_v55 }
0x1a27   :  { %6212 = vpow2.f32 %v5185_v50  ;;  %v3165_v50 = vadd.f32 %v3161_v14, %v8083_v24 }
0x1a28   :  { %3102 = vrot.lane.b32.xlu0 %v3085_v16, %s6451_s0  ;;  %6214 = vpow2.f32 %v5186_v51  ;;  %v5187_v22 = vmul.f32 -1.442695, %v3164_v8 }
0x1a29   :  { %6216 = vpow2.f32 %v5183_v28  ;;  %v5188_v51 = vmul.f32 -1.442695, %v3165_v50 }
0x1a2f   :  { %v6211_v6 = vpop.eup %6210 }
0x1a30   :  { %v3097_v54 = vadd.f32 1.0, %v6211_v6 }
0x1a31   :  { %v6213_v30 = vpop.eup %6212 }
0x1a32   :  { %v6215_v2 = vpop.eup %6214  ;;  %v3153_v1 = vadd.f32 1.0, %v6213_v30  ;;  %6218 = vrcp.f32 %v3097_v54 }
0x1a33   :  { %v6217_v4 = vpop.eup %6216  ;;  %v3154_v52 = vadd.f32 1.0, %v6215_v2 }
0x1a34   :  { %v3096_v47 = vadd.f32 1.0, %v6217_v4  ;;  %6220 = vrcp.f32 %v3153_v1 }
0x1a35   :  { %6222 = vrcp.f32 %v3154_v52 }
0x1a36   :  { %6224 = vrcp.f32 %v3096_v47 }
0x1a3c   :  { %v6219_v11 = vpop.eup %6218 }
0x1a3d   :  { %v3123_v4 = vsub.f32 1.0, %v6219_v11 }
0x1a3e   :  { %v6221_v53 = vpop.eup %6220 }
0x1a3f   :  { %v6223_v13 = vpop.eup %6222 }
0x1a40   :  { %v6225_v0 = vpop.eup %6224 }
0x1a93   :  { %v3105_v20 = vpop.permute.xlu1 %3104 }
0x1a94   :  { %v3109_v15 = vmul.f32 %v6219_v11, %v3105_v20  ;;  %v3210_v20 = vrot.slane %v8099_v39, 1 }
0x1a96   :  { %v3179_v34 = vpop.permute.xlu0 %3178  ;;  %3114 = vrot.lane.b32.xlu1 %v3109_v15, %s6451_s0  ;;  %v3211_v15 = vrot.slane %v8101_v17, 1 }
0x1a97   :  { %v3184_v7 = vmul.f32 %v6221_v53, %v3179_v34  ;;  %v3181_v25 = vpop.permute.xlu1 %3180  ;;  %v3138_v53 = vmul.f32 %v6219_v11, %v2996_v31 }
0x1a98   :  { %v3185_v59 = vmul.f32 %v6223_v13, %v3181_v25 }
0x1a99   :  { %3188 = vrot.lane.b32.xlu0 %v3184_v7, %s6451_s0 }
0x1a9a   :  { %3190 = vrot.lane.b32.xlu1 %v3185_v59, %s6451_s0  ;;  %v3103_v60 = vpop.permute.xlu0 %3102 }
0x1a9b   :  { %v3108_v38 = vmul.f32 %v6225_v0, %v3103_v60 }
0x1a9d   :  { %3112 = vrot.lane.b32.xlu0 %v3108_v38, %s6451_s0 }
0x1b08   :  { %v3115_v40 = vpop.permute.xlu1 %3114 }
0x1b09   :  { %v3119_v35 = vadd.f32 %v3115_v40, %v8064_v48  ;;  %v3122_v40 = vsub.f32 1.0, %v6225_v0 }
0x1b0b   :  { %6226 = vtanh.f32 %v3119_v35  ;;  %v3189_v37 = vpop.permute.xlu0 %3188  ;;  %v3134_v35 = vrot.slane %v8104_v9, 7 }
0x1b0c   :  { %v3194_v36 = vadd.f32 %v3189_v37, %v8078_v55  ;;  %v3191_v29 = vpop.permute.xlu1 %3190 }
0x1b0d   :  { %v3195_v46 = vadd.f32 %v3191_v29, %v8083_v24  ;;  %v3137_v29 = vmul.f32 %v6225_v0, %v3134_v35 }
0x1b0e   :  { %6228 = vtanh.f32 %v3194_v36 }
0x1b0f   :  { %6230 = vtanh.f32 %v3195_v46  ;;  %v3113_v16 = vpop.permute.xlu0 %3112 }
0x1b10   :  { %v3118_v61 = vadd.f32 %v3113_v16, %v8066_v12 }
0x1b12   :  { %6232 = vtanh.f32 %v3118_v61 }
0x1b13   :  { %6234 = vpow2.f32 %v5187_v22 }
0x1b14   :  { %6236 = vpow2.f32 %v5188_v51 }
0x1b15   :  { %v6227_v10 = vpop.eup %6226 }
0x1b16   :  { %3128 = vrot.lane.b32.xlu1 %v6227_v10, %s6452_s3 }
0x1b18   :  { %v6229_v21 = vpop.eup %6228 }
0x1b19   :  { %v6231_v56 = vpop.eup %6230  ;;  %3202 = vrot.lane.b32.xlu0 %v6229_v21, %s6452_s3 }
0x1b1a   :  { %3204 = vrot.lane.b32.xlu1 %v6231_v56, %s6452_s3 }
0x1b1c   :  { %v6233_v18 = vpop.eup %6232 }
0x1b1d   :  { %3126 = vrot.lane.b32.xlu0 %v6233_v18, %s6452_s3  ;;  %v6235_v28 = vpop.eup %6234 }
0x1b1e   :  { %v6237_v6 = vpop.eup %6236  ;;  %v3172_v30 = vadd.f32 1.0, %v6235_v28 }
0x1b1f   :  { %v3173_v54 = vadd.f32 1.0, %v6237_v6 }
0x1b20   :  { %6238 = vrcp.f32 %v3172_v30 }
0x1b21   :  { %6240 = vrcp.f32 %v3173_v54 }
0x1b2a   :  { %v6239_v2 = vpop.eup %6238 }
0x1b2b   :  { %v6241_v1 = vpop.eup %6240  ;;  %v3198_v45 = vsub.f32 1.0, %v6239_v2  ;;  %v3214_v34 = vmul.f32 %v6239_v2, %v3210_v20 }
0x1b2c   :  { %v3199_v14 = vsub.f32 1.0, %v6241_v1  ;;  %v3215_v25 = vmul.f32 %v6241_v1, %v3211_v15 }
0x1b88   :  { %v3129_v52 = vpop.permute.xlu1 %3128 }
0x1b89   :  { %v3133_v47 = vmul.f32 %v3129_v52, %v3123_v4 }
0x1b8b   :  { %v3203_v19 = vpop.permute.xlu0 %3202  ;;  %v8166_v60 = vadd.f32 %v3138_v53, %v3133_v47 }
0x1b8c   :  { %v3208_v13 = vmul.f32 %v3203_v19, %v3198_v45  ;;  %v3205_v7 = vpop.permute.xlu1 %3204 }
0x1b8d   :  { %v3209_v59 = vmul.f32 %v3205_v7, %v3199_v14  ;;  %v3220_v11 = vrot.slane %v8166_v60, 7 }
0x1b8e   :  { %v8168_v38 = vadd.f32 %v3214_v34, %v3208_v13 }
0x1b8f   :  { %v8171_v37 = vadd.f32 %v3215_v25, %v3209_v59  ;;  %v3127_v36 = vpop.permute.xlu0 %3126 }
0x1b90   :  { %v3132_v46 = vmul.f32 %v3127_v36, %v3122_v40  ;;  %v3227_v16 = vrot.slane %v8168_v38, 5 }
0x1b91   :  { %v3228_v31 = vrot.slane %v8171_v37, 4 }
0x1b92   :  { %v8176_v61 = vadd.f32 %v3137_v29, %v3132_v46 }
0x1b93   :  { %v3229_v10 = vsel %vm945_vm3, %v3228_v31, %v3227_v16 }
0x1b94   :  { %3230 = vrot.lane.b32.xlu0 %v3229_v10, %s6453_s14  ;;  %v3221_v21 = vsel %vm945_vm3, %v3220_v11, %v8176_v61 }
0x1b95   :  { %3222 = vrot.lane.b32.xlu1 %v3221_v21, %s6452_s3 }
0x1c06   :  { %v3231_v0 = vpop.permute.xlu0 %3230 }
0x1c07   :  { %v3223_v56 = vpop.permute.xlu1 %3222 }
0x1c08   :  { %v3233_v18 = vsel %vm732_vm1, %v3223_v56, %v3231_v0 }
0x1c09   :  { %v3235_v8 = vrot.slane %v3233_v18, 1 }
0x1c0b   :  { %5189 = vmatmul.mubr.msk.f32.vlgmr.msra.gmra.mrb[24].mxu1 %vm516_vm2, %v3235_v8 }
0x1c0c   :  { %5746 = vmatpush1.bf16.msra.mxu1 %v7876_v5  ;;  %3751 = vmatprep.mubr.f32.mxu1 %v6450_v3 }
0x1c0d   :  { %5748 = vmatprep.subr.bf16.mxu1 %v7884_v41 }
0x1c10   :  { %5750 = vmatpush1.bf16.msra.mxu1 %v7898_v32 }
0x1c11   :  { %5752 = vmatprep.subr.bf16.mxu1 %v7906_v23 }
0x1c14   :  { %5754 = vmatpush1.bf16.msra.mxu1 %v7916_v26 }
0x1c15   :  { %5756 = vmatprep.subr.bf16.mxu1 %v7924_v33 }
0x1c18   :  { %5758 = vmatpush1.bf16.msra.mxu1 %v7934_v27 }
0x1c19   :  { %5776 = vmatprep.subr.bf16.mxu1 %v7865_v62 }
0x1cde   :  { %v3304_v50 = vpop.f32.mrb[24].mxu1 }
0x1cdf   :  { %v3305_v22 = vadd.f32 %v3304_v50, %v8041_v58  ;;  %v3306_v51 = vpop.f32.mrb[25].mxu1 }
0x1ce0   :  { %v8198_v28 = vadd.f32 %v3306_v51, %v8044_v63 }
0x1ce1   :  { %v3311_v6 = vrot.slane %v3305_v22, 7  ;;  %v3310_v2 = vrot.slane %v3305_v22, 6  ;;  %v3367_v1 = vrot.slane %v3305_v22, 3  ;;  %v3368_v4 = vrot.slane %v3305_v22, 4 }
0x1ce2   :  { %v3386_v30 = vrot.slane %v8198_v28, 3  ;;  %v3387_v54 = vrot.slane %v8198_v28, 4 }
0x1ce3   :  { %3330 = vrot.lane.b32.xlu1 %v3311_v6, %s6451_s0  ;;  %v3315_v52 = vadd.f32 %v3311_v6, %v8064_v48  ;;  %v3371_v47 = vadd.f32 %v3367_v1, %v8066_v12  ;;  %v3372_v45 = vadd.f32 %v3368_v4, %v8064_v48  ;;  %v3314_v14 = vadd.f32 %v3310_v2, %v8066_v12 }
0x1ce4   :  { %3404 = vrot.lane.b32.xlu0 %v3386_v30, %s6451_s0 }
0x1ce5   :  { %v5191_v20 = vmul.f32 -1.442695, %v3315_v52  ;;  %v5192_v19 = vmul.f32 -1.442695, %v3371_v47  ;;  %v5193_v15 = vmul.f32 -1.442695, %v3372_v45 }
0x1ce6   :  { %v5190_v53 = vmul.f32 -1.442695, %v3314_v14 }
0x1ce7   :  { %3406 = vrot.lane.b32.xlu1 %v3387_v54, %s6451_s0  ;;  %6242 = vpow2.f32 %v5191_v20 }
0x1ce8   :  { %3328 = vrot.lane.b32.xlu0 %v3310_v2, %s6451_s0  ;;  %6244 = vpow2.f32 %v5192_v19 }
0x1ce9   :  { %6246 = vpow2.f32 %v5193_v15 }
0x1cea   :  { %6248 = vpow2.f32 %v5190_v53  ;;  %v3390_v53 = vadd.f32 %v3386_v30, %v8078_v55 }
0x1cf1   :  { %v6243_v34 = vpop.eup %6242 }
0x1cf2   :  { %v6245_v13 = vpop.eup %6244  ;;  %v3323_v7 = vadd.f32 1.0, %v6243_v34  ;;  %v3391_v34 = vadd.f32 %v3387_v54, %v8083_v24 }
0x1cf3   :  { %v6247_v25 = vpop.eup %6246  ;;  %v3379_v59 = vadd.f32 1.0, %v6245_v13  ;;  %v5194_v13 = vmul.f32 -1.442695, %v3390_v53 }
0x1cf4   :  { %v6249_v40 = vpop.eup %6248  ;;  %6250 = vrcp.f32 %v3323_v7  ;;  %v3380_v35 = vadd.f32 1.0, %v6247_v25  ;;  %v5195_v7 = vmul.f32 -1.442695, %v3391_v34 }
0x1cf5   :  { %v3322_v36 = vadd.f32 1.0, %v6249_v40  ;;  %6252 = vrcp.f32 %v3379_v59 }
0x1cf6   :  { %6254 = vrcp.f32 %v3380_v35 }
0x1cf7   :  { %6256 = vrcp.f32 %v3322_v36 }
0x1cfe   :  { %v6251_v29 = vpop.eup %6250 }
0x1cff   :  { %v6253_v16 = vpop.eup %6252  ;;  %v3364_v54 = vmul.f32 %v6251_v29, %v3220_v11 }
0x1d00   :  { %v6255_v0 = vpop.eup %6254 }
0x1d01   :  { %v6257_v18 = vpop.eup %6256 }
0x1d55   :  { %v3331_v46 = vpop.permute.xlu1 %3330 }
0x1d56   :  { %v3335_v31 = vmul.f32 %v6251_v29, %v3331_v46  ;;  %v3405_v10 = vpop.permute.xlu0 %3404  ;;  %v3349_v46 = vsub.f32 1.0, %v6251_v29 }
0x1d57   :  { %v3410_v21 = vmul.f32 %v6253_v16, %v3405_v10 }
0x1d58   :  { %3340 = vrot.lane.b32.xlu1 %v3335_v31, %s6451_s0 }
0x1d59   :  { %v3407_v56 = vpop.permute.xlu1 %3406  ;;  %3414 = vrot.lane.b32.xlu0 %v3410_v21, %s6451_s0  ;;  %v3436_v21 = vrot.slane %v8168_v38, 1 }
0x1d5a   :  { %v3411_v8 = vmul.f32 %v6255_v0, %v3407_v56  ;;  %v3329_v50 = vpop.permute.xlu0 %3328 }
0x1d5b   :  { %v3334_v22 = vmul.f32 %v6257_v18, %v3329_v50  ;;  %v3437_v50 = vrot.slane %v8171_v37, 1 }
0x1d5c   :  { %3416 = vrot.lane.b32.xlu1 %v3411_v8, %s6451_s0 }
0x1d5d   :  { %3338 = vrot.lane.b32.xlu0 %v3334_v22, %s6451_s0 }
0x1dca   :  { %v3341_v51 = vpop.permute.xlu1 %3340 }
0x1dcb   :  { %v3345_v6 = vadd.f32 %v3341_v51, %v8064_v48  ;;  %v3415_v2 = vpop.permute.xlu0 %3414 }
0x1dcc   :  { %v3420_v1 = vadd.f32 %v3415_v2, %v8078_v55  ;;  %v3360_v2 = vrot.slane %v8176_v61, 7 }
0x1dcd   :  { %6258 = vtanh.f32 %v3345_v6  ;;  %v3348_v6 = vsub.f32 1.0, %v6257_v18 }
0x1dce   :  { %6260 = vtanh.f32 %v3420_v1  ;;  %v3417_v4 = vpop.permute.xlu1 %3416 }
0x1dcf   :  { %v3421_v52 = vadd.f32 %v3417_v4, %v8083_v24  ;;  %v3339_v47 = vpop.permute.xlu0 %3338 }
0x1dd0   :  { %v3344_v45 = vadd.f32 %v3339_v47, %v8066_v12 }
0x1dd1   :  { %6262 = vtanh.f32 %v3421_v52 }
0x1dd2   :  { %6264 = vtanh.f32 %v3344_v45  ;;  %v3363_v45 = vmul.f32 %v6257_v18, %v3360_v2 }
0x1dd3   :  { %6266 = vpow2.f32 %v5194_v13 }
0x1dd4   :  { %6268 = vpow2.f32 %v5195_v7 }
0x1dd7   :  { %v6259_v20 = vpop.eup %6258 }
0x1dd8   :  { %v6261_v19 = vpop.eup %6260  ;;  %3354 = vrot.lane.b32.xlu1 %v6259_v20, %s6452_s3 }
0x1dd9   :  { %3428 = vrot.lane.b32.xlu0 %v6261_v19, %s6452_s3 }
0x1ddb   :  { %v6263_v14 = vpop.eup %6262 }
0x1ddc   :  { %v6265_v15 = vpop.eup %6264  ;;  %3430 = vrot.lane.b32.xlu1 %v6263_v14, %s6452_s3 }
0x1ddd   :  { %3352 = vrot.lane.b32.xlu0 %v6265_v15, %s6452_s3  ;;  %v6267_v25 = vpop.eup %6266 }
0x1dde   :  { %v6269_v59 = vpop.eup %6268  ;;  %v3398_v40 = vadd.f32 1.0, %v6267_v25 }
0x1ddf   :  { %v3399_v35 = vadd.f32 1.0, %v6269_v59 }
0x1de0   :  { %6270 = vrcp.f32 %v3398_v40 }
0x1de1   :  { %6272 = vrcp.f32 %v3399_v35 }
0x1dea   :  { %v6271_v36 = vpop.eup %6270 }
0x1deb   :  { %v6273_v16 = vpop.eup %6272  ;;  %v3424_v10 = vsub.f32 1.0, %v6271_v36  ;;  %v3440_v56 = vmul.f32 %v6271_v36, %v3436_v21 }
0x1dec   :  { %v3425_v8 = vsub.f32 1.0, %v6273_v16  ;;  %v3441_v4 = vmul.f32 %v6273_v16, %v3437_v50 }
0x1e4a   :  { %v3355_v31 = vpop.permute.xlu1 %3354 }
0x1e4b   :  { %v3359_v30 = vmul.f32 %v3355_v31, %v3349_v46  ;;  %v3429_v28 = vpop.permute.xlu0 %3428 }
0x1e4c   :  { %v3434_v0 = vmul.f32 %v3429_v28, %v3424_v10 }
0x1e4d   :  { %v8236_v22 = vadd.f32 %v3364_v54, %v3359_v30 }
0x1e4e   :  { %v3431_v51 = vpop.permute.xlu1 %3430  ;;  %v8239_v1 = vadd.f32 %v3440_v56, %v3434_v0 }
0x1e4f   :  { %v3435_v52 = vmul.f32 %v3431_v51, %v3425_v8  ;;  %v3353_v47 = vpop.permute.xlu0 %3352  ;;  %v3446_v11 = vrot.slane %v8236_v22, 7 }
0x1e50   :  { %v3358_v20 = vmul.f32 %v3353_v47, %v3348_v6  ;;  %v3453_v15 = vrot.slane %v8239_v1, 3 }
0x1e51   :  { %v8241_v19 = vadd.f32 %v3441_v4, %v3435_v52 }
0x1e52   :  { %v8244_v29 = vadd.f32 %v3363_v45, %v3358_v20 }
0x1e53   :  { %v3454_v14 = vrot.slane %v8241_v19, 2 }
0x1e54   :  { %v3447_v53 = vsel %vm1172_vm5, %v3446_v11, %v8244_v29 }
0x1e55   :  { %3448 = vrot.lane.b32.xlu1 %v3447_v53, %s6452_s3  ;;  %v3455_v18 = vsel %vm1172_vm5, %v3454_v14, %v3453_v15 }
0x1e56   :  { %3456 = vrot.lane.b32.xlu0 %v3455_v18, %s6453_s14 }
0x1ec7   :  { %v3449_v34 = vpop.permute.xlu1 %3448 }
0x1ec8   :  { %v3457_v13 = vpop.permute.xlu0 %3456 }
0x1ec9   :  { %v3459_v7 = vsel %vm732_vm1, %v3449_v34, %v3457_v13 }
0x1eca   :  { %v3461_v25 = vrot.slane %v3459_v7, 2 }
0x1ecc   :  { %5196 = vmatmul.mubr.msk.f32.vlgmr.msra.gmra.mrb[4].mxu0 %vm516_vm2, %v3461_v25 }
0x1ecd   :  { %5762 = vmatpush1.bf16.msra.mxu0 %v7876_v5  ;;  %3974 = vmatprep.mubr.f32.mxu0 %v6450_v3 }
0x1ece   :  { %5764 = vmatprep.subr.bf16.mxu0 %v7884_v41 }
0x1ed1   :  { %5766 = vmatpush1.bf16.msra.mxu0 %v7898_v32 }
0x1ed2   :  { %5768 = vmatprep.subr.bf16.mxu0 %v7906_v23 }
0x1ed5   :  { %5770 = vmatpush1.bf16.msra.mxu0 %v7916_v26 }
0x1ed6   :  { %5772 = vmatprep.subr.bf16.mxu0 %v7924_v33 }
0x1ed9   :  { %5774 = vmatpush1.bf16.msra.mxu0 %v7934_v27 }
0x1eda   :  { %5792 = vmatprep.subr.bf16.mxu0 %v7865_v62 }
0x1f9f   :  { %v3530_v59 = vpop.f32.mrb[4].mxu0 }
0x1fa0   :  { %v3531_v40 = vadd.f32 %v3530_v59, %v8041_v58  ;;  %v3532_v35 = vpop.f32.mrb[5].mxu0 }
0x1fa1   :  { %v8268_v36 = vadd.f32 %v3532_v35, %v8044_v63 }
0x1fa2   :  { %v3537_v46 = vrot.slane %v3531_v40, 6  ;;  %v3536_v31 = vrot.slane %v3531_v40, 5  ;;  %v3593_v62 = vrot.slane %v3531_v40, 4 }
0x1fa3   :  { %v3610_v16 = vrot.slane %v8268_v36, 4  ;;  %v3611_v10 = vrot.slane %v8268_v36, 5 }
0x1fa4   :  { %3556 = vrot.lane.b32.xlu1 %v3537_v46, %s6451_s0  ;;  %v3541_v30 = vadd.f32 %v3537_v46, %v8064_v48  ;;  %v3595_v21 = vadd.f32 %v3593_v62, %v8066_v12  ;;  %v3540_v28 = vadd.f32 %v3536_v31, %v8066_v12  ;;  %v3596_v0 = vadd.f32 %v3536_v31, %v8064_v48 }
0x1fa5   :  { %3628 = vrot.lane.b32.xlu0 %v3610_v16, %s6451_s0 }
0x1fa6   :  { %v5198_v54 = vmul.f32 -1.442695, %v3541_v30  ;;  %v5199_v56 = vmul.f32 -1.442695, %v3595_v21  ;;  %v5197_v8 = vmul.f32 -1.442695, %v3540_v28 }
0x1fa7   :  { %v5200_v50 = vmul.f32 -1.442695, %v3596_v0 }
0x1fa8   :  { %3554 = vrot.lane.b32.xlu1 %v3536_v31, %s6451_s0  ;;  %6274 = vpow2.f32 %v5198_v54 }
0x1fa9   :  { %3630 = vrot.lane.b32.xlu0 %v3611_v10, %s6451_s0  ;;  %6276 = vpow2.f32 %v5199_v56 }
0x1faa   :  { %6278 = vpow2.f32 %v5197_v8 }
0x1fab   :  { %6280 = vpow2.f32 %v5200_v50 }
0x1fb2   :  { %v6275_v51 = vpop.eup %6274 }
0x1fb3   :  { %v6277_v6 = vpop.eup %6276  ;;  %v3549_v2 = vadd.f32 1.0, %v6275_v51 }
0x1fb4   :  { %v6279_v4 = vpop.eup %6278  ;;  %v3603_v52 = vadd.f32 1.0, %v6277_v6 }
0x1fb5   :  { %v6281_v47 = vpop.eup %6280  ;;  %v3548_v45 = vadd.f32 1.0, %v6279_v4  ;;  %6282 = vrcp.f32 %v3549_v2  ;;  %v3614_v2 = vadd.f32 %v3610_v16, %v8078_v55  ;;  %v3615_v4 = vadd.f32 %v3611_v10, %v8083_v24 }
0x1fb6   :  { %6284 = vrcp.f32 %v3603_v52  ;;  %v3604_v20 = vadd.f32 1.0, %v6281_v47  ;;  %v3660_v16 = vrot.slane %v8239_v1, 1 }
0x1fb7   :  { %6286 = vrcp.f32 %v3548_v45  ;;  %v5201_v52 = vmul.f32 -1.442695, %v3614_v2  ;;  %v5202_v47 = vmul.f32 -1.442695, %v3615_v4 }
0x1fb8   :  { %6288 = vrcp.f32 %v3604_v20 }
0x1fbf   :  { %v6283_v14 = vpop.eup %6282 }
0x1fc0   :  { %v6285_v53 = vpop.eup %6284  ;;  %v3590_v36 = vmul.f32 %v6283_v14, %v3446_v11 }
0x1fc1   :  { %v6287_v7 = vpop.eup %6286 }
0x1fc2   :  { %v6289_v59 = vpop.eup %6288 }
0x2016   :  { %v3557_v15 = vpop.permute.xlu1 %3556 }
0x2017   :  { %v3561_v18 = vmul.f32 %v6283_v14, %v3557_v15  ;;  %v3629_v34 = vpop.permute.xlu0 %3628 }
0x2018   :  { %v3634_v13 = vmul.f32 %v6285_v53, %v3629_v34  ;;  %v3575_v34 = vsub.f32 1.0, %v6283_v14 }
0x2019   :  { %3566 = vrot.lane.b32.xlu1 %v3561_v18, %s6451_s0 }
0x201a   :  { %3638 = vrot.lane.b32.xlu0 %v3634_v13, %s6451_s0  ;;  %v3555_v25 = vpop.permute.xlu1 %3554 }
0x201b   :  { %v3560_v40 = vmul.f32 %v6287_v7, %v3555_v25  ;;  %v3631_v35 = vpop.permute.xlu0 %3630 }
0x201c   :  { %v3635_v46 = vmul.f32 %v6289_v59, %v3631_v35 }
0x201d   :  { %3564 = vrot.lane.b32.xlu1 %v3560_v40, %s6451_s0 }
0x201e   :  { %3640 = vrot.lane.b32.xlu0 %v3635_v46, %s6451_s0 }
0x208b   :  { %v3567_v31 = vpop.permute.xlu1 %3566 }
0x208c   :  { %v3571_v62 = vadd.f32 %v3567_v31, %v8064_v48  ;;  %v3639_v30 = vpop.permute.xlu0 %3638 }
0x208d   :  { %v3644_v21 = vadd.f32 %v3639_v30, %v8078_v55  ;;  %v3586_v30 = vrot.slane %v8244_v29, 7 }
0x208e   :  { %6290 = vtanh.f32 %v3571_v62  ;;  %v3574_v62 = vsub.f32 1.0, %v6287_v7 }
0x208f   :  { %6292 = vtanh.f32 %v3644_v21  ;;  %v3565_v28 = vpop.permute.xlu1 %3564 }
0x2090   :  { %v3570_v54 = vadd.f32 %v3565_v28, %v8066_v12  ;;  %v3641_v0 = vpop.permute.xlu0 %3640 }
0x2091   :  { %v3645_v56 = vadd.f32 %v3641_v0, %v8083_v24  ;;  %v3661_v0 = vrot.slane %v8241_v19, 1 }
0x2092   :  { %6294 = vtanh.f32 %v3570_v54 }
0x2093   :  { %6296 = vtanh.f32 %v3645_v56  ;;  %v3589_v56 = vmul.f32 %v6287_v7, %v3586_v30 }
0x2094   :  { %6298 = vpow2.f32 %v5201_v52 }
0x2095   :  { %6300 = vpow2.f32 %v5202_v47 }
0x2098   :  { %v6291_v8 = vpop.eup %6290 }
0x2099   :  { %v6293_v50 = vpop.eup %6292  ;;  %3580 = vrot.lane.b32.xlu1 %v6291_v8, %s6452_s3 }
0x209a   :  { %3652 = vrot.lane.b32.xlu0 %v6293_v50, %s6452_s3 }
0x209c   :  { %v6295_v51 = vpop.eup %6294 }
0x209d   :  { %v6297_v6 = vpop.eup %6296  ;;  %3578 = vrot.lane.b32.xlu1 %v6295_v51, %s6452_s3 }
0x209e   :  { %3654 = vrot.lane.b32.xlu0 %v6297_v6, %s6452_s3  ;;  %v6299_v45 = vpop.eup %6298 }
0x209f   :  { %v3622_v20 = vadd.f32 1.0, %v6299_v45  ;;  %v6301_v15 = vpop.eup %6300 }
0x20a0   :  { %v3623_v53 = vadd.f32 1.0, %v6301_v15 }
0x20a1   :  { %6302 = vrcp.f32 %v3622_v20 }
0x20a2   :  { %6304 = vrcp.f32 %v3623_v53 }
0x20ab   :  { %v6303_v18 = vpop.eup %6302 }
0x20ac   :  { %v3648_v25 = vsub.f32 1.0, %v6303_v18  ;;  %v6305_v59 = vpop.eup %6304  ;;  %v3664_v35 = vmul.f32 %v6303_v18, %v3660_v16 }
0x20ad   :  { %v3649_v54 = vsub.f32 1.0, %v6305_v59  ;;  %v3665_v51 = vmul.f32 %v6305_v59, %v3661_v0 }
0x210b   :  { %v3581_v13 = vpop.permute.xlu1 %3580 }
0x210c   :  { %v3585_v10 = vmul.f32 %v3581_v13, %v3575_v34  ;;  %v3653_v40 = vpop.permute.xlu0 %3652 }
0x210d   :  { %v3658_v46 = vmul.f32 %v3653_v40, %v3648_v25 }
0x210e   :  { %v8305_v31 = vadd.f32 %v3590_v36, %v3585_v10 }
0x210f   :  { %v8308_v21 = vadd.f32 %v3664_v35, %v3658_v46  ;;  %v3579_v28 = vpop.permute.xlu1 %3578 }
0x2110   :  { %v3584_v8 = vmul.f32 %v3579_v28, %v3574_v62  ;;  %v3655_v50 = vpop.permute.xlu0 %3654  ;;  %v3670_v14 = vrot.slane %v8305_v31, 7 }
0x2111   :  { %v3659_v11 = vmul.f32 %v3655_v50, %v3649_v54  ;;  %v3677_v2 = vrot.slane %v8308_v21, 1 }
0x2112   :  { %v8312_v6 = vadd.f32 %v3589_v56, %v3584_v8 }
0x2113   :  { %v8315_v4 = vadd.f32 %v3665_v51, %v3659_v11 }
0x2114   :  { %v3671_v52 = vsel %vm1397_vm7, %v3670_v14, %v8312_v6 }
0x2115   :  { %3672 = vrot.lane.b32.xlu1 %v3671_v52, %s6452_s3  ;;  %v3678_v7 = vsel %vm1397_vm7, %v8315_v4, %v3677_v2 }
0x2116   :  { %3679 = vrot.lane.b32.xlu0 %v3678_v7, %s6453_s14 }
0x2187   :  { %v3673_v47 = vpop.permute.xlu1 %3672 }
0x2188   :  { %v3680_v45 = vpop.permute.xlu0 %3679 }
0x2189   :  { %v3682_v20 = vsel %vm732_vm1, %v3673_v47, %v3680_v45 }
0x218a   :  { %v3684_v15 = vrot.slane %v3682_v20, 3 }
0x218c   :  { %5203 = vmatmul.mubr.msk.f32.vlgmr.msra.gmra.mrb[26].mxu1 %vm516_vm2, %v3684_v15 }
0x218d   :  { %5778 = vmatpush1.bf16.msra.mxu1 %v7876_v5  ;;  %4200 = vmatprep.mubr.f32.mxu1 %v6450_v3 }
0x218e   :  { %5780 = vmatprep.subr.bf16.mxu1 %v7884_v41 }
0x2191   :  { %5782 = vmatpush1.bf16.msra.mxu1 %v7898_v32 }
0x2192   :  { %5784 = vmatprep.subr.bf16.mxu1 %v7906_v23 }
0x2195   :  { %5786 = vmatpush1.bf16.msra.mxu1 %v7916_v26 }
0x2196   :  { %5788 = vmatprep.subr.bf16.mxu1 %v7924_v33 }
0x2199   :  { %5790 = vmatpush1.bf16.msra.mxu1 %v7934_v27 }
0x225f   :  { %v3753_v53 = vpop.f32.mrb[26].mxu1 }
0x2260   :  { %v3754_v18 = vadd.f32 %v3753_v53, %v8041_v58  ;;  %v3755_v34 = vpop.f32.mrb[27].mxu1 }
0x2261   :  { %v8339_v13 = vadd.f32 %v3755_v34, %v8044_v63 }
0x2262   :  { %v3760_v25 = vrot.slane %v3754_v18, 5  ;;  %v3759_v36 = vrot.slane %v3754_v18, 4  ;;  %v3816_v40 = vrot.slane %v3754_v18, 6 }
0x2263   :  { %v3833_v16 = vrot.slane %v8339_v13, 5  ;;  %v3834_v59 = vrot.slane %v8339_v13, 6 }
0x2264   :  { %3779 = vrot.lane.b32.xlu1 %v3760_v25, %s6451_s0  ;;  %v3764_v10 = vadd.f32 %v3760_v25, %v8064_v48  ;;  %v3818_v35 = vadd.f32 %v3760_v25, %v8066_v12  ;;  %v3819_v62 = vadd.f32 %v3816_v40, %v8064_v48  ;;  %v3763_v30 = vadd.f32 %v3759_v36, %v8066_v12 }
0x2265   :  { %3851 = vrot.lane.b32.xlu0 %v3833_v16, %s6451_s0 }
0x2266   :  { %v5205_v46 = vmul.f32 -1.442695, %v3764_v10  ;;  %v5206_v28 = vmul.f32 -1.442695, %v3818_v35  ;;  %v5207_v54 = vmul.f32 -1.442695, %v3819_v62 }
0x2267   :  { %v5204_v0 = vmul.f32 -1.442695, %v3763_v30 }
0x2268   :  { %3853 = vrot.lane.b32.xlu1 %v3834_v59, %s6451_s0  ;;  %6306 = vpow2.f32 %v5205_v46 }
0x2269   :  { %3777 = vrot.lane.b32.xlu0 %v3759_v36, %s6451_s0  ;;  %6308 = vpow2.f32 %v5206_v28 }
0x226a   :  { %6310 = vpow2.f32 %v5207_v54 }
0x226b   :  { %6312 = vpow2.f32 %v5204_v0 }
0x2272   :  { %v6307_v56 = vpop.eup %6306 }
0x2273   :  { %v6309_v8 = vpop.eup %6308  ;;  %v3772_v50 = vadd.f32 1.0, %v6307_v56 }
0x2274   :  { %v6311_v51 = vpop.eup %6310  ;;  %v3826_v11 = vadd.f32 1.0, %v6309_v8 }
0x2275   :  { %v6313_v52 = vpop.eup %6312  ;;  %6314 = vrcp.f32 %v3772_v50  ;;  %v3827_v7 = vadd.f32 1.0, %v6311_v51 }
0x2276   :  { %v3771_v47 = vadd.f32 1.0, %v6313_v52  ;;  %6316 = vrcp.f32 %v3826_v11 }
0x2277   :  { %6318 = vrcp.f32 %v3827_v7 }
0x2278   :  { %6320 = vrcp.f32 %v3771_v47  ;;  %v3837_v47 = vadd.f32 %v3833_v16, %v8078_v55 }
0x227f   :  { %v6315_v45 = vpop.eup %6314 }
0x2280   :  { %v6317_v15 = vpop.eup %6316  ;;  %v3813_v13 = vmul.f32 %v6315_v45, %v3670_v14 }
0x2281   :  { %v6319_v25 = vpop.eup %6318 }
0x2282   :  { %v6321_v10 = vpop.eup %6320 }
0x22d6   :  { %v3780_v20 = vpop.permute.xlu1 %3779 }
0x22d7   :  { %v3784_v53 = vmul.f32 %v6315_v45, %v3780_v20  ;;  %v3852_v18 = vpop.permute.xlu0 %3851  ;;  %v3838_v20 = vadd.f32 %v3834_v59, %v8083_v24 }
0x22d8   :  { %v3857_v34 = vmul.f32 %v6317_v15, %v3852_v18  ;;  %v5208_v15 = vmul.f32 -1.442695, %v3837_v47 }
0x22d9   :  { %3789 = vrot.lane.b32.xlu1 %v3784_v53, %s6451_s0  ;;  %v5209_v53 = vmul.f32 -1.442695, %v3838_v20 }
0x22da   :  { %v3854_v36 = vpop.permute.xlu1 %3853  ;;  %3861 = vrot.lane.b32.xlu0 %v3857_v34, %s6451_s0 }
0x22db   :  { %v3858_v40 = vmul.f32 %v6319_v25, %v3854_v36  ;;  %v3778_v35 = vpop.permute.xlu0 %3777 }
0x22dc   :  { %v3783_v46 = vmul.f32 %v6321_v10, %v3778_v35  ;;  %v3798_v35 = vsub.f32 1.0, %v6315_v45 }
0x22dd   :  { %3863 = vrot.lane.b32.xlu1 %v3858_v40, %s6451_s0 }
0x22de   :  { %3787 = vrot.lane.b32.xlu0 %v3783_v46, %s6451_s0 }
0x234b   :  { %v3790_v62 = vpop.permute.xlu1 %3789 }
0x234c   :  { %v3794_v30 = vadd.f32 %v3790_v62, %v8064_v48  ;;  %v3862_v28 = vpop.permute.xlu0 %3861 }
0x234d   :  { %v3867_v54 = vadd.f32 %v3862_v28, %v8078_v55 }
0x234e   :  { %6322 = vtanh.f32 %v3794_v30 }
0x234f   :  { %6324 = vtanh.f32 %v3867_v54  ;;  %v3864_v0 = vpop.permute.xlu1 %3863 }
0x2350   :  { %v3868_v56 = vadd.f32 %v3864_v0, %v8083_v24  ;;  %v3788_v8 = vpop.permute.xlu0 %3787 }
0x2351   :  { %v3793_v50 = vadd.f32 %v3788_v8, %v8066_v12 }
0x2352   :  { %6326 = vtanh.f32 %v3868_v56  ;;  %v3883_v56 = vrot.slane %v8315_v4, 1 }
0x2353   :  { %6328 = vtanh.f32 %v3793_v50 }
0x2354   :  { %6330 = vpow2.f32 %v5208_v15 }
0x2355   :  { %6332 = vpow2.f32 %v5209_v53 }
0x2358   :  { %v6323_v51 = vpop.eup %6322 }
0x2359   :  { %v6325_v11 = vpop.eup %6324  ;;  %3803 = vrot.lane.b32.xlu1 %v6323_v51, %s6452_s3  ;;  %v3797_v51 = vsub.f32 1.0, %v6321_v10 }
0x235a   :  { %3875 = vrot.lane.b32.xlu0 %v6325_v11, %s6452_s3  ;;  %v3809_v11 = vrot.slane %v8312_v6, 7 }
0x235c   :  { %v6327_v52 = vpop.eup %6326  ;;  %v3812_v15 = vmul.f32 %v6321_v10, %v3809_v11 }
0x235d   :  { %v6329_v7 = vpop.eup %6328  ;;  %3877 = vrot.lane.b32.xlu1 %v6327_v52, %s6452_s3 }
0x235e   :  { %3801 = vrot.lane.b32.xlu0 %v6329_v7, %s6452_s3  ;;  %v6331_v18 = vpop.eup %6330 }
0x235f   :  { %v6333_v34 = vpop.eup %6332  ;;  %v3845_v25 = vadd.f32 1.0, %v6331_v18 }
0x2360   :  { %v3846_v36 = vadd.f32 1.0, %v6333_v34 }
0x2361   :  { %6334 = vrcp.f32 %v3845_v25 }
0x2362   :  { %6336 = vrcp.f32 %v3846_v36 }
0x236b   :  { %v6335_v40 = vpop.eup %6334 }
0x236c   :  { %v6337_v46 = vpop.eup %6336  ;;  %v3871_v30 = vsub.f32 1.0, %v6335_v40  ;;  %v3886_v54 = vmul.f32 %v6335_v40, %v3677_v2 }
0x236d   :  { %v3872_v0 = vsub.f32 1.0, %v6337_v46  ;;  %v3887_v7 = vmul.f32 %v6337_v46, %v3883_v56 }
0x23cb   :  { %v3804_v62 = vpop.permute.xlu1 %3803 }
0x23cc   :  { %v3808_v16 = vmul.f32 %v3804_v62, %v3798_v35  ;;  %v3876_v28 = vpop.permute.xlu0 %3875 }
0x23cd   :  { %v3881_v59 = vmul.f32 %v3876_v28, %v3871_v30 }
0x23ce   :  { %v8378_v8 = vadd.f32 %v3813_v13, %v3808_v16 }
0x23cf   :  { %v3878_v50 = vpop.permute.xlu1 %3877  ;;  %v8381_v52 = vadd.f32 %v3886_v54, %v3881_v59 }
0x23d0   :  { %v3882_v47 = vmul.f32 %v3878_v50, %v3872_v0  ;;  %v3802_v20 = vpop.permute.xlu0 %3801  ;;  %v3892_v2 = vrot.slane %v8378_v8, 7 }
0x23d1   :  { %v3807_v14 = vmul.f32 %v3802_v20, %v3797_v51  ;;  %v3899_v18 = vrot.slane %v8381_v52, 7 }
0x23d2   :  { %v8383_v45 = vadd.f32 %v3887_v7, %v3882_v47 }
0x23d3   :  { %v8386_v53 = vadd.f32 %v3812_v15, %v3807_v14 }
0x23d4   :  { %v3900_v34 = vrot.slane %v8383_v45, 6 }
0x23d5   :  { %v3893_v25 = vsel %vm1620_vm8, %v3892_v2, %v8386_v53 }
0x23d6   :  { %3894 = vrot.lane.b32.xlu1 %v3893_v25, %s6452_s3  ;;  %v3901_v10 = vsel %vm1620_vm8, %v3900_v34, %v3899_v18 }
0x23d7   :  { %3902 = vrot.lane.b32.xlu0 %v3901_v10, %s6453_s14 }
0x2448   :  { %v3895_v36 = vpop.permute.xlu1 %3894 }
0x2449   :  { %v3903_v40 = vpop.permute.xlu0 %3902 }
0x244a   :  { %v3905_v35 = vsel %vm732_vm1, %v3895_v36, %v3903_v40 }
0x244b   :  { %v3907_v46 = vrot.slane %v3905_v35, 4 }
0x244d   :  { %5210 = vmatmul.mubr.msk.f32.vlgmr.msra.gmra.mrb[6].mxu0 %vm516_vm2, %v3907_v46 }
0x244e   :  { %5794 = vmatpush1.bf16.msra.mxu0 %v7876_v5  ;;  %4424 = vmatprep.mubr.f32.mxu0 %v6450_v3 }
0x244f   :  { %5796 = vmatprep.subr.bf16.mxu0 %v7884_v41 }
0x2452   :  { %5798 = vmatpush1.bf16.msra.mxu0 %v7898_v32 }
0x2453   :  { %5800 = vmatprep.subr.bf16.mxu0 %v7906_v23 }
0x2456   :  { %5802 = vmatpush1.bf16.msra.mxu0 %v7916_v26 }
0x2457   :  { %5804 = vmatprep.subr.bf16.mxu0 %v7924_v33 }
0x245a   :  { %5806 = vmatpush1.bf16.msra.mxu0 %v7934_v27 }
0x2520   :  { %v3976_v62 = vpop.f32.mrb[6].mxu0 }
0x2521   :  { %v3977_v30 = vadd.f32 %v3976_v62, %v8041_v58  ;;  %v3978_v16 = vpop.f32.mrb[7].mxu0 }
0x2522   :  { %v8409_v5 = vadd.f32 %v3978_v16, %v8044_v63 }
0x2523   :  { %v3983_v3 = vrot.slane %v3977_v30, 4  ;;  %v3982_v23 = vrot.slane %v3977_v30, 3  ;;  %v4039_v26 = vrot.slane %v3977_v30, 6  ;;  %v4040_v33 = vrot.slane %v3977_v30, 7 }
0x2524   :  { %v4058_v41 = vrot.slane %v8409_v5, 6  ;;  %v4059_v32 = vrot.slane %v8409_v5, 7 }
0x2525   :  { %4002 = vrot.lane.b32.xlu1 %v3983_v3, %s6451_s0  ;;  %v3987_v27 = vadd.f32 %v3983_v3, %v8064_v48  ;;  %v4043_v28 = vadd.f32 %v4039_v26, %v8066_v12  ;;  %v4044_v13 = vadd.f32 %v4040_v33, %v8064_v48  ;;  %v3986_v0 = vadd.f32 %v3982_v23, %v8066_v12 }
0x2526   :  { %4076 = vrot.lane.b32.xlu0 %v4058_v41, %s6451_s0 }
0x2527   :  { %v5212_v59 = vmul.f32 -1.442695, %v3987_v27  ;;  %v5213_v54 = vmul.f32 -1.442695, %v4043_v28  ;;  %v5214_v56 = vmul.f32 -1.442695, %v4044_v13 }
0x2528   :  { %v5211_v50 = vmul.f32 -1.442695, %v3986_v0 }
0x2529   :  { %4078 = vrot.lane.b32.xlu1 %v4059_v32, %s6451_s0  ;;  %6338 = vpow2.f32 %v5212_v59 }
0x252a   :  { %4000 = vrot.lane.b32.xlu0 %v3982_v23, %s6451_s0  ;;  %6340 = vpow2.f32 %v5213_v54 }
0x252b   :  { %6342 = vpow2.f32 %v5214_v56 }
0x252c   :  { %6344 = vpow2.f32 %v5211_v50 }
0x2533   :  { %v6339_v51 = vpop.eup %6338 }
0x2534   :  { %v6341_v11 = vpop.eup %6340  ;;  %v3995_v7 = vadd.f32 1.0, %v6339_v51 }
0x2535   :  { %v6343_v47 = vpop.eup %6342  ;;  %v4051_v20 = vadd.f32 1.0, %v6341_v11 }
0x2536   :  { %v6345_v15 = vpop.eup %6344  ;;  %6346 = vrcp.f32 %v3995_v7  ;;  %v4052_v14 = vadd.f32 1.0, %v6343_v47  ;;  %v4062_v7 = vadd.f32 %v4058_v41, %v8078_v55  ;;  %v4063_v47 = vadd.f32 %v4059_v32, %v8083_v24 }
0x2537   :  { %v3994_v18 = vadd.f32 1.0, %v6345_v15  ;;  %6348 = vrcp.f32 %v4051_v20 }
0x2538   :  { %6350 = vrcp.f32 %v4052_v14  ;;  %v5215_v20 = vmul.f32 -1.442695, %v4062_v7  ;;  %v5216_v15 = vmul.f32 -1.442695, %v4063_v47 }
0x2539   :  { %6352 = vrcp.f32 %v3994_v18 }
0x2540   :  { %v6347_v34 = vpop.eup %6346 }
0x2541   :  { %v6349_v10 = vpop.eup %6348  ;;  %v4036_v32 = vmul.f32 %v6347_v34, %v3892_v2 }
0x2542   :  { %v6351_v46 = vpop.eup %6350 }
0x2543   :  { %v6353_v30 = vpop.eup %6352 }
0x2597   :  { %v4003_v25 = vpop.permute.xlu1 %4002 }
0x2598   :  { %v4007_v36 = vmul.f32 %v6347_v34, %v4003_v25  ;;  %v4077_v40 = vpop.permute.xlu0 %4076 }
0x2599   :  { %v4082_v35 = vmul.f32 %v6349_v10, %v4077_v40  ;;  %v4021_v40 = vsub.f32 1.0, %v6347_v34 }
0x259a   :  { %4012 = vrot.lane.b32.xlu1 %v4007_v36, %s6451_s0 }
0x259b   :  { %v4079_v62 = vpop.permute.xlu1 %4078  ;;  %4086 = vrot.lane.b32.xlu0 %v4082_v35, %s6451_s0 }
0x259c   :  { %v4083_v16 = vmul.f32 %v6351_v46, %v4079_v62  ;;  %v4001_v3 = vpop.permute.xlu0 %4000 }
0x259d   :  { %v4006_v23 = vmul.f32 %v6353_v30, %v4001_v3 }
0x259e   :  { %4088 = vrot.lane.b32.xlu1 %v4083_v16, %s6451_s0  ;;  %v4108_v16 = vrot.slane %v8381_v52, 1 }
0x259f   :  { %4010 = vrot.lane.b32.xlu0 %v4006_v23, %s6451_s0 }
0x260c   :  { %v4013_v26 = vpop.permute.xlu1 %4012 }
0x260d   :  { %v4017_v33 = vadd.f32 %v4013_v26, %v8064_v48  ;;  %v4087_v27 = vpop.permute.xlu0 %4086 }
0x260e   :  { %v4092_v28 = vadd.f32 %v4087_v27, %v8078_v55 }
0x260f   :  { %6354 = vtanh.f32 %v4017_v33  ;;  %v4109_v33 = vrot.slane %v8383_v45, 1 }
0x2610   :  { %6356 = vtanh.f32 %v4092_v28  ;;  %v4089_v13 = vpop.permute.xlu1 %4088 }
0x2611   :  { %v4093_v59 = vadd.f32 %v4089_v13, %v8083_v24  ;;  %v4011_v54 = vpop.permute.xlu0 %4010  ;;  %v4020_v13 = vsub.f32 1.0, %v6353_v30 }
0x2612   :  { %v4016_v0 = vadd.f32 %v4011_v54, %v8066_v12 }
0x2613   :  { %6358 = vtanh.f32 %v4093_v59  ;;  %v4032_v59 = vrot.slane %v8386_v53, 7 }
0x2614   :  { %6360 = vtanh.f32 %v4016_v0 }
0x2615   :  { %6362 = vpow2.f32 %v5215_v20 }
0x2616   :  { %6364 = vpow2.f32 %v5216_v15 }
0x2619   :  { %v6355_v56 = vpop.eup %6354 }
0x261a   :  { %v6357_v50 = vpop.eup %6356  ;;  %4026 = vrot.lane.b32.xlu1 %v6355_v56, %s6452_s3 }
0x261b   :  { %4100 = vrot.lane.b32.xlu0 %v6357_v50, %s6452_s3 }
0x261d   :  { %v6359_v51 = vpop.eup %6358 }
0x261e   :  { %v6361_v11 = vpop.eup %6360  ;;  %4102 = vrot.lane.b32.xlu1 %v6359_v51, %s6452_s3  ;;  %v4035_v51 = vmul.f32 %v6353_v30, %v4032_v59 }
0x261f   :  { %4024 = vrot.lane.b32.xlu0 %v6361_v11, %s6452_s3  ;;  %v6363_v14 = vpop.eup %6362 }
0x2620   :  { %v6365_v18 = vpop.eup %6364  ;;  %v4070_v25 = vadd.f32 1.0, %v6363_v14 }
0x2621   :  { %v4071_v10 = vadd.f32 1.0, %v6365_v18 }
0x2622   :  { %6366 = vrcp.f32 %v4070_v25 }
0x2623   :  { %6368 = vrcp.f32 %v4071_v10 }
0x262c   :  { %v6367_v36 = vpop.eup %6366 }
0x262d   :  { %v6369_v35 = vpop.eup %6368  ;;  %v4096_v62 = vsub.f32 1.0, %v6367_v36  ;;  %v4112_v23 = vmul.f32 %v6367_v36, %v4108_v16 }
0x262e   :  { %v4097_v26 = vsub.f32 1.0, %v6369_v35  ;;  %v4113_v0 = vmul.f32 %v6369_v35, %v4109_v33 }
0x268c   :  { %v4027_v46 = vpop.permute.xlu1 %4026 }
0x268d   :  { %v4031_v41 = vmul.f32 %v4027_v46, %v4021_v40  ;;  %v4101_v5 = vpop.permute.xlu0 %4100 }
0x268e   :  { %v4106_v3 = vmul.f32 %v4101_v5, %v4096_v62 }
0x268f   :  { %v8447_v27 = vadd.f32 %v4036_v32, %v4031_v41 }
0x2690   :  { %v4103_v28 = vpop.permute.xlu1 %4102  ;;  %v8450_v54 = vadd.f32 %v4112_v23, %v4106_v3 }
0x2691   :  { %v4107_v56 = vmul.f32 %v4103_v28, %v4097_v26  ;;  %v4025_v50 = vpop.permute.xlu0 %4024  ;;  %v4118_v2 = vrot.slane %v8447_v27, 7 }
0x2692   :  { %v4030_v11 = vmul.f32 %v4025_v50, %v4020_v13  ;;  %v4125_v47 = vrot.slane %v8450_v54, 5 }
0x2693   :  { %v8452_v7 = vadd.f32 %v4113_v0, %v4107_v56 }
0x2694   :  { %v8455_v34 = vadd.f32 %v4035_v51, %v4030_v11 }
0x2695   :  { %v4126_v20 = vrot.slane %v8452_v7, 4 }
0x2696   :  { %v4119_v15 = vsel %vm1847_vm6, %v4118_v2, %v8455_v34 }
0x2697   :  { %4120 = vrot.lane.b32.xlu1 %v4119_v15, %s6452_s3  ;;  %v4127_v30 = vsel %vm1847_vm6, %v4126_v20, %v4125_v47 }
0x2698   :  { %4128 = vrot.lane.b32.xlu0 %v4127_v30, %s6453_s14 }
0x2709   :  { %v4121_v14 = vpop.permute.xlu1 %4120 }
0x270a   :  { %v4129_v18 = vpop.permute.xlu0 %4128 }
0x270b   :  { %v4131_v25 = vsel %vm732_vm1, %v4121_v14, %v4129_v18 }
0x270c   :  { %v4133_v10 = vrot.slane %v4131_v25, 5 }
0x270e   :  { %5217 = vmatmul.mubr.msk.f32.vlgmr.msra.gmra.mrb[28].mxu1 %vm516_vm2, %v4133_v10 }
0x27e1   :  { %v4202_v36 = vpop.f32.mrb[28].mxu1 }
0x27e2   :  { %v4203_v40 = vadd.f32 %v4202_v36, %v8041_v58  ;;  %v4204_v35 = vpop.f32.mrb[29].mxu1 }
0x27e3   :  { %v8470_v46 = vadd.f32 %v4204_v35, %v8044_v63 }
0x27e4   :  { %v4209_v62 = vrot.slane %v4203_v40, 3  ;;  %v4208_v16 = vrot.slane %v4203_v40, 2  ;;  %v4265_v5 = vrot.slane %v4203_v40, 7  ;;  %v4269_v23 = vadd.f32 %v4203_v40, %v8064_v48 }
0x27e5   :  { %v4283_v41 = vrot.slane %v8470_v46, 7 }
0x27e6   :  { %4228 = vrot.lane.b32.xlu1 %v4209_v62, %s6451_s0  ;;  %v4213_v32 = vadd.f32 %v4209_v62, %v8064_v48  ;;  %v4268_v3 = vadd.f32 %v4265_v5, %v8066_v12  ;;  %v4212_v28 = vadd.f32 %v4208_v16, %v8066_v12  ;;  %v5221_v13 = vmul.f32 -1.442695, %v4269_v23 }
0x27e7   :  { %4300 = vrot.lane.b32.xlu0 %v4283_v41, %s6451_s0 }
0x27e8   :  { %v5219_v26 = vmul.f32 -1.442695, %v4213_v32  ;;  %v5220_v33 = vmul.f32 -1.442695, %v4268_v3  ;;  %v5218_v59 = vmul.f32 -1.442695, %v4212_v28 }
0x27ea   :  { %4302 = vrot.lane.b32.xlu1 %v8470_v46, %s6451_s0  ;;  %6370 = vpow2.f32 %v5219_v26 }
0x27eb   :  { %4226 = vrot.lane.b32.xlu0 %v4208_v16, %s6451_s0  ;;  %6372 = vpow2.f32 %v5220_v33 }
0x27ec   :  { %6374 = vpow2.f32 %v5221_v13 }
0x27ed   :  { %6376 = vpow2.f32 %v5218_v59 }
0x27f4   :  { %v6371_v0 = vpop.eup %6370 }
0x27f5   :  { %v6373_v56 = vpop.eup %6372  ;;  %v4221_v50 = vadd.f32 1.0, %v6371_v0 }
0x27f6   :  { %v6375_v51 = vpop.eup %6374  ;;  %v4276_v11 = vadd.f32 1.0, %v6373_v56 }
0x27f7   :  { %v6377_v47 = vpop.eup %6376  ;;  %6378 = vrcp.f32 %v4221_v50  ;;  %v4277_v20 = vadd.f32 1.0, %v6375_v51 }
0x27f8   :  { %v4220_v15 = vadd.f32 1.0, %v6377_v47  ;;  %6380 = vrcp.f32 %v4276_v11  ;;  %v4286_v47 = vadd.f32 %v4283_v41, %v8078_v55  ;;  %v4332_v41 = vrot.slane %v8450_v54, 1 }
0x27f9   :  { %6382 = vrcp.f32 %v4277_v20  ;;  %v4287_v20 = vadd.f32 %v8470_v46, %v8083_v24 }
0x27fa   :  { %6384 = vrcp.f32 %v4220_v15  ;;  %v5222_v15 = vmul.f32 -1.442695, %v4286_v47 }
0x2801   :  { %v6379_v30 = vpop.eup %6378 }
0x2802   :  { %v6381_v18 = vpop.eup %6380  ;;  %v4262_v46 = vmul.f32 %v6379_v30, %v4118_v2 }
0x2803   :  { %v6383_v40 = vpop.eup %6382 }
0x2804   :  { %v6385_v62 = vpop.eup %6384 }
0x2858   :  { %v4229_v14 = vpop.permute.xlu1 %4228 }
0x2859   :  { %v4233_v25 = vmul.f32 %v6379_v30, %v4229_v14  ;;  %v4301_v10 = vpop.permute.xlu0 %4300  ;;  %v5223_v14 = vmul.f32 -1.442695, %v4287_v20 }
0x285a   :  { %v4306_v36 = vmul.f32 %v6381_v18, %v4301_v10 }
0x285b   :  { %4238 = vrot.lane.b32.xlu1 %v4233_v25, %s6451_s0 }
0x285c   :  { %v4303_v35 = vpop.permute.xlu1 %4302  ;;  %4310 = vrot.lane.b32.xlu0 %v4306_v36, %s6451_s0 }
0x285d   :  { %v4307_v16 = vmul.f32 %v6383_v40, %v4303_v35  ;;  %v4227_v5 = vpop.permute.xlu0 %4226  ;;  %v4247_v35 = vsub.f32 1.0, %v6379_v30 }
0x285e   :  { %v4232_v32 = vmul.f32 %v6385_v62, %v4227_v5 }
0x285f   :  { %4312 = vrot.lane.b32.xlu1 %v4307_v16, %s6451_s0 }
0x2860   :  { %4236 = vrot.lane.b32.xlu0 %v4232_v32, %s6451_s0 }
0x28cd   :  { %v4239_v3 = vpop.permute.xlu1 %4238 }
0x28ce   :  { %v4243_v23 = vadd.f32 %v4239_v3, %v8064_v48  ;;  %v4311_v26 = vpop.permute.xlu0 %4310 }
0x28cf   :  { %v4316_v33 = vadd.f32 %v4311_v26, %v8078_v55 }
0x28d0   :  { %6386 = vtanh.f32 %v4243_v23 }
0x28d1   :  { %6388 = vtanh.f32 %v4316_v33  ;;  %v4313_v28 = vpop.permute.xlu1 %4312 }
0x28d2   :  { %v4317_v13 = vadd.f32 %v4313_v28, %v8083_v24  ;;  %v4237_v59 = vpop.permute.xlu0 %4236 }
0x28d3   :  { %v4242_v0 = vadd.f32 %v4237_v59, %v8066_v12 }
0x28d4   :  { %6390 = vtanh.f32 %v4317_v13  ;;  %v4333_v13 = vrot.slane %v8452_v7, 1 }
0x28d5   :  { %6392 = vtanh.f32 %v4242_v0 }
0x28d6   :  { %6394 = vpow2.f32 %v5222_v15 }
0x28d7   :  { %6396 = vpow2.f32 %v5223_v14 }
0x28da   :  { %v6387_v56 = vpop.eup %6386 }
0x28db   :  { %v6389_v50 = vpop.eup %6388  ;;  %4252 = vrot.lane.b32.xlu1 %v6387_v56, %s6452_s3  ;;  %v4246_v56 = vsub.f32 1.0, %v6385_v62 }
0x28dc   :  { %4324 = vrot.lane.b32.xlu0 %v6389_v50, %s6452_s3  ;;  %v4258_v50 = vrot.slane %v8455_v34, 7 }
0x28de   :  { %v6391_v51 = vpop.eup %6390  ;;  %v4261_v15 = vmul.f32 %v6385_v62, %v4258_v50  ;;  %v4644_v50 = vld [vmem:[%s8984_s10 + $0x10] sm:$0xff] }
0x28df   :  { %v6393_v11 = vpop.eup %6392  ;;  %4326 = vrot.lane.b32.xlu1 %v6391_v51, %s6452_s3 }
0x28e0   :  { %4250 = vrot.lane.b32.xlu0 %v6393_v11, %s6452_s3  ;;  %v6395_v18 = vpop.eup %6394 }
0x28e1   :  { %v6397_v25 = vpop.eup %6396  ;;  %v4294_v10 = vadd.f32 1.0, %v6395_v18 }
0x28e2   :  { %v4295_v36 = vadd.f32 1.0, %v6397_v25 }
0x28e3   :  { %6398 = vrcp.f32 %v4294_v10 }
0x28e4   :  { %6400 = vrcp.f32 %v4295_v36 }
0x28ed   :  { %v6399_v40 = vpop.eup %6398 }
0x28ee   :  { %v6401_v16 = vpop.eup %6400  ;;  %v4320_v32 = vsub.f32 1.0, %v6399_v40  ;;  %v4336_v33 = vmul.f32 %v6399_v40, %v4332_v41  ;;  %v4642_v41 = vld [vmem:[%s8984_s10] sm:$0xff] }
0x28ef   :  { %v4321_v28 = vsub.f32 1.0, %v6401_v16  ;;  %v4337_v11 = vmul.f32 %v6401_v16, %v4333_v13 }
0x294d   :  { %v4253_v5 = vpop.permute.xlu1 %4252 }
0x294e   :  { %v4257_v3 = vmul.f32 %v4253_v5, %v4247_v35  ;;  %v4325_v23 = vpop.permute.xlu0 %4324 }
0x294f   :  { %v4330_v26 = vmul.f32 %v4325_v23, %v4320_v32  ;;  %v4658_v32 = vld [vmem:[%s8984_s10 + $0x80] sm:$0xff] }
0x2950   :  { %v8505_v59 = vadd.f32 %v4262_v46, %v4257_v3  ;;  %v4659_v3 = vld [vmem:[%s8984_s10 + $0x88] sm:$0xff] }
0x2951   :  { %v4327_v0 = vpop.permute.xlu1 %4326  ;;  %v8508_v51 = vadd.f32 %v4336_v33, %v4330_v26  ;;  %v5807_v23 = vpack.c.bf16 %v4659_v3, %v4658_v32  ;;  %v4643_v46 = vld [vmem:[%s8984_s10 + $0x8] sm:$0xff]  ;;  %v4660_v26 = vld [vmem:[%s8984_s10 + $0x90] sm:$0xff]  ;;  %v4661_v33 = vld [vmem:[%s8984_s10 + $0x98] sm:$0xff] }
0x2952   :  { %v4331_v47 = vmul.f32 %v4327_v0, %v4321_v28  ;;  %v4251_v20 = vpop.permute.xlu0 %4250  ;;  %v4342_v2 = vrot.slane %v8505_v59, 7  ;;  %v6455_v28 = vmov 1983009808   ;;  %v5809_v0 = vpack.c.bf16 %v4643_v46, %v4642_v41  ;;  %v4649_v32 = vld [vmem:[%s8984_s10 + $0x38] sm:$0xff]  ;;  %v4666_v41 = vld [vmem:[%s8984_s10 + $0xc0] sm:$0xff] }
0x2953   :  { %v4256_v14 = vmul.f32 %v4251_v20, %v4246_v56  ;;  %v4349_v25 = vrot.slane %v8508_v51, 3  ;;  %v4751_v13 = vunpack.c.l.s4 %v6455_v28  ;;  %v5811_v56 = vpack.c.bf16 %v4661_v33, %v4660_v26  ;;  %5808 = vmatprep.subr.bf16.mxu1 %v5807_v23  ;;  %v4663_v20 = vld [vmem:[%s8984_s10 + $0xa8] sm:$0xff]  ;;  %v4690_v46 = vld [vmem:[%s8984_s10 + $0x180] sm:$0xff] }
0x2954   :  { %v8510_v18 = vadd.f32 %v4337_v11, %v4331_v47  ;;  %v4645_v11 = vld [vmem:[%s8984_s10 + $0x18] sm:$0xff]  ;;  %v4662_v47 = vld [vmem:[%s8984_s10 + $0xa0] sm:$0xff]  ;;  %5810 = vmatpush3.bf16.msra.mxu1 %v5809_v0  ;;  %v4667_v23 = vld [vmem:[%s8984_s10 + $0xc8] sm:$0xff] }
0x2955   :  { %v8513_v30 = vadd.f32 %v4261_v15, %v4256_v14  ;;  %v5813_v15 = vpack.c.bf16 %v4645_v11, %v4644_v50  ;;  %5812 = vmatprep.subr.bf16.mxu1 %v5811_v56  ;;  %v5815_v14 = vpack.c.bf16 %v4663_v20, %v4662_v47  ;;  %v4691_v26 = vld [vmem:[%s8984_s10 + $0x188] sm:$0xff]  ;;  %v4674_v33 = vld [vmem:[%s8984_s10 + $0x100] sm:$0xff]  ;;  %v5823_v20 = vpack.c.bf16 %v4667_v23, %v4666_v41  ;;  %v4652_v23 = vld [vmem:[%s8984_s10 + $0x50] sm:$0xff] }
0x2956   :  { %v4350_v10 = vrot.slane %v8510_v18, 2  ;;  %v4675_v28 = vld [vmem:[%s8984_s10 + $0x108] sm:$0xff]  ;;  %v4650_v0 = vld [vmem:[%s8984_s10 + $0x40] sm:$0xff]  ;;  %v5839_v50 = vpack.c.bf16 %v4691_v26, %v4690_v46  ;;  %v4653_v46 = vld [vmem:[%s8984_s10 + $0x58] sm:$0xff] }
0x2957   :  { %v4343_v36 = vsel %vm2072_vm4, %v4342_v2, %v8513_v30  ;;  %v4651_v56 = vld [vmem:[%s8984_s10 + $0x48] sm:$0xff]  ;;  %v5841_v11 = vpack.c.bf16 %v4675_v28, %v4674_v33  ;;  %v8604_v47 = vld [vmem:[%s8985_s1] sm:$0xff]  ;;  %v5829_v28 = vpack.c.bf16 %v4653_v46, %v4652_v23  ;;  %v4725_v23 = vld [vmem:[%s8984_s10 + $0x298] sm:$0xff] }
0x2958   :  { %4344 = vrot.lane.b32.xlu1 %v4343_v36, %s6452_s3  ;;  %v4351_v62 = vsel %vm2072_vm4, %v4350_v10, %v4349_v25  ;;  %v4646_v25 = vld [vmem:[%s8984_s10 + $0x20] sm:$0xff]  ;;  %v4647_v10 = vld [vmem:[%s8984_s10 + $0x28] sm:$0xff]  ;;  %v4752_v36 = vunpack.c.0.s8 %v4751_v13  ;;  %5814 = vmatpush3.bf16.msra.mxu1 %v5813_v15  ;;  %v4668_v15 = vld [vmem:[%s8984_s10 + $0xd0] sm:$0xff] }
0x2959   :  { %4352 = vrot.lane.b32.xlu0 %v4351_v62, %s6453_s14  ;;  %v4664_v62 = vld [vmem:[%s8984_s10 + $0xb0] sm:$0xff]  ;;  %5816 = vmatprep.subr.bf16.mxu1 %v5815_v14  ;;  %v4669_v14 = vld [vmem:[%s8984_s10 + $0xd8] sm:$0xff]  ;;  %v4670_v26 = vld [vmem:[%s8984_s10 + $0xe0] sm:$0xff] }
0x295a   :  { %v8575_v3 = vsub.s32 %v4752_v36, %v7219_v43  ;;  %5840 = vmatprep.subr.bf16.mxu0 %v5839_v50  ;;  %v4693_v36 = vld [vmem:[%s8984_s10 + $0x198] sm:$0xff]  ;;  %v5827_v41 = vpack.c.bf16 %v4669_v14, %v4668_v15  ;;  %v4671_v33 = vld [vmem:[%s8984_s10 + $0xe8] sm:$0xff]  ;;  %v4672_v50 = vld [vmem:[%s8984_s10 + $0xf0] sm:$0xff] }
0x295b   :  { %v4656_v14 = vld [vmem:[%s8984_s10 + $0x70] sm:$0xff] }
0x295c   :  { %v4708_v46 = vld [vmem:[%s8984_s10 + $0x210] sm:$0xff] }
0x29ca   :  { %v4345_v40 = vpop.permute.xlu1 %4344 }
0x29cb   :  { %v4353_v35 = vpop.permute.xlu0 %4352 }
0x29cc   :  { %v4355_v16 = vsel %vm732_vm1, %v4345_v40, %v4353_v35  ;;  %v4665_v40 = vld [vmem:[%s8984_s10 + $0xb8] sm:$0xff]  ;;  %v5817_v35 = vpack.c.bf16 %v4647_v10, %v4646_v25  ;;  %v4756_v25 = vrot.slane %v8604_v47, %v8575_v3  ;;  %v4692_v10 = vld [vmem:[%s8984_s10 + $0x190] sm:$0xff] }
0x29cd   :  { %v4357_v5 = vrot.slane %v4355_v16, 6  ;;  %v5819_v16 = vpack.c.bf16 %v4665_v40, %v4664_v62  ;;  %v4676_v62 = vld [vmem:[%s8984_s10 + $0x110] sm:$0xff]  ;;  %v4677_v40 = vld [vmem:[%s8984_s10 + $0x118] sm:$0xff] }
0x29ce   :  { %5818 = vmatpush3.bf16.msra.mxu1 %v5817_v35  ;;  %v4764_v35 = vcombine.high %v4756_v25, %v4756_v25 }
0x29cf   :  { %5224 = vmatmul.mubr.msk.f32.vlgmr.msra.gmra.mrb[8].mxu0 %vm516_vm2, %v4357_v5  ;;  %v4648_v5 = vld [vmem:[%s8984_s10 + $0x30] sm:$0xff]  ;;  %5820 = vmatprep.subr.bf16.mxu1 %v5819_v16  ;;  %v5843_v16 = vpack.c.bf16 %v4693_v36, %v4692_v10  ;;  %v4657_v10 = vld [vmem:[%s8984_s10 + $0x78] sm:$0xff]  ;;  %v4722_v36 = vld [vmem:[%s8984_s10 + $0x280] sm:$0xff] }
0x29d0   :  { %v5821_v13 = vpack.c.bf16 %v4649_v32, %v4648_v5  ;;  %5842 = vmatpush3.bf16.msra.mxu0 %v5841_v11  ;;  %v5845_v5 = vpack.c.bf16 %v4677_v40, %v4676_v62  ;;  %v5825_v32 = vpack.c.bf16 %v4651_v56, %v4650_v0  ;;  %4844 = vmatprep.mubr.f32.mxu1 %v4764_v35  ;;  %v4654_v0 = vld [vmem:[%s8984_s10 + $0x60] sm:$0xff]  ;;  %v4655_v56 = vld [vmem:[%s8984_s10 + $0x68] sm:$0xff]  ;;  %v4673_v11 = vld [vmem:[%s8984_s10 + $0xf8] sm:$0xff] }
0x29d1   :  { %5844 = vmatprep.subr.bf16.mxu0 %v5843_v16  ;;  %v5835_v15 = vpack.c.bf16 %v4673_v11, %v4672_v50  ;;  %v4723_v62 = vld [vmem:[%s8984_s10 + $0x288] sm:$0xff]  ;;  %v5837_v40 = vpack.c.bf16 %v4657_v10, %v4656_v14  ;;  %v4706_v16 = vld [vmem:[%s8984_s10 + $0x200] sm:$0xff] }
0x29d2   :  { %5822 = vmatpush3.bf16.msra.mxu1 %v5821_v13  ;;  %v5831_v13 = vpack.c.bf16 %v4671_v33, %v4670_v26  ;;  %v5871_v35 = vpack.c.bf16 %v4723_v62, %v4722_v36  ;;  %v4709_v33 = vld [vmem:[%s8984_s10 + $0x218] sm:$0xff]  ;;  %v4679_v50 = vld [vmem:[%s8984_s10 + $0x128] sm:$0xff]  ;;  %v4726_v11 = vld [vmem:[%s8984_s10 + $0x2a0] sm:$0xff] }
0x29d3   :  { %5824 = vmatprep.subr.bf16.mxu1 %v5823_v20  ;;  %v5833_v20 = vpack.c.bf16 %v4655_v56, %v4654_v0  ;;  %v4678_v0 = vld [vmem:[%s8984_s10 + $0x120] sm:$0xff]  ;;  %v4711_v36 = vld [vmem:[%s8984_s10 + $0x228] sm:$0xff]  ;;  %v4696_v62 = vld [vmem:[%s8984_s10 + $0x1b0] sm:$0xff] }
0x29d4   :  { %5846 = vmatpush3.bf16.msra.mxu0 %v5845_v5  ;;  %v4707_v5 = vld [vmem:[%s8984_s10 + $0x208] sm:$0xff]  ;;  %v4710_v10 = vld [vmem:[%s8984_s10 + $0x220] sm:$0xff] }
0x29d6   :  { %5826 = vmatpush3.bf16.msra.mxu1 %v5825_v32  ;;  %v5873_v32 = vpack.c.bf16 %v4707_v5, %v4706_v16  ;;  %v4680_v5 = vld [vmem:[%s8984_s10 + $0x130] sm:$0xff] }
0x29d7   :  { %5828 = vmatprep.subr.bf16.mxu1 %v5827_v41  ;;  %v4724_v41 = vld [vmem:[%s8984_s10 + $0x290] sm:$0xff] }
0x29d8   :  { %v5875_v26 = vpack.c.bf16 %v4725_v23, %v4724_v41  ;;  %v4728_v41 = vld [vmem:[%s8984_s10 + $0x2b0] sm:$0xff] }
0x29da   :  { %5830 = vmatpush3.bf16.msra.mxu1 %v5829_v28  ;;  %v5877_v28 = vpack.c.bf16 %v4709_v33, %v4708_v46  ;;  %v4729_v46 = vld [vmem:[%s8984_s10 + $0x2b8] sm:$0xff]  ;;  %v4712_v33 = vld [vmem:[%s8984_s10 + $0x230] sm:$0xff] }
0x29db   :  { %5832 = vmatprep.subr.bf16.mxu1 %v5831_v13  ;;  %v4695_v13 = vld [vmem:[%s8984_s10 + $0x1a8] sm:$0xff] }
0x29de   :  { %5834 = vmatpush3.bf16.msra.mxu1 %v5833_v20  ;;  %v4727_v20 = vld [vmem:[%s8984_s10 + $0x2a8] sm:$0xff] }
0x29df   :  { %5836 = vmatprep.subr.bf16.mxu1 %v5835_v15  ;;  %v5849_v15 = vpack.c.bf16 %v4679_v50, %v4678_v0  ;;  %v5879_v14 = vpack.c.bf16 %v4727_v20, %v4726_v11  ;;  %v4682_v50 = vld [vmem:[%s8984_s10 + $0x140] sm:$0xff]  ;;  %v4683_v11 = vld [vmem:[%s8984_s10 + $0x148] sm:$0xff] }
0x29e2   :  { %5838 = vmatpush3.bf16.msra.mxu1 %v5837_v40  ;;  %v5881_v40 = vpack.c.bf16 %v4711_v36, %v4710_v10  ;;  %v4730_v10 = vld [vmem:[%s8984_s10 + $0x2c0] sm:$0xff]  ;;  %v4731_v36 = vld [vmem:[%s8984_s10 + $0x2c8] sm:$0xff] }
0x29e3   :  { %5872 = vmatprep.subr.bf16.mxu1 %v5871_v35  ;;  %v4697_v35 = vld [vmem:[%s8984_s10 + $0x1b8] sm:$0xff] }
0x29e4   :  { %v5851_v16 = vpack.c.bf16 %v4697_v35, %v4696_v62  ;;  %v4714_v62 = vld [vmem:[%s8984_s10 + $0x240] sm:$0xff] }
0x29e5   :  { %4845 = vmatmul.mubr.f32.vlgmr.msra.gmra.mrb[30].mxu1 %v4756_v25  ;;  %v4694_v25 = vld [vmem:[%s8984_s10 + $0x1a0] sm:$0xff] }
0x29e6   :  { %5874 = vmatpush3.bf16.msra.mxu1 %v5873_v32  ;;  %v5847_v56 = vpack.c.bf16 %v4695_v13, %v4694_v25  ;;  %v4681_v32 = vld [vmem:[%s8984_s10 + $0x138] sm:$0xff]  ;;  %v4698_v25 = vld [vmem:[%s8984_s10 + $0x1c0] sm:$0xff] }
0x29e7   :  { %5876 = vmatprep.subr.bf16.mxu1 %v5875_v26  ;;  %v5853_v23 = vpack.c.bf16 %v4681_v32, %v4680_v5  ;;  %v5883_v26 = vpack.c.bf16 %v4729_v46, %v4728_v41  ;;  %v4715_v5 = vld [vmem:[%s8984_s10 + $0x248] sm:$0xff]  ;;  %v4700_v32 = vld [vmem:[%s8984_s10 + $0x1d0] sm:$0xff]  ;;  %v4701_v41 = vld [vmem:[%s8984_s10 + $0x1d8] sm:$0xff] }
0x29e8   :  { %5848 = vmatprep.subr.bf16.mxu0 %v5847_v56  ;;  %v4699_v56 = vld [vmem:[%s8984_s10 + $0x1c8] sm:$0xff]  ;;  %v4732_v46 = vld [vmem:[%s8984_s10 + $0x2d0] sm:$0xff] }
0x29e9   :  { %5850 = vmatpush3.bf16.msra.mxu0 %v5849_v15  ;;  %v5855_v15 = vpack.c.bf16 %v4699_v56, %v4698_v25  ;;  %v4716_v25 = vld [vmem:[%s8984_s10 + $0x250] sm:$0xff] }
0x29ea   :  { %5878 = vmatpush3.bf16.msra.mxu1 %v5877_v28  ;;  %5852 = vmatprep.subr.bf16.mxu0 %v5851_v16  ;;  %v4713_v28 = vld [vmem:[%s8984_s10 + $0x238] sm:$0xff]  ;;  %v5887_v16 = vpack.c.bf16 %v4731_v36, %v4730_v10  ;;  %v4687_v10 = vld [vmem:[%s8984_s10 + $0x168] sm:$0xff]  ;;  %v4734_v36 = vld [vmem:[%s8984_s10 + $0x2e0] sm:$0xff] }
0x29eb   :  { %5880 = vmatprep.subr.bf16.mxu1 %v5879_v14  ;;  %v5885_v0 = vpack.c.bf16 %v4713_v28, %v4712_v33  ;;  %v5857_v14 = vpack.c.bf16 %v4683_v11, %v4682_v50  ;;  %v5859_v33 = vpack.c.bf16 %v4701_v41, %v4700_v32  ;;  %v4733_v28 = vld [vmem:[%s8984_s10 + $0x2d8] sm:$0xff]  ;;  %v4702_v50 = vld [vmem:[%s8984_s10 + $0x1e0] sm:$0xff]  ;;  %v4703_v11 = vld [vmem:[%s8984_s10 + $0x1e8] sm:$0xff] }
0x29ec   :  { %v4704_v32 = vld [vmem:[%s8984_s10 + $0x1f0] sm:$0xff] }
0x29ed   :  { %5854 = vmatpush3.bf16.msra.mxu0 %v5853_v23  ;;  %v5889_v23 = vpack.c.bf16 %v4715_v5, %v4714_v62  ;;  %v4735_v62 = vld [vmem:[%s8984_s10 + $0x2e8] sm:$0xff] }
0x29ee   :  { %5882 = vmatpush3.bf16.msra.mxu1 %v5881_v40  ;;  %v4749_v40 = vcombine.high %v8604_v47, %v8604_v47  ;;  %5856 = vmatprep.subr.bf16.mxu0 %v5855_v15  ;;  %v4685_v47 = vld [vmem:[%s8984_s10 + $0x158] sm:$0xff]  ;;  %v4719_v5 = vld [vmem:[%s8984_s10 + $0x268] sm:$0xff] }
0x29ef   :  { %5884 = vmatprep.subr.bf16.mxu1 %v5883_v26 }
0x29f0   :  { %v4763_v15 = vrot.slane %v4749_v40, %v8575_v3  ;;  %v5863_v40 = vpack.c.bf16 %v4703_v11, %v4702_v50  ;;  %v5232_v50 = vld.sshfl [vmem:[%s8985_s1 + $0x8] sm:$0x33 pattern:$0x76325410] }
0x29f1   :  { %5858 = vmatpush3.bf16.msra.mxu0 %v5857_v14  ;;  %v5891_v14 = vpack.c.bf16 %v4733_v28, %v4732_v46  ;;  %v4689_v28 = vld [vmem:[%s8984_s10 + $0x178] sm:$0xff] }
0x29f2   :  { %5886 = vmatpush3.bf16.msra.mxu1 %v5885_v0  ;;  %v4717_v0 = vld [vmem:[%s8984_s10 + $0x258] sm:$0xff]  ;;  %5860 = vmatprep.subr.bf16.mxu0 %v5859_v33  ;;  %v4765_v46 = vcombine.high %v4763_v15, %v4763_v15 }
0x29f3   :  { %5888 = vmatprep.subr.bf16.mxu1 %v5887_v16  ;;  %v5893_v3 = vpack.c.bf16 %v4717_v0, %v4716_v25  ;;  %v4718_v16 = vld [vmem:[%s8984_s10 + $0x260] sm:$0xff]  ;;  %v4736_v25 = vld [vmem:[%s8984_s10 + $0x2f0] sm:$0xff]  ;;  %v4737_v0 = vld [vmem:[%s8984_s10 + $0x2f8] sm:$0xff] }
0x29f4   :  { %4914 = vmatprep.mubr.f32.mxu0 %v4765_v46  ;;  %v5899_v11 = vpack.c.bf16 %v4737_v0, %v4736_v25 }
0x29f6   :  { %5890 = vmatpush3.bf16.msra.mxu1 %v5889_v23  ;;  %v4705_v23 = vld [vmem:[%s8984_s10 + $0x1f8] sm:$0xff] }
0x29f7   :  { %5892 = vmatprep.subr.bf16.mxu1 %v5891_v14  ;;  %v5867_v33 = vpack.c.bf16 %v4705_v23, %v4704_v32  ;;  %v4721_v14 = vld [vmem:[%s8984_s10 + $0x278] sm:$0xff] }
0x29fa   :  { %5894 = vmatpush3.bf16.msra.mxu1 %v5893_v3 }
0x2aa2   :  { %v8731_v13 = vpop.f32.mrb[8].mxu0 }
0x2aa3   :  { %v4428_v20 = vpop.f32.mrb[9].mxu0  ;;  %v4427_v3 = vadd.f32 %v8731_v13, %v8041_v58 }
0x2aa4   :  { %v8754_v35 = vadd.f32 %v4428_v20, %v8044_v63  ;;  %v4684_v63 = vld [vmem:[%s8984_s10 + $0x150] sm:$0xff]  ;;  %v4686_v20 = vld [vmem:[%s8984_s10 + $0x160] sm:$0xff] }
0x2aa5   :  { %v5861_v56 = vpack.c.bf16 %v4685_v47, %v4684_v63  ;;  %v5865_v41 = vpack.c.bf16 %v4687_v10, %v4686_v20  ;;  %v5895_v63 = vpack.c.bf16 %v4735_v62, %v4734_v36  ;;  %v4688_v47 = vld [vmem:[%s8984_s10 + $0x170] sm:$0xff]  ;;  %v4773_v10 = vcombine.high %v5232_v50, %v5232_v50 }
0x2aa6   :  { %v4505_v26 = vrot.slane %v8754_v35, 1  ;;  %4522 = vrot.lane.b32.xlu1 %v8754_v35, %s6451_s0  ;;  %v4720_v20 = vld [vmem:[%s8984_s10 + $0x270] sm:$0xff]  ;;  %v5869_v36 = vpack.c.bf16 %v4689_v28, %v4688_v47  ;;  %v4433_v0 = vrot.slane %v4427_v3, 2 }
0x2aa7   :  { %5862 = vmatpush3.bf16.msra.mxu0 %v5861_v56  ;;  %v5897_v56 = vpack.c.bf16 %v4719_v5, %v4718_v16  ;;  %5896 = vmatprep.subr.bf16.mxu1 %v5895_v63  ;;  %v5901_v62 = vpack.c.bf16 %v4721_v14, %v4720_v20  ;;  %v4490_v16 = vadd.f32 %v4427_v3, %v8066_v12 }
0x2aa8   :  { %4524 = vrot.lane.b32.xlu0 %v4505_v26, %s6451_s0  ;;  %5864 = vmatprep.subr.bf16.mxu0 %v5863_v40  ;;  %v4432_v40 = vrot.slane %v4427_v3, 1  ;;  %v4437_v14 = vadd.f32 %v4433_v0, %v8064_v48  ;;  %v5231_v3 = vld [vmem:[%s8986_s11] ss:$0 sm:$0xff] }
0x2aa9   :  { %4984 = vmatprep.mubr.f32.mxu1 %v4773_v10  ;;  %5898 = vmatpush3.bf16.msra.mxu1 %v5897_v56  ;;  %v5227_v32 = vmul.f32 -1.442695, %v4490_v16 }
0x2aaa   :  { %5900 = vmatprep.subr.bf16.mxu1 %v5899_v11  ;;  %v4491_v5 = vadd.f32 %v4432_v40, %v8064_v48  ;;  %v4436_v20 = vadd.f32 %v4432_v40, %v8066_v12 }
0x2aab   :  { %5866 = vmatpush3.bf16.msra.mxu0 %v5865_v41  ;;  %6402 = vpow2.f32 %v5227_v32 }
0x2aac   :  { %5868 = vmatprep.subr.bf16.mxu0 %v5867_v33  ;;  %v5228_v41 = vmul.f32 -1.442695, %v4491_v5  ;;  %v5225_v10 = vmul.f32 -1.442695, %v4436_v20 }
0x2aad   :  { %5902 = vmatpush3.bf16.msra.mxu1 %v5901_v62 }
0x2aae   :  { %6404 = vpow2.f32 %v5228_v41 }
0x2aaf   :  { %5870 = vmatpush3.bf16.msra.mxu0 %v5869_v36  ;;  %v5226_v36 = vmul.f32 -1.442695, %v4437_v14 }
0x2ab0   :  { %4985 = vmatmul.mubr.f32.vlgmr.msra.gmra.mrb[32].mxu1 %v5232_v50 }
0x2ab2   :  { %4915 = vmatmul.mubr.f32.vlgmr.msra.gmra.mrb[10].mxu0 %v4763_v15 }
0x2ab5   :  { %v6403_v63 = vpop.eup %6402 }
0x2ab6   :  { %v4498_v47 = vadd.f32 1.0, %v6403_v63 }
0x2ab8   :  { %v6405_v23 = vpop.eup %6404  ;;  %6406 = vrcp.f32 %v4498_v47  ;;  %v5270_v56 = vpop.f32.mrb[30].mxu1 }
0x2ab9   :  { %v4499_v46 = vadd.f32 1.0, %v6405_v23  ;;  %v5271_v50 = vpop.f32.mrb[31].mxu1 }
0x2aba   :  { %v5272_v11 = vadd.f32 %v5271_v50, %v5270_v56 }
0x2abb   :  { %6408 = vrcp.f32 %v4499_v46 }
0x2abc   :  { %6410 = vpow2.f32 %v5225_v10  ;;  %v4847_v41 = vadd.f32 %v5272_v11, %v5231_v3 }
0x2abd   :  { %6412 = vpow2.f32 %v5226_v36 }
0x2ac2   :  { %v6407_v15 = vpop.eup %6406 }
0x2ac5   :  { %v6409_v25 = vpop.eup %6408 }
0x2ac6   :  { %v6411_v62 = vpop.eup %6410 }
0x2ac7   :  { %v6413_v16 = vpop.eup %6412  ;;  %v4444_v5 = vadd.f32 1.0, %v6411_v62 }
0x2ac8   :  { %v4445_v32 = vadd.f32 1.0, %v6413_v16  ;;  %v4508_v16 = vadd.f32 %v8754_v35, %v8078_v55 }
0x2ac9   :  { %6414 = vrcp.f32 %v4444_v5  ;;  %v4509_v5 = vadd.f32 %v4505_v26, %v8083_v24 }
0x2aca   :  { %6416 = vrcp.f32 %v4445_v32  ;;  %v5229_v32 = vmul.f32 -1.442695, %v4508_v16 }
0x2acb   :  { %v5230_v3 = vmul.f32 -1.442695, %v4509_v5 }
0x2ad3   :  { %v8856_v56 = vpop.eup %6414 }
0x2ad4   :  { %v8859_v20 = vpop.eup %6416 }
0x2b18   :  { %v4523_v33 = vpop.permute.xlu1 %4522 }
0x2b19   :  { %v4528_v28 = vmul.f32 %v6407_v15, %v4523_v33 }
0x2b1a   :  { %v4525_v58 = vpop.permute.xlu0 %4524 }
0x2b1b   :  { %v4529_v13 = vmul.f32 %v6409_v25, %v4525_v58  ;;  %4532 = vrot.lane.b32.xlu1 %v4528_v28, %s6451_s0 }
0x2b1d   :  { %4534 = vrot.lane.b32.xlu0 %v4529_v13, %s6451_s0 }
0x2b1f   :  { %4450 = vrot.lane.b32.xlu1 %v4432_v40, %s6451_s0 }
0x2b21   :  { %4452 = vrot.lane.b32.xlu0 %v4433_v0, %s6451_s0 }
0x2b83   :  { %v5340_v47 = vpop.f32.mrb[32].mxu1 }
0x2b84   :  { %v5341_v46 = vpop.f32.mrb[33].mxu1 }
0x2b85   :  { %v5305_v63 = vpop.f32.mrb[10].mxu0  ;;  %v5342_v28 = vadd.f32 %v5341_v46, %v5340_v47 }
0x2b86   :  { %v5306_v23 = vpop.f32.mrb[11].mxu0 }
0x2b87   :  { %v5307_v40 = vadd.f32 %v5306_v23, %v5305_v63 }
0x2b89   :  { %v4917_v33 = vadd.f32 %v5307_v40, %v4847_v41 }
0x2b8b   :  { %v4987_v13 = vadd.f32 %v5342_v28, %v4917_v33  ;;  %v4554_v33 = vrot.slane %v8508_v51, 1 }
0x2b8d   :  { %v4533_v15 = vpop.permute.xlu1 %4532 }
0x2b8e   :  { %v4538_v25 = vadd.f32 %v4533_v15, %v8078_v55 }
0x2b8f   :  { %v4535_v58 = vpop.permute.xlu0 %4534 }
0x2b90   :  { %6418 = vtanh.f32 %v4538_v25  ;;  %v4539_v0 = vadd.f32 %v4535_v58, %v8083_v24 }
0x2b91   :  { %v4451_v50 = vpop.permute.xlu1 %4450 }
0x2b92   :  { %6420 = vtanh.f32 %v4539_v0  ;;  %v4456_v11 = vmul.f32 %v8856_v56, %v4451_v50 }
0x2b93   :  { %v4453_v14 = vpop.permute.xlu0 %4452  ;;  %6422 = vpow2.f32 %v5229_v32  ;;  %v4482_v32 = vrot.slane %v8513_v30, 7 }
0x2b94   :  { %v4457_v10 = vmul.f32 %v8859_v20, %v4453_v14  ;;  %4460 = vrot.lane.b32.xlu1 %v4456_v11, %s6451_s0  ;;  %6424 = vpow2.f32 %v5230_v3 }
0x2b96   :  { %4462 = vrot.lane.b32.xlu0 %v4457_v10, %s6451_s0 }
0x2b9a   :  { %v6419_v36 = vpop.eup %6418 }
0x2b9b   :  { %4546 = vrot.lane.b32.xlu1 %v6419_v36, %s6452_s3 }
0x2b9c   :  { %v6421_v62 = vpop.eup %6420 }
0x2b9d   :  { %4548 = vrot.lane.b32.xlu0 %v6421_v62, %s6452_s3  ;;  %v6423_v23 = vpop.eup %6422 }
0x2b9e   :  { %v4516_v47 = vadd.f32 1.0, %v6423_v23  ;;  %v4485_v23 = vmul.f32 %v8856_v56, %v4482_v32 }
0x2b9f   :  { %4572 = vrot.lane.b32.xlu1 %v8508_v51, %s6453_s14 }
0x2ba1   :  { %4574 = vrot.lane.b32.xlu0 %v8510_v18, %s6453_s14 }
0x2ba3   :  { %4580 = vrot.lane.b32.xlu1 %v8450_v54, %s6453_s14 }
0x2ba5   :  { %4582 = vrot.lane.b32.xlu0 %v8452_v7, %s6453_s14  ;;  %v6425_v7 = vpop.eup %6424 }
0x2ba6   :  { %v4517_v55 = vadd.f32 1.0, %v6425_v7  ;;  %v4471_v7 = vsub.f32 1.0, %v8859_v20 }
0x2c06   :  { %v4461_v41 = vpop.permute.xlu1 %4460 }
0x2c07   :  { %v4466_v63 = vadd.f32 %v4461_v41, %v8066_v12  ;;  %v4470_v41 = vsub.f32 1.0, %v8856_v56 }
0x2c08   :  { %v4463_v40 = vpop.permute.xlu0 %4462 }
0x2c09   :  { %6426 = vtanh.f32 %v4466_v63  ;;  %v4467_v54 = vadd.f32 %v4463_v40, %v8064_v48 }
0x2c0b   :  { %6428 = vtanh.f32 %v4467_v54 }
0x2c0c   :  { %6430 = vrcp.f32 %v4516_v47 }
0x2c0d   :  { %6432 = vrcp.f32 %v4517_v55  ;;  %v4547_v26 = vpop.permute.xlu1 %4546  ;;  %v4486_v55 = vmul.f32 %v8859_v20, %v4342_v2 }
0x2c0f   :  { %v4549_v15 = vpop.permute.xlu0 %4548 }
0x2c13   :  { %v6427_v35 = vpop.eup %6426 }
0x2c14   :  { %4474 = vrot.lane.b32.xlu1 %v6427_v35, %s6452_s3 }
0x2c15   :  { %v6429_v24 = vpop.eup %6428 }
0x2c16   :  { %4476 = vrot.lane.b32.xlu0 %v6429_v24, %s6452_s3  ;;  %v6431_v12 = vpop.eup %6430 }
0x2c17   :  { %v6433_v48 = vpop.eup %6432  ;;  %v4542_v46 = vsub.f32 1.0, %v6431_v12  ;;  %v4558_v58 = vmul.f32 %v6431_v12, %v4554_v33 }
0x2c18   :  { %4588 = vrot.lane.b32.xlu1 %v8381_v52, %s6453_s14  ;;  %v4543_v25 = vsub.f32 1.0, %v6433_v48  ;;  %v4555_v52 = vrot.slane %v8510_v18, 1 }
0x2c19   :  { %v4552_v28 = vmul.f32 %v4547_v26, %v4542_v46 }
0x2c1a   :  { %4590 = vrot.lane.b32.xlu0 %v8383_v45, %s6453_s14  ;;  %v4553_v0 = vmul.f32 %v4549_v15, %v4543_v25  ;;  %v4559_v50 = vmul.f32 %v6433_v48, %v4555_v52 }
0x2c1b   :  { %v4560_v45 = vadd.f32 %v4558_v58, %v4552_v28 }
0x2c1c   :  { %4596 = vrot.lane.b32.xlu1 %v8308_v21, %s6453_s14  ;;  %v4997_v21 = vrot.slane %v4987_v13, %v7939_v49  ;;  %v4561_v51 = vadd.f32 %v4559_v50, %v4553_v0 }
0x2c1e   :  { %4598 = vrot.lane.b32.xlu0 %v8315_v4, %s6453_s14  ;;  %v4998_v4 = vcombine.high %v4997_v21, %v4997_v21  ;;  %v5005_v18 = vrot.slane %v4997_v21, %v7939_v49 }
0x2c20   :  { %4604 = vrot.lane.b32.xlu1 %v8239_v1, %s6453_s14  ;;  %v5012_v1 = vrot.slane %v4998_v4, %v7939_v49  ;;  %v4575_v49 = vpop.permute.xlu0 %4574 }
0x2c21   :  { %v4579_v40 = vadd.f32 %v4575_v49, %v8166_v60 }
0x2c22   :  { %4606 = vrot.lane.b32.xlu0 %v8241_v19, %s6453_s14  ;;  %v8911_v19 = vrot.slane %v5005_v18, %v7222_v44 }
0x2c24   :  { %4564 = vrot.lane.b32.xlu1 %v4560_v45, %s6453_s14  ;;  %v4583_v11 = vpop.permute.xlu0 %4582 }
0x2c25   :  { %v4587_v56 = vadd.f32 %v4583_v11, %v8236_v22 }
0x2c26   :  { %4566 = vrot.lane.b32.xlu0 %v4561_v51, %s6453_s14 }
0x2c28   :  { %4612 = vrot.lane.b32.xlu1 %v8168_v38, %s6453_s14  ;;  %v8916_v38 = vrot.slane %v5012_v1, %v7222_v44 }
0x2c2a   :  { %4614 = vrot.lane.b32.xlu0 %v8171_v37, %s6453_s14  ;;  %v4573_v37 = vpop.permute.xlu1 %4572 }
0x2c2b   :  { %v4578_v44 = vadd.f32 %v4573_v37, %v8176_v61 }
0x2c2c   :  { %4620 = vrot.lane.b32.xlu1 %v8099_v39, %s6453_s14 }
0x2c2e   :  { %4622 = vrot.lane.b32.xlu0 %v8101_v17, %s6453_s14  ;;  %v4581_v13 = vpop.permute.xlu1 %4580 }
0x2c2f   :  { %v4586_v54 = vadd.f32 %v4581_v13, %v8244_v29 }
0x2c30   :  { %5021 = vrot.lane.b32.xlu1 %v8911_v19, %s6453_s14 }
0x2c32   :  { %5023 = vrot.lane.b32.xlu0 %v8916_v38, %s6453_s14 }
0x2c86   :  { %v4475_v39 = vpop.permute.xlu1 %4474 }
0x2c87   :  { %v4480_v35 = vmul.f32 %v4475_v39, %v4470_v41 }
0x2c88   :  { %v4477_v14 = vpop.permute.xlu0 %4476 }
0x2c89   :  { %v4481_v12 = vmul.f32 %v4477_v14, %v4471_v7 }
0x2c8a   :  { %v4589_v10 = vpop.permute.xlu1 %4588 }
0x2c8b   :  { %v4594_v61 = vadd.f32 %v4589_v10, %v8312_v6  ;;  %v4488_v0 = vadd.f32 %v4486_v55, %v4481_v12 }
0x2c8c   :  { %v4591_v17 = vpop.permute.xlu0 %4590 }
0x2c8d   :  { %v4595_v26 = vadd.f32 %v4591_v17, %v8305_v31  ;;  %v4487_v31 = vadd.f32 %v4485_v23, %v4480_v35 }
0x2c8e   :  { %v4597_v36 = vpop.permute.xlu1 %4596 }
0x2c8f   :  { %v4602_v60 = vadd.f32 %v4597_v36, %v8386_v53 }
0x2c90   :  { %v4599_v62 = vpop.permute.xlu0 %4598 }
0x2c91   :  { %v4603_v20 = vadd.f32 %v4599_v62, %v8378_v8 }
0x2c92   :  { %v4605_v16 = vpop.permute.xlu1 %4604 }
0x2c93   :  { %v4610_v46 = vadd.f32 %v4605_v16, %v8455_v34 }
0x2c94   :  { %v4607_v5 = vpop.permute.xlu0 %4606 }
0x2c95   :  { %v4611_v33 = vadd.f32 %v4607_v5, %v8447_v27 }
0x2c96   :  { %v4565_v3 = vpop.permute.xlu1 %4564 }
0x2c97   :  { %v4570_v63 = vadd.f32 %v4565_v3, %v8104_v9 }
0x2c98   :  { %v4567_v47 = vpop.permute.xlu0 %4566 }
0x2c99   :  { %v4628_v24 = vsel %vm2638_vm9, %v4570_v63, %v4578_v44  ;;  %v4571_v9 = vadd.f32 %v4567_v47, %v8097_v57 }
0x2c9a   :  { %v4630_v29 = vsel %vm2641_vm10, %v4628_v24, %v4586_v54  ;;  %v4613_v48 = vpop.permute.xlu1 %4612 }
0x2c9b   :  { %v4632_v2 = vsel %vm2644_vm11, %v4630_v29, %v4594_v61  ;;  %v4629_v6 = vsel %vm2638_vm9, %v4571_v9, %v4579_v40  ;;  %v4618_v22 = vadd.f32 %v4613_v48, %v8513_v30  ;;  %v5076_v61 = vand.u32 127, %v264_v42 }
0x2c9c   :  { %v4631_v57 = vsel %vm2641_vm10, %v4629_v6, %v4587_v56  ;;  %v4615_v15 = vpop.permute.xlu0 %4614  ;;  %v4634_v53 = vsel %vm2647_vm12, %v4632_v2, %v4602_v60 }
0x2c9d   :  { %v4633_v28 = vsel %vm2644_vm11, %v4631_v57, %v4595_v26  ;;  %v4636_v34 = vsel %vm2650_vm13, %v4634_v53, %v4610_v46  ;;  %v4619_v25 = vadd.f32 %v4615_v15, %v8505_v59  ;;  %v5079_v9 = vsub.s32 %v5076_v61, %v7219_v43 }
0x2c9e   :  { %v4621_v58 = vpop.permute.xlu1 %4620  ;;  %v4635_v52 = vsel %vm2647_vm12, %v4633_v28, %v4603_v20  ;;  %v4638_v50 = vsel %vm2653_vm14, %v4636_v34, %v4618_v22 }
0x2c9f   :  { %v4626_v8 = vadd.f32 %v4621_v58, %v4487_v31  ;;  %v4637_v45 = vsel %vm2650_vm13, %v4635_v52, %v4611_v33 }
0x2ca0   :  { %v4623_v30 = vpop.permute.xlu0 %4622  ;;  %v4639_v4 = vsel %vm2653_vm14, %v4637_v45, %v4619_v25 }
0x2ca1   :  { %v4627_v21 = vadd.f32 %v4623_v30, %v4488_v0  ;;  %v4640_v27 = vsel %vm2656_vm15, %v4638_v50, %v4626_v8 }
0x2ca2   :  { %v5022_v51 = vpop.permute.xlu1 %5021  ;;  %v5045_v49 = vmul.f32 %v8911_v19, %v4640_v27 }
0x2ca3   :  { %v5027_v18 = vmul.f32 %v5022_v51, %v4640_v27  ;;  %v4641_v1 = vsel %vm2656_vm15, %v4639_v4, %v4627_v21 }
0x2ca4   :  { %v5024_v59 = vpop.permute.xlu0 %5023  ;;  %v5046_v13 = vmul.f32 %v8916_v38, %v4641_v1 }
0x2ca5   :  { %v5028_v37 = vmul.f32 %v5024_v59, %v4641_v1  ;;  %5031 = vrot.lane.b32.xlu1 %v5027_v18, %s6452_s3 }
0x2ca7   :  { %5033 = vrot.lane.b32.xlu0 %v5028_v37, %s6452_s3 }
0x2ca9   :  { %5049 = vrot.lane.b32.xlu1 %v5045_v49, %s6452_s3 }
0x2cab   :  { %5051 = vrot.lane.b32.xlu0 %v5046_v13, %s6452_s3 }
0x2d17   :  { %v5032_v11 = vpop.permute.xlu1 %5031 }
0x2d18   :  { %v5037_v39 = vsel %vm732_vm1, %v5032_v11, 0.0 }
0x2d19   :  { %v5034_v14 = vpop.permute.xlu0 %5033  ;;  %5038 = vadd.xlane.f32.xlu1 %v5037_v39 }
0x2d1a   :  { %v5040_v10 = vsel %vm732_vm1, %v5034_v14, 0.0 }
0x2d1b   :  { %5041 = vadd.xlane.f32.xlu0 %v5040_v10  ;;  %v5050_v17 = vpop.permute.xlu1 %5049 }
0x2d1c   :  { %v5055_v19 = vsel %vm732_vm1, %v5050_v17, 0.0 }
0x2d1d   :  { %v5052_v36 = vpop.permute.xlu0 %5051 }
0x2d1e   :  { %v5058_v62 = vsel %vm732_vm1, %v5052_v36, 0.0  ;;  %vm5087_vm1 = vcmask 58368  }
0x2d1f   :  { %5059 = vadd.xlane.f32.xlu1 %v5058_v62  ;;  %5056 = vadd.xlane.f32.xlu0 %v5055_v19 }
0x2da6   :  { %v5039_v38 = vpop.xlane.xlu1 %5038 }
0x2da7   :  { %v5233_v16 = vmul.f32 -1.442695, %v5039_v38 }
0x2da8   :  { %v5042_v5 = vpop.xlane.xlu0 %5041 }
0x2da9   :  { %6434 = vpow2.f32 %v5233_v16  ;;  %v5234_v32 = vmul.f32 -1.442695, %v5042_v5 }
0x2dab   :  { %6436 = vpow2.f32 %v5234_v32 }
0x2dac   :  { %v5057_v3 = vpop.xlane.xlu0 %5056  ;;  %v5060_v44 = vpop.xlane.xlu1 %5059 }
0x2dad   :  { %v5235_v41 = vmul.f32 -1.442695, %v5057_v3  ;;  %v5236_v63 = vmul.f32 -1.442695, %v5060_v44 }
0x2daf   :  { %6438 = vpow2.f32 %v5235_v41 }
0x2db0   :  { %6440 = vpow2.f32 %v5236_v63 }
0x2db3   :  { %v6435_v23 = vpop.eup %6434 }
0x2db4   :  { %v5067_v40 = vadd.f32 1.0, %v6435_v23 }
0x2db5   :  { %v6437_v54 = vpop.eup %6436 }
0x2db6   :  { %6442 = vrcp.f32 %v5067_v40  ;;  %v5068_v7 = vadd.f32 1.0, %v6437_v54 }
0x2db8   :  { %6444 = vrcp.f32 %v5068_v7 }
0x2db9   :  { %v6439_v47 = vpop.eup %6438 }
0x2dba   :  { %v6441_v55 = vpop.eup %6440  ;;  %v5095_v35 = vadd.f32 1.0, %v6439_v47 }
0x2dbb   :  { %v5096_v24 = vadd.f32 1.0, %v6441_v55 }
0x2dbc   :  { %6446 = vrcp.f32 %v5095_v35 }
0x2dbd   :  { %6448 = vrcp.f32 %v5096_v24 }
0x2dc0   :  { %v6443_v56 = vpop.eup %6442 }
0x2dc1   :  { %v5080_v60 = vrot.slane %v6443_v56, %v5079_v9 }
0x2dc2   :  { %v6445_v12 = vpop.eup %6444 }
0x2dc3   :  { %v5084_v29 = vrot.slane %v6445_v12, %v5079_v9 }
0x2dc5   :  { %v5085_v48 = vsel %vm719_vm0, %v5084_v29, %v5080_v60 }
0x2dc6   :  { %v6447_v26 = vpop.eup %6446  ;;  %5088 = vst.msk [vmem:[%s8987_s12] sm:$0x3] %vm5087_vm1, %v5085_v48 }
0x2dc7   :  { %v6449_v46 = vpop.eup %6448  ;;  %v5106_v2 = vrot.slane %v6447_v26, %v5079_v9 }
0x2dc8   :  { %v5110_v42 = vrot.slane %v6449_v46, %v5079_v9 }
0x2dca   :  { %v5111_v6 = vsel %vm719_vm0, %v5110_v42, %v5106_v2 }
0x2dcb   :  { %5237 = vst.msk [vmem:[%s8987_s12 + $0x2] sm:$0x3] %vm5087_vm1, %v5111_v6 }

</bundles_post_ra>
